<compile_context>
chip_gen: v6e
topology: v6e:2x2x1
jax: 0.10.0
libtpu: 0.0.40
codegen_flags: <defaults>
</compile_context>

<pallas_src>
import math

import jax
import jax.numpy as jnp
import numpy as np
from jax import lax
from jax.experimental import pallas as pl
from jax.experimental.pallas import tpu as pltpu

# Keep the pure-JAX reference and the in-kernel matmuls at full f32 precision
# so the numeric check is meaningful on TPU.
jax.config.update("jax_default_matmul_precision", "highest")


def _pick_b_tile(B, max_tile=8):
    """Largest divisor of B that is <= max_tile."""
    for t in range(min(B, max_tile), 0, -1):
        if B % t == 0:
            return t
    return 1


def _split_qkv(wqkv, bqkv, H):
    """(NL, H, 3H), (NL, 1, 3H) -> per-projection (q, k, v) weights/biases."""
    return (wqkv[:, :, 0:H], bqkv[:, :, 0:H],
            wqkv[:, :, H:2 * H], bqkv[:, :, H:2 * H],
            wqkv[:, :, 2 * H:3 * H], bqkv[:, :, 2 * H:3 * H])


def _build_weight_list(params, H):
    """Order must match the kernel signature."""
    ws = []
    for attn, side in (("g2s", "g"), ("s2g", "s")):
        wq, bq, wk, bk, wv, bv = _split_qkv(params[f"{attn}_wqkv"],
                                            params[f"{attn}_bqkv"], H)
        ws += [wq, bq, wk, bk, wv, bv, params[f"{attn}_wo"], params[f"{attn}_bo"]]
        ws += [params[f"{side}_ln1_g"], params[f"{side}_ln1_b"]]
        ws += [params[f"{side}_ffn_w1"], params[f"{side}_ffn_b1"],
               params[f"{side}_ffn_w2"], params[f"{side}_ffn_b2"]]
        ws += [params[f"{side}_ln2_g"], params[f"{side}_ln2_b"]]
    gate_w = params["gate_w"]                       # (2H, H)
    ws += [gate_w[0:H, :], gate_w[H:2 * H, :], params["gate_b"],
           params["out_w"], params["out_b"]]
    return ws


def _make_kernel(num_heads, hidden_dim, seq_len, b_tile):
    H = hidden_dim
    NH = num_heads
    HD = H // NH
    L = seq_len
    BT = b_tile
    N = BT * L                     # rows per grid step; row = b * L + l
    scale = 1.0 / math.sqrt(HD)
    f32 = jnp.float32

    def _erf(x):
        # Abramowitz & Stegun 7.1.26, |err| < 1.5e-7; matches nn.GELU() exact
        # (erf) form using only exp/mul/add (safe Mosaic ops).
        a1, a2, a3, a4, a5 = (0.254829592, -0.284496736, 1.421413741,
                              -1.453152027, 1.061405429)
        p = 0.3275911
        ax = jnp.abs(x)
        t = 1.0 / (1.0 + p * ax)
        poly = ((((a5 * t + a4) * t + a3) * t + a2) * t + a1) * t
        y = 1.0 - poly * jnp.exp(-ax * ax)
        return jnp.where(x >= 0, y, -y)

    def gelu_exact(x):
        return 0.5 * x * (1.0 + _erf(x * 0.7071067811865476))

    def layernorm(x, gamma, beta):
        mu = jnp.mean(x, axis=-1, keepdims=True)
        xc = x - mu
        var = jnp.mean(xc * xc, axis=-1, keepdims=True)
        return xc * lax.rsqrt(var + 1e-5) * gamma + beta

    def mha(xq, xkv, wq_ref, bq_ref, wk_ref, bk_ref, wv_ref, bv_ref,
            wo_ref, bo_ref):
        # xq, xkv: (N, H) flat rows (row = b*L + l).  Full-width projections
        # on the whole slab (no in-kernel weight slicing).
        q = (jnp.dot(xq, wq_ref[...], preferred_element_type=f32)
             + bq_ref[...]) * scale
        k = jnp.dot(xkv, wk_ref[...], preferred_element_type=f32) + bk_ref[...]
        v = jnp.dot(xkv, wv_ref[...], preferred_element_type=f32) + bv_ref[...]

        o_rows = []        # per batch element: (L, H) concat of heads
        p_avgs = []        # per batch element: (L, L) head-averaged probs
        for b in range(BT):
            r0 = b * L
            qb = q[r0:r0 + L, :]
            kb = k[r0:r0 + L, :]
            vb = v[r0:r0 + L, :]
            heads = []
            p_sum = None
            for h in range(NH):
                c0 = h * HD
                # scores = q_h @ k_h^T without an explicit transpose.
                sc = lax.dot_general(qb[:, c0:c0 + HD], kb[:, c0:c0 + HD],
                                     (((1,), (1,)), ((), ())),
                                     preferred_element_type=f32)
                sc = sc - jnp.max(sc, axis=-1, keepdims=True)
                e = jnp.exp(sc)
                p = e / jnp.sum(e, axis=-1, keepdims=True)
                heads.append(jnp.dot(p, vb[:, c0:c0 + HD],
                                     preferred_element_type=f32))
                p_sum = p if p_sum is None else p_sum + p
            o_rows.append(jnp.concatenate(heads, axis=-1))      # (L, H)
            p_avgs.append(p_sum * (1.0 / NH))
        o = jnp.concatenate(o_rows, axis=0)                      # (N, H)
        # Single out-projection with full K=H contraction.
        attn_out = jnp.dot(o, wo_ref[...], preferred_element_type=f32) + bo_ref[...]
        return attn_out, p_avgs

    def ffn(x, w1, b1, w2, b2):
        h1 = jnp.dot(x, w1, preferred_element_type=f32) + b1
        h1 = gelu_exact(h1)
        return jnp.dot(h1, w2, preferred_element_type=f32) + b2

    def kernel(g_ref, s_ref,
               g_wq, g_bq, g_wk, g_bk, g_wv, g_bv, g_wo, g_bo,
               g_ln1_g, g_ln1_b, g_ffn_w1, g_ffn_b1, g_ffn_w2, g_ffn_b2,
               g_ln2_g, g_ln2_b,
               s_wq, s_bq, s_wk, s_bk, s_wv, s_bv, s_wo, s_bo,
               s_ln1_g, s_ln1_b, s_ffn_w1, s_ffn_b1, s_ffn_w2, s_ffn_b2,
               s_ln2_g, s_ln2_b,
               gate_wg, gate_ws, gate_b, out_w, out_b,
               out_ref, g2s_attn_ref, s2g_attn_ref,
               g_scr, s_scr):
        l_idx = pl.program_id(1)
        n_layers = pl.num_programs(1)

        # (Re-)initialize the activation carries at the first layer step of
        # every batch block.  Inputs arrive already flattened to (N, H).
        @pl.when(l_idx == 0)
        def _init():
            g_scr[...] = g_ref[...]
            s_scr[...] = s_ref[...]

        g = g_scr[...]
        s = s_scr[...]

        # --- graph attends to sequence ---
        g_res = g
        g_attn, g2s_ps = mha(g, s, g_wq, g_bq, g_wk, g_bk, g_wv, g_bv,
                             g_wo, g_bo)
        for b in range(BT):
            g2s_attn_ref[b] = g2s_ps[b]
        g1 = layernorm(g + g_attn, g_ln1_g[...], g_ln1_b[...])
        g_f = ffn(g1, g_ffn_w1[...], g_ffn_b1[...], g_ffn_w2[...], g_ffn_b2[...])
        g2 = layernorm(g1 + g_f + g_res, g_ln2_g[...], g_ln2_b[...])

        # --- sequence attends to (updated) graph ---
        s_res = s
        s_attn, s2g_ps = mha(s, g2, s_wq, s_bq, s_wk, s_bk, s_wv, s_bv,
                             s_wo, s_bo)
        for b in range(BT):
            s2g_attn_ref[b] = s2g_ps[b]
        s1 = layernorm(s + s_attn, s_ln1_g[...], s_ln1_b[...])
        s_f = ffn(s1, s_ffn_w1[...], s_ffn_b1[...], s_ffn_w2[...], s_ffn_b2[...])
        s2 = layernorm(s1 + s_f + s_res, s_ln2_g[...], s_ln2_b[...])

        # Carry to the next layer step only if one follows (skip the redundant
        # VMEM store on the last layer).
        @pl.when(l_idx + 1 < n_layers)
        def _carry():
            g_scr[...] = g2
            s_scr[...] = s2

        # Fusion gate + output projection only after the last layer.
        @pl.when(l_idx == n_layers - 1)
        def _finalize():
            # sigmoid(Linear(cat([g, s], -1))) with the concat folded into two
            # full-width matmuls (weights pre-split in the wrapper).
            gate_pre = (jnp.dot(g2, gate_wg[...], preferred_element_type=f32)
                        + jnp.dot(s2, gate_ws[...], preferred_element_type=f32)
                        + gate_b[...])
            gate = 1.0 / (1.0 + jnp.exp(-gate_pre))
            fused = gate * g2 + (1.0 - gate) * s2
            out_ref[...] = (jnp.dot(fused, out_w[...], preferred_element_type=f32)
                            + out_b[...])

    return kernel


def cross_transformer_fusion(graph_feat, seq_feat, params, num_heads,
                             b_tile=None, vmem_limit_bytes=None):
    """graph_feat, seq_feat: (L, B, H) float32 (PyTorch batch_first=False layout).

    Returns (output (L,B,H), g2s_attn (NL,B,L,L), s2g_attn (NL,B,L,L)).
    """
    L, B, H = graph_feat.shape
    assert seq_feat.shape == graph_feat.shape
    NL = params["g2s_wqkv"].shape[0]
    if b_tile is None:
        b_tile = _pick_b_tile(B)
    assert B % b_tile == 0
    N = b_tile * L

    # (L, B, H) -> flat (B*L, H) row-major (row = b*L + l).  Wrapper-side
    # transpose/reshape is free XLA work; the kernel sees a 2-D slab and never
    # reshapes.
    g = jnp.transpose(graph_feat, (1, 0, 2)).reshape(B * L, H)
    s = jnp.transpose(seq_feat, (1, 0, 2)).reshape(B * L, H)

    weights = _build_weight_list(params, H)

    def layer_spec(arr):
        # (NL, d0, d1) -> stream one layer per grid step along the layer axis.
        _, d0, d1 = arr.shape
        return pl.BlockSpec((None, d0, d1), lambda b, l: (l, 0, 0))

    def shared_spec(arr):
        d0, d1 = arr.shape
        return pl.BlockSpec((d0, d1), lambda b, l: (0, 0))

    w_specs = [layer_spec(w) if w.ndim == 3 else shared_spec(w) for w in weights]

    in_specs = ([pl.BlockSpec((N, H), lambda b, l: (b, 0)),
                 pl.BlockSpec((N, H), lambda b, l: (b, 0))]
                + w_specs)
    out_shape = (
        jax.ShapeDtypeStruct((B * L, H), jnp.float32),       # fused output
        jax.ShapeDtypeStruct((NL, B, L, L), jnp.float32),    # g2s attn (avg heads)
        jax.ShapeDtypeStruct((NL, B, L, L), jnp.float32),    # s2g attn (avg heads)
    )
    out_specs = (
        pl.BlockSpec((N, H), lambda b, l: (b, 0)),
        pl.BlockSpec((None, b_tile, L, L), lambda b, l: (l, b, 0, 0)),
        pl.BlockSpec((None, b_tile, L, L), lambda b, l: (l, b, 0, 0)),
    )

    kernel = _make_kernel(num_heads, H, L, b_tile)
    out, g2s_w, s2g_w = pl.pallas_call(
        kernel,
        out_shape=out_shape,
        grid=(B // b_tile, NL),
        in_specs=in_specs,
        out_specs=out_specs,
        scratch_shapes=[pltpu.VMEM((N, H), jnp.float32),   # g carry
                        pltpu.VMEM((N, H), jnp.float32)],  # s carry
        compiler_params=pltpu.CompilerParams(
            dimension_semantics=("parallel", "arbitrary"),
            vmem_limit_bytes=vmem_limit_bytes),
    )(g, s, *weights)

    out = jnp.transpose(out.reshape(B, L, H), (1, 0, 2))
    return out, g2s_w, s2g_w


def init_params(key, hidden_dim, num_heads, num_layers):
    """Deterministic synthetic parameters with the shapes implied by __init__."""
    H = hidden_dim
    NL = num_layers
    keys = iter(jax.random.split(key, 512))

    def rnd(shape, scale=0.05):
        return (scale * jax.random.normal(next(keys), shape)).astype(jnp.float32)

    def stack(fn):
        return jnp.stack([fn() for _ in range(NL)], axis=0)

    p = {}
    for side in ("g", "s"):
        attn = "g2s" if side == "g" else "s2g"
        p[f"{attn}_wqkv"] = stack(lambda: rnd((3 * H, H)).T)          # (NL, H, 3H)
        p[f"{attn}_bqkv"] = stack(lambda: rnd((1, 3 * H)))            # (NL, 1, 3H)
        p[f"{attn}_wo"] = stack(lambda: rnd((H, H)).T)                # (NL, H, H)
        p[f"{attn}_bo"] = stack(lambda: rnd((1, H)))                  # (NL, 1, H)
        p[f"{side}_ln1_g"] = stack(lambda: 1.0 + rnd((1, H), 0.02))   # (NL, 1, H)
        p[f"{side}_ln1_b"] = stack(lambda: rnd((1, H), 0.02))
        p[f"{side}_ffn_w1"] = stack(lambda: rnd((4 * H, H)).T)        # (NL, H, 4H)
        p[f"{side}_ffn_b1"] = stack(lambda: rnd((1, 4 * H)))
        p[f"{side}_ffn_w2"] = stack(lambda: rnd((H, 4 * H)).T)        # (NL, 4H, H)
        p[f"{side}_ffn_b2"] = stack(lambda: rnd((1, H)))
        p[f"{side}_ln2_g"] = stack(lambda: 1.0 + rnd((1, H), 0.02))
        p[f"{side}_ln2_b"] = stack(lambda: rnd((1, H), 0.02))
    p["gate_w"] = rnd((H, 2 * H)).T   # (2H, H)
    p["gate_b"] = rnd((1, H))
    p["out_w"] = rnd((H, H)).T        # (H, H)
    p["out_b"] = rnd((1, H))
    return p


def reference(graph_feat, seq_feat, params, num_heads):
    """Pure-JAX mirror of the PyTorch forward (eval mode), for a correctness check."""
    H = graph_feat.shape[-1]
    NH = num_heads
    HD = H // NH
    NL = params["g2s_wqkv"].shape[0]

    def layernorm(x, g, b):
        mu = x.mean(-1, keepdims=True)
        var = ((x - mu) ** 2).mean(-1, keepdims=True)
        return (x - mu) / jnp.sqrt(var + 1e-5) * g + b

    def mha(q_in, kv_in, wqkv, bqkv, wo, bo):
        Lq, Lk = q_in.shape[0], kv_in.shape[0]
        q = q_in @ wqkv[:, :H] + bqkv[:, :H]
        k = kv_in @ wqkv[:, H:2 * H] + bqkv[:, H:2 * H]
        v = kv_in @ wqkv[:, 2 * H:] + bqkv[:, 2 * H:]
        q = q.reshape(Lq, NH, HD).transpose(1, 0, 2) / np.sqrt(HD)
        k = k.reshape(Lk, NH, HD).transpose(1, 0, 2)
        v = v.reshape(Lk, NH, HD).transpose(1, 0, 2)
        pr = jax.nn.softmax(jnp.einsum("hqd,hkd->hqk", q, k), axis=-1)
        o = jnp.einsum("hqk,hkd->hqd", pr, v).transpose(1, 0, 2).reshape(Lq, H)
        return o @ wo + bo, pr.mean(0)

    def ffn(x, w1, b1, w2, b2):
        return jax.nn.gelu(x @ w1 + b1, approximate=False) @ w2 + b2

    def single(g, s):
        g2s_l, s2g_l = [], []
        for l in range(NL):
            g_res = g
            ga, gp = mha(g, s, params["g2s_wqkv"][l], params["g2s_bqkv"][l],
                         params["g2s_wo"][l], params["g2s_bo"][l])
            g2s_l.append(gp)
            g = layernorm(g + ga, params["g_ln1_g"][l], params["g_ln1_b"][l])
            g = layernorm(g + ffn(g, params["g_ffn_w1"][l], params["g_ffn_b1"][l],
                                  params["g_ffn_w2"][l], params["g_ffn_b2"][l]) + g_res,
                          params["g_ln2_g"][l], params["g_ln2_b"][l])
            s_res = s
            sa, sp = mha(s, g, params["s2g_wqkv"][l], params["s2g_bqkv"][l],
                         params["s2g_wo"][l], params["s2g_bo"][l])
            s2g_l.append(sp)
            s = layernorm(s + sa, params["s_ln1_g"][l], params["s_ln1_b"][l])
            s = layernorm(s + ffn(s, params["s_ffn_w1"][l], params["s_ffn_b1"][l],
                                  params["s_ffn_w2"][l], params["s_ffn_b2"][l]) + s_res,
                          params["s_ln2_g"][l], params["s_ln2_b"][l])
        combined = jnp.concatenate([g, s], axis=-1)
        gate = jax.nn.sigmoid(combined @ params["gate_w"] + params["gate_b"])
        fused = gate * g + (1 - gate) * s
        return fused @ params["out_w"] + params["out_b"], jnp.stack(g2s_l), jnp.stack(s2g_l)

    gB = jnp.transpose(graph_feat, (1, 0, 2))
    sB = jnp.transpose(seq_feat, (1, 0, 2))
    out, g2s, s2g = jax.vmap(single)(gB, sB)
    return (jnp.transpose(out, (1, 0, 2)),
            jnp.transpose(g2s, (1, 0, 2, 3)),
            jnp.transpose(s2g, (1, 0, 2, 3)))


if __name__ == "__main__":
    # Small shapes: seq len L=8, batch B=4, hidden H=32, heads=4, layers=2.
    # b_tile=2 -> grid = (2 batch blocks, 2 layers): exercises both the layer
    # carry in VMEM scratch and its re-initialization per batch block.
    L, B, H, NH, NL = 8, 4, 32, 4, 2
    key = jax.random.PRNGKey(0)
    k_g, k_s, k_p = jax.random.split(key, 3)
    graph_feat = jax.random.normal(k_g, (L, B, H), dtype=jnp.float32)
    seq_feat = jax.random.normal(k_s, (L, B, H), dtype=jnp.float32)
    params = init_params(k_p, H, NH, NL)

    out, g2s_w, s2g_w = cross_transformer_fusion(graph_feat, seq_feat, params, NH,
                                                 b_tile=2)
    out = jax.block_until_ready(out)
    g2s_w = jax.block_until_ready(g2s_w)
    s2g_w = jax.block_until_ready(s2g_w)

    ref_out, ref_g2s, ref_s2g = reference(graph_feat, seq_feat, params, NH)
    np.testing.assert_allclose(np.asarray(out), np.asarray(ref_out), rtol=3e-4, atol=3e-4)
    np.testing.assert_allclose(np.asarray(g2s_w), np.asarray(ref_g2s), rtol=3e-4, atol=3e-4)
    np.testing.assert_allclose(np.asarray(s2g_w), np.asarray(ref_s2g), rtol=3e-4, atol=3e-4)

    print("KERNEL_OK")
</pallas_src>

<mosaic_0001>
module attributes {stable_mosaic.version = 11 : i64} {
  func.func @kernel(%arg0: i32, %arg1: i32, %arg2: memref<16x32xf32, #tpu.memory_space<vmem>>, %arg3: memref<16x32xf32, #tpu.memory_space<vmem>>, %arg4: memref<1x32x32xf32, #tpu.memory_space<vmem>>, %arg5: memref<1x1x32xf32, #tpu.memory_space<vmem>>, %arg6: memref<1x32x32xf32, #tpu.memory_space<vmem>>, %arg7: memref<1x1x32xf32, #tpu.memory_space<vmem>>, %arg8: memref<1x32x32xf32, #tpu.memory_space<vmem>>, %arg9: memref<1x1x32xf32, #tpu.memory_space<vmem>>, %arg10: memref<1x32x32xf32, #tpu.memory_space<vmem>>, %arg11: memref<1x1x32xf32, #tpu.memory_space<vmem>>, %arg12: memref<1x1x32xf32, #tpu.memory_space<vmem>>, %arg13: memref<1x1x32xf32, #tpu.memory_space<vmem>>, %arg14: memref<1x32x128xf32, #tpu.memory_space<vmem>>, %arg15: memref<1x1x128xf32, #tpu.memory_space<vmem>>, %arg16: memref<1x128x32xf32, #tpu.memory_space<vmem>>, %arg17: memref<1x1x32xf32, #tpu.memory_space<vmem>>, %arg18: memref<1x1x32xf32, #tpu.memory_space<vmem>>, %arg19: memref<1x1x32xf32, #tpu.memory_space<vmem>>, %arg20: memref<1x32x32xf32, #tpu.memory_space<vmem>>, %arg21: memref<1x1x32xf32, #tpu.memory_space<vmem>>, %arg22: memref<1x32x32xf32, #tpu.memory_space<vmem>>, %arg23: memref<1x1x32xf32, #tpu.memory_space<vmem>>, %arg24: memref<1x32x32xf32, #tpu.memory_space<vmem>>, %arg25: memref<1x1x32xf32, #tpu.memory_space<vmem>>, %arg26: memref<1x32x32xf32, #tpu.memory_space<vmem>>, %arg27: memref<1x1x32xf32, #tpu.memory_space<vmem>>, %arg28: memref<1x1x32xf32, #tpu.memory_space<vmem>>, %arg29: memref<1x1x32xf32, #tpu.memory_space<vmem>>, %arg30: memref<1x32x128xf32, #tpu.memory_space<vmem>>, %arg31: memref<1x1x128xf32, #tpu.memory_space<vmem>>, %arg32: memref<1x128x32xf32, #tpu.memory_space<vmem>>, %arg33: memref<1x1x32xf32, #tpu.memory_space<vmem>>, %arg34: memref<1x1x32xf32, #tpu.memory_space<vmem>>, %arg35: memref<1x1x32xf32, #tpu.memory_space<vmem>>, %arg36: memref<32x32xf32, #tpu.memory_space<vmem>>, %arg37: memref<32x32xf32, #tpu.memory_space<vmem>>, %arg38: memref<1x32xf32, #tpu.memory_space<vmem>>, %arg39: memref<32x32xf32, #tpu.memory_space<vmem>>, %arg40: memref<1x32xf32, #tpu.memory_space<vmem>>, %arg41: memref<16x32xf32, #tpu.memory_space<vmem>>, %arg42: memref<1x2x8x8xf32, #tpu.memory_space<vmem>>, %arg43: memref<1x2x8x8xf32, #tpu.memory_space<vmem>>, %arg44: memref<16x32xf32, #tpu.memory_space<vmem>>, %arg45: memref<16x32xf32, #tpu.memory_space<vmem>>) attributes {dimension_semantics = [#tpu.dimension_semantics<parallel>, #tpu.dimension_semantics<arbitrary>], iteration_bounds = array<i64: 2, 2>, scalar_prefetch = 0 : i64, scratch_operands = 2 : i64, tpu.core_type = #tpu.core_type<tc>, window_params = [{transform_indices = @transform_0, window_bounds = array<i64: 16, 32>}, {transform_indices = @transform_1, window_bounds = array<i64: 16, 32>}, {transform_indices = @transform_2, window_bounds = array<i64: 1, 32, 32>}, {transform_indices = @transform_3, window_bounds = array<i64: 1, 1, 32>}, {transform_indices = @transform_4, window_bounds = array<i64: 1, 32, 32>}, {transform_indices = @transform_5, window_bounds = array<i64: 1, 1, 32>}, {transform_indices = @transform_6, window_bounds = array<i64: 1, 32, 32>}, {transform_indices = @transform_7, window_bounds = array<i64: 1, 1, 32>}, {transform_indices = @transform_8, window_bounds = array<i64: 1, 32, 32>}, {transform_indices = @transform_9, window_bounds = array<i64: 1, 1, 32>}, {transform_indices = @transform_10, window_bounds = array<i64: 1, 1, 32>}, {transform_indices = @transform_11, window_bounds = array<i64: 1, 1, 32>}, {transform_indices = @transform_12, window_bounds = array<i64: 1, 32, 128>}, {transform_indices = @transform_13, window_bounds = array<i64: 1, 1, 128>}, {transform_indices = @transform_14, window_bounds = array<i64: 1, 128, 32>}, {transform_indices = @transform_15, window_bounds = array<i64: 1, 1, 32>}, {transform_indices = @transform_16, window_bounds = array<i64: 1, 1, 32>}, {transform_indices = @transform_17, window_bounds = array<i64: 1, 1, 32>}, {transform_indices = @transform_18, window_bounds = array<i64: 1, 32, 32>}, {transform_indices = @transform_19, window_bounds = array<i64: 1, 1, 32>}, {transform_indices = @transform_20, window_bounds = array<i64: 1, 32, 32>}, {transform_indices = @transform_21, window_bounds = array<i64: 1, 1, 32>}, {transform_indices = @transform_22, window_bounds = array<i64: 1, 32, 32>}, {transform_indices = @transform_23, window_bounds = array<i64: 1, 1, 32>}, {transform_indices = @transform_24, window_bounds = array<i64: 1, 32, 32>}, {transform_indices = @transform_25, window_bounds = array<i64: 1, 1, 32>}, {transform_indices = @transform_26, window_bounds = array<i64: 1, 1, 32>}, {transform_indices = @transform_27, window_bounds = array<i64: 1, 1, 32>}, {transform_indices = @transform_28, window_bounds = array<i64: 1, 32, 128>}, {transform_indices = @transform_29, window_bounds = array<i64: 1, 1, 128>}, {transform_indices = @transform_30, window_bounds = array<i64: 1, 128, 32>}, {transform_indices = @transform_31, window_bounds = array<i64: 1, 1, 32>}, {transform_indices = @transform_32, window_bounds = array<i64: 1, 1, 32>}, {transform_indices = @transform_33, window_bounds = array<i64: 1, 1, 32>}, {pipeline_mode = #tpu.pipeline_mode<synchronous>, transform_indices = @transform_34, window_bounds = array<i64: 32, 32>}, {pipeline_mode = #tpu.pipeline_mode<synchronous>, transform_indices = @transform_35, window_bounds = array<i64: 32, 32>}, {pipeline_mode = #tpu.pipeline_mode<synchronous>, transform_indices = @transform_36, window_bounds = array<i64: 1, 32>}, {pipeline_mode = #tpu.pipeline_mode<synchronous>, transform_indices = @transform_37, window_bounds = array<i64: 32, 32>}, {pipeline_mode = #tpu.pipeline_mode<synchronous>, transform_indices = @transform_38, window_bounds = array<i64: 1, 32>}, {transform_indices = @transform_39, window_bounds = array<i64: 16, 32>}, {transform_indices = @transform_40, window_bounds = array<i64: 1, 2, 8, 8>}, {transform_indices = @transform_41, window_bounds = array<i64: 1, 2, 8, 8>}]} {
    %c0_i32 = arith.constant 0 : i32
    %0 = arith.cmpi eq, %arg1, %c0_i32 : i32
    %1 = arith.extui %0 : i1 to i32
    %c0_i32_0 = arith.constant 0 : i32
    %2 = arith.cmpi ne, %1, %c0_i32_0 : i32
    scf.if %2 {
      %c0_249 = arith.constant 0 : index
      %c0_250 = arith.constant 0 : index
      %556 = vector.load %arg2[%c0_249, %c0_250] : memref<16x32xf32, #tpu.memory_space<vmem>>, vector<16x32xf32>
      %c0_251 = arith.constant 0 : index
      %c0_252 = arith.constant 0 : index
      %557 = vector.load %arg44[%c0_251, %c0_252] : memref<16x32xf32, #tpu.memory_space<vmem>>, vector<16x32xf32>
      tpu.vector_store %arg44[%c0_251, %c0_252], %556 {strides = array<i32>} : memref<16x32xf32, #tpu.memory_space<vmem>>, vector<16x32xf32>,
      %c0_253 = arith.constant 0 : index
      %c0_254 = arith.constant 0 : index
      %558 = vector.load %arg3[%c0_253, %c0_254] : memref<16x32xf32, #tpu.memory_space<vmem>>, vector<16x32xf32>
      %c0_255 = arith.constant 0 : index
      %c0_256 = arith.constant 0 : index
      %559 = vector.load %arg45[%c0_255, %c0_256] : memref<16x32xf32, #tpu.memory_space<vmem>>, vector<16x32xf32>
      tpu.vector_store %arg45[%c0_255, %c0_256], %558 {strides = array<i32>} : memref<16x32xf32, #tpu.memory_space<vmem>>, vector<16x32xf32>,
    } else {
    }
    %c0 = arith.constant 0 : index
    %c0_1 = arith.constant 0 : index
    %3 = vector.load %arg44[%c0, %c0_1] : memref<16x32xf32, #tpu.memory_space<vmem>>, vector<16x32xf32>
    %c0_2 = arith.constant 0 : index
    %c0_3 = arith.constant 0 : index
    %4 = vector.load %arg45[%c0_2, %c0_3] : memref<16x32xf32, #tpu.memory_space<vmem>>, vector<16x32xf32>
    %c0_4 = arith.constant 0 : index
    %c0_5 = arith.constant 0 : index
    %c0_6 = arith.constant 0 : index
    %5 = vector.load %arg4[%c0_4, %c0_5, %c0_6] : memref<1x32x32xf32, #tpu.memory_space<vmem>>, vector<1x32x32xf32>
    %6 = vector.shape_cast %5 : vector<1x32x32xf32> to vector<32x32xf32>
    %cst = arith.constant dense<0.000000e+00> : vector<16x32xf32>
    %7 = tpu.matmul %3, %6, %cst {dimension_numbers = #tpu.dot_dimension_numbers<[1], [0], [0], [1], [0, 0, 1, 1], [], []>, precision = #tpu.contract_precision<fp32>} : vector<16x32xf32>, vector<32x32xf32>, vector<16x32xf32> -> vector<16x32xf32>
    %c0_7 = arith.constant 0 : index
    %c0_8 = arith.constant 0 : index
    %c0_9 = arith.constant 0 : index
    %8 = vector.load %arg5[%c0_7, %c0_8, %c0_9] : memref<1x1x32xf32, #tpu.memory_space<vmem>>, vector<1x1x32xf32>
    %9 = vector.shape_cast %8 : vector<1x1x32xf32> to vector<1x32xf32>
    %10 = vector.broadcast %9 : vector<1x32xf32> to vector<16x32xf32>
    %11 = arith.addf %7, %10 : vector<16x32xf32>
    %cst_10 = arith.constant 0.353553385 : f32
    %12 = vector.broadcast %cst_10 : f32 to vector<16x32xf32>
    %13 = arith.mulf %11, %12 : vector<16x32xf32>
    %c0_11 = arith.constant 0 : index
    %c0_12 = arith.constant 0 : index
    %c0_13 = arith.constant 0 : index
    %14 = vector.load %arg6[%c0_11, %c0_12, %c0_13] : memref<1x32x32xf32, #tpu.memory_space<vmem>>, vector<1x32x32xf32>
    %15 = vector.shape_cast %14 : vector<1x32x32xf32> to vector<32x32xf32>
    %cst_14 = arith.constant dense<0.000000e+00> : vector<16x32xf32>
    %16 = tpu.matmul %4, %15, %cst_14 {dimension_numbers = #tpu.dot_dimension_numbers<[1], [0], [0], [1], [0, 0, 1, 1], [], []>, precision = #tpu.contract_precision<fp32>} : vector<16x32xf32>, vector<32x32xf32>, vector<16x32xf32> -> vector<16x32xf32>
    %c0_15 = arith.constant 0 : index
    %c0_16 = arith.constant 0 : index
    %c0_17 = arith.constant 0 : index
    %17 = vector.load %arg7[%c0_15, %c0_16, %c0_17] : memref<1x1x32xf32, #tpu.memory_space<vmem>>, vector<1x1x32xf32>
    %18 = vector.shape_cast %17 : vector<1x1x32xf32> to vector<1x32xf32>
    %19 = vector.broadcast %18 : vector<1x32xf32> to vector<16x32xf32>
    %20 = arith.addf %16, %19 : vector<16x32xf32>
    %c0_18 = arith.constant 0 : index
    %c0_19 = arith.constant 0 : index
    %c0_20 = arith.constant 0 : index
    %21 = vector.load %arg8[%c0_18, %c0_19, %c0_20] : memref<1x32x32xf32, #tpu.memory_space<vmem>>, vector<1x32x32xf32>
    %22 = vector.shape_cast %21 : vector<1x32x32xf32> to vector<32x32xf32>
    %cst_21 = arith.constant dense<0.000000e+00> : vector<16x32xf32>
    %23 = tpu.matmul %4, %22, %cst_21 {dimension_numbers = #tpu.dot_dimension_numbers<[1], [0], [0], [1], [0, 0, 1, 1], [], []>, precision = #tpu.contract_precision<fp32>} : vector<16x32xf32>, vector<32x32xf32>, vector<16x32xf32> -> vector<16x32xf32>
    %c0_22 = arith.constant 0 : index
    %c0_23 = arith.constant 0 : index
    %c0_24 = arith.constant 0 : index
    %24 = vector.load %arg9[%c0_22, %c0_23, %c0_24] : memref<1x1x32xf32, #tpu.memory_space<vmem>>, vector<1x1x32xf32>
    %25 = vector.shape_cast %24 : vector<1x1x32xf32> to vector<1x32xf32>
    %26 = vector.broadcast %25 : vector<1x32xf32> to vector<16x32xf32>
    %27 = arith.addf %23, %26 : vector<16x32xf32>
    %28 = vector.extract_strided_slice %13 {offsets = [0, 0], sizes = [8, 32], strides = [1, 1]} : vector<16x32xf32> to vector<8x32xf32>
    %29 = vector.extract_strided_slice %20 {offsets = [0, 0], sizes = [8, 32], strides = [1, 1]} : vector<16x32xf32> to vector<8x32xf32>
    %30 = vector.extract_strided_slice %27 {offsets = [0, 0], sizes = [8, 32], strides = [1, 1]} : vector<16x32xf32> to vector<8x32xf32>
    %31 = vector.extract_strided_slice %28 {offsets = [0, 0], sizes = [8, 8], strides = [1, 1]} : vector<8x32xf32> to vector<8x8xf32>
    %32 = vector.extract_strided_slice %29 {offsets = [0, 0], sizes = [8, 8], strides = [1, 1]} : vector<8x32xf32> to vector<8x8xf32>
    %cst_25 = arith.constant dense<0.000000e+00> : vector<8x8xf32>
    %33 = tpu.matmul %31, %32, %cst_25 {dimension_numbers = #tpu.dot_dimension_numbers<[1], [1], [0], [0], [0, 0, 1, 0], [], []>, precision = #tpu.contract_precision<fp32>} : vector<8x8xf32>, vector<8x8xf32>, vector<8x8xf32> -> vector<8x8xf32>
    %cst_26 = arith.constant dense<0xFF800000> : vector<8xf32>
    %34 = vector.multi_reduction <maximumf>, %33, %cst_26 [1] : vector<8x8xf32> to vector<8xf32>
    %35 = vector.shape_cast %34 : vector<8xf32> to vector<8x1xf32>
    %36 = vector.broadcast %35 : vector<8x1xf32> to vector<8x8xf32>
    %37 = arith.subf %33, %36 : vector<8x8xf32>
    %38 = math.exp %37 : vector<8x8xf32>
    %cst_27 = arith.constant dense<0.000000e+00> : vector<8xf32>
    %39 = vector.multi_reduction <add>, %38, %cst_27 [1] : vector<8x8xf32> to vector<8xf32>
    %40 = vector.shape_cast %39 : vector<8xf32> to vector<8x1xf32>
    %41 = vector.broadcast %40 : vector<8x1xf32> to vector<8x8xf32>
    %42 = arith.divf %38, %41 : vector<8x8xf32>
    %43 = vector.extract_strided_slice %30 {offsets = [0, 0], sizes = [8, 8], strides = [1, 1]} : vector<8x32xf32> to vector<8x8xf32>
    %cst_28 = arith.constant dense<0.000000e+00> : vector<8x8xf32>
    %44 = tpu.matmul %42, %43, %cst_28 {dimension_numbers = #tpu.dot_dimension_numbers<[1], [0], [0], [1], [0, 0, 1, 1], [], []>, precision = #tpu.contract_precision<fp32>} : vector<8x8xf32>, vector<8x8xf32>, vector<8x8xf32> -> vector<8x8xf32>
    %45 = vector.extract_strided_slice %28 {offsets = [0, 8], sizes = [8, 8], strides = [1, 1]} : vector<8x32xf32> to vector<8x8xf32>
    %46 = vector.extract_strided_slice %29 {offsets = [0, 8], sizes = [8, 8], strides = [1, 1]} : vector<8x32xf32> to vector<8x8xf32>
    %cst_29 = arith.constant dense<0.000000e+00> : vector<8x8xf32>
    %47 = tpu.matmul %45, %46, %cst_29 {dimension_numbers = #tpu.dot_dimension_numbers<[1], [1], [0], [0], [0, 0, 1, 0], [], []>, precision = #tpu.contract_precision<fp32>} : vector<8x8xf32>, vector<8x8xf32>, vector<8x8xf32> -> vector<8x8xf32>
    %cst_30 = arith.constant dense<0xFF800000> : vector<8xf32>
    %48 = vector.multi_reduction <maximumf>, %47, %cst_30 [1] : vector<8x8xf32> to vector<8xf32>
    %49 = vector.shape_cast %48 : vector<8xf32> to vector<8x1xf32>
    %50 = vector.broadcast %49 : vector<8x1xf32> to vector<8x8xf32>
    %51 = arith.subf %47, %50 : vector<8x8xf32>
    %52 = math.exp %51 : vector<8x8xf32>
    %cst_31 = arith.constant dense<0.000000e+00> : vector<8xf32>
    %53 = vector.multi_reduction <add>, %52, %cst_31 [1] : vector<8x8xf32> to vector<8xf32>
    %54 = vector.shape_cast %53 : vector<8xf32> to vector<8x1xf32>
    %55 = vector.broadcast %54 : vector<8x1xf32> to vector<8x8xf32>
    %56 = arith.divf %52, %55 : vector<8x8xf32>
    %57 = vector.extract_strided_slice %30 {offsets = [0, 8], sizes = [8, 8], strides = [1, 1]} : vector<8x32xf32> to vector<8x8xf32>
    %cst_32 = arith.constant dense<0.000000e+00> : vector<8x8xf32>
    %58 = tpu.matmul %56, %57, %cst_32 {dimension_numbers = #tpu.dot_dimension_numbers<[1], [0], [0], [1], [0, 0, 1, 1], [], []>, precision = #tpu.contract_precision<fp32>} : vector<8x8xf32>, vector<8x8xf32>, vector<8x8xf32> -> vector<8x8xf32>
    %59 = arith.addf %42, %56 : vector<8x8xf32>
    %60 = vector.extract_strided_slice %28 {offsets = [0, 16], sizes = [8, 8], strides = [1, 1]} : vector<8x32xf32> to vector<8x8xf32>
    %61 = vector.extract_strided_slice %29 {offsets = [0, 16], sizes = [8, 8], strides = [1, 1]} : vector<8x32xf32> to vector<8x8xf32>
    %cst_33 = arith.constant dense<0.000000e+00> : vector<8x8xf32>
    %62 = tpu.matmul %60, %61, %cst_33 {dimension_numbers = #tpu.dot_dimension_numbers<[1], [1], [0], [0], [0, 0, 1, 0], [], []>, precision = #tpu.contract_precision<fp32>} : vector<8x8xf32>, vector<8x8xf32>, vector<8x8xf32> -> vector<8x8xf32>
    %cst_34 = arith.constant dense<0xFF800000> : vector<8xf32>
    %63 = vector.multi_reduction <maximumf>, %62, %cst_34 [1] : vector<8x8xf32> to vector<8xf32>
    %64 = vector.shape_cast %63 : vector<8xf32> to vector<8x1xf32>
    %65 = vector.broadcast %64 : vector<8x1xf32> to vector<8x8xf32>
    %66 = arith.subf %62, %65 : vector<8x8xf32>
    %67 = math.exp %66 : vector<8x8xf32>
    %cst_35 = arith.constant dense<0.000000e+00> : vector<8xf32>
    %68 = vector.multi_reduction <add>, %67, %cst_35 [1] : vector<8x8xf32> to vector<8xf32>
    %69 = vector.shape_cast %68 : vector<8xf32> to vector<8x1xf32>
    %70 = vector.broadcast %69 : vector<8x1xf32> to vector<8x8xf32>
    %71 = arith.divf %67, %70 : vector<8x8xf32>
    %72 = vector.extract_strided_slice %30 {offsets = [0, 16], sizes = [8, 8], strides = [1, 1]} : vector<8x32xf32> to vector<8x8xf32>
    %cst_36 = arith.constant dense<0.000000e+00> : vector<8x8xf32>
    %73 = tpu.matmul %71, %72, %cst_36 {dimension_numbers = #tpu.dot_dimension_numbers<[1], [0], [0], [1], [0, 0, 1, 1], [], []>, precision = #tpu.contract_precision<fp32>} : vector<8x8xf32>, vector<8x8xf32>, vector<8x8xf32> -> vector<8x8xf32>
    %74 = arith.addf %59, %71 : vector<8x8xf32>
    %75 = vector.extract_strided_slice %28 {offsets = [0, 24], sizes = [8, 8], strides = [1, 1]} : vector<8x32xf32> to vector<8x8xf32>
    %76 = vector.extract_strided_slice %29 {offsets = [0, 24], sizes = [8, 8], strides = [1, 1]} : vector<8x32xf32> to vector<8x8xf32>
    %cst_37 = arith.constant dense<0.000000e+00> : vector<8x8xf32>
    %77 = tpu.matmul %75, %76, %cst_37 {dimension_numbers = #tpu.dot_dimension_numbers<[1], [1], [0], [0], [0, 0, 1, 0], [], []>, precision = #tpu.contract_precision<fp32>} : vector<8x8xf32>, vector<8x8xf32>, vector<8x8xf32> -> vector<8x8xf32>
    %cst_38 = arith.constant dense<0xFF800000> : vector<8xf32>
    %78 = vector.multi_reduction <maximumf>, %77, %cst_38 [1] : vector<8x8xf32> to vector<8xf32>
    %79 = vector.shape_cast %78 : vector<8xf32> to vector<8x1xf32>
    %80 = vector.broadcast %79 : vector<8x1xf32> to vector<8x8xf32>
    %81 = arith.subf %77, %80 : vector<8x8xf32>
    %82 = math.exp %81 : vector<8x8xf32>
    %cst_39 = arith.constant dense<0.000000e+00> : vector<8xf32>
    %83 = vector.multi_reduction <add>, %82, %cst_39 [1] : vector<8x8xf32> to vector<8xf32>
    %84 = vector.shape_cast %83 : vector<8xf32> to vector<8x1xf32>
    %85 = vector.broadcast %84 : vector<8x1xf32> to vector<8x8xf32>
    %86 = arith.divf %82, %85 : vector<8x8xf32>
    %87 = vector.extract_strided_slice %30 {offsets = [0, 24], sizes = [8, 8], strides = [1, 1]} : vector<8x32xf32> to vector<8x8xf32>
    %cst_40 = arith.constant dense<0.000000e+00> : vector<8x8xf32>
    %88 = tpu.matmul %86, %87, %cst_40 {dimension_numbers = #tpu.dot_dimension_numbers<[1], [0], [0], [1], [0, 0, 1, 1], [], []>, precision = #tpu.contract_precision<fp32>} : vector<8x8xf32>, vector<8x8xf32>, vector<8x8xf32> -> vector<8x8xf32>
    %89 = arith.addf %74, %86 : vector<8x8xf32>
    %90 = tpu.concatenate %44, %58, %73, %88 in 1 : vector<8x8xf32>, vector<8x8xf32>, vector<8x8xf32>, vector<8x8xf32> -> vector<8x32xf32>
    %cst_41 = arith.constant 2.500000e-01 : f32
    %91 = vector.broadcast %cst_41 : f32 to vector<8x8xf32>
    %92 = arith.mulf %89, %91 : vector<8x8xf32>
    %93 = vector.extract_strided_slice %13 {offsets = [8, 0], sizes = [8, 32], strides = [1, 1]} : vector<16x32xf32> to vector<8x32xf32>
    %94 = vector.extract_strided_slice %20 {offsets = [8, 0], sizes = [8, 32], strides = [1, 1]} : vector<16x32xf32> to vector<8x32xf32>
    %95 = vector.extract_strided_slice %27 {offsets = [8, 0], sizes = [8, 32], strides = [1, 1]} : vector<16x32xf32> to vector<8x32xf32>
    %96 = vector.extract_strided_slice %93 {offsets = [0, 0], sizes = [8, 8], strides = [1, 1]} : vector<8x32xf32> to vector<8x8xf32>
    %97 = vector.extract_strided_slice %94 {offsets = [0, 0], sizes = [8, 8], strides = [1, 1]} : vector<8x32xf32> to vector<8x8xf32>
    %cst_42 = arith.constant dense<0.000000e+00> : vector<8x8xf32>
    %98 = tpu.matmul %96, %97, %cst_42 {dimension_numbers = #tpu.dot_dimension_numbers<[1], [1], [0], [0], [0, 0, 1, 0], [], []>, precision = #tpu.contract_precision<fp32>} : vector<8x8xf32>, vector<8x8xf32>, vector<8x8xf32> -> vector<8x8xf32>
    %cst_43 = arith.constant dense<0xFF800000> : vector<8xf32>
    %99 = vector.multi_reduction <maximumf>, %98, %cst_43 [1] : vector<8x8xf32> to vector<8xf32>
    %100 = vector.shape_cast %99 : vector<8xf32> to vector<8x1xf32>
    %101 = vector.broadcast %100 : vector<8x1xf32> to vector<8x8xf32>
    %102 = arith.subf %98, %101 : vector<8x8xf32>
    %103 = math.exp %102 : vector<8x8xf32>
    %cst_44 = arith.constant dense<0.000000e+00> : vector<8xf32>
    %104 = vector.multi_reduction <add>, %103, %cst_44 [1] : vector<8x8xf32> to vector<8xf32>
    %105 = vector.shape_cast %104 : vector<8xf32> to vector<8x1xf32>
    %106 = vector.broadcast %105 : vector<8x1xf32> to vector<8x8xf32>
    %107 = arith.divf %103, %106 : vector<8x8xf32>
    %108 = vector.extract_strided_slice %95 {offsets = [0, 0], sizes = [8, 8], strides = [1, 1]} : vector<8x32xf32> to vector<8x8xf32>
    %cst_45 = arith.constant dense<0.000000e+00> : vector<8x8xf32>
    %109 = tpu.matmul %107, %108, %cst_45 {dimension_numbers = #tpu.dot_dimension_numbers<[1], [0], [0], [1], [0, 0, 1, 1], [], []>, precision = #tpu.contract_precision<fp32>} : vector<8x8xf32>, vector<8x8xf32>, vector<8x8xf32> -> vector<8x8xf32>
    %110 = vector.extract_strided_slice %93 {offsets = [0, 8], sizes = [8, 8], strides = [1, 1]} : vector<8x32xf32> to vector<8x8xf32>
    %111 = vector.extract_strided_slice %94 {offsets = [0, 8], sizes = [8, 8], strides = [1, 1]} : vector<8x32xf32> to vector<8x8xf32>
    %cst_46 = arith.constant dense<0.000000e+00> : vector<8x8xf32>
    %112 = tpu.matmul %110, %111, %cst_46 {dimension_numbers = #tpu.dot_dimension_numbers<[1], [1], [0], [0], [0, 0, 1, 0], [], []>, precision = #tpu.contract_precision<fp32>} : vector<8x8xf32>, vector<8x8xf32>, vector<8x8xf32> -> vector<8x8xf32>
    %cst_47 = arith.constant dense<0xFF800000> : vector<8xf32>
    %113 = vector.multi_reduction <maximumf>, %112, %cst_47 [1] : vector<8x8xf32> to vector<8xf32>
    %114 = vector.shape_cast %113 : vector<8xf32> to vector<8x1xf32>
    %115 = vector.broadcast %114 : vector<8x1xf32> to vector<8x8xf32>
    %116 = arith.subf %112, %115 : vector<8x8xf32>
    %117 = math.exp %116 : vector<8x8xf32>
    %cst_48 = arith.constant dense<0.000000e+00> : vector<8xf32>
    %118 = vector.multi_reduction <add>, %117, %cst_48 [1] : vector<8x8xf32> to vector<8xf32>
    %119 = vector.shape_cast %118 : vector<8xf32> to vector<8x1xf32>
    %120 = vector.broadcast %119 : vector<8x1xf32> to vector<8x8xf32>
    %121 = arith.divf %117, %120 : vector<8x8xf32>
    %122 = vector.extract_strided_slice %95 {offsets = [0, 8], sizes = [8, 8], strides = [1, 1]} : vector<8x32xf32> to vector<8x8xf32>
    %cst_49 = arith.constant dense<0.000000e+00> : vector<8x8xf32>
    %123 = tpu.matmul %121, %122, %cst_49 {dimension_numbers = #tpu.dot_dimension_numbers<[1], [0], [0], [1], [0, 0, 1, 1], [], []>, precision = #tpu.contract_precision<fp32>} : vector<8x8xf32>, vector<8x8xf32>, vector<8x8xf32> -> vector<8x8xf32>
    %124 = arith.addf %107, %121 : vector<8x8xf32>
    %125 = vector.extract_strided_slice %93 {offsets = [0, 16], sizes = [8, 8], strides = [1, 1]} : vector<8x32xf32> to vector<8x8xf32>
    %126 = vector.extract_strided_slice %94 {offsets = [0, 16], sizes = [8, 8], strides = [1, 1]} : vector<8x32xf32> to vector<8x8xf32>
    %cst_50 = arith.constant dense<0.000000e+00> : vector<8x8xf32>
    %127 = tpu.matmul %125, %126, %cst_50 {dimension_numbers = #tpu.dot_dimension_numbers<[1], [1], [0], [0], [0, 0, 1, 0], [], []>, precision = #tpu.contract_precision<fp32>} : vector<8x8xf32>, vector<8x8xf32>, vector<8x8xf32> -> vector<8x8xf32>
    %cst_51 = arith.constant dense<0xFF800000> : vector<8xf32>
    %128 = vector.multi_reduction <maximumf>, %127, %cst_51 [1] : vector<8x8xf32> to vector<8xf32>
    %129 = vector.shape_cast %128 : vector<8xf32> to vector<8x1xf32>
    %130 = vector.broadcast %129 : vector<8x1xf32> to vector<8x8xf32>
    %131 = arith.subf %127, %130 : vector<8x8xf32>
    %132 = math.exp %131 : vector<8x8xf32>
    %cst_52 = arith.constant dense<0.000000e+00> : vector<8xf32>
    %133 = vector.multi_reduction <add>, %132, %cst_52 [1] : vector<8x8xf32> to vector<8xf32>
    %134 = vector.shape_cast %133 : vector<8xf32> to vector<8x1xf32>
    %135 = vector.broadcast %134 : vector<8x1xf32> to vector<8x8xf32>
    %136 = arith.divf %132, %135 : vector<8x8xf32>
    %137 = vector.extract_strided_slice %95 {offsets = [0, 16], sizes = [8, 8], strides = [1, 1]} : vector<8x32xf32> to vector<8x8xf32>
    %cst_53 = arith.constant dense<0.000000e+00> : vector<8x8xf32>
    %138 = tpu.matmul %136, %137, %cst_53 {dimension_numbers = #tpu.dot_dimension_numbers<[1], [0], [0], [1], [0, 0, 1, 1], [], []>, precision = #tpu.contract_precision<fp32>} : vector<8x8xf32>, vector<8x8xf32>, vector<8x8xf32> -> vector<8x8xf32>
    %139 = arith.addf %124, %136 : vector<8x8xf32>
    %140 = vector.extract_strided_slice %93 {offsets = [0, 24], sizes = [8, 8], strides = [1, 1]} : vector<8x32xf32> to vector<8x8xf32>
    %141 = vector.extract_strided_slice %94 {offsets = [0, 24], sizes = [8, 8], strides = [1, 1]} : vector<8x32xf32> to vector<8x8xf32>
    %cst_54 = arith.constant dense<0.000000e+00> : vector<8x8xf32>
    %142 = tpu.matmul %140, %141, %cst_54 {dimension_numbers = #tpu.dot_dimension_numbers<[1], [1], [0], [0], [0, 0, 1, 0], [], []>, precision = #tpu.contract_precision<fp32>} : vector<8x8xf32>, vector<8x8xf32>, vector<8x8xf32> -> vector<8x8xf32>
    %cst_55 = arith.constant dense<0xFF800000> : vector<8xf32>
    %143 = vector.multi_reduction <maximumf>, %142, %cst_55 [1] : vector<8x8xf32> to vector<8xf32>
    %144 = vector.shape_cast %143 : vector<8xf32> to vector<8x1xf32>
    %145 = vector.broadcast %144 : vector<8x1xf32> to vector<8x8xf32>
    %146 = arith.subf %142, %145 : vector<8x8xf32>
    %147 = math.exp %146 : vector<8x8xf32>
    %cst_56 = arith.constant dense<0.000000e+00> : vector<8xf32>
    %148 = vector.multi_reduction <add>, %147, %cst_56 [1] : vector<8x8xf32> to vector<8xf32>
    %149 = vector.shape_cast %148 : vector<8xf32> to vector<8x1xf32>
    %150 = vector.broadcast %149 : vector<8x1xf32> to vector<8x8xf32>
    %151 = arith.divf %147, %150 : vector<8x8xf32>
    %152 = vector.extract_strided_slice %95 {offsets = [0, 24], sizes = [8, 8], strides = [1, 1]} : vector<8x32xf32> to vector<8x8xf32>
    %cst_57 = arith.constant dense<0.000000e+00> : vector<8x8xf32>
    %153 = tpu.matmul %151, %152, %cst_57 {dimension_numbers = #tpu.dot_dimension_numbers<[1], [0], [0], [1], [0, 0, 1, 1], [], []>, precision = #tpu.contract_precision<fp32>} : vector<8x8xf32>, vector<8x8xf32>, vector<8x8xf32> -> vector<8x8xf32>
    %154 = arith.addf %139, %151 : vector<8x8xf32>
    %155 = tpu.concatenate %109, %123, %138, %153 in 1 : vector<8x8xf32>, vector<8x8xf32>, vector<8x8xf32>, vector<8x8xf32> -> vector<8x32xf32>
    %cst_58 = arith.constant 2.500000e-01 : f32
    %156 = vector.broadcast %cst_58 : f32 to vector<8x8xf32>
    %157 = arith.mulf %154, %156 : vector<8x8xf32>
    %158 = tpu.concatenate %90, %155 in 0 : vector<8x32xf32>, vector<8x32xf32> -> vector<16x32xf32>
    %c0_59 = arith.constant 0 : index
    %c0_60 = arith.constant 0 : index
    %c0_61 = arith.constant 0 : index
    %159 = vector.load %arg10[%c0_59, %c0_60, %c0_61] : memref<1x32x32xf32, #tpu.memory_space<vmem>>, vector<1x32x32xf32>
    %160 = vector.shape_cast %159 : vector<1x32x32xf32> to vector<32x32xf32>
    %cst_62 = arith.constant dense<0.000000e+00> : vector<16x32xf32>
    %161 = tpu.matmul %158, %160, %cst_62 {dimension_numbers = #tpu.dot_dimension_numbers<[1], [0], [0], [1], [0, 0, 1, 1], [], []>, precision = #tpu.contract_precision<fp32>} : vector<16x32xf32>, vector<32x32xf32>, vector<16x32xf32> -> vector<16x32xf32>
    %c0_63 = arith.constant 0 : index
    %c0_64 = arith.constant 0 : index
    %c0_65 = arith.constant 0 : index
    %162 = vector.load %arg11[%c0_63, %c0_64, %c0_65] : memref<1x1x32xf32, #tpu.memory_space<vmem>>, vector<1x1x32xf32>
    %163 = vector.shape_cast %162 : vector<1x1x32xf32> to vector<1x32xf32>
    %164 = vector.broadcast %163 : vector<1x32xf32> to vector<16x32xf32>
    %165 = arith.addf %161, %164 : vector<16x32xf32>
    %c0_66 = arith.constant 0 : index
    %c0_67 = arith.constant 0 : index
    %c0_68 = arith.constant 0 : index
    %c0_69 = arith.constant 0 : index
    %166 = vector.load %arg42[%c0_66, %c0_67, %c0_68, %c0_69] : memref<1x2x8x8xf32, #tpu.memory_space<vmem>>, vector<1x1x8x8xf32>
    %167 = vector.shape_cast %166 : vector<1x1x8x8xf32> to vector<8x8xf32>
    %168 = vector.shape_cast %92 : vector<8x8xf32> to vector<1x1x8x8xf32>
    tpu.vector_store %arg42[%c0_66, %c0_67, %c0_68, %c0_69], %168 {strides = array<i32>} : memref<1x2x8x8xf32, #tpu.memory_space<vmem>>, vector<1x1x8x8xf32>,
    %c0_70 = arith.constant 0 : index
    %c1 = arith.constant 1 : index
    %c0_71 = arith.constant 0 : index
    %c0_72 = arith.constant 0 : index
    %169 = vector.load %arg42[%c0_70, %c1, %c0_71, %c0_72] : memref<1x2x8x8xf32, #tpu.memory_space<vmem>>, vector<1x1x8x8xf32>
    %170 = vector.shape_cast %169 : vector<1x1x8x8xf32> to vector<8x8xf32>
    %171 = vector.shape_cast %157 : vector<8x8xf32> to vector<1x1x8x8xf32>
    tpu.vector_store %arg42[%c0_70, %c1, %c0_71, %c0_72], %171 {strides = array<i32>} : memref<1x2x8x8xf32, #tpu.memory_space<vmem>>, vector<1x1x8x8xf32>,
    %172 = arith.addf %3, %165 : vector<16x32xf32>
    %c0_73 = arith.constant 0 : index
    %c0_74 = arith.constant 0 : index
    %c0_75 = arith.constant 0 : index
    %173 = vector.load %arg12[%c0_73, %c0_74, %c0_75] : memref<1x1x32xf32, #tpu.memory_space<vmem>>, vector<1x1x32xf32>
    %174 = vector.shape_cast %173 : vector<1x1x32xf32> to vector<1x32xf32>
    %c0_76 = arith.constant 0 : index
    %c0_77 = arith.constant 0 : index
    %c0_78 = arith.constant 0 : index
    %175 = vector.load %arg13[%c0_76, %c0_77, %c0_78] : memref<1x1x32xf32, #tpu.memory_space<vmem>>, vector<1x1x32xf32>
    %176 = vector.shape_cast %175 : vector<1x1x32xf32> to vector<1x32xf32>
    %cst_79 = arith.constant dense<0.000000e+00> : vector<16xf32>
    %177 = vector.multi_reduction <add>, %172, %cst_79 [1] : vector<16x32xf32> to vector<16xf32>
    %178 = vector.shape_cast %177 : vector<16xf32> to vector<16x1xf32>
    %cst_80 = arith.constant 3.200000e+01 : f32
    %179 = vector.broadcast %cst_80 : f32 to vector<16x1xf32>
    %180 = arith.divf %178, %179 : vector<16x1xf32>
    %181 = vector.broadcast %180 : vector<16x1xf32> to vector<16x32xf32>
    %182 = arith.subf %172, %181 : vector<16x32xf32>
    %183 = arith.mulf %182, %182 : vector<16x32xf32>
    %cst_81 = arith.constant dense<0.000000e+00> : vector<16xf32>
    %184 = vector.multi_reduction <add>, %183, %cst_81 [1] : vector<16x32xf32> to vector<16xf32>
    %185 = vector.shape_cast %184 : vector<16xf32> to vector<16x1xf32>
    %cst_82 = arith.constant 3.200000e+01 : f32
    %186 = vector.broadcast %cst_82 : f32 to vector<16x1xf32>
    %187 = arith.divf %185, %186 : vector<16x1xf32>
    %cst_83 = arith.constant 9.99999974E-6 : f32
    %188 = vector.broadcast %cst_83 : f32 to vector<16x1xf32>
    %189 = arith.addf %187, %188 : vector<16x1xf32>
    %190 = math.rsqrt %189 : vector<16x1xf32>
    %191 = vector.broadcast %190 : vector<16x1xf32> to vector<16x32xf32>
    %192 = arith.mulf %182, %191 : vector<16x32xf32>
    %193 = vector.broadcast %174 : vector<1x32xf32> to vector<16x32xf32>
    %194 = arith.mulf %192, %193 : vector<16x32xf32>
    %195 = vector.broadcast %176 : vector<1x32xf32> to vector<16x32xf32>
    %196 = arith.addf %194, %195 : vector<16x32xf32>
    %c0_84 = arith.constant 0 : index
    %c0_85 = arith.constant 0 : index
    %c0_86 = arith.constant 0 : index
    %197 = vector.load %arg14[%c0_84, %c0_85, %c0_86] : memref<1x32x128xf32, #tpu.memory_space<vmem>>, vector<1x32x128xf32>
    %198 = vector.shape_cast %197 : vector<1x32x128xf32> to vector<32x128xf32>
    %c0_87 = arith.constant 0 : index
    %c0_88 = arith.constant 0 : index
    %c0_89 = arith.constant 0 : index
    %199 = vector.load %arg15[%c0_87, %c0_88, %c0_89] : memref<1x1x128xf32, #tpu.memory_space<vmem>>, vector<1x1x128xf32>
    %200 = vector.shape_cast %199 : vector<1x1x128xf32> to vector<1x128xf32>
    %c0_90 = arith.constant 0 : index
    %c0_91 = arith.constant 0 : index
    %c0_92 = arith.constant 0 : index
    %201 = vector.load %arg16[%c0_90, %c0_91, %c0_92] : memref<1x128x32xf32, #tpu.memory_space<vmem>>, vector<1x128x32xf32>
    %202 = vector.shape_cast %201 : vector<1x128x32xf32> to vector<128x32xf32>
    %c0_93 = arith.constant 0 : index
    %c0_94 = arith.constant 0 : index
    %c0_95 = arith.constant 0 : index
    %203 = vector.load %arg17[%c0_93, %c0_94, %c0_95] : memref<1x1x32xf32, #tpu.memory_space<vmem>>, vector<1x1x32xf32>
    %204 = vector.shape_cast %203 : vector<1x1x32xf32> to vector<1x32xf32>
    %cst_96 = arith.constant dense<0.000000e+00> : vector<16x128xf32>
    %205 = tpu.matmul %196, %198, %cst_96 {dimension_numbers = #tpu.dot_dimension_numbers<[1], [0], [0], [1], [0, 0, 1, 1], [], []>, precision = #tpu.contract_precision<fp32>} : vector<16x32xf32>, vector<32x128xf32>, vector<16x128xf32> -> vector<16x128xf32>
    %206 = vector.broadcast %200 : vector<1x128xf32> to vector<16x128xf32>
    %207 = arith.addf %205, %206 : vector<16x128xf32>
    %cst_97 = arith.constant 5.000000e-01 : f32
    %208 = vector.broadcast %cst_97 : f32 to vector<16x128xf32>
    %209 = arith.mulf %208, %207 : vector<16x128xf32>
    %cst_98 = arith.constant 0.707106769 : f32
    %210 = vector.broadcast %cst_98 : f32 to vector<16x128xf32>
    %211 = arith.mulf %207, %210 : vector<16x128xf32>
    %212 = math.absf %211 : vector<16x128xf32>
    %cst_99 = arith.constant 0.327591091 : f32
    %213 = vector.broadcast %cst_99 : f32 to vector<16x128xf32>
    %214 = arith.mulf %213, %212 : vector<16x128xf32>
    %cst_100 = arith.constant 1.000000e+00 : f32
    %215 = vector.broadcast %cst_100 : f32 to vector<16x128xf32>
    %216 = arith.addf %215, %214 : vector<16x128xf32>
    %cst_101 = arith.constant 1.000000e+00 : f32
    %217 = vector.broadcast %cst_101 : f32 to vector<16x128xf32>
    %218 = arith.divf %217, %216 : vector<16x128xf32>
    %cst_102 = arith.constant 1.06140542 : f32
    %219 = vector.broadcast %cst_102 : f32 to vector<16x128xf32>
    %220 = arith.mulf %219, %218 : vector<16x128xf32>
    %cst_103 = arith.constant -1.45315206 : f32
    %221 = vector.broadcast %cst_103 : f32 to vector<16x128xf32>
    %222 = arith.addf %220, %221 : vector<16x128xf32>
    %223 = arith.mulf %222, %218 : vector<16x128xf32>
    %cst_104 = arith.constant 1.42141378 : f32
    %224 = vector.broadcast %cst_104 : f32 to vector<16x128xf32>
    %225 = arith.addf %223, %224 : vector<16x128xf32>
    %226 = arith.mulf %225, %218 : vector<16x128xf32>
    %cst_105 = arith.constant -0.284496725 : f32
    %227 = vector.broadcast %cst_105 : f32 to vector<16x128xf32>
    %228 = arith.addf %226, %227 : vector<16x128xf32>
    %229 = arith.mulf %228, %218 : vector<16x128xf32>
    %cst_106 = arith.constant 0.254829586 : f32
    %230 = vector.broadcast %cst_106 : f32 to vector<16x128xf32>
    %231 = arith.addf %229, %230 : vector<16x128xf32>
    %232 = arith.mulf %231, %218 : vector<16x128xf32>
    %cst_107 = arith.constant 0.000000e+00 : f32
    %233 = vector.broadcast %cst_107 : f32 to vector<16x128xf32>
    %234 = arith.subf %233, %212 : vector<16x128xf32>
    %235 = arith.mulf %234, %212 : vector<16x128xf32>
    %236 = math.exp %235 : vector<16x128xf32>
    %237 = arith.mulf %232, %236 : vector<16x128xf32>
    %cst_108 = arith.constant 1.000000e+00 : f32
    %238 = vector.broadcast %cst_108 : f32 to vector<16x128xf32>
    %239 = arith.subf %238, %237 : vector<16x128xf32>
    %cst_109 = arith.constant 0.000000e+00 : f32
    %240 = vector.broadcast %cst_109 : f32 to vector<16x128xf32>
    %241 = arith.cmpf oge, %211, %240 : vector<16x128xf32>
    %cst_110 = arith.constant 0.000000e+00 : f32
    %242 = vector.broadcast %cst_110 : f32 to vector<16x128xf32>
    %243 = arith.subf %242, %239 : vector<16x128xf32>
    %244 = arith.select %241, %239, %243 : vector<16x128xi1>, vector<16x128xf32>
    %cst_111 = arith.constant 1.000000e+00 : f32
    %245 = vector.broadcast %cst_111 : f32 to vector<16x128xf32>
    %246 = arith.addf %245, %244 : vector<16x128xf32>
    %247 = arith.mulf %209, %246 : vector<16x128xf32>
    %cst_112 = arith.constant dense<0.000000e+00> : vector<16x32xf32>
    %248 = tpu.matmul %247, %202, %cst_112 {dimension_numbers = #tpu.dot_dimension_numbers<[1], [0], [0], [1], [0, 0, 1, 1], [], []>, precision = #tpu.contract_precision<fp32>} : vector<16x128xf32>, vector<128x32xf32>, vector<16x32xf32> -> vector<16x32xf32>
    %249 = vector.broadcast %204 : vector<1x32xf32> to vector<16x32xf32>
    %250 = arith.addf %248, %249 : vector<16x32xf32>
    %251 = arith.addf %196, %250 : vector<16x32xf32>
    %252 = arith.addf %251, %3 : vector<16x32xf32>
    %c0_113 = arith.constant 0 : index
    %c0_114 = arith.constant 0 : index
    %c0_115 = arith.constant 0 : index
    %253 = vector.load %arg18[%c0_113, %c0_114, %c0_115] : memref<1x1x32xf32, #tpu.memory_space<vmem>>, vector<1x1x32xf32>
    %254 = vector.shape_cast %253 : vector<1x1x32xf32> to vector<1x32xf32>
    %c0_116 = arith.constant 0 : index
    %c0_117 = arith.constant 0 : index
    %c0_118 = arith.constant 0 : index
    %255 = vector.load %arg19[%c0_116, %c0_117, %c0_118] : memref<1x1x32xf32, #tpu.memory_space<vmem>>, vector<1x1x32xf32>
    %256 = vector.shape_cast %255 : vector<1x1x32xf32> to vector<1x32xf32>
    %cst_119 = arith.constant dense<0.000000e+00> : vector<16xf32>
    %257 = vector.multi_reduction <add>, %252, %cst_119 [1] : vector<16x32xf32> to vector<16xf32>
    %258 = vector.shape_cast %257 : vector<16xf32> to vector<16x1xf32>
    %cst_120 = arith.constant 3.200000e+01 : f32
    %259 = vector.broadcast %cst_120 : f32 to vector<16x1xf32>
    %260 = arith.divf %258, %259 : vector<16x1xf32>
    %261 = vector.broadcast %260 : vector<16x1xf32> to vector<16x32xf32>
    %262 = arith.subf %252, %261 : vector<16x32xf32>
    %263 = arith.mulf %262, %262 : vector<16x32xf32>
    %cst_121 = arith.constant dense<0.000000e+00> : vector<16xf32>
    %264 = vector.multi_reduction <add>, %263, %cst_121 [1] : vector<16x32xf32> to vector<16xf32>
    %265 = vector.shape_cast %264 : vector<16xf32> to vector<16x1xf32>
    %cst_122 = arith.constant 3.200000e+01 : f32
    %266 = vector.broadcast %cst_122 : f32 to vector<16x1xf32>
    %267 = arith.divf %265, %266 : vector<16x1xf32>
    %cst_123 = arith.constant 9.99999974E-6 : f32
    %268 = vector.broadcast %cst_123 : f32 to vector<16x1xf32>
    %269 = arith.addf %267, %268 : vector<16x1xf32>
    %270 = math.rsqrt %269 : vector<16x1xf32>
    %271 = vector.broadcast %270 : vector<16x1xf32> to vector<16x32xf32>
    %272 = arith.mulf %262, %271 : vector<16x32xf32>
    %273 = vector.broadcast %254 : vector<1x32xf32> to vector<16x32xf32>
    %274 = arith.mulf %272, %273 : vector<16x32xf32>
    %275 = vector.broadcast %256 : vector<1x32xf32> to vector<16x32xf32>
    %276 = arith.addf %274, %275 : vector<16x32xf32>
    %c0_124 = arith.constant 0 : index
    %c0_125 = arith.constant 0 : index
    %c0_126 = arith.constant 0 : index
    %277 = vector.load %arg20[%c0_124, %c0_125, %c0_126] : memref<1x32x32xf32, #tpu.memory_space<vmem>>, vector<1x32x32xf32>
    %278 = vector.shape_cast %277 : vector<1x32x32xf32> to vector<32x32xf32>
    %cst_127 = arith.constant dense<0.000000e+00> : vector<16x32xf32>
    %279 = tpu.matmul %4, %278, %cst_127 {dimension_numbers = #tpu.dot_dimension_numbers<[1], [0], [0], [1], [0, 0, 1, 1], [], []>, precision = #tpu.contract_precision<fp32>} : vector<16x32xf32>, vector<32x32xf32>, vector<16x32xf32> -> vector<16x32xf32>
    %c0_128 = arith.constant 0 : index
    %c0_129 = arith.constant 0 : index
    %c0_130 = arith.constant 0 : index
    %280 = vector.load %arg21[%c0_128, %c0_129, %c0_130] : memref<1x1x32xf32, #tpu.memory_space<vmem>>, vector<1x1x32xf32>
    %281 = vector.shape_cast %280 : vector<1x1x32xf32> to vector<1x32xf32>
    %282 = vector.broadcast %281 : vector<1x32xf32> to vector<16x32xf32>
    %283 = arith.addf %279, %282 : vector<16x32xf32>
    %cst_131 = arith.constant 0.353553385 : f32
    %284 = vector.broadcast %cst_131 : f32 to vector<16x32xf32>
    %285 = arith.mulf %283, %284 : vector<16x32xf32>
    %c0_132 = arith.constant 0 : index
    %c0_133 = arith.constant 0 : index
    %c0_134 = arith.constant 0 : index
    %286 = vector.load %arg22[%c0_132, %c0_133, %c0_134] : memref<1x32x32xf32, #tpu.memory_space<vmem>>, vector<1x32x32xf32>
    %287 = vector.shape_cast %286 : vector<1x32x32xf32> to vector<32x32xf32>
    %cst_135 = arith.constant dense<0.000000e+00> : vector<16x32xf32>
    %288 = tpu.matmul %276, %287, %cst_135 {dimension_numbers = #tpu.dot_dimension_numbers<[1], [0], [0], [1], [0, 0, 1, 1], [], []>, precision = #tpu.contract_precision<fp32>} : vector<16x32xf32>, vector<32x32xf32>, vector<16x32xf32> -> vector<16x32xf32>
    %c0_136 = arith.constant 0 : index
    %c0_137 = arith.constant 0 : index
    %c0_138 = arith.constant 0 : index
    %289 = vector.load %arg23[%c0_136, %c0_137, %c0_138] : memref<1x1x32xf32, #tpu.memory_space<vmem>>, vector<1x1x32xf32>
    %290 = vector.shape_cast %289 : vector<1x1x32xf32> to vector<1x32xf32>
    %291 = vector.broadcast %290 : vector<1x32xf32> to vector<16x32xf32>
    %292 = arith.addf %288, %291 : vector<16x32xf32>
    %c0_139 = arith.constant 0 : index
    %c0_140 = arith.constant 0 : index
    %c0_141 = arith.constant 0 : index
    %293 = vector.load %arg24[%c0_139, %c0_140, %c0_141] : memref<1x32x32xf32, #tpu.memory_space<vmem>>, vector<1x32x32xf32>
    %294 = vector.shape_cast %293 : vector<1x32x32xf32> to vector<32x32xf32>
    %cst_142 = arith.constant dense<0.000000e+00> : vector<16x32xf32>
    %295 = tpu.matmul %276, %294, %cst_142 {dimension_numbers = #tpu.dot_dimension_numbers<[1], [0], [0], [1], [0, 0, 1, 1], [], []>, precision = #tpu.contract_precision<fp32>} : vector<16x32xf32>, vector<32x32xf32>, vector<16x32xf32> -> vector<16x32xf32>
    %c0_143 = arith.constant 0 : index
    %c0_144 = arith.constant 0 : index
    %c0_145 = arith.constant 0 : index
    %296 = vector.load %arg25[%c0_143, %c0_144, %c0_145] : memref<1x1x32xf32, #tpu.memory_space<vmem>>, vector<1x1x32xf32>
    %297 = vector.shape_cast %296 : vector<1x1x32xf32> to vector<1x32xf32>
    %298 = vector.broadcast %297 : vector<1x32xf32> to vector<16x32xf32>
    %299 = arith.addf %295, %298 : vector<16x32xf32>
    %300 = vector.extract_strided_slice %285 {offsets = [0, 0], sizes = [8, 32], strides = [1, 1]} : vector<16x32xf32> to vector<8x32xf32>
    %301 = vector.extract_strided_slice %292 {offsets = [0, 0], sizes = [8, 32], strides = [1, 1]} : vector<16x32xf32> to vector<8x32xf32>
    %302 = vector.extract_strided_slice %299 {offsets = [0, 0], sizes = [8, 32], strides = [1, 1]} : vector<16x32xf32> to vector<8x32xf32>
    %303 = vector.extract_strided_slice %300 {offsets = [0, 0], sizes = [8, 8], strides = [1, 1]} : vector<8x32xf32> to vector<8x8xf32>
    %304 = vector.extract_strided_slice %301 {offsets = [0, 0], sizes = [8, 8], strides = [1, 1]} : vector<8x32xf32> to vector<8x8xf32>
    %cst_146 = arith.constant dense<0.000000e+00> : vector<8x8xf32>
    %305 = tpu.matmul %303, %304, %cst_146 {dimension_numbers = #tpu.dot_dimension_numbers<[1], [1], [0], [0], [0, 0, 1, 0], [], []>, precision = #tpu.contract_precision<fp32>} : vector<8x8xf32>, vector<8x8xf32>, vector<8x8xf32> -> vector<8x8xf32>
    %cst_147 = arith.constant dense<0xFF800000> : vector<8xf32>
    %306 = vector.multi_reduction <maximumf>, %305, %cst_147 [1] : vector<8x8xf32> to vector<8xf32>
    %307 = vector.shape_cast %306 : vector<8xf32> to vector<8x1xf32>
    %308 = vector.broadcast %307 : vector<8x1xf32> to vector<8x8xf32>
    %309 = arith.subf %305, %308 : vector<8x8xf32>
    %310 = math.exp %309 : vector<8x8xf32>
    %cst_148 = arith.constant dense<0.000000e+00> : vector<8xf32>
    %311 = vector.multi_reduction <add>, %310, %cst_148 [1] : vector<8x8xf32> to vector<8xf32>
    %312 = vector.shape_cast %311 : vector<8xf32> to vector<8x1xf32>
    %313 = vector.broadcast %312 : vector<8x1xf32> to vector<8x8xf32>
    %314 = arith.divf %310, %313 : vector<8x8xf32>
    %315 = vector.extract_strided_slice %302 {offsets = [0, 0], sizes = [8, 8], strides = [1, 1]} : vector<8x32xf32> to vector<8x8xf32>
    %cst_149 = arith.constant dense<0.000000e+00> : vector<8x8xf32>
    %316 = tpu.matmul %314, %315, %cst_149 {dimension_numbers = #tpu.dot_dimension_numbers<[1], [0], [0], [1], [0, 0, 1, 1], [], []>, precision = #tpu.contract_precision<fp32>} : vector<8x8xf32>, vector<8x8xf32>, vector<8x8xf32> -> vector<8x8xf32>
    %317 = vector.extract_strided_slice %300 {offsets = [0, 8], sizes = [8, 8], strides = [1, 1]} : vector<8x32xf32> to vector<8x8xf32>
    %318 = vector.extract_strided_slice %301 {offsets = [0, 8], sizes = [8, 8], strides = [1, 1]} : vector<8x32xf32> to vector<8x8xf32>
    %cst_150 = arith.constant dense<0.000000e+00> : vector<8x8xf32>
    %319 = tpu.matmul %317, %318, %cst_150 {dimension_numbers = #tpu.dot_dimension_numbers<[1], [1], [0], [0], [0, 0, 1, 0], [], []>, precision = #tpu.contract_precision<fp32>} : vector<8x8xf32>, vector<8x8xf32>, vector<8x8xf32> -> vector<8x8xf32>
    %cst_151 = arith.constant dense<0xFF800000> : vector<8xf32>
    %320 = vector.multi_reduction <maximumf>, %319, %cst_151 [1] : vector<8x8xf32> to vector<8xf32>
    %321 = vector.shape_cast %320 : vector<8xf32> to vector<8x1xf32>
    %322 = vector.broadcast %321 : vector<8x1xf32> to vector<8x8xf32>
    %323 = arith.subf %319, %322 : vector<8x8xf32>
    %324 = math.exp %323 : vector<8x8xf32>
    %cst_152 = arith.constant dense<0.000000e+00> : vector<8xf32>
    %325 = vector.multi_reduction <add>, %324, %cst_152 [1] : vector<8x8xf32> to vector<8xf32>
    %326 = vector.shape_cast %325 : vector<8xf32> to vector<8x1xf32>
    %327 = vector.broadcast %326 : vector<8x1xf32> to vector<8x8xf32>
    %328 = arith.divf %324, %327 : vector<8x8xf32>
    %329 = vector.extract_strided_slice %302 {offsets = [0, 8], sizes = [8, 8], strides = [1, 1]} : vector<8x32xf32> to vector<8x8xf32>
    %cst_153 = arith.constant dense<0.000000e+00> : vector<8x8xf32>
    %330 = tpu.matmul %328, %329, %cst_153 {dimension_numbers = #tpu.dot_dimension_numbers<[1], [0], [0], [1], [0, 0, 1, 1], [], []>, precision = #tpu.contract_precision<fp32>} : vector<8x8xf32>, vector<8x8xf32>, vector<8x8xf32> -> vector<8x8xf32>
    %331 = arith.addf %314, %328 : vector<8x8xf32>
    %332 = vector.extract_strided_slice %300 {offsets = [0, 16], sizes = [8, 8], strides = [1, 1]} : vector<8x32xf32> to vector<8x8xf32>
    %333 = vector.extract_strided_slice %301 {offsets = [0, 16], sizes = [8, 8], strides = [1, 1]} : vector<8x32xf32> to vector<8x8xf32>
    %cst_154 = arith.constant dense<0.000000e+00> : vector<8x8xf32>
    %334 = tpu.matmul %332, %333, %cst_154 {dimension_numbers = #tpu.dot_dimension_numbers<[1], [1], [0], [0], [0, 0, 1, 0], [], []>, precision = #tpu.contract_precision<fp32>} : vector<8x8xf32>, vector<8x8xf32>, vector<8x8xf32> -> vector<8x8xf32>
    %cst_155 = arith.constant dense<0xFF800000> : vector<8xf32>
    %335 = vector.multi_reduction <maximumf>, %334, %cst_155 [1] : vector<8x8xf32> to vector<8xf32>
    %336 = vector.shape_cast %335 : vector<8xf32> to vector<8x1xf32>
    %337 = vector.broadcast %336 : vector<8x1xf32> to vector<8x8xf32>
    %338 = arith.subf %334, %337 : vector<8x8xf32>
    %339 = math.exp %338 : vector<8x8xf32>
    %cst_156 = arith.constant dense<0.000000e+00> : vector<8xf32>
    %340 = vector.multi_reduction <add>, %339, %cst_156 [1] : vector<8x8xf32> to vector<8xf32>
    %341 = vector.shape_cast %340 : vector<8xf32> to vector<8x1xf32>
    %342 = vector.broadcast %341 : vector<8x1xf32> to vector<8x8xf32>
    %343 = arith.divf %339, %342 : vector<8x8xf32>
    %344 = vector.extract_strided_slice %302 {offsets = [0, 16], sizes = [8, 8], strides = [1, 1]} : vector<8x32xf32> to vector<8x8xf32>
    %cst_157 = arith.constant dense<0.000000e+00> : vector<8x8xf32>
    %345 = tpu.matmul %343, %344, %cst_157 {dimension_numbers = #tpu.dot_dimension_numbers<[1], [0], [0], [1], [0, 0, 1, 1], [], []>, precision = #tpu.contract_precision<fp32>} : vector<8x8xf32>, vector<8x8xf32>, vector<8x8xf32> -> vector<8x8xf32>
    %346 = arith.addf %331, %343 : vector<8x8xf32>
    %347 = vector.extract_strided_slice %300 {offsets = [0, 24], sizes = [8, 8], strides = [1, 1]} : vector<8x32xf32> to vector<8x8xf32>
    %348 = vector.extract_strided_slice %301 {offsets = [0, 24], sizes = [8, 8], strides = [1, 1]} : vector<8x32xf32> to vector<8x8xf32>
    %cst_158 = arith.constant dense<0.000000e+00> : vector<8x8xf32>
    %349 = tpu.matmul %347, %348, %cst_158 {dimension_numbers = #tpu.dot_dimension_numbers<[1], [1], [0], [0], [0, 0, 1, 0], [], []>, precision = #tpu.contract_precision<fp32>} : vector<8x8xf32>, vector<8x8xf32>, vector<8x8xf32> -> vector<8x8xf32>
    %cst_159 = arith.constant dense<0xFF800000> : vector<8xf32>
    %350 = vector.multi_reduction <maximumf>, %349, %cst_159 [1] : vector<8x8xf32> to vector<8xf32>
    %351 = vector.shape_cast %350 : vector<8xf32> to vector<8x1xf32>
    %352 = vector.broadcast %351 : vector<8x1xf32> to vector<8x8xf32>
    %353 = arith.subf %349, %352 : vector<8x8xf32>
    %354 = math.exp %353 : vector<8x8xf32>
    %cst_160 = arith.constant dense<0.000000e+00> : vector<8xf32>
    %355 = vector.multi_reduction <add>, %354, %cst_160 [1] : vector<8x8xf32> to vector<8xf32>
    %356 = vector.shape_cast %355 : vector<8xf32> to vector<8x1xf32>
    %357 = vector.broadcast %356 : vector<8x1xf32> to vector<8x8xf32>
    %358 = arith.divf %354, %357 : vector<8x8xf32>
    %359 = vector.extract_strided_slice %302 {offsets = [0, 24], sizes = [8, 8], strides = [1, 1]} : vector<8x32xf32> to vector<8x8xf32>
    %cst_161 = arith.constant dense<0.000000e+00> : vector<8x8xf32>
    %360 = tpu.matmul %358, %359, %cst_161 {dimension_numbers = #tpu.dot_dimension_numbers<[1], [0], [0], [1], [0, 0, 1, 1], [], []>, precision = #tpu.contract_precision<fp32>} : vector<8x8xf32>, vector<8x8xf32>, vector<8x8xf32> -> vector<8x8xf32>
    %361 = arith.addf %346, %358 : vector<8x8xf32>
    %362 = tpu.concatenate %316, %330, %345, %360 in 1 : vector<8x8xf32>, vector<8x8xf32>, vector<8x8xf32>, vector<8x8xf32> -> vector<8x32xf32>
    %cst_162 = arith.constant 2.500000e-01 : f32
    %363 = vector.broadcast %cst_162 : f32 to vector<8x8xf32>
    %364 = arith.mulf %361, %363 : vector<8x8xf32>
    %365 = vector.extract_strided_slice %285 {offsets = [8, 0], sizes = [8, 32], strides = [1, 1]} : vector<16x32xf32> to vector<8x32xf32>
    %366 = vector.extract_strided_slice %292 {offsets = [8, 0], sizes = [8, 32], strides = [1, 1]} : vector<16x32xf32> to vector<8x32xf32>
    %367 = vector.extract_strided_slice %299 {offsets = [8, 0], sizes = [8, 32], strides = [1, 1]} : vector<16x32xf32> to vector<8x32xf32>
    %368 = vector.extract_strided_slice %365 {offsets = [0, 0], sizes = [8, 8], strides = [1, 1]} : vector<8x32xf32> to vector<8x8xf32>
    %369 = vector.extract_strided_slice %366 {offsets = [0, 0], sizes = [8, 8], strides = [1, 1]} : vector<8x32xf32> to vector<8x8xf32>
    %cst_163 = arith.constant dense<0.000000e+00> : vector<8x8xf32>
    %370 = tpu.matmul %368, %369, %cst_163 {dimension_numbers = #tpu.dot_dimension_numbers<[1], [1], [0], [0], [0, 0, 1, 0], [], []>, precision = #tpu.contract_precision<fp32>} : vector<8x8xf32>, vector<8x8xf32>, vector<8x8xf32> -> vector<8x8xf32>
    %cst_164 = arith.constant dense<0xFF800000> : vector<8xf32>
    %371 = vector.multi_reduction <maximumf>, %370, %cst_164 [1] : vector<8x8xf32> to vector<8xf32>
    %372 = vector.shape_cast %371 : vector<8xf32> to vector<8x1xf32>
    %373 = vector.broadcast %372 : vector<8x1xf32> to vector<8x8xf32>
    %374 = arith.subf %370, %373 : vector<8x8xf32>
    %375 = math.exp %374 : vector<8x8xf32>
    %cst_165 = arith.constant dense<0.000000e+00> : vector<8xf32>
    %376 = vector.multi_reduction <add>, %375, %cst_165 [1] : vector<8x8xf32> to vector<8xf32>
    %377 = vector.shape_cast %376 : vector<8xf32> to vector<8x1xf32>
    %378 = vector.broadcast %377 : vector<8x1xf32> to vector<8x8xf32>
    %379 = arith.divf %375, %378 : vector<8x8xf32>
    %380 = vector.extract_strided_slice %367 {offsets = [0, 0], sizes = [8, 8], strides = [1, 1]} : vector<8x32xf32> to vector<8x8xf32>
    %cst_166 = arith.constant dense<0.000000e+00> : vector<8x8xf32>
    %381 = tpu.matmul %379, %380, %cst_166 {dimension_numbers = #tpu.dot_dimension_numbers<[1], [0], [0], [1], [0, 0, 1, 1], [], []>, precision = #tpu.contract_precision<fp32>} : vector<8x8xf32>, vector<8x8xf32>, vector<8x8xf32> -> vector<8x8xf32>
    %382 = vector.extract_strided_slice %365 {offsets = [0, 8], sizes = [8, 8], strides = [1, 1]} : vector<8x32xf32> to vector<8x8xf32>
    %383 = vector.extract_strided_slice %366 {offsets = [0, 8], sizes = [8, 8], strides = [1, 1]} : vector<8x32xf32> to vector<8x8xf32>
    %cst_167 = arith.constant dense<0.000000e+00> : vector<8x8xf32>
    %384 = tpu.matmul %382, %383, %cst_167 {dimension_numbers = #tpu.dot_dimension_numbers<[1], [1], [0], [0], [0, 0, 1, 0], [], []>, precision = #tpu.contract_precision<fp32>} : vector<8x8xf32>, vector<8x8xf32>, vector<8x8xf32> -> vector<8x8xf32>
    %cst_168 = arith.constant dense<0xFF800000> : vector<8xf32>
    %385 = vector.multi_reduction <maximumf>, %384, %cst_168 [1] : vector<8x8xf32> to vector<8xf32>
    %386 = vector.shape_cast %385 : vector<8xf32> to vector<8x1xf32>
    %387 = vector.broadcast %386 : vector<8x1xf32> to vector<8x8xf32>
    %388 = arith.subf %384, %387 : vector<8x8xf32>
    %389 = math.exp %388 : vector<8x8xf32>
    %cst_169 = arith.constant dense<0.000000e+00> : vector<8xf32>
    %390 = vector.multi_reduction <add>, %389, %cst_169 [1] : vector<8x8xf32> to vector<8xf32>
    %391 = vector.shape_cast %390 : vector<8xf32> to vector<8x1xf32>
    %392 = vector.broadcast %391 : vector<8x1xf32> to vector<8x8xf32>
    %393 = arith.divf %389, %392 : vector<8x8xf32>
    %394 = vector.extract_strided_slice %367 {offsets = [0, 8], sizes = [8, 8], strides = [1, 1]} : vector<8x32xf32> to vector<8x8xf32>
    %cst_170 = arith.constant dense<0.000000e+00> : vector<8x8xf32>
    %395 = tpu.matmul %393, %394, %cst_170 {dimension_numbers = #tpu.dot_dimension_numbers<[1], [0], [0], [1], [0, 0, 1, 1], [], []>, precision = #tpu.contract_precision<fp32>} : vector<8x8xf32>, vector<8x8xf32>, vector<8x8xf32> -> vector<8x8xf32>
    %396 = arith.addf %379, %393 : vector<8x8xf32>
    %397 = vector.extract_strided_slice %365 {offsets = [0, 16], sizes = [8, 8], strides = [1, 1]} : vector<8x32xf32> to vector<8x8xf32>
    %398 = vector.extract_strided_slice %366 {offsets = [0, 16], sizes = [8, 8], strides = [1, 1]} : vector<8x32xf32> to vector<8x8xf32>
    %cst_171 = arith.constant dense<0.000000e+00> : vector<8x8xf32>
    %399 = tpu.matmul %397, %398, %cst_171 {dimension_numbers = #tpu.dot_dimension_numbers<[1], [1], [0], [0], [0, 0, 1, 0], [], []>, precision = #tpu.contract_precision<fp32>} : vector<8x8xf32>, vector<8x8xf32>, vector<8x8xf32> -> vector<8x8xf32>
    %cst_172 = arith.constant dense<0xFF800000> : vector<8xf32>
    %400 = vector.multi_reduction <maximumf>, %399, %cst_172 [1] : vector<8x8xf32> to vector<8xf32>
    %401 = vector.shape_cast %400 : vector<8xf32> to vector<8x1xf32>
    %402 = vector.broadcast %401 : vector<8x1xf32> to vector<8x8xf32>
    %403 = arith.subf %399, %402 : vector<8x8xf32>
    %404 = math.exp %403 : vector<8x8xf32>
    %cst_173 = arith.constant dense<0.000000e+00> : vector<8xf32>
    %405 = vector.multi_reduction <add>, %404, %cst_173 [1] : vector<8x8xf32> to vector<8xf32>
    %406 = vector.shape_cast %405 : vector<8xf32> to vector<8x1xf32>
    %407 = vector.broadcast %406 : vector<8x1xf32> to vector<8x8xf32>
    %408 = arith.divf %404, %407 : vector<8x8xf32>
    %409 = vector.extract_strided_slice %367 {offsets = [0, 16], sizes = [8, 8], strides = [1, 1]} : vector<8x32xf32> to vector<8x8xf32>
    %cst_174 = arith.constant dense<0.000000e+00> : vector<8x8xf32>
    %410 = tpu.matmul %408, %409, %cst_174 {dimension_numbers = #tpu.dot_dimension_numbers<[1], [0], [0], [1], [0, 0, 1, 1], [], []>, precision = #tpu.contract_precision<fp32>} : vector<8x8xf32>, vector<8x8xf32>, vector<8x8xf32> -> vector<8x8xf32>
    %411 = arith.addf %396, %408 : vector<8x8xf32>
    %412 = vector.extract_strided_slice %365 {offsets = [0, 24], sizes = [8, 8], strides = [1, 1]} : vector<8x32xf32> to vector<8x8xf32>
    %413 = vector.extract_strided_slice %366 {offsets = [0, 24], sizes = [8, 8], strides = [1, 1]} : vector<8x32xf32> to vector<8x8xf32>
    %cst_175 = arith.constant dense<0.000000e+00> : vector<8x8xf32>
    %414 = tpu.matmul %412, %413, %cst_175 {dimension_numbers = #tpu.dot_dimension_numbers<[1], [1], [0], [0], [0, 0, 1, 0], [], []>, precision = #tpu.contract_precision<fp32>} : vector<8x8xf32>, vector<8x8xf32>, vector<8x8xf32> -> vector<8x8xf32>
    %cst_176 = arith.constant dense<0xFF800000> : vector<8xf32>
    %415 = vector.multi_reduction <maximumf>, %414, %cst_176 [1] : vector<8x8xf32> to vector<8xf32>
    %416 = vector.shape_cast %415 : vector<8xf32> to vector<8x1xf32>
    %417 = vector.broadcast %416 : vector<8x1xf32> to vector<8x8xf32>
    %418 = arith.subf %414, %417 : vector<8x8xf32>
    %419 = math.exp %418 : vector<8x8xf32>
    %cst_177 = arith.constant dense<0.000000e+00> : vector<8xf32>
    %420 = vector.multi_reduction <add>, %419, %cst_177 [1] : vector<8x8xf32> to vector<8xf32>
    %421 = vector.shape_cast %420 : vector<8xf32> to vector<8x1xf32>
    %422 = vector.broadcast %421 : vector<8x1xf32> to vector<8x8xf32>
    %423 = arith.divf %419, %422 : vector<8x8xf32>
    %424 = vector.extract_strided_slice %367 {offsets = [0, 24], sizes = [8, 8], strides = [1, 1]} : vector<8x32xf32> to vector<8x8xf32>
    %cst_178 = arith.constant dense<0.000000e+00> : vector<8x8xf32>
    %425 = tpu.matmul %423, %424, %cst_178 {dimension_numbers = #tpu.dot_dimension_numbers<[1], [0], [0], [1], [0, 0, 1, 1], [], []>, precision = #tpu.contract_precision<fp32>} : vector<8x8xf32>, vector<8x8xf32>, vector<8x8xf32> -> vector<8x8xf32>
    %426 = arith.addf %411, %423 : vector<8x8xf32>
    %427 = tpu.concatenate %381, %395, %410, %425 in 1 : vector<8x8xf32>, vector<8x8xf32>, vector<8x8xf32>, vector<8x8xf32> -> vector<8x32xf32>
    %cst_179 = arith.constant 2.500000e-01 : f32
    %428 = vector.broadcast %cst_179 : f32 to vector<8x8xf32>
    %429 = arith.mulf %426, %428 : vector<8x8xf32>
    %430 = tpu.concatenate %362, %427 in 0 : vector<8x32xf32>, vector<8x32xf32> -> vector<16x32xf32>
    %c0_180 = arith.constant 0 : index
    %c0_181 = arith.constant 0 : index
    %c0_182 = arith.constant 0 : index
    %431 = vector.load %arg26[%c0_180, %c0_181, %c0_182] : memref<1x32x32xf32, #tpu.memory_space<vmem>>, vector<1x32x32xf32>
    %432 = vector.shape_cast %431 : vector<1x32x32xf32> to vector<32x32xf32>
    %cst_183 = arith.constant dense<0.000000e+00> : vector<16x32xf32>
    %433 = tpu.matmul %430, %432, %cst_183 {dimension_numbers = #tpu.dot_dimension_numbers<[1], [0], [0], [1], [0, 0, 1, 1], [], []>, precision = #tpu.contract_precision<fp32>} : vector<16x32xf32>, vector<32x32xf32>, vector<16x32xf32> -> vector<16x32xf32>
    %c0_184 = arith.constant 0 : index
    %c0_185 = arith.constant 0 : index
    %c0_186 = arith.constant 0 : index
    %434 = vector.load %arg27[%c0_184, %c0_185, %c0_186] : memref<1x1x32xf32, #tpu.memory_space<vmem>>, vector<1x1x32xf32>
    %435 = vector.shape_cast %434 : vector<1x1x32xf32> to vector<1x32xf32>
    %436 = vector.broadcast %435 : vector<1x32xf32> to vector<16x32xf32>
    %437 = arith.addf %433, %436 : vector<16x32xf32>
    %c0_187 = arith.constant 0 : index
    %c0_188 = arith.constant 0 : index
    %c0_189 = arith.constant 0 : index
    %c0_190 = arith.constant 0 : index
    %438 = vector.load %arg43[%c0_187, %c0_188, %c0_189, %c0_190] : memref<1x2x8x8xf32, #tpu.memory_space<vmem>>, vector<1x1x8x8xf32>
    %439 = vector.shape_cast %438 : vector<1x1x8x8xf32> to vector<8x8xf32>
    %440 = vector.shape_cast %364 : vector<8x8xf32> to vector<1x1x8x8xf32>
    tpu.vector_store %arg43[%c0_187, %c0_188, %c0_189, %c0_190], %440 {strides = array<i32>} : memref<1x2x8x8xf32, #tpu.memory_space<vmem>>, vector<1x1x8x8xf32>,
    %c0_191 = arith.constant 0 : index
    %c1_192 = arith.constant 1 : index
    %c0_193 = arith.constant 0 : index
    %c0_194 = arith.constant 0 : index
    %441 = vector.load %arg43[%c0_191, %c1_192, %c0_193, %c0_194] : memref<1x2x8x8xf32, #tpu.memory_space<vmem>>, vector<1x1x8x8xf32>
    %442 = vector.shape_cast %441 : vector<1x1x8x8xf32> to vector<8x8xf32>
    %443 = vector.shape_cast %429 : vector<8x8xf32> to vector<1x1x8x8xf32>
    tpu.vector_store %arg43[%c0_191, %c1_192, %c0_193, %c0_194], %443 {strides = array<i32>} : memref<1x2x8x8xf32, #tpu.memory_space<vmem>>, vector<1x1x8x8xf32>,
    %444 = arith.addf %4, %437 : vector<16x32xf32>
    %c0_195 = arith.constant 0 : index
    %c0_196 = arith.constant 0 : index
    %c0_197 = arith.constant 0 : index
    %445 = vector.load %arg28[%c0_195, %c0_196, %c0_197] : memref<1x1x32xf32, #tpu.memory_space<vmem>>, vector<1x1x32xf32>
    %446 = vector.shape_cast %445 : vector<1x1x32xf32> to vector<1x32xf32>
    %c0_198 = arith.constant 0 : index
    %c0_199 = arith.constant 0 : index
    %c0_200 = arith.constant 0 : index
    %447 = vector.load %arg29[%c0_198, %c0_199, %c0_200] : memref<1x1x32xf32, #tpu.memory_space<vmem>>, vector<1x1x32xf32>
    %448 = vector.shape_cast %447 : vector<1x1x32xf32> to vector<1x32xf32>
    %cst_201 = arith.constant dense<0.000000e+00> : vector<16xf32>
    %449 = vector.multi_reduction <add>, %444, %cst_201 [1] : vector<16x32xf32> to vector<16xf32>
    %450 = vector.shape_cast %449 : vector<16xf32> to vector<16x1xf32>
    %cst_202 = arith.constant 3.200000e+01 : f32
    %451 = vector.broadcast %cst_202 : f32 to vector<16x1xf32>
    %452 = arith.divf %450, %451 : vector<16x1xf32>
    %453 = vector.broadcast %452 : vector<16x1xf32> to vector<16x32xf32>
    %454 = arith.subf %444, %453 : vector<16x32xf32>
    %455 = arith.mulf %454, %454 : vector<16x32xf32>
    %cst_203 = arith.constant dense<0.000000e+00> : vector<16xf32>
    %456 = vector.multi_reduction <add>, %455, %cst_203 [1] : vector<16x32xf32> to vector<16xf32>
    %457 = vector.shape_cast %456 : vector<16xf32> to vector<16x1xf32>
    %cst_204 = arith.constant 3.200000e+01 : f32
    %458 = vector.broadcast %cst_204 : f32 to vector<16x1xf32>
    %459 = arith.divf %457, %458 : vector<16x1xf32>
    %cst_205 = arith.constant 9.99999974E-6 : f32
    %460 = vector.broadcast %cst_205 : f32 to vector<16x1xf32>
    %461 = arith.addf %459, %460 : vector<16x1xf32>
    %462 = math.rsqrt %461 : vector<16x1xf32>
    %463 = vector.broadcast %462 : vector<16x1xf32> to vector<16x32xf32>
    %464 = arith.mulf %454, %463 : vector<16x32xf32>
    %465 = vector.broadcast %446 : vector<1x32xf32> to vector<16x32xf32>
    %466 = arith.mulf %464, %465 : vector<16x32xf32>
    %467 = vector.broadcast %448 : vector<1x32xf32> to vector<16x32xf32>
    %468 = arith.addf %466, %467 : vector<16x32xf32>
    %c0_206 = arith.constant 0 : index
    %c0_207 = arith.constant 0 : index
    %c0_208 = arith.constant 0 : index
    %469 = vector.load %arg30[%c0_206, %c0_207, %c0_208] : memref<1x32x128xf32, #tpu.memory_space<vmem>>, vector<1x32x128xf32>
    %470 = vector.shape_cast %469 : vector<1x32x128xf32> to vector<32x128xf32>
    %c0_209 = arith.constant 0 : index
    %c0_210 = arith.constant 0 : index
    %c0_211 = arith.constant 0 : index
    %471 = vector.load %arg31[%c0_209, %c0_210, %c0_211] : memref<1x1x128xf32, #tpu.memory_space<vmem>>, vector<1x1x128xf32>
    %472 = vector.shape_cast %471 : vector<1x1x128xf32> to vector<1x128xf32>
    %c0_212 = arith.constant 0 : index
    %c0_213 = arith.constant 0 : index
    %c0_214 = arith.constant 0 : index
    %473 = vector.load %arg32[%c0_212, %c0_213, %c0_214] : memref<1x128x32xf32, #tpu.memory_space<vmem>>, vector<1x128x32xf32>
    %474 = vector.shape_cast %473 : vector<1x128x32xf32> to vector<128x32xf32>
    %c0_215 = arith.constant 0 : index
    %c0_216 = arith.constant 0 : index
    %c0_217 = arith.constant 0 : index
    %475 = vector.load %arg33[%c0_215, %c0_216, %c0_217] : memref<1x1x32xf32, #tpu.memory_space<vmem>>, vector<1x1x32xf32>
    %476 = vector.shape_cast %475 : vector<1x1x32xf32> to vector<1x32xf32>
    %cst_218 = arith.constant dense<0.000000e+00> : vector<16x128xf32>
    %477 = tpu.matmul %468, %470, %cst_218 {dimension_numbers = #tpu.dot_dimension_numbers<[1], [0], [0], [1], [0, 0, 1, 1], [], []>, precision = #tpu.contract_precision<fp32>} : vector<16x32xf32>, vector<32x128xf32>, vector<16x128xf32> -> vector<16x128xf32>
    %478 = vector.broadcast %472 : vector<1x128xf32> to vector<16x128xf32>
    %479 = arith.addf %477, %478 : vector<16x128xf32>
    %cst_219 = arith.constant 5.000000e-01 : f32
    %480 = vector.broadcast %cst_219 : f32 to vector<16x128xf32>
    %481 = arith.mulf %480, %479 : vector<16x128xf32>
    %cst_220 = arith.constant 0.707106769 : f32
    %482 = vector.broadcast %cst_220 : f32 to vector<16x128xf32>
    %483 = arith.mulf %479, %482 : vector<16x128xf32>
    %484 = math.absf %483 : vector<16x128xf32>
    %cst_221 = arith.constant 0.327591091 : f32
    %485 = vector.broadcast %cst_221 : f32 to vector<16x128xf32>
    %486 = arith.mulf %485, %484 : vector<16x128xf32>
    %cst_222 = arith.constant 1.000000e+00 : f32
    %487 = vector.broadcast %cst_222 : f32 to vector<16x128xf32>
    %488 = arith.addf %487, %486 : vector<16x128xf32>
    %cst_223 = arith.constant 1.000000e+00 : f32
    %489 = vector.broadcast %cst_223 : f32 to vector<16x128xf32>
    %490 = arith.divf %489, %488 : vector<16x128xf32>
    %cst_224 = arith.constant 1.06140542 : f32
    %491 = vector.broadcast %cst_224 : f32 to vector<16x128xf32>
    %492 = arith.mulf %491, %490 : vector<16x128xf32>
    %cst_225 = arith.constant -1.45315206 : f32
    %493 = vector.broadcast %cst_225 : f32 to vector<16x128xf32>
    %494 = arith.addf %492, %493 : vector<16x128xf32>
    %495 = arith.mulf %494, %490 : vector<16x128xf32>
    %cst_226 = arith.constant 1.42141378 : f32
    %496 = vector.broadcast %cst_226 : f32 to vector<16x128xf32>
    %497 = arith.addf %495, %496 : vector<16x128xf32>
    %498 = arith.mulf %497, %490 : vector<16x128xf32>
    %cst_227 = arith.constant -0.284496725 : f32
    %499 = vector.broadcast %cst_227 : f32 to vector<16x128xf32>
    %500 = arith.addf %498, %499 : vector<16x128xf32>
    %501 = arith.mulf %500, %490 : vector<16x128xf32>
    %cst_228 = arith.constant 0.254829586 : f32
    %502 = vector.broadcast %cst_228 : f32 to vector<16x128xf32>
    %503 = arith.addf %501, %502 : vector<16x128xf32>
    %504 = arith.mulf %503, %490 : vector<16x128xf32>
    %cst_229 = arith.constant 0.000000e+00 : f32
    %505 = vector.broadcast %cst_229 : f32 to vector<16x128xf32>
    %506 = arith.subf %505, %484 : vector<16x128xf32>
    %507 = arith.mulf %506, %484 : vector<16x128xf32>
    %508 = math.exp %507 : vector<16x128xf32>
    %509 = arith.mulf %504, %508 : vector<16x128xf32>
    %cst_230 = arith.constant 1.000000e+00 : f32
    %510 = vector.broadcast %cst_230 : f32 to vector<16x128xf32>
    %511 = arith.subf %510, %509 : vector<16x128xf32>
    %cst_231 = arith.constant 0.000000e+00 : f32
    %512 = vector.broadcast %cst_231 : f32 to vector<16x128xf32>
    %513 = arith.cmpf oge, %483, %512 : vector<16x128xf32>
    %cst_232 = arith.constant 0.000000e+00 : f32
    %514 = vector.broadcast %cst_232 : f32 to vector<16x128xf32>
    %515 = arith.subf %514, %511 : vector<16x128xf32>
    %516 = arith.select %513, %511, %515 : vector<16x128xi1>, vector<16x128xf32>
    %cst_233 = arith.constant 1.000000e+00 : f32
    %517 = vector.broadcast %cst_233 : f32 to vector<16x128xf32>
    %518 = arith.addf %517, %516 : vector<16x128xf32>
    %519 = arith.mulf %481, %518 : vector<16x128xf32>
    %cst_234 = arith.constant dense<0.000000e+00> : vector<16x32xf32>
    %520 = tpu.matmul %519, %474, %cst_234 {dimension_numbers = #tpu.dot_dimension_numbers<[1], [0], [0], [1], [0, 0, 1, 1], [], []>, precision = #tpu.contract_precision<fp32>} : vector<16x128xf32>, vector<128x32xf32>, vector<16x32xf32> -> vector<16x32xf32>
    %521 = vector.broadcast %476 : vector<1x32xf32> to vector<16x32xf32>
    %522 = arith.addf %520, %521 : vector<16x32xf32>
    %523 = arith.addf %468, %522 : vector<16x32xf32>
    %524 = arith.addf %523, %4 : vector<16x32xf32>
    %c0_235 = arith.constant 0 : index
    %c0_236 = arith.constant 0 : index
    %c0_237 = arith.constant 0 : index
    %525 = vector.load %arg34[%c0_235, %c0_236, %c0_237] : memref<1x1x32xf32, #tpu.memory_space<vmem>>, vector<1x1x32xf32>
    %526 = vector.shape_cast %525 : vector<1x1x32xf32> to vector<1x32xf32>
    %c0_238 = arith.constant 0 : index
    %c0_239 = arith.constant 0 : index
    %c0_240 = arith.constant 0 : index
    %527 = vector.load %arg35[%c0_238, %c0_239, %c0_240] : memref<1x1x32xf32, #tpu.memory_space<vmem>>, vector<1x1x32xf32>
    %528 = vector.shape_cast %527 : vector<1x1x32xf32> to vector<1x32xf32>
    %cst_241 = arith.constant dense<0.000000e+00> : vector<16xf32>
    %529 = vector.multi_reduction <add>, %524, %cst_241 [1] : vector<16x32xf32> to vector<16xf32>
    %530 = vector.shape_cast %529 : vector<16xf32> to vector<16x1xf32>
    %cst_242 = arith.constant 3.200000e+01 : f32
    %531 = vector.broadcast %cst_242 : f32 to vector<16x1xf32>
    %532 = arith.divf %530, %531 : vector<16x1xf32>
    %533 = vector.broadcast %532 : vector<16x1xf32> to vector<16x32xf32>
    %534 = arith.subf %524, %533 : vector<16x32xf32>
    %535 = arith.mulf %534, %534 : vector<16x32xf32>
    %cst_243 = arith.constant dense<0.000000e+00> : vector<16xf32>
    %536 = vector.multi_reduction <add>, %535, %cst_243 [1] : vector<16x32xf32> to vector<16xf32>
    %537 = vector.shape_cast %536 : vector<16xf32> to vector<16x1xf32>
    %cst_244 = arith.constant 3.200000e+01 : f32
    %538 = vector.broadcast %cst_244 : f32 to vector<16x1xf32>
    %539 = arith.divf %537, %538 : vector<16x1xf32>
    %cst_245 = arith.constant 9.99999974E-6 : f32
    %540 = vector.broadcast %cst_245 : f32 to vector<16x1xf32>
    %541 = arith.addf %539, %540 : vector<16x1xf32>
    %542 = math.rsqrt %541 : vector<16x1xf32>
    %543 = vector.broadcast %542 : vector<16x1xf32> to vector<16x32xf32>
    %544 = arith.mulf %534, %543 : vector<16x32xf32>
    %545 = vector.broadcast %526 : vector<1x32xf32> to vector<16x32xf32>
    %546 = arith.mulf %544, %545 : vector<16x32xf32>
    %547 = vector.broadcast %528 : vector<1x32xf32> to vector<16x32xf32>
    %548 = arith.addf %546, %547 : vector<16x32xf32>
    %c1_i32 = arith.constant 1 : i32
    %549 = arith.addi %arg1, %c1_i32 : i32
    %c2_i32 = arith.constant 2 : i32
    %550 = arith.cmpi slt, %549, %c2_i32 : i32
    %551 = arith.extui %550 : i1 to i32
    %c0_i32_246 = arith.constant 0 : i32
    %552 = arith.cmpi ne, %551, %c0_i32_246 : i32
    scf.if %552 {
      %c0_249 = arith.constant 0 : index
      %c0_250 = arith.constant 0 : index
      %556 = vector.load %arg44[%c0_249, %c0_250] : memref<16x32xf32, #tpu.memory_space<vmem>>, vector<16x32xf32>
      tpu.vector_store %arg44[%c0_249, %c0_250], %276 {strides = array<i32>} : memref<16x32xf32, #tpu.memory_space<vmem>>, vector<16x32xf32>,
      %c0_251 = arith.constant 0 : index
      %c0_252 = arith.constant 0 : index
      %557 = vector.load %arg45[%c0_251, %c0_252] : memref<16x32xf32, #tpu.memory_space<vmem>>, vector<16x32xf32>
      tpu.vector_store %arg45[%c0_251, %c0_252], %548 {strides = array<i32>} : memref<16x32xf32, #tpu.memory_space<vmem>>, vector<16x32xf32>,
    } else {
    }
    %c1_i32_247 = arith.constant 1 : i32
    %553 = arith.cmpi eq, %arg1, %c1_i32_247 : i32
    %554 = arith.extui %553 : i1 to i32
    %c0_i32_248 = arith.constant 0 : i32
    %555 = arith.cmpi ne, %554, %c0_i32_248 : i32
    scf.if %555 {
      %c0_249 = arith.constant 0 : index
      %c0_250 = arith.constant 0 : index
      %556 = vector.load %arg36[%c0_249, %c0_250] : memref<32x32xf32, #tpu.memory_space<vmem>>, vector<32x32xf32>
      %cst_251 = arith.constant dense<0.000000e+00> : vector<16x32xf32>
      %557 = tpu.matmul %276, %556, %cst_251 {dimension_numbers = #tpu.dot_dimension_numbers<[1], [0], [0], [1], [0, 0, 1, 1], [], []>, precision = #tpu.contract_precision<fp32>} : vector<16x32xf32>, vector<32x32xf32>, vector<16x32xf32> -> vector<16x32xf32>
      %c0_252 = arith.constant 0 : index
      %c0_253 = arith.constant 0 : index
      %558 = vector.load %arg37[%c0_252, %c0_253] : memref<32x32xf32, #tpu.memory_space<vmem>>, vector<32x32xf32>
      %cst_254 = arith.constant dense<0.000000e+00> : vector<16x32xf32>
      %559 = tpu.matmul %548, %558, %cst_254 {dimension_numbers = #tpu.dot_dimension_numbers<[1], [0], [0], [1], [0, 0, 1, 1], [], []>, precision = #tpu.contract_precision<fp32>} : vector<16x32xf32>, vector<32x32xf32>, vector<16x32xf32> -> vector<16x32xf32>
      %560 = arith.addf %557, %559 : vector<16x32xf32>
      %c0_255 = arith.constant 0 : index
      %c0_256 = arith.constant 0 : index
      %561 = vector.load %arg38[%c0_255, %c0_256] : memref<1x32xf32, #tpu.memory_space<vmem>>, vector<1x32xf32>
      %562 = vector.broadcast %561 : vector<1x32xf32> to vector<16x32xf32>
      %563 = arith.addf %560, %562 : vector<16x32xf32>
      %cst_257 = arith.constant 0.000000e+00 : f32
      %564 = vector.broadcast %cst_257 : f32 to vector<16x32xf32>
      %565 = arith.subf %564, %563 : vector<16x32xf32>
      %566 = math.exp %565 : vector<16x32xf32>
      %cst_258 = arith.constant 1.000000e+00 : f32
      %567 = vector.broadcast %cst_258 : f32 to vector<16x32xf32>
      %568 = arith.addf %567, %566 : vector<16x32xf32>
      %cst_259 = arith.constant 1.000000e+00 : f32
      %569 = vector.broadcast %cst_259 : f32 to vector<16x32xf32>
      %570 = arith.divf %569, %568 : vector<16x32xf32>
      %571 = arith.mulf %570, %276 : vector<16x32xf32>
      %cst_260 = arith.constant 1.000000e+00 : f32
      %572 = vector.broadcast %cst_260 : f32 to vector<16x32xf32>
      %573 = arith.subf %572, %570 : vector<16x32xf32>
      %574 = arith.mulf %573, %548 : vector<16x32xf32>
      %575 = arith.addf %571, %574 : vector<16x32xf32>
      %c0_261 = arith.constant 0 : index
      %c0_262 = arith.constant 0 : index
      %576 = vector.load %arg39[%c0_261, %c0_262] : memref<32x32xf32, #tpu.memory_space<vmem>>, vector<32x32xf32>
      %cst_263 = arith.constant dense<0.000000e+00> : vector<16x32xf32>
      %577 = tpu.matmul %575, %576, %cst_263 {dimension_numbers = #tpu.dot_dimension_numbers<[1], [0], [0], [1], [0, 0, 1, 1], [], []>, precision = #tpu.contract_precision<fp32>} : vector<16x32xf32>, vector<32x32xf32>, vector<16x32xf32> -> vector<16x32xf32>
      %c0_264 = arith.constant 0 : index
      %c0_265 = arith.constant 0 : index
      %578 = vector.load %arg40[%c0_264, %c0_265] : memref<1x32xf32, #tpu.memory_space<vmem>>, vector<1x32xf32>
      %579 = vector.broadcast %578 : vector<1x32xf32> to vector<16x32xf32>
      %580 = arith.addf %577, %579 : vector<16x32xf32>
      %c0_266 = arith.constant 0 : index
      %c0_267 = arith.constant 0 : index
      %581 = vector.load %arg41[%c0_266, %c0_267] : memref<16x32xf32, #tpu.memory_space<vmem>>, vector<16x32xf32>
      tpu.vector_store %arg41[%c0_266, %c0_267], %580 {strides = array<i32>} : memref<16x32xf32, #tpu.memory_space<vmem>>, vector<16x32xf32>,
    } else {
    }
    return
  }
  func.func @transform_0(%arg0: i32, %arg1: i32) -> (i32, i32) {
    %c0_i32 = arith.constant 0 : i32
    %c0_i32_0 = arith.constant 0 : i32
    return %arg0, %c0_i32 : i32, i32
  }
  func.func @transform_1(%arg0: i32, %arg1: i32) -> (i32, i32) {
    %c0_i32 = arith.constant 0 : i32
    %c0_i32_0 = arith.constant 0 : i32
    return %arg0, %c0_i32 : i32, i32
  }
  func.func @transform_2(%arg0: i32, %arg1: i32) -> (i32, i32, i32) {
    %c0_i32 = arith.constant 0 : i32
    %c0_i32_0 = arith.constant 0 : i32
    %c0_i32_1 = arith.constant 0 : i32
    return %arg1, %c0_i32, %c0_i32_0 : i32, i32, i32
  }
  func.func @transform_3(%arg0: i32, %arg1: i32) -> (i32, i32, i32) {
    %c0_i32 = arith.constant 0 : i32
    %c0_i32_0 = arith.constant 0 : i32
    %c0_i32_1 = arith.constant 0 : i32
    return %arg1, %c0_i32, %c0_i32_0 : i32, i32, i32
  }
  func.func @transform_4(%arg0: i32, %arg1: i32) -> (i32, i32, i32) {
    %c0_i32 = arith.constant 0 : i32
    %c0_i32_0 = arith.constant 0 : i32
    %c0_i32_1 = arith.constant 0 : i32
    return %arg1, %c0_i32, %c0_i32_0 : i32, i32, i32
  }
  func.func @transform_5(%arg0: i32, %arg1: i32) -> (i32, i32, i32) {
    %c0_i32 = arith.constant 0 : i32
    %c0_i32_0 = arith.constant 0 : i32
    %c0_i32_1 = arith.constant 0 : i32
    return %arg1, %c0_i32, %c0_i32_0 : i32, i32, i32
  }
  func.func @transform_6(%arg0: i32, %arg1: i32) -> (i32, i32, i32) {
    %c0_i32 = arith.constant 0 : i32
    %c0_i32_0 = arith.constant 0 : i32
    %c0_i32_1 = arith.constant 0 : i32
    return %arg1, %c0_i32, %c0_i32_0 : i32, i32, i32
  }
  func.func @transform_7(%arg0: i32, %arg1: i32) -> (i32, i32, i32) {
    %c0_i32 = arith.constant 0 : i32
    %c0_i32_0 = arith.constant 0 : i32
    %c0_i32_1 = arith.constant 0 : i32
    return %arg1, %c0_i32, %c0_i32_0 : i32, i32, i32
  }
  func.func @transform_8(%arg0: i32, %arg1: i32) -> (i32, i32, i32) {
    %c0_i32 = arith.constant 0 : i32
    %c0_i32_0 = arith.constant 0 : i32
    %c0_i32_1 = arith.constant 0 : i32
    return %arg1, %c0_i32, %c0_i32_0 : i32, i32, i32
  }
  func.func @transform_9(%arg0: i32, %arg1: i32) -> (i32, i32, i32) {
    %c0_i32 = arith.constant 0 : i32
    %c0_i32_0 = arith.constant 0 : i32
    %c0_i32_1 = arith.constant 0 : i32
    return %arg1, %c0_i32, %c0_i32_0 : i32, i32, i32
  }
  func.func @transform_10(%arg0: i32, %arg1: i32) -> (i32, i32, i32) {
    %c0_i32 = arith.constant 0 : i32
    %c0_i32_0 = arith.constant 0 : i32
    %c0_i32_1 = arith.constant 0 : i32
    return %arg1, %c0_i32, %c0_i32_0 : i32, i32, i32
  }
  func.func @transform_11(%arg0: i32, %arg1: i32) -> (i32, i32, i32) {
    %c0_i32 = arith.constant 0 : i32
    %c0_i32_0 = arith.constant 0 : i32
    %c0_i32_1 = arith.constant 0 : i32
    return %arg1, %c0_i32, %c0_i32_0 : i32, i32, i32
  }
  func.func @transform_12(%arg0: i32, %arg1: i32) -> (i32, i32, i32) {
    %c0_i32 = arith.constant 0 : i32
    %c0_i32_0 = arith.constant 0 : i32
    %c0_i32_1 = arith.constant 0 : i32
    return %arg1, %c0_i32, %c0_i32_0 : i32, i32, i32
  }
  func.func @transform_13(%arg0: i32, %arg1: i32) -> (i32, i32, i32) {
    %c0_i32 = arith.constant 0 : i32
    %c0_i32_0 = arith.constant 0 : i32
    %c0_i32_1 = arith.constant 0 : i32
    return %arg1, %c0_i32, %c0_i32_0 : i32, i32, i32
  }
  func.func @transform_14(%arg0: i32, %arg1: i32) -> (i32, i32, i32) {
    %c0_i32 = arith.constant 0 : i32
    %c0_i32_0 = arith.constant 0 : i32
    %c0_i32_1 = arith.constant 0 : i32
    return %arg1, %c0_i32, %c0_i32_0 : i32, i32, i32
  }
  func.func @transform_15(%arg0: i32, %arg1: i32) -> (i32, i32, i32) {
    %c0_i32 = arith.constant 0 : i32
    %c0_i32_0 = arith.constant 0 : i32
    %c0_i32_1 = arith.constant 0 : i32
    return %arg1, %c0_i32, %c0_i32_0 : i32, i32, i32
  }
  func.func @transform_16(%arg0: i32, %arg1: i32) -> (i32, i32, i32) {
    %c0_i32 = arith.constant 0 : i32
    %c0_i32_0 = arith.constant 0 : i32
    %c0_i32_1 = arith.constant 0 : i32
    return %arg1, %c0_i32, %c0_i32_0 : i32, i32, i32
  }
  func.func @transform_17(%arg0: i32, %arg1: i32) -> (i32, i32, i32) {
    %c0_i32 = arith.constant 0 : i32
    %c0_i32_0 = arith.constant 0 : i32
    %c0_i32_1 = arith.constant 0 : i32
    return %arg1, %c0_i32, %c0_i32_0 : i32, i32, i32
  }
  func.func @transform_18(%arg0: i32, %arg1: i32) -> (i32, i32, i32) {
    %c0_i32 = arith.constant 0 : i32
    %c0_i32_0 = arith.constant 0 : i32
    %c0_i32_1 = arith.constant 0 : i32
    return %arg1, %c0_i32, %c0_i32_0 : i32, i32, i32
  }
  func.func @transform_19(%arg0: i32, %arg1: i32) -> (i32, i32, i32) {
    %c0_i32 = arith.constant 0 : i32
    %c0_i32_0 = arith.constant 0 : i32
    %c0_i32_1 = arith.constant 0 : i32
    return %arg1, %c0_i32, %c0_i32_0 : i32, i32, i32
  }
  func.func @transform_20(%arg0: i32, %arg1: i32) -> (i32, i32, i32) {
    %c0_i32 = arith.constant 0 : i32
    %c0_i32_0 = arith.constant 0 : i32
    %c0_i32_1 = arith.constant 0 : i32
    return %arg1, %c0_i32, %c0_i32_0 : i32, i32, i32
  }
  func.func @transform_21(%arg0: i32, %arg1: i32) -> (i32, i32, i32) {
    %c0_i32 = arith.constant 0 : i32
    %c0_i32_0 = arith.constant 0 : i32
    %c0_i32_1 = arith.constant 0 : i32
    return %arg1, %c0_i32, %c0_i32_0 : i32, i32, i32
  }
  func.func @transform_22(%arg0: i32, %arg1: i32) -> (i32, i32, i32) {
    %c0_i32 = arith.constant 0 : i32
    %c0_i32_0 = arith.constant 0 : i32
    %c0_i32_1 = arith.constant 0 : i32
    return %arg1, %c0_i32, %c0_i32_0 : i32, i32, i32
  }
  func.func @transform_23(%arg0: i32, %arg1: i32) -> (i32, i32, i32) {
    %c0_i32 = arith.constant 0 : i32
    %c0_i32_0 = arith.constant 0 : i32
    %c0_i32_1 = arith.constant 0 : i32
    return %arg1, %c0_i32, %c0_i32_0 : i32, i32, i32
  }
  func.func @transform_24(%arg0: i32, %arg1: i32) -> (i32, i32, i32) {
    %c0_i32 = arith.constant 0 : i32
    %c0_i32_0 = arith.constant 0 : i32
    %c0_i32_1 = arith.constant 0 : i32
    return %arg1, %c0_i32, %c0_i32_0 : i32, i32, i32
  }
  func.func @transform_25(%arg0: i32, %arg1: i32) -> (i32, i32, i32) {
    %c0_i32 = arith.constant 0 : i32
    %c0_i32_0 = arith.constant 0 : i32
    %c0_i32_1 = arith.constant 0 : i32
    return %arg1, %c0_i32, %c0_i32_0 : i32, i32, i32
  }
  func.func @transform_26(%arg0: i32, %arg1: i32) -> (i32, i32, i32) {
    %c0_i32 = arith.constant 0 : i32
    %c0_i32_0 = arith.constant 0 : i32
    %c0_i32_1 = arith.constant 0 : i32
    return %arg1, %c0_i32, %c0_i32_0 : i32, i32, i32
  }
  func.func @transform_27(%arg0: i32, %arg1: i32) -> (i32, i32, i32) {
    %c0_i32 = arith.constant 0 : i32
    %c0_i32_0 = arith.constant 0 : i32
    %c0_i32_1 = arith.constant 0 : i32
    return %arg1, %c0_i32, %c0_i32_0 : i32, i32, i32
  }
  func.func @transform_28(%arg0: i32, %arg1: i32) -> (i32, i32, i32) {
    %c0_i32 = arith.constant 0 : i32
    %c0_i32_0 = arith.constant 0 : i32
    %c0_i32_1 = arith.constant 0 : i32
    return %arg1, %c0_i32, %c0_i32_0 : i32, i32, i32
  }
  func.func @transform_29(%arg0: i32, %arg1: i32) -> (i32, i32, i32) {
    %c0_i32 = arith.constant 0 : i32
    %c0_i32_0 = arith.constant 0 : i32
    %c0_i32_1 = arith.constant 0 : i32
    return %arg1, %c0_i32, %c0_i32_0 : i32, i32, i32
  }
  func.func @transform_30(%arg0: i32, %arg1: i32) -> (i32, i32, i32) {
    %c0_i32 = arith.constant 0 : i32
    %c0_i32_0 = arith.constant 0 : i32
    %c0_i32_1 = arith.constant 0 : i32
    return %arg1, %c0_i32, %c0_i32_0 : i32, i32, i32
  }
  func.func @transform_31(%arg0: i32, %arg1: i32) -> (i32, i32, i32) {
    %c0_i32 = arith.constant 0 : i32
    %c0_i32_0 = arith.constant 0 : i32
    %c0_i32_1 = arith.constant 0 : i32
    return %arg1, %c0_i32, %c0_i32_0 : i32, i32, i32
  }
  func.func @transform_32(%arg0: i32, %arg1: i32) -> (i32, i32, i32) {
    %c0_i32 = arith.constant 0 : i32
    %c0_i32_0 = arith.constant 0 : i32
    %c0_i32_1 = arith.constant 0 : i32
    return %arg1, %c0_i32, %c0_i32_0 : i32, i32, i32
  }
  func.func @transform_33(%arg0: i32, %arg1: i32) -> (i32, i32, i32) {
    %c0_i32 = arith.constant 0 : i32
    %c0_i32_0 = arith.constant 0 : i32
    %c0_i32_1 = arith.constant 0 : i32
    return %arg1, %c0_i32, %c0_i32_0 : i32, i32, i32
  }
  func.func @transform_34(%arg0: i32, %arg1: i32) -> (i32, i32) {
    %c0_i32 = arith.constant 0 : i32
    %c0_i32_0 = arith.constant 0 : i32
    %c0_i32_1 = arith.constant 0 : i32
    return %c0_i32, %c0_i32_0 : i32, i32
  }
  func.func @transform_35(%arg0: i32, %arg1: i32) -> (i32, i32) {
    %c0_i32 = arith.constant 0 : i32
    %c0_i32_0 = arith.constant 0 : i32
    %c0_i32_1 = arith.constant 0 : i32
    return %c0_i32, %c0_i32_0 : i32, i32
  }
  func.func @transform_36(%arg0: i32, %arg1: i32) -> (i32, i32) {
    %c0_i32 = arith.constant 0 : i32
    %c0_i32_0 = arith.constant 0 : i32
    %c0_i32_1 = arith.constant 0 : i32
    return %c0_i32, %c0_i32_0 : i32, i32
  }
  func.func @transform_37(%arg0: i32, %arg1: i32) -> (i32, i32) {
    %c0_i32 = arith.constant 0 : i32
    %c0_i32_0 = arith.constant 0 : i32
    %c0_i32_1 = arith.constant 0 : i32
    return %c0_i32, %c0_i32_0 : i32, i32
  }
  func.func @transform_38(%arg0: i32, %arg1: i32) -> (i32, i32) {
    %c0_i32 = arith.constant 0 : i32
    %c0_i32_0 = arith.constant 0 : i32
    %c0_i32_1 = arith.constant 0 : i32
    return %c0_i32, %c0_i32_0 : i32, i32
  }
  func.func @transform_39(%arg0: i32, %arg1: i32) -> (i32, i32) {
    %c0_i32 = arith.constant 0 : i32
    %c0_i32_0 = arith.constant 0 : i32
    return %arg0, %c0_i32 : i32, i32
  }
  func.func @transform_40(%arg0: i32, %arg1: i32) -> (i32, i32, i32, i32) {
    %c0_i32 = arith.constant 0 : i32
    %c0_i32_0 = arith.constant 0 : i32
    %c0_i32_1 = arith.constant 0 : i32
    return %arg1, %arg0, %c0_i32, %c0_i32_0 : i32, i32, i32, i32
  }
  func.func @transform_41(%arg0: i32, %arg1: i32) -> (i32, i32, i32, i32) {
    %c0_i32 = arith.constant 0 : i32
    %c0_i32_0 = arith.constant 0 : i32
    %c0_i32_1 = arith.constant 0 : i32
    return %arg1, %arg0, %c0_i32, %c0_i32_0 : i32, i32, i32, i32
  }
}

</mosaic_0001>

<bundles_post_ra>
// kernel: tpu_custom_call.1
= control target key start
LH: loop header
LB: loop body
LE: loop exit
PB: predicated region body
PF: predicated region fallthrough
CT: control target
= control target key end

     0   :  { %s31344_s6 = smov 1   ;;  %s31345_s10 = smov 2   ;;  %s35495_s0 = inlined_call_operand.smem [shape: u32[42], index: -1, kind: input, shape index: {}] }
   0x1   :  { %s31434_s5 = sld [smem:[%s35495_s0]]   ;;  %s31346_s14 = smov 3  }
   0x2   :  { %s31439_s9 = sld [smem:[%s35495_s0 + %s31344_s6]]   ;;  %s31347_s18 = smov 4  }
   0x3   :  { %s31444_s13 = sld [smem:[%s35495_s0 + %s31345_s10]]   ;;  %s31348_s22 = smov 5  }
   0x4   :  { %s31449_s17 = sld [smem:[%s35495_s0 + %s31346_s14]]   ;;  %s31349_s26 = smov 6  }
   0x5   :  { %s31454_s21 = sld [smem:[%s35495_s0 + %s31347_s18]]   ;;  %s31350_s30 = smov 7  }
   0x6   :  { %s31459_s25 = sld [smem:[%s35495_s0 + %s31348_s22]]   ;;  %s31351_s4 = smov 8  }
   0x7   :  { %35663 = sst [smem:[#allocation63_spill]] %s31434_s5  ;;  %s31352_s10 = smov 9  }
   0x8   :  { %35664 = sst [smem:[#allocation64_spill]] %s31439_s9  ;;  %s31353_s15 = smov 10  }
   0x9   :  { %35665 = sst [smem:[#allocation65_spill]] %s31444_s13  ;;  %s31354_s20 = smov 11  }
   0xa   :  { %35666 = sst [smem:[#allocation66_spill]] %s31449_s17  ;;  %s31356_s1 = smov 13  }
   0xb   :  { %35667 = sst [smem:[#allocation67_spill]] %s31454_s21  ;;  %s31357_s7 = smov 14  }
   0xc   :  { %35668 = sst [smem:[#allocation68_spill]] %s31459_s25  ;;  %s31359_s22 = smov 16  }
   0xd   :  { %s31464_s29 = sld [smem:[%s35495_s0 + %s31349_s26]]   ;;  %s31355_s26 = smov 12  }
   0xe   :  { %s31469_s3 = sld [smem:[%s35495_s0 + %s31350_s30]]   ;;  %s31360_s28 = smov 17  }
   0xf   :  { %s31474_s8 = sld [smem:[%s35495_s0 + %s31351_s4]]  }
  0x10   :  { %s31479_s14 = sld [smem:[%s35495_s0 + %s31352_s10]]  }
  0x11   :  { %s31484_s19 = sld [smem:[%s35495_s0 + %s31353_s15]]   ;;  %s31358_s15 = smov 15  }
  0x12   :  { %s31489_s24 = sld [smem:[%s35495_s0 + %s31354_s20]]  }
  0x13   :  { %35669 = sst [smem:[#allocation69_spill]] %s31464_s29 }
  0x14   :  { %35670 = sst [smem:[#allocation70_spill]] %s31469_s3 }
  0x15   :  { %35671 = sst [smem:[#allocation71_spill]] %s31474_s8 }
  0x16   :  { %35672 = sst [smem:[#allocation72_spill]] %s31479_s14 }
  0x17   :  { %35673 = sst [smem:[#allocation73_spill]] %s31484_s19 }
  0x18   :  { %35674 = sst [smem:[#allocation74_spill]] %s31489_s24 }
  0x19   :  { %s31494_s30 = sld [smem:[%s35495_s0 + %s31355_s26]]  }
  0x1a   :  { %s31499_s6 = sld [smem:[%s35495_s0 + %s31356_s1]]  }
  0x1b   :  { %s31504_s12 = sld [smem:[%s35495_s0 + %s31357_s7]]   ;;  %s31361_s7 = smov 18  }
  0x1c   :  { %s31509_s20 = sld [smem:[%s35495_s0 + %s31358_s15]]   ;;  %s31362_s15 = smov 19  }
  0x1d   :  { %s31514_s27 = sld [smem:[%s35495_s0 + %s31359_s22]]   ;;  %s31363_s22 = smov 20  }
  0x1e   :  { %s31519_s4 = sld [smem:[%s35495_s0 + %s31360_s28]]   ;;  %s31364_s28 = smov 21  }
  0x1f   :  { %35675 = sst [smem:[#allocation75_spill]] %s31494_s30 }
  0x20   :  { %35676 = sst [smem:[#allocation76_spill]] %s31499_s6 }
  0x21   :  { %35677 = sst [smem:[#allocation77_spill]] %s31504_s12 }
  0x22   :  { %35678 = sst [smem:[#allocation78_spill]] %s31509_s20 }
  0x23   :  { %35679 = sst [smem:[#allocation79_spill]] %s31514_s27 }
  0x24   :  { %35680 = sst [smem:[#allocation80_spill]] %s31519_s4 }
  0x25   :  { %s31524_s12 = sld [smem:[%s35495_s0 + %s31361_s7]]   ;;  %s31365_s7 = smov 22  }
  0x26   :  { %s31529_s30 = sld [smem:[%s35495_s0 + %s31362_s15]]   ;;  %s31366_s15 = smov 23  }
  0x27   :  { %s31534_s8 = sld [smem:[%s35495_s0 + %s31363_s22]]   ;;  %s31367_s22 = smov 24  }
  0x28   :  { %s31539_s29 = sld [smem:[%s35495_s0 + %s31364_s28]]   ;;  %s31368_s28 = smov 25  }
  0x29   :  { %s31549_s21 = sld [smem:[%s35495_s0 + %s31366_s15]]   ;;  %s31370_s15 = smov 27  }
  0x2a   :  { %s31559_s13 = sld [smem:[%s35495_s0 + %s31368_s28]]   ;;  %s31372_s28 = smov 29  }
  0x2b   :  { %35681 = sst [smem:[#allocation81_spill]] %s31524_s12 }
  0x2c   :  { %35682 = sst [smem:[#allocation82_spill]] %s31529_s30 }
  0x2d   :  { %35683 = sst [smem:[#allocation83_spill]] %s31534_s8 }
  0x2e   :  { %35684 = sst [smem:[#allocation84_spill]] %s31539_s29 }
  0x2f   :  { %s31544_s12 = sld [smem:[%s35495_s0 + %s31365_s7]]   ;;  %s31369_s7 = smov 26  }
  0x30   :  { %35686 = sst [smem:[#allocation86_spill]] %s31549_s21 }
  0x31   :  { %s31554_s8 = sld [smem:[%s35495_s0 + %s31367_s22]]   ;;  %s31371_s22 = smov 28  }
  0x32   :  { %35688 = sst [smem:[#allocation88_spill]] %s31559_s13 }
  0x33   :  { %s31569_s21 = sld [smem:[%s35495_s0 + %s31370_s15]]   ;;  %s31374_s15 = smov 31  }
  0x34   :  { %s31579_s30 = sld [smem:[%s35495_s0 + %s31372_s28]]   ;;  %s31376_s28 = smov 33  }
  0x35   :  { %35685 = sst [smem:[#allocation85_spill]] %s31544_s12 }
  0x36   :  { %s31564_s12 = sld [smem:[%s35495_s0 + %s31369_s7]]   ;;  %s31373_s7 = smov 30  }
  0x37   :  { %35687 = sst [smem:[#allocation87_spill]] %s31554_s8 }
  0x38   :  { %s31574_s8 = sld [smem:[%s35495_s0 + %s31371_s22]]   ;;  %s31375_s22 = smov 32  }
  0x39   :  { %35690 = sst [smem:[#allocation90_spill]] %s31569_s21 }
  0x3a   :  { %35692 = sst [smem:[#allocation92_spill]] %s31579_s30 }
  0x3b   :  { %s31589_s27 = sld [smem:[%s35495_s0 + %s31374_s15]]   ;;  %s31378_s15 = smov 35  }
  0x3c   :  { %35689 = sst [smem:[#allocation89_spill]] %s31564_s12 }
  0x3d   :  { %s31584_s12 = sld [smem:[%s35495_s0 + %s31373_s7]]   ;;  %s31377_s7 = smov 34  }
  0x3e   :  { %35691 = sst [smem:[#allocation91_spill]] %s31574_s8 }
  0x3f   :  { %s31594_s8 = sld [smem:[%s35495_s0 + %s31375_s22]]   ;;  %s31379_s22 = smov 36  }
  0x40   :  { %s31599_s6 = sld [smem:[%s35495_s0 + %s31376_s28]]   ;;  %s31380_s28 = smov 37  }
  0x41   :  { %35694 = sst [smem:[#allocation94_spill]] %s31589_s27 }
  0x42   :  { %s31609_s27 = sld [smem:[%s35495_s0 + %s31378_s15]]   ;;  %s31382_s15 = smov 39  }
  0x43   :  { %35693 = sst [smem:[#allocation93_spill]] %s31584_s12 }
  0x44   :  { %s31604_s12 = sld [smem:[%s35495_s0 + %s31377_s7]]   ;;  %s31381_s7 = smov 38  }
  0x45   :  { %35695 = sst [smem:[#allocation95_spill]] %s31594_s8 }
  0x46   :  { %35696 = sst [smem:[#allocation96_spill]] %s31599_s6 }
  0x47   :  { %s31614_s19 = sld [smem:[%s35495_s0 + %s31379_s22]]   ;;  %s31383_s22 = smov 40  }
  0x48   :  { %35698 = sst [smem:[#allocation98_spill]] %s31609_s27 }
  0x49   :  { %s31619_s6 = sld [smem:[%s35495_s0 + %s31380_s28]]   ;;  %s31384_s28 = smov 41  }
  0x4a   :  { %35697 = sst [smem:[#allocation97_spill]] %s31604_s12 }
  0x4b   :  { %s31624_s12 = sld [smem:[%s35495_s0 + %s31381_s7]]  }
  0x4c   :  { %s31629_s3 = sld [smem:[%s35495_s0 + %s31382_s15]]  }
  0x4d   :  { %35699 = sst [smem:[#allocation99_spill]] %s31614_s19 }
  0x4e   :  { %s31634_s19 = sld [smem:[%s35495_s0 + %s31383_s22]]  }
  0x4f   :  { %35700 = sst [smem:[#allocation100_spill]] %s31619_s6 }
  0x50   :  { %s31639_s6 = sld [smem:[%s35495_s0 + %s31384_s28]]  }
  0x51   :  { %35701 = sst [smem:[#allocation101_spill]] %s31624_s12 }
  0x52   :  { %35702 = sst [smem:[#allocation102_spill]] %s31629_s3 }
  0x54   :  { %35703 = sst [smem:[#allocation103_spill]] %s31634_s19 }
  0x56   :  { %35704 = sst [smem:[#allocation104_spill]] %s31639_s6 }
  0x57   :  { %89 = vsyncpa [#allocation5], 0 }
  0x58   :  { %91 = vsyncpa [#allocation5 + $0x1], 0 }
  0x59   :  { %92 = vsyncpa [#allocation8], 0 }
  0x5a   :  { %94 = vsyncpa [#allocation8 + $0x1], 0 }
  0x5b   :  { %95 = vsyncpa [#allocation11], 0 }
  0x5c   :  { %97 = vsyncpa [#allocation11 + $0x1], 0 }
  0x5d   :  { %98 = vsyncpa [#allocation14], 0 }
  0x5e   :  { %100 = vsyncpa [#allocation14 + $0x1], 0 }
  0x5f   :  { %101 = vsyncpa [#allocation17], 0 }
  0x60   :  { %103 = vsyncpa [#allocation17 + $0x1], 0 }
  0x61   :  { %104 = vsyncpa [#allocation20], 0 }
  0x62   :  { %106 = vsyncpa [#allocation20 + $0x1], 0 }
  0x63   :  { %107 = vsyncpa [#allocation23], 0 }
  0x64   :  { %109 = vsyncpa [#allocation23 + $0x1], 0 }
  0x65   :  { %110 = vsyncpa [#allocation26], 0 }
  0x66   :  { %112 = vsyncpa [#allocation26 + $0x1], 0 }
  0x67   :  { %113 = vsyncpa [#allocation29], 0 }
  0x68   :  { %115 = vsyncpa [#allocation29 + $0x1], 0 }
  0x69   :  { %116 = vsyncpa [#allocation32], 0 }
  0x6a   :  { %118 = vsyncpa [#allocation32 + $0x1], 0 }
  0x6b   :  { %119 = vsyncpa [#allocation35], 0 }
  0x6c   :  { %121 = vsyncpa [#allocation35 + $0x1], 0 }
  0x6d   :  { %122 = vsyncpa [#allocation38], 0 }
  0x6e   :  { %124 = vsyncpa [#allocation38 + $0x1], 0 }
  0x6f   :  { %125 = vsyncpa [#allocation41], 0 }
  0x70   :  { %126 = vsyncpa [#allocation6], 0 }
  0x71   :  { %128 = vsyncpa [#allocation6 + $0x1], 0 }
  0x72   :  { %129 = vsyncpa [#allocation45], 0 }
  0x73   :  { %131 = vsyncpa [#allocation45 + $0x1], 0  ;;  %s31641_s0 = smov 0   ;;  %s31643_s7 = smov 0  }
  0x74   :  { %s31645_s10 = smov 0   ;;  %s31647_s11 = smov 0  }
  0x75   :  { %s31649_s15 = smov 0   ;;  %s31651_s16 = smov 0  }
  0x76   :  { %s31653_s18 = smov 0   ;;  %s31655_s22 = smov 0  }
  0x77   :  { %s31657_s23 = smov 0   ;;  %s31659_s26 = smov 0  }
  0x78   :  { %s31661_s28 = smov 0   ;;  %s31663_s1 = smov 0  }
  0x79   :  { %s31665_s2 = smov 0   ;;  %s31667_s3 = smov 0  }
  0x7a LB: > { %s35705_s25 = sld [smem:[#allocation68_spill]]  ;;  %s31712_s6 = sadd.s32 4294967295, %s31342_s3   ;;  %s31306_s15 = sphi %s31649_s15, %s35953_s15   ;;  %s31302_s11 = sphi %s31647_s11, %s35952_s11   ;;  %s31298_s10 = sphi %s31645_s10, %s35963_s10   ;;  %s31294_s7 = sphi %s31643_s7, %s35950_s7   ;;  %s31290_s0 = sphi %s31641_s0, %s35949_s0   ;;  %s31342_s3 = sphi %s31667_s3, %s137_s3   ;;  %s31338_s2 = sphi %s31665_s2, %s35961_s2   ;;  %s31334_s1 = sphi %s31663_s1, %s35960_s1   ;;  %s31330_s28 = sphi %s31661_s28, %s35959_s28   ;;  %s31326_s26 = sphi %s31659_s26, %s35958_s26   ;;  %s31322_s23 = sphi %s31657_s23, %s35957_s23   ;;  %s31318_s22 = sphi %s31655_s22, %s35956_s22   ;;  %s31314_s18 = sphi %s31653_s18, %s35955_s18   ;;  %s31310_s16 = sphi %s31651_s16, %s35964_s16  }
  0x7b   : > { %s35706_s24 = sld [smem:[#allocation74_spill]]  ;;  %s156_s17 = sadd.s32 1, %s31322_s23 }
  0x7c   : > { %s35707_s20 = sld [smem:[#allocation78_spill]]  ;;  %p163_p1 = scmp.ne.s32.totalorder %s31322_s23, %s31318_s22 }
  0x7d   : > { %s35708_s14 = sld [smem:[#allocation72_spill]]  ;;  %p164_p2 = scmp.eq.s32.totalorder %s31342_s3, 0 }
  0x7e   : > { %s35709_s9 = sld [smem:[#allocation64_spill]]  ;;  %p169_p4 = scmp.ne.s32.totalorder %s31318_s22, %s31314_s18 }
  0x7f   : > { %35710 = sst [smem:[#allocation105_spill]] %s31294_s7  ;;  %p31729_p3 = por %p164_p2, %p163_p1 }
  0x80   : > { %35711 = sst [smem:[#allocation106_spill]] %s31298_s10  ;;  %p35525_p6 = scmp.eq.s32.totalorder %s31712_s6, 0 }
  0x81   : > { %35712 = sst [smem:[#allocation107_spill]] %s31306_s15  ;;  %s234_s8 = sadd.s32 1, %s31310_s16 }
  0x82   : > { %35713 = sst [smem:[#allocation108_spill]] %s31310_s16  ;;  %p31746_p7 = por %p35525_p6, %p169_p4 }
  0x83   : > { %35714 = sst [smem:[#allocation109_spill]] %s31314_s18  ;;  %p241_p9 = scmp.ne.s32.totalorder %s31310_s16, %s31306_s15 }
  0x84   : > { %35715 = sst [smem:[#allocation110_spill]] %s31318_s22  ;;  %p247_p11 = scmp.ne.s32.totalorder %s31306_s15, %s31302_s11 }
  0x85   : > { %35716 = sst [smem:[#allocation111_spill]] %s31322_s23  ;;  %p31764_p12 = por %p241_p9, %p164_p2 }
  0x86   : > { %35717 = sst [smem:[#allocation112_spill]] %s31326_s26  ;;  %s149_s26 = sadd.s32 1, %s31338_s2 }
  0x87   : > { %35718 = sst [smem:[#allocation113_spill]] %s31330_s28  ;;  %s146_s28 = sadd.s32 1, %s31334_s1 }
  0x88   : > { %35719 = sst [smem:[#allocation114_spill]] %s31334_s1  ;;  %p147_p0 = scmp.ge.s32.totalorder %s146_s28, 2 }
  0x89   : > { %35720 = sst [smem:[#allocation115_spill]] %s31338_s2  ;;  %p31770_p13 = por %p247_p11, %p35525_p6 }
  0x8a   : > { %35721 = sst [smem:[#allocation116_spill]] %s31342_s3  ;;  %s35966_s28 = smov (%p147_p0, %s146_s28), 0 }
  0x8b   : > { %35722 = sst [smem:[#allocation117_spill]] %s35966_s28  ;;  %s35968_s26 = smov (!%p147_p0, %s149_s26), %s31338_s2 }
  0x8c   : > { %p151_p5 = scmp.ge.s32.totalorder %s35968_s26, 2  ;;  %s231_s5 = ssub.s32 %s31334_s1, %s35966_s28 }
  0x8d   : > { %s35725_s30 = scalar_select %p31746_p7, 1, 0 }
  0x8e   : > { %s35970_s26 = smov (%p151_p5, %s35968_s26), 0  ;;  %p232_p8 = scmp.eq.s32.totalorder %s231_s5, 0 }
  0x8f   : > { %35724 = sst [smem:[#allocation118_spill]] %s35970_s26  ;;  %s153_s21 = ssub.s32 %s31338_s2, %s35970_s26 }
  0x90   : > { %35726 = sst [smem:[#allocation119_spill]] %s35725_s30  ;;  %p154_p10 = scmp.eq.s32.totalorder %s153_s21, 0 }
  0x91   : > { %s31757_s28 = scalar_select %p232_p8, %s31310_s16, %s234_s8  }
  0x92   : > { %s31760_s13 = scalar_select %p154_p10, %s31322_s23, %s156_s17  }
  0x93   : > { %35727 = sst [smem:[#allocation120_spill]] %s31757_s28  ;;  %p1156_p0 = scmp.eq.s32.totalorder %s31712_s6, 3 }
  0x94   : > { %35728 = sst [smem:[#allocation121_spill]] %s31760_s13  ;;  %s35731_s30 = sadd.s32 4294967294, %s31342_s3  }
  0x95   : > { %s35729_s29 = scalar_select %p31764_p12, 1, 0 }
  0x96   : > { %s35730_s26 = scalar_select %p31770_p13, 1, 0 }
  0x97   : > { %p1162_p5 = scmp.eq.s32.totalorder %s35731_s30, 3  ;;  %s1170_s4 = sor.u32 %s231_s5, %s153_s21 }
  0x98   : > { %s1173_s11 = sadd.s32 1, %s31298_s10  ;;  %p31781_p8 = por %p1156_p0, %p163_p1 }
  0x99   : > { %p31788_p2 = por %p1162_p5, %p169_p4  ;;  %p1171_p9 = scmp.eq.s32.totalorder %s1170_s4, 0 }
  0x9a   : > { %s35732_s17 = scalar_select %p31781_p8, 1, 0 }
  0x9b   : > { %s35734_s8 = scalar_select %p31788_p2, 1, 0 }
  0x9c   : > { %35733 = sst [smem:[#allocation122_spill]] %s35732_s17  ;;  %p1183_p10 = scmp.ne.s32.totalorder %s31298_s10, %s31294_s7 }
  0x9d   : > { %35735 = sst [smem:[#allocation123_spill]] %s35734_s8  ;;  %p1189_p11 = scmp.ne.s32.totalorder %s31294_s7, %s31290_s0 }
  0x9e   : > { %p26653_p6 = scmp.ge.s32.totalorder %s31342_s3, 1  ;;  %p31800_p13 = por %p1183_p10, %p1156_p0 }
  0x9f   : > { %s31798_s13 = scalar_select %p1171_p9, %s31298_s10, %s1173_s11  }
  0xa0   : > { %s35737_s5 = scalar_select %p31800_p13, 1, 0 }
  0xa1   : > { %35736 = sst [smem:[#allocation124_spill]] %s31798_s13  ;;  %p31804_p1 = por %p1189_p11, %p1162_p5 }
  0xa2   : > { %p1225_p8 = scmp.lt.s32.totalorder %s31342_s3, 5  ;;  %s31385_s4 = smov [#allocation40]  }
  0xa3   : > { %s35738_s21 = scalar_select %p31804_p1, 1, 0 }
  0xa4   : > { %p31809_p4 = pnand %p26653_p6, %p1225_p8  ;;  %s1240_s28 = sshll.u32 %s31385_s4, 4  ;;  %s1241_s28 = int_to_ptr.vmem [resolvable:$true] %s1240_s28 }
  0xa5   : > { %35739 = sst [smem:[#allocation125_spill]] %s35738_s21  ;;  %s31386_s0 = smov [#allocation42]  }
  0xa6   : > { %s35740_s30 = scalar_select %p31809_p4, 1, 0 }
  0xa7   : > { %p30138_p2 = pneg %p31809_p4  ;;  %s1260_s11 = sshll.u32 %s31386_s0, 4  ;;  %s1261_s11 = int_to_ptr.vmem [resolvable:$true] %s1260_s11 }
  0xa8   : > { %p35741_p0 = scmp.eq.s32.totalorder %s31712_s6, 0  ;;  %s30451_s10 = scalar_lea.vmem %s1241_s28, 512 }
  0xa9   : > { %p30452_p5 = scmp.ne.s32.totalorder %s1241_s28, %s30451_s10  ;;  %p30459_p11 = scmp.lt.s32.totalorder %s1241_s28, %s1241_s28 }
  0xaa   : > { %p31817_p9 = pnand %p30138_p2, %p35741_p0  ;;  %p30460_p1 = scmp.lt.s32.totalorder %s30451_s10, %s30451_s10 }
  0xac   : > { %p30442_p6 = pneg %p31817_p9  ;;  %p30461_p13 = por %p30460_p1, %p30459_p11 }
  0xae   : > { %p30454_p8 = pnand %p30452_p5, %p30442_p6 }
  0xb0   : > { %p30455_p10 = pneg %p30454_p8 }
  0xb2   : > { %p30462_p7 = pnand %p30461_p13, %p30455_p10 }
  0xb4   : > { %30465 = shalt.err (!%p30462_p7)
}
  0xb5   : > { %s31387_s4 = smov 128   ;;  %s35743_s27 = sld [smem:[#allocation98_spill]] }
  0xb6   : > { %s31388_s0 = smov 8   ;;  %s30477_s21 = scalar_lea.vmem %s1261_s11, 16 }
  0xb7   : > { %p30478_p2 = scmp.ne.s32.totalorder %s1261_s11, %s30477_s21  ;;  %s30484_s8 = scalar_lea.vmem %s1261_s11, 32 }
  0xb8   : > { %p30485_p5 = scmp.lt.s32.totalorder %s1261_s11, %s1261_s11  ;;  %p30486_p8 = scmp.lt.s32.totalorder %s30484_s8, %s30477_s21 }
  0xb9   : > { %p30480_p0 = pnand %p30478_p2, %p30442_p6 }
  0xba   : > { %p30487_p12 = por %p30486_p8, %p30485_p5 }
  0xbb   : > { %30141 = dma.hbm_to_vmem [thread:$0]  (!%p31817_p9), %s35743_s27, 512, %s1241_s28, [#allocation41], %s31387_s4, %s31387_s4, %s31388_s0  }
  0xbc   : > { %p30481_p4 = pneg %p30480_p0 }
  0xbe   : > { %p30488_p1 = pnand %p30487_p12, %p30481_p4 }
  0xc0   : > { %30491 = shalt.err (!%p30488_p1)
}
  0xc1   : > { %s35744_s12 = sld [smem:[#allocation101_spill]]  ;;  %p26656_p7 = scmp.ge.s32.totalorder %s31342_s3, 4 }
  0xc2   : > { %s35535_s10 = sand.u32 (!%p26656_p7), 1, %s31322_s23   ;;  %s35536_s28 = sshll.u32 (!%p26656_p7), %s31338_s2, 8 }
  0xc3   : > { %1267 = sbr.rel (%p26656_p7) target bundleno = 760 (0x2f8), region = 36  ;;  %s31840_s8 = sshll.u32 (!%p26656_p7), %s35535_s10, 4 }
  0xc4   : > { %s31843_s13 = sand.u32 (!%p26656_p7), 1, %s31342_s3   ;;  %s31848_s21 = scalar_lea.hbm (!%p26656_p7), %s35709_s9, %s35536_s28 }
  0xc5   : > { %s31854_s0 = sand.u32 (!%p26656_p7), 1, %s31310_s16   ;;  %s30492_s27 = scalar_lea.hbm (!%p26656_p7), %s31848_s21, 256 }
  0xc6   : > { %p30493_p12 = scmp.ne.s32.totalorder (!%p26656_p7), %s31848_s21, %s30492_s27  ;;  %s30496_s10 = scalar_lea.hbm (!%p26656_p7), %s35709_s9, 512 }
  0xc7   : > { %30144 = dma.hbm_to_vmem [thread:$0]  (!%p31817_p9), %s35744_s12, 16, %s1261_s11, [#allocation41]  }
  0xc8   : > { %s1296_s11 = scalar_lea.vmem [#allocation7], %s31840_s8  ;;  %p30494_p13 = pnand %p30493_p12, %p31729_p3 }
  0xc9   : > { %s1303_s4 = sshll.u32 %s1296_s11, 4  ;;  %p30497_p9 = scmp.lt.s32.totalorder %s31848_s21, %s35709_s9  ;;  %s31851_s4 = int_to_ptr.vmem [resolvable:$true] %s1303_s4 }
  0xca   : > { %p30495_p4 = pneg %p30494_p13  ;;  %p30498_p6 = scmp.lt.s32.totalorder %s30496_s10, %s30492_s27 }
  0xcc   : > { %p30499_p10 = por %p30498_p6, %p30497_p9 }
  0xce   : > { %p30500_p11 = pnand %p30499_p10, %p30495_p4 }
  0xd0   : > { %30503 = shalt.err (!%p30500_p11)
}
  0xd1   : > { %s30504_s11 = scalar_lea.vmem %s31851_s4, 256  ;;  %s31389_s28 = smov [#allocation7]  }
  0xd2   : > { %p30505_p2 = scmp.ne.s32.totalorder %s31851_s4, %s30504_s11  ;;  %s30508_s12 = sshll.u32 %s31389_s28, 4  ;;  %s30509_s12 = int_to_ptr.vmem [resolvable:$false] %s30508_s12 }
  0xd3   : > { %s30510_s16 = scalar_lea.vmem %s30509_s12, 512  ;;  %p30511_p8 = scmp.lt.s32.totalorder %s31851_s4, %s30509_s12 }
  0xd4   : > { %p30506_p0 = pnand %p30505_p2, %p31729_p3  ;;  %p30512_p1 = scmp.lt.s32.totalorder %s30510_s16, %s30504_s11 }
  0xd6   : > { %p30507_p5 = pneg %p30506_p0  ;;  %p30513_p7 = por %p30512_p1, %p30511_p8 }
  0xd8   : > { %p30514_p12 = pnand %p30513_p7, %p30507_p5 }
  0xda   : > { %30517 = shalt.err (!%p30514_p12)
}
  0xdb   : > { %s35547_s27 = smov 128   ;;  %s35550_s10 = smov 8  }
  0xdc   : > { %s35745_s12 = scalar_lea.sflag [#allocation8], %s31843_s13  ;;  %s31879_s16 = sshll.u32 %s31334_s1, 4 }
  0xdd   : > { %30083 = dma.hbm_to_vmem [thread:$0]  (%p31729_p3), %s31848_s21, 256, %s31851_s4, %s35745_s12, %s35547_s27, %s35547_s27, %s35550_s10  }
  0xde   : > { %s31883_s28 = scalar_lea.hbm %s35705_s25, %s31879_s16  ;;  %s1349_s11 = scalar_lea.vmem [#allocation10], %s31854_s0 }
  0xdf   : > { %s1356_s9 = sshll.u32 %s1349_s11, 4  ;;  %s35544_s18 = scalar_lea.sflag [#allocation11], %s31843_s13  ;;  %s1357_s9 = int_to_ptr.vmem [resolvable:$true] %s1356_s9 }
  0xe0   : > { %s30518_s3 = scalar_lea.hbm %s31883_s28, 16  ;;  %p35746_p4 = scmp.ne.s32.totalorder %s35729_s29, 0 }
  0xe1   : > { %p30519_p13 = scmp.ne.s32.totalorder %s31883_s28, %s30518_s3  ;;  %s30522_s17 = scalar_lea.hbm %s35705_s25, 32 }
  0xe2   : > { %p30523_p10 = scmp.lt.s32.totalorder %s31883_s28, %s35705_s25  ;;  %p30524_p11 = scmp.lt.s32.totalorder %s30522_s17, %s30518_s3 }
  0xe3   : > { %p30520_p9 = pnand %p30519_p13, %p35746_p4 }
  0xe4   : > { %p30525_p2 = por %p30524_p11, %p30523_p10 }
  0xe5   : > { %p30521_p6 = pneg %p30520_p9 }
  0xe7   : > { %p30526_p0 = pnand %p30525_p2, %p30521_p6 }
  0xe9   : > { %30529 = shalt.err (!%p30526_p0)
}
  0xea   : > { %s30530_s21 = scalar_lea.vmem %s1357_s9, 16  ;;  %s31392_s4 = smov [#allocation10]  }
  0xeb   : > { %p30531_p5 = scmp.ne.s32.totalorder %s1357_s9, %s30530_s21  ;;  %s30534_s12 = sshll.u32 %s31392_s4, 4  ;;  %s30535_s12 = int_to_ptr.vmem [resolvable:$false] %s30534_s12 }
  0xec   : > { %s30536_s11 = scalar_lea.vmem %s30535_s12, 32  ;;  %p30537_p7 = scmp.lt.s32.totalorder %s1357_s9, %s30535_s12 }
  0xed   : > { %p30532_p8 = pnand %p30531_p5, %p35746_p4  ;;  %p30538_p12 = scmp.lt.s32.totalorder %s30536_s11, %s30530_s21 }
  0xef   : > { %p30533_p1 = pneg %p30532_p8  ;;  %p30539_p13 = por %p30538_p12, %p30537_p7 }
  0xf1   : > { %p30540_p9 = pnand %p30539_p13, %p30533_p1 }
  0xf3   : > { %30543 = shalt.err (!%p30540_p9)
}
  0xf4   : > { %30085 = dma.hbm_to_vmem [thread:$0]  (%p35746_p4), %s31883_s28, 16, %s1357_s9, %s35544_s18  }
  0xf5   : > { %s31903_s3 = scalar_lea.hbm %s35708_s14, %s31879_s16  ;;  %s1399_s17 = scalar_lea.vmem [#allocation13], %s31854_s0 }
  0xf6   : > { %s1406_s21 = sshll.u32 %s1399_s17, 4  ;;  %s35545_s4 = scalar_lea.sflag [#allocation14], %s31843_s13  ;;  %s1407_s21 = int_to_ptr.vmem [resolvable:$true] %s1406_s21 }
  0xf7   : > { %s30544_s12 = scalar_lea.hbm %s31903_s3, 16  ;;  %s30548_s11 = scalar_lea.hbm %s35708_s14, 32 }
  0xf8   : > { %p30545_p6 = scmp.ne.s32.totalorder %s31903_s3, %s30544_s12  ;;  %p30549_p2 = scmp.lt.s32.totalorder %s31903_s3, %s35708_s14 }
  0xf9   : > { %p30550_p0 = scmp.lt.s32.totalorder %s30548_s11, %s30544_s12 }
  0xfa   : > { %p30546_p10 = pnand %p30545_p6, %p35746_p4 }
  0xfb   : > { %p30551_p5 = por %p30550_p0, %p30549_p2 }
  0xfc   : > { %p30547_p11 = pneg %p30546_p10 }
  0xfe   : > { %p30552_p8 = pnand %p30551_p5, %p30547_p11 }
 0x100   : > { %30555 = shalt.err (!%p30552_p8)
}
 0x101   : > { %s30556_s9 = scalar_lea.vmem %s1407_s21, 16  ;;  %s31393_s28 = smov [#allocation13]  }
 0x102   : > { %p30557_p1 = scmp.ne.s32.totalorder %s1407_s21, %s30556_s9  ;;  %s30560_s17 = sshll.u32 %s31393_s28, 4  ;;  %s30561_s17 = int_to_ptr.vmem [resolvable:$false] %s30560_s17 }
 0x103   : > { %s30562_s18 = scalar_lea.vmem %s30561_s17, 32  ;;  %p30563_p13 = scmp.lt.s32.totalorder %s1407_s21, %s30561_s17 }
 0x104   : > { %p30558_p7 = pnand %p30557_p1, %p35746_p4  ;;  %p30564_p9 = scmp.lt.s32.totalorder %s30562_s18, %s30556_s9 }
 0x106   : > { %p30559_p12 = pneg %p30558_p7  ;;  %p30565_p6 = por %p30564_p9, %p30563_p13 }
 0x108   : > { %p30566_p10 = pnand %p30565_p6, %p30559_p12 }
 0x10a   : > { %30569 = shalt.err (!%p30566_p10)
}
 0x10b   : > { %30087 = dma.hbm_to_vmem [thread:$0]  (%p35746_p4), %s31903_s3, 16, %s1407_s21, %s35545_s4  }
 0x10c   : > { %s31923_s12 = scalar_lea.hbm %s35706_s24, %s31879_s16  ;;  %s1433_s18 = scalar_lea.vmem [#allocation16], %s31854_s0 }
 0x10d   : > { %s1440_s11 = sshll.u32 %s1433_s18, 4  ;;  %s35546_s9 = scalar_lea.sflag [#allocation17], %s31843_s13  ;;  %s1441_s11 = int_to_ptr.vmem [resolvable:$true] %s1440_s11 }
 0x10e   : > { %s30570_s28 = scalar_lea.hbm %s31923_s12, 16  ;;  %s30574_s17 = scalar_lea.hbm %s35706_s24, 32 }
 0x10f   : > { %p30571_p11 = scmp.ne.s32.totalorder %s31923_s12, %s30570_s28  ;;  %p30575_p5 = scmp.lt.s32.totalorder %s31923_s12, %s35706_s24 }
 0x110   : > { %p30576_p8 = scmp.lt.s32.totalorder %s30574_s17, %s30570_s28 }
 0x111   : > { %p30572_p2 = pnand %p30571_p11, %p35746_p4 }
 0x112   : > { %p30577_p1 = por %p30576_p8, %p30575_p5 }
 0x113   : > { %p30573_p0 = pneg %p30572_p2 }
 0x115   : > { %p30578_p7 = pnand %p30577_p1, %p30573_p0 }
 0x117   : > { %30581 = shalt.err (!%p30578_p7)
}
 0x118   : > { %s30582_s3 = scalar_lea.vmem %s1441_s11, 16  ;;  %s31394_s21 = smov [#allocation16]  }
 0x119   : > { %p30583_p12 = scmp.ne.s32.totalorder %s1441_s11, %s30582_s3  ;;  %s30586_s18 = sshll.u32 %s31394_s21, 4  ;;  %s30587_s18 = int_to_ptr.vmem [resolvable:$false] %s30586_s18 }
 0x11a   : > { %s30588_s4 = scalar_lea.vmem %s30587_s18, 32  ;;  %p30589_p6 = scmp.lt.s32.totalorder %s1441_s11, %s30587_s18 }
 0x11b   : > { %p30584_p13 = pnand %p30583_p12, %p35746_p4  ;;  %p30590_p10 = scmp.lt.s32.totalorder %s30588_s4, %s30582_s3 }
 0x11d   : > { %p30585_p9 = pneg %p30584_p13  ;;  %p30591_p11 = por %p30590_p10, %p30589_p6 }
 0x11f   : > { %p30592_p2 = pnand %p30591_p11, %p30585_p9 }
 0x121   : > { %30595 = shalt.err (!%p30592_p2)
}
 0x122   : > { %30089 = dma.hbm_to_vmem [thread:$0]  (%p35746_p4), %s31923_s12, 16, %s1441_s11, %s35546_s9  }
 0x123   : > { %s31943_s28 = scalar_lea.hbm %s35707_s20, %s31879_s16  ;;  %s1483_s4 = scalar_lea.vmem [#allocation19], %s31854_s0 }
 0x124   : > { %s1490_s17 = sshll.u32 %s1483_s4, 4  ;;  %s35549_s3 = scalar_lea.sflag [#allocation20], %s31843_s13  ;;  %s1491_s17 = int_to_ptr.vmem [resolvable:$true] %s1490_s17 }
 0x125   : > { %s30596_s21 = scalar_lea.hbm %s31943_s28, 16  ;;  %s30600_s18 = scalar_lea.hbm %s35707_s20, 32 }
 0x126   : > { %p30597_p0 = scmp.ne.s32.totalorder %s31943_s28, %s30596_s21  ;;  %p30601_p1 = scmp.lt.s32.totalorder %s31943_s28, %s35707_s20 }
 0x127   : > { %p30602_p7 = scmp.lt.s32.totalorder %s30600_s18, %s30596_s21 }
 0x128   : > { %p30598_p5 = pnand %p30597_p0, %p35746_p4 }
 0x129   : > { %p30603_p12 = por %p30602_p7, %p30601_p1 }
 0x12a   : > { %p30599_p8 = pneg %p30598_p5 }
 0x12c   : > { %p30604_p13 = pnand %p30603_p12, %p30599_p8 }
 0x12e   : > { %30607 = shalt.err (!%p30604_p13)
}
 0x12f   : > { %s30608_s12 = scalar_lea.vmem %s1491_s17, 16  ;;  %s31395_s11 = smov [#allocation19]  }
 0x130   : > { %p30609_p9 = scmp.ne.s32.totalorder %s1491_s17, %s30608_s12  ;;  %s30612_s4 = sshll.u32 %s31395_s11, 4  ;;  %s30613_s4 = int_to_ptr.vmem [resolvable:$false] %s30612_s4 }
 0x131   : > { %s30614_s9 = scalar_lea.vmem %s30613_s4, 32  ;;  %p30615_p11 = scmp.lt.s32.totalorder %s1491_s17, %s30613_s4 }
 0x132   : > { %p30610_p6 = pnand %p30609_p9, %p35746_p4  ;;  %p30616_p2 = scmp.lt.s32.totalorder %s30614_s9, %s30608_s12 }
 0x134   : > { %p30611_p10 = pneg %p30610_p6  ;;  %p30617_p0 = por %p30616_p2, %p30615_p11 }
 0x136   : > { %p30618_p5 = pnand %p30617_p0, %p30611_p10 }
 0x138   : > { %30621 = shalt.err (!%p30618_p5)
}
 0x139   : > { %s35747_s21 = sld [smem:[#allocation80_spill]]  ;;  %s1517_s9 = scalar_lea.vmem [#allocation22], %s31854_s0 }
 0x13a   : > { %30091 = dma.hbm_to_vmem [thread:$0]  (%p35746_p4), %s31943_s28, 16, %s1491_s17, %s35549_s3  }
 0x13b   : > { %s1524_s12 = sshll.u32 %s1517_s9, 4  ;;  %s35552_s11 = scalar_lea.sflag [#allocation23], %s31843_s13  ;;  %s1525_s12 = int_to_ptr.vmem [resolvable:$true] %s1524_s12 }
 0x13f   : > { %s31963_s18 = scalar_lea.hbm %s35747_s21, %s31879_s16  ;;  %s30626_s27 = scalar_lea.hbm %s35747_s21, 32 }
 0x140   : > { %s30622_s4 = scalar_lea.hbm %s31963_s18, 16  ;;  %p30627_p12 = scmp.lt.s32.totalorder %s31963_s18, %s35747_s21 }
 0x141   : > { %p30623_p8 = scmp.ne.s32.totalorder %s31963_s18, %s30622_s4  ;;  %p30628_p13 = scmp.lt.s32.totalorder %s30626_s27, %s30622_s4 }
 0x143   : > { %p30624_p1 = pnand %p30623_p8, %p35746_p4  ;;  %p30629_p9 = por %p30628_p13, %p30627_p12 }
 0x145   : > { %p30625_p7 = pneg %p30624_p1 }
 0x147   : > { %p30630_p6 = pnand %p30629_p9, %p30625_p7 }
 0x149   : > { %30633 = shalt.err (!%p30630_p6)
}
 0x14a   : > { %s30634_s28 = scalar_lea.vmem %s1525_s12, 16  ;;  %s31396_s17 = smov [#allocation22]  }
 0x14b   : > { %p30635_p10 = scmp.ne.s32.totalorder %s1525_s12, %s30634_s28  ;;  %s30638_s9 = sshll.u32 %s31396_s17, 4  ;;  %s30639_s9 = int_to_ptr.vmem [resolvable:$false] %s30638_s9 }
 0x14c   : > { %s30640_s3 = scalar_lea.vmem %s30639_s9, 32  ;;  %p30641_p0 = scmp.lt.s32.totalorder %s1525_s12, %s30639_s9 }
 0x14d   : > { %p30636_p11 = pnand %p30635_p10, %p35746_p4  ;;  %p30642_p5 = scmp.lt.s32.totalorder %s30640_s3, %s30634_s28 }
 0x14f   : > { %p30637_p2 = pneg %p30636_p11  ;;  %p30643_p8 = por %p30642_p5, %p30641_p0 }
 0x151   : > { %p30644_p1 = pnand %p30643_p8, %p30637_p2 }
 0x153   : > { %30647 = shalt.err (!%p30644_p1)
}
 0x154   : > { %s35748_s27 = sld [smem:[#allocation84_spill]]  ;;  %s1567_s3 = scalar_lea.vmem [#allocation25], %s31854_s0 }
 0x155   : > { %30093 = dma.hbm_to_vmem [thread:$0]  (%p35746_p4), %s31963_s18, 16, %s1525_s12, %s35552_s11  }
 0x156   : > { %s1574_s28 = sshll.u32 %s1567_s3, 4  ;;  %s35555_s17 = scalar_lea.sflag [#allocation26], %s31843_s13  ;;  %s1575_s28 = int_to_ptr.vmem [resolvable:$true] %s1574_s28 }
 0x15a   : > { %s31983_s4 = scalar_lea.hbm %s35748_s27, %s31879_s16  ;;  %s30652_s10 = scalar_lea.hbm %s35748_s27, 32 }
 0x15b   : > { %s30648_s9 = scalar_lea.hbm %s31983_s4, 16  ;;  %p30653_p9 = scmp.lt.s32.totalorder %s31983_s4, %s35748_s27 }
 0x15c   : > { %p30649_p7 = scmp.ne.s32.totalorder %s31983_s4, %s30648_s9  ;;  %p30654_p6 = scmp.lt.s32.totalorder %s30652_s10, %s30648_s9 }
 0x15e   : > { %p30650_p12 = pnand %p30649_p7, %p35746_p4  ;;  %p30655_p10 = por %p30654_p6, %p30653_p9 }
 0x160   : > { %p30651_p13 = pneg %p30650_p12 }
 0x162   : > { %p30656_p11 = pnand %p30655_p10, %p30651_p13 }
 0x164   : > { %30659 = shalt.err (!%p30656_p11)
}
 0x165   : > { %s30660_s18 = scalar_lea.vmem %s1575_s28, 16  ;;  %s31397_s12 = smov [#allocation25]  }
 0x166   : > { %p30661_p2 = scmp.ne.s32.totalorder %s1575_s28, %s30660_s18  ;;  %s30664_s3 = sshll.u32 %s31397_s12, 4  ;;  %s30665_s3 = int_to_ptr.vmem [resolvable:$false] %s30664_s3 }
 0x167   : > { %s30666_s11 = scalar_lea.vmem %s30665_s3, 32  ;;  %p30667_p8 = scmp.lt.s32.totalorder %s1575_s28, %s30665_s3 }
 0x168   : > { %p30662_p0 = pnand %p30661_p2, %p35746_p4  ;;  %p30668_p1 = scmp.lt.s32.totalorder %s30666_s11, %s30660_s18 }
 0x16a   : > { %p30663_p5 = pneg %p30662_p0  ;;  %p30669_p7 = por %p30668_p1, %p30667_p8 }
 0x16c   : > { %p30670_p12 = pnand %p30669_p7, %p30663_p5 }
 0x16e   : > { %30673 = shalt.err (!%p30670_p12)
}
 0x16f   : > { %s35749_s10 = sld [smem:[#allocation88_spill]]  ;;  %s1617_s11 = scalar_lea.vmem [#allocation28], %s31854_s0 }
 0x170   : > { %30095 = dma.hbm_to_vmem [thread:$0]  (%p35746_p4), %s31983_s4, 16, %s1575_s28, %s35555_s17  }
 0x171   : > { %s1624_s18 = sshll.u32 %s1617_s11, 4  ;;  %s35556_s3 = scalar_lea.sflag [#allocation29], %s31843_s13  ;;  %s1625_s18 = int_to_ptr.vmem [resolvable:$true] %s1624_s18 }
 0x175   : > { %s35750_s9 = smov %s35749_s10  ;;  %s32003_s12 = scalar_lea.hbm %s35749_s10, %s31879_s16 }
 0x176   : > { %s30674_s14 = scalar_lea.hbm %s32003_s12, 16  ;;  %s30678_s20 = scalar_lea.hbm %s35750_s9, 32 }
 0x177   : > { %p30675_p13 = scmp.ne.s32.totalorder %s32003_s12, %s30674_s14  ;;  %p30679_p10 = scmp.lt.s32.totalorder %s32003_s12, %s35750_s9 }
 0x178   : > { %p30680_p11 = scmp.lt.s32.totalorder %s30678_s20, %s30674_s14 }
 0x179   : > { %p30676_p9 = pnand %p30675_p13, %p35746_p4 }
 0x17a   : > { %p30681_p2 = por %p30680_p11, %p30679_p10 }
 0x17b   : > { %p30677_p6 = pneg %p30676_p9 }
 0x17d   : > { %p30682_p0 = pnand %p30681_p2, %p30677_p6 }
 0x17f   : > { %30685 = shalt.err (!%p30682_p0)
}
 0x180   : > { %s30686_s4 = scalar_lea.vmem %s1625_s18, 16  ;;  %s31398_s28 = smov [#allocation28]  }
 0x181   : > { %p30687_p5 = scmp.ne.s32.totalorder %s1625_s18, %s30686_s4  ;;  %s30690_s10 = sshll.u32 %s31398_s28, 4  ;;  %s30691_s10 = int_to_ptr.vmem [resolvable:$false] %s30690_s10 }
 0x182   : > { %s30692_s11 = scalar_lea.vmem %s30691_s10, 32  ;;  %p30693_p7 = scmp.lt.s32.totalorder %s1625_s18, %s30691_s10 }
 0x183   : > { %p30688_p8 = pnand %p30687_p5, %p35746_p4  ;;  %p30694_p12 = scmp.lt.s32.totalorder %s30692_s11, %s30686_s4 }
 0x185   : > { %p30689_p1 = pneg %p30688_p8  ;;  %p30695_p13 = por %p30694_p12, %p30693_p7 }
 0x187   : > { %p30696_p9 = pnand %p30695_p13, %p30689_p1 }
 0x189   : > { %30699 = shalt.err (!%p30696_p9)
}
 0x18a   : > { %s35751_s14 = sld [smem:[#allocation90_spill]]  ;;  %s1651_s4 = scalar_lea.vmem [#allocation31], %s31854_s0 }
 0x18b   : > { %30097 = dma.hbm_to_vmem [thread:$0]  (%p35746_p4), %s32003_s12, 16, %s1625_s18, %s35556_s3  }
 0x18c   : > { %s1658_s28 = sshll.u32 %s1651_s4, 4  ;;  %s35558_s10 = scalar_lea.sflag [#allocation32], %s31843_s13  ;;  %s1659_s28 = int_to_ptr.vmem [resolvable:$true] %s1658_s28 }
 0x190   : > { %s32023_s20 = scalar_lea.hbm %s35751_s14, %s31879_s16  ;;  %s30704_s17 = scalar_lea.hbm %s35751_s14, 32 }
 0x191   : > { %s30700_s11 = scalar_lea.hbm %s32023_s20, 16  ;;  %p30705_p2 = scmp.lt.s32.totalorder %s32023_s20, %s35751_s14 }
 0x192   : > { %p30701_p6 = scmp.ne.s32.totalorder %s32023_s20, %s30700_s11  ;;  %p30706_p0 = scmp.lt.s32.totalorder %s30704_s17, %s30700_s11 }
 0x194   : > { %p30702_p10 = pnand %p30701_p6, %p35746_p4  ;;  %p30707_p5 = por %p30706_p0, %p30705_p2 }
 0x196   : > { %p30703_p11 = pneg %p30702_p10 }
 0x198   : > { %p30708_p8 = pnand %p30707_p5, %p30703_p11 }
 0x19a   : > { %30711 = shalt.err (!%p30708_p8)
}
 0x19b   : > { %s30712_s12 = scalar_lea.vmem %s1659_s28, 16  ;;  %s31399_s18 = smov [#allocation31]  }
 0x19c   : > { %p30713_p1 = scmp.ne.s32.totalorder %s1659_s28, %s30712_s12  ;;  %s30716_s4 = sshll.u32 %s31399_s18, 4  ;;  %s30717_s4 = int_to_ptr.vmem [resolvable:$false] %s30716_s4 }
 0x19d   : > { %s30718_s3 = scalar_lea.vmem %s30717_s4, 32  ;;  %p30719_p13 = scmp.lt.s32.totalorder %s1659_s28, %s30717_s4 }
 0x19e   : > { %p30714_p7 = pnand %p30713_p1, %p35746_p4  ;;  %p30720_p9 = scmp.lt.s32.totalorder %s30718_s3, %s30712_s12 }
 0x1a0   : > { %p30715_p12 = pneg %p30714_p7  ;;  %p30721_p6 = por %p30720_p9, %p30719_p13 }
 0x1a2   : > { %p30722_p10 = pnand %p30721_p6, %p30715_p12 }
 0x1a4   : > { %30725 = shalt.err (!%p30722_p10)
}
 0x1a5   : > { %s35752_s17 = sld [smem:[#allocation92_spill]]  ;;  %s1689_s3 = scalar_lea.vmem [#allocation34], %s31854_s0 }
 0x1a6   : > { %30099 = dma.hbm_to_vmem [thread:$0]  (%p35746_p4), %s32023_s20, 16, %s1659_s28, %s35558_s10  }
 0x1a7   : > { %s1696_s12 = sshll.u32 %s1689_s3, 4  ;;  %s35560_s18 = scalar_lea.sflag [#allocation35], %s31843_s13  ;;  %s1697_s12 = int_to_ptr.vmem [resolvable:$true] %s1696_s12 }
 0x1ab   : > { %s32043_s11 = scalar_lea.hbm %s35752_s17, %s31879_s16  ;;  %s30730_s9 = scalar_lea.hbm %s35752_s17, 32 }
 0x1ac   : > { %s30726_s4 = scalar_lea.hbm %s32043_s11, 16  ;;  %p30731_p5 = scmp.lt.s32.totalorder %s32043_s11, %s35752_s17 }
 0x1ad   : > { %p30727_p11 = scmp.ne.s32.totalorder %s32043_s11, %s30726_s4  ;;  %p30732_p8 = scmp.lt.s32.totalorder %s30730_s9, %s30726_s4 }
 0x1af   : > { %p30728_p2 = pnand %p30727_p11, %p35746_p4  ;;  %p30733_p1 = por %p30732_p8, %p30731_p5 }
 0x1b1   : > { %p30729_p0 = pneg %p30728_p2 }
 0x1b3   : > { %p30734_p7 = pnand %p30733_p1, %p30729_p0 }
 0x1b5   : > { %30737 = shalt.err (!%p30734_p7)
}
 0x1b6   : > { %s30738_s20 = scalar_lea.vmem %s1697_s12, 16  ;;  %s31400_s28 = smov [#allocation34]  }
 0x1b7   : > { %p30739_p12 = scmp.ne.s32.totalorder %s1697_s12, %s30738_s20  ;;  %s30742_s3 = sshll.u32 %s31400_s28, 4  ;;  %s30743_s3 = int_to_ptr.vmem [resolvable:$false] %s30742_s3 }
 0x1b8   : > { %s30744_s10 = scalar_lea.vmem %s30743_s3, 32  ;;  %p30745_p6 = scmp.lt.s32.totalorder %s1697_s12, %s30743_s3 }
 0x1b9   : > { %p30740_p13 = pnand %p30739_p12, %p35746_p4  ;;  %p30746_p10 = scmp.lt.s32.totalorder %s30744_s10, %s30738_s20 }
 0x1bb   : > { %p30741_p9 = pneg %p30740_p13  ;;  %p30747_p11 = por %p30746_p10, %p30745_p6 }
 0x1bd   : > { %p30748_p2 = pnand %p30747_p11, %p30741_p9 }
 0x1bf   : > { %30751 = shalt.err (!%p30748_p2)
}
 0x1c0   : > { %s35753_s9 = sld [smem:[#allocation95_spill]]  ;;  %s1731_s10 = scalar_lea.vmem [#allocation37], %s31854_s0 }
 0x1c1   : > { %30101 = dma.hbm_to_vmem [thread:$0]  (%p35746_p4), %s32043_s11, 16, %s1697_s12, %s35560_s18  }
 0x1c2   : > { %s1738_s20 = sshll.u32 %s1731_s10, 4  ;;  %s35566_s28 = scalar_lea.sflag [#allocation38], %s31843_s13  ;;  %s1739_s20 = int_to_ptr.vmem [resolvable:$true] %s1738_s20 }
 0x1c6   : > { %s32063_s4 = scalar_lea.hbm %s35753_s9, %s31879_s16  ;;  %s30756_s14 = scalar_lea.hbm %s35753_s9, 32 }
 0x1c7   : > { %s30752_s3 = scalar_lea.hbm %s32063_s4, 16  ;;  %p30757_p1 = scmp.lt.s32.totalorder %s32063_s4, %s35753_s9 }
 0x1c8   : > { %p30753_p0 = scmp.ne.s32.totalorder %s32063_s4, %s30752_s3  ;;  %p30758_p7 = scmp.lt.s32.totalorder %s30756_s14, %s30752_s3 }
 0x1ca   : > { %p30754_p5 = pnand %p30753_p0, %p35746_p4  ;;  %p30759_p12 = por %p30758_p7, %p30757_p1 }
 0x1cc   : > { %p30755_p8 = pneg %p30754_p5 }
 0x1ce   : > { %p30760_p13 = pnand %p30759_p12, %p30755_p8 }
 0x1d0   : > { %30763 = shalt.err (!%p30760_p13)
}
 0x1d1   : > { %s30764_s11 = scalar_lea.vmem %s1739_s20, 16  ;;  %s31401_s12 = smov [#allocation37]  }
 0x1d2   : > { %p30765_p9 = scmp.ne.s32.totalorder %s1739_s20, %s30764_s11  ;;  %s30768_s10 = sshll.u32 %s31401_s12, 4  ;;  %s30769_s10 = int_to_ptr.vmem [resolvable:$false] %s30768_s10 }
 0x1d3   : > { %s30770_s18 = scalar_lea.vmem %s30769_s10, 32  ;;  %p30771_p11 = scmp.lt.s32.totalorder %s1739_s20, %s30769_s10 }
 0x1d4   : > { %p30766_p6 = pnand %p30765_p9, %p35746_p4  ;;  %p30772_p2 = scmp.lt.s32.totalorder %s30770_s18, %s30764_s11 }
 0x1d6   : > { %p30767_p10 = pneg %p30766_p6  ;;  %p30773_p0 = por %p30772_p2, %p30771_p11 }
 0x1d8   : > { %p30774_p5 = pnand %p30773_p0, %p30767_p10 }
 0x1da   : > { %30777 = shalt.err (!%p30774_p5)
}
 0x1db   : > { %s35754_s14 = sld [smem:[#allocation63_spill]]  ;;  %s35757_s12 = sshll.u32 %s31338_s2, 8 }
 0x1dc   : > { %s35755_s3 = sld [smem:[#allocation66_spill]]  ;;  %s1275_s11 = scalar_lea.vmem [#allocation4], %s31840_s8 }
 0x1dd   : > { %30103 = dma.hbm_to_vmem [thread:$0]  (%p35746_p4), %s32063_s4, 16, %s1739_s20, %s35566_s28  }
 0x1de   : > { %s1282_s10 = sshll.u32 %s1275_s11, 4  ;;  %s35758_s21 = sand.u32 1, %s31322_s23   ;;  %s32087_s10 = int_to_ptr.vmem [resolvable:$true] %s1282_s10 }
 0x1df   : > { %s1272_s24 = scalar_lea.sflag [#allocation5], %s35758_s21 }
 0x1e1   : > { %s32084_s18 = scalar_lea.hbm %s35754_s14, %s35757_s12  ;;  %s30782_s4 = scalar_lea.hbm %s35754_s14, 512 }
 0x1e2   : > { %s35756_s9 = smov %s35755_s3  ;;  %s32091_s17 = scalar_lea.hbm %s35755_s3, %s31879_s16 }
 0x1e3   : > { %s30778_s25 = scalar_lea.hbm %s32084_s18, 256  ;;  %p30783_p12 = scmp.lt.s32.totalorder %s32084_s18, %s35754_s14 }
 0x1e4   : > { %p30779_p8 = scmp.ne.s32.totalorder %s32084_s18, %s30778_s25  ;;  %p30784_p13 = scmp.lt.s32.totalorder %s30782_s4, %s30778_s25 }
 0x1e6   : > { %p30780_p1 = pnand %p30779_p8, %p31729_p3  ;;  %p30785_p9 = por %p30784_p13, %p30783_p12 }
 0x1e8   : > { %p30781_p7 = pneg %p30780_p1 }
 0x1ea   : > { %p30786_p6 = pnand %p30785_p9, %p30781_p7 }
 0x1ec   : > { %30789 = shalt.err (!%p30786_p6)
}
 0x1ed   : > { %s30790_s8 = scalar_lea.vmem %s32087_s10, 256  ;;  %s31402_s21 = smov [#allocation4]  }
 0x1ee   : > { %p30791_p10 = scmp.ne.s32.totalorder %s32087_s10, %s30790_s8  ;;  %s30794_s20 = sshll.u32 %s31402_s21, 4  ;;  %s30795_s20 = int_to_ptr.vmem [resolvable:$false] %s30794_s20 }
 0x1ef   : > { %s30796_s3 = scalar_lea.vmem %s30795_s20, 512  ;;  %p30797_p0 = scmp.lt.s32.totalorder %s32087_s10, %s30795_s20 }
 0x1f0   : > { %p30792_p11 = pnand %p30791_p10, %p31729_p3  ;;  %p30798_p5 = scmp.lt.s32.totalorder %s30796_s3, %s30790_s8 }
 0x1f2   : > { %p30793_p2 = pneg %p30792_p11  ;;  %p30799_p8 = por %p30798_p5, %p30797_p0 }
 0x1f4   : > { %p30800_p1 = pnand %p30799_p8, %p30793_p2 }
 0x1f6   : > { %30803 = shalt.err (!%p30800_p1)
}
 0x1f7   : > { %s35759_s25 = smov 8   ;;  %s35760_s12 = smov 128  }
 0x1f8   : > { %s35761_s11 = sld [smem:[#allocation70_spill]]  ;;  %s1324_s8 = scalar_lea.vmem [#allocation9], %s31854_s0 }
 0x1f9   : > { %30082 = dma.hbm_to_vmem [thread:$0]  (%p31729_p3), %s32084_s18, 256, %s32087_s10, %s1272_s24, %s35760_s12, %s35760_s12, %s35759_s25  }
 0x1fa   : > { %s1331_s21 = sshll.u32 %s1324_s8, 4  ;;  %s30804_s19 = scalar_lea.hbm %s32091_s17, 16  ;;  %s1332_s21 = int_to_ptr.vmem [resolvable:$true] %s1331_s21 }
 0x1fb   : > { %p30805_p7 = scmp.ne.s32.totalorder %s32091_s17, %s30804_s19  ;;  %s30808_s3 = scalar_lea.hbm %s35756_s9, 32 }
 0x1fc   : > { %p30809_p9 = scmp.lt.s32.totalorder %s32091_s17, %s35756_s9  ;;  %p30810_p6 = scmp.lt.s32.totalorder %s30808_s3, %s30804_s19 }
 0x1fd   : > { %p30806_p12 = pnand %p30805_p7, %p35746_p4 }
 0x1fe   : > { %s35762_s4 = smov %s35761_s11  ;;  %s32117_s20 = scalar_lea.hbm %s35761_s11, %s31879_s16 }
 0x1ff   : > { %p30807_p13 = pneg %p30806_p12  ;;  %p30811_p10 = por %p30810_p6, %p30809_p9 }
 0x201   : > { %p30812_p11 = pnand %p30811_p10, %p30807_p13 }
 0x203   : > { %30815 = shalt.err (!%p30812_p11)
}
 0x204   : > { %s30816_s28 = scalar_lea.vmem %s1332_s21, 16  ;;  %s31403_s24 = smov [#allocation9]  }
 0x205   : > { %p30817_p2 = scmp.ne.s32.totalorder %s1332_s21, %s30816_s28  ;;  %s30820_s18 = sshll.u32 %s31403_s24, 4  ;;  %s30821_s18 = int_to_ptr.vmem [resolvable:$false] %s30820_s18 }
 0x206   : > { %s30822_s10 = scalar_lea.vmem %s30821_s18, 32  ;;  %p30823_p5 = scmp.lt.s32.totalorder %s1332_s21, %s30821_s18 }
 0x207   : > { %p30818_p3 = pnand %p30817_p2, %p35746_p4  ;;  %p30824_p8 = scmp.lt.s32.totalorder %s30822_s10, %s30816_s28 }
 0x209   : > { %p30819_p0 = pneg %p30818_p3  ;;  %p30825_p1 = por %p30824_p8, %p30823_p5 }
 0x20b   : > { %p30826_p7 = pnand %p30825_p1, %p30819_p0 }
 0x20d   : > { %30829 = shalt.err (!%p30826_p7)
}
 0x20e   : > { %s35763_s11 = scalar_lea.sflag [#allocation8], %s31843_s13  ;;  %s35764_s8 = sld [smem:[#allocation73_spill]] }
 0x20f   : > { %30084 = dma.hbm_to_vmem [thread:$0]  (%p35746_p4), %s32091_s17, 16, %s1332_s21, %s35763_s11  }
 0x210   : > { %s1374_s19 = scalar_lea.vmem [#allocation12], %s31854_s0  ;;  %s30830_s24 = scalar_lea.hbm %s32117_s20, 16 }
 0x211   : > { %s1381_s28 = sshll.u32 %s1374_s19, 4  ;;  %p30831_p12 = scmp.ne.s32.totalorder %s32117_s20, %s30830_s24  ;;  %s1382_s28 = int_to_ptr.vmem [resolvable:$true] %s1381_s28 }
 0x212   : > { %s30834_s18 = scalar_lea.hbm %s35762_s4, 32  ;;  %p30835_p6 = scmp.lt.s32.totalorder %s32117_s20, %s35762_s4 }
 0x213   : > { %p30832_p13 = pnand %p30831_p12, %p35746_p4  ;;  %p30836_p10 = scmp.lt.s32.totalorder %s30834_s18, %s30830_s24 }
 0x214   : > { %s32136_s3 = scalar_lea.hbm %s35764_s8, %s31879_s16 }
 0x215   : > { %p30833_p9 = pneg %p30832_p13  ;;  %p30837_p11 = por %p30836_p10, %p30835_p6 }
 0x217   : > { %p30838_p2 = pnand %p30837_p11, %p30833_p9 }
 0x219   : > { %30841 = shalt.err (!%p30838_p2)
}
 0x21a   : > { %s30842_s10 = scalar_lea.vmem %s1382_s28, 16  ;;  %s31404_s17 = smov [#allocation12]  }
 0x21b   : > { %p30843_p3 = scmp.ne.s32.totalorder %s1382_s28, %s30842_s10  ;;  %s30846_s21 = sshll.u32 %s31404_s17, 4  ;;  %s30847_s21 = int_to_ptr.vmem [resolvable:$false] %s30846_s21 }
 0x21c   : > { %s30848_s11 = scalar_lea.vmem %s30847_s21, 32  ;;  %p30849_p8 = scmp.lt.s32.totalorder %s1382_s28, %s30847_s21 }
 0x21d   : > { %p30844_p0 = pnand %p30843_p3, %p35746_p4  ;;  %p30850_p1 = scmp.lt.s32.totalorder %s30848_s11, %s30842_s10 }
 0x21f   : > { %p30845_p5 = pneg %p30844_p0  ;;  %p30851_p7 = por %p30850_p1, %p30849_p8 }
 0x221   : > { %p30852_p12 = pnand %p30851_p7, %p30845_p5 }
 0x223   : > { %30855 = shalt.err (!%p30852_p12)
}
 0x224   : > { %s35765_s19 = scalar_lea.sflag [#allocation11], %s31843_s13  ;;  %s35766_s24 = sld [smem:[#allocation76_spill]] }
 0x225   : > { %30086 = dma.hbm_to_vmem [thread:$0]  (%p35746_p4), %s32117_s20, 16, %s1382_s28, %s35765_s19  }
 0x226   : > { %s1416_s18 = scalar_lea.vmem [#allocation15], %s31854_s0  ;;  %s30856_s21 = scalar_lea.hbm %s32136_s3, 16 }
 0x227   : > { %s1423_s10 = sshll.u32 %s1416_s18, 4  ;;  %p30857_p13 = scmp.ne.s32.totalorder %s32136_s3, %s30856_s21  ;;  %s1424_s10 = int_to_ptr.vmem [resolvable:$true] %s1423_s10 }
 0x228   : > { %s30860_s11 = scalar_lea.hbm %s35764_s8, 32  ;;  %p30861_p10 = scmp.lt.s32.totalorder %s32136_s3, %s35764_s8 }
 0x229   : > { %p30858_p9 = pnand %p30857_p13, %p35746_p4  ;;  %p30862_p11 = scmp.lt.s32.totalorder %s30860_s11, %s30856_s21 }
 0x22a   : > { %s32155_s17 = scalar_lea.hbm %s35766_s24, %s31879_s16 }
 0x22b   : > { %p30859_p6 = pneg %p30858_p9  ;;  %p30863_p2 = por %p30862_p11, %p30861_p10 }
 0x22d   : > { %p30864_p3 = pnand %p30863_p2, %p30859_p6 }
 0x22f   : > { %30867 = shalt.err (!%p30864_p3)
}
 0x230   : > { %s30868_s4 = scalar_lea.vmem %s1424_s10, 16  ;;  %s31405_s20 = smov [#allocation15]  }
 0x231   : > { %p30869_p0 = scmp.ne.s32.totalorder %s1424_s10, %s30868_s4  ;;  %s30872_s28 = sshll.u32 %s31405_s20, 4  ;;  %s30873_s28 = int_to_ptr.vmem [resolvable:$false] %s30872_s28 }
 0x232   : > { %s30874_s19 = scalar_lea.vmem %s30873_s28, 32  ;;  %p30875_p1 = scmp.lt.s32.totalorder %s1424_s10, %s30873_s28 }
 0x233   : > { %p30870_p5 = pnand %p30869_p0, %p35746_p4  ;;  %p30876_p7 = scmp.lt.s32.totalorder %s30874_s19, %s30868_s4 }
 0x235   : > { %p30871_p8 = pneg %p30870_p5  ;;  %p30877_p12 = por %p30876_p7, %p30875_p1 }
 0x237   : > { %p30878_p13 = pnand %p30877_p12, %p30871_p8 }
 0x239   : > { %30881 = shalt.err (!%p30878_p13)
}
 0x23a   : > { %s35767_s18 = scalar_lea.sflag [#allocation14], %s31843_s13  ;;  %s35768_s21 = sld [smem:[#allocation79_spill]] }
 0x23b   : > { %30088 = dma.hbm_to_vmem [thread:$0]  (%p35746_p4), %s32136_s3, 16, %s1424_s10, %s35767_s18  }
 0x23c   : > { %s1458_s11 = scalar_lea.vmem [#allocation18], %s31854_s0  ;;  %s30882_s28 = scalar_lea.hbm %s32155_s17, 16 }
 0x23d   : > { %s1465_s4 = sshll.u32 %s1458_s11, 4  ;;  %p30883_p9 = scmp.ne.s32.totalorder %s32155_s17, %s30882_s28  ;;  %s1466_s4 = int_to_ptr.vmem [resolvable:$true] %s1465_s4 }
 0x23e   : > { %s30886_s19 = scalar_lea.hbm %s35766_s24, 32  ;;  %p30887_p11 = scmp.lt.s32.totalorder %s32155_s17, %s35766_s24 }
 0x23f   : > { %p30884_p6 = pnand %p30883_p9, %p35746_p4  ;;  %p30888_p2 = scmp.lt.s32.totalorder %s30886_s19, %s30882_s28 }
 0x240   : > { %s32174_s20 = scalar_lea.hbm %s35768_s21, %s31879_s16 }
 0x241   : > { %p30885_p10 = pneg %p30884_p6  ;;  %p30889_p3 = por %p30888_p2, %p30887_p11 }
 0x243   : > { %p30890_p0 = pnand %p30889_p3, %p30885_p10 }
 0x245   : > { %30893 = shalt.err (!%p30890_p0)
}
 0x246   : > { %s30894_s8 = scalar_lea.vmem %s1466_s4, 16  ;;  %s31406_s3 = smov [#allocation18]  }
 0x247   : > { %p30895_p5 = scmp.ne.s32.totalorder %s1466_s4, %s30894_s8  ;;  %s30898_s10 = sshll.u32 %s31406_s3, 4  ;;  %s30899_s10 = int_to_ptr.vmem [resolvable:$false] %s30898_s10 }
 0x248   : > { %s30900_s18 = scalar_lea.vmem %s30899_s10, 32  ;;  %p30901_p7 = scmp.lt.s32.totalorder %s1466_s4, %s30899_s10 }
 0x249   : > { %p30896_p8 = pnand %p30895_p5, %p35746_p4  ;;  %p30902_p12 = scmp.lt.s32.totalorder %s30900_s18, %s30894_s8 }
 0x24b   : > { %p30897_p1 = pneg %p30896_p8  ;;  %p30903_p13 = por %p30902_p12, %p30901_p7 }
 0x24d   : > { %p30904_p9 = pnand %p30903_p13, %p30897_p1 }
 0x24f   : > { %30907 = shalt.err (!%p30904_p9)
}
 0x250   : > { %s35769_s11 = scalar_lea.sflag [#allocation17], %s31843_s13  ;;  %s35770_s28 = sld [smem:[#allocation82_spill]] }
 0x251   : > { %30090 = dma.hbm_to_vmem [thread:$0]  (%p35746_p4), %s32155_s17, 16, %s1466_s4, %s35769_s11  }
 0x252   : > { %s1500_s3 = scalar_lea.vmem [#allocation21], %s31854_s0  ;;  %s30908_s18 = scalar_lea.hbm %s32174_s20, 16 }
 0x253   : > { %s1507_s8 = sshll.u32 %s1500_s3, 4  ;;  %p30909_p6 = scmp.ne.s32.totalorder %s32174_s20, %s30908_s18  ;;  %s1508_s8 = int_to_ptr.vmem [resolvable:$true] %s1507_s8 }
 0x254   : > { %s30912_s9 = scalar_lea.hbm %s35768_s21, 32  ;;  %p30913_p2 = scmp.lt.s32.totalorder %s32174_s20, %s35768_s21 }
 0x255   : > { %p30910_p10 = pnand %p30909_p6, %p35746_p4  ;;  %p30914_p3 = scmp.lt.s32.totalorder %s30912_s9, %s30908_s18 }
 0x256   : > { %s35771_s19 = smov %s35770_s28  ;;  %s32193_s10 = scalar_lea.hbm %s35770_s28, %s31879_s16 }
 0x257   : > { %p30911_p11 = pneg %p30910_p10  ;;  %p30915_p0 = por %p30914_p3, %p30913_p2 }
 0x259   : > { %p30916_p5 = pnand %p30915_p0, %p30911_p11 }
 0x25b   : > { %30919 = shalt.err (!%p30916_p5)
}
 0x25c   : > { %s30920_s14 = scalar_lea.vmem %s1508_s8, 16  ;;  %s31407_s17 = smov [#allocation21]  }
 0x25d   : > { %p30921_p8 = scmp.ne.s32.totalorder %s1508_s8, %s30920_s14  ;;  %s30924_s4 = sshll.u32 %s31407_s17, 4  ;;  %s30925_s4 = int_to_ptr.vmem [resolvable:$false] %s30924_s4 }
 0x25e   : > { %s30926_s11 = scalar_lea.vmem %s30925_s4, 32  ;;  %p30927_p12 = scmp.lt.s32.totalorder %s1508_s8, %s30925_s4 }
 0x25f   : > { %p30922_p1 = pnand %p30921_p8, %p35746_p4  ;;  %p30928_p13 = scmp.lt.s32.totalorder %s30926_s11, %s30920_s14 }
 0x261   : > { %p30923_p7 = pneg %p30922_p1  ;;  %p30929_p9 = por %p30928_p13, %p30927_p12 }
 0x263   : > { %p30930_p6 = pnand %p30929_p9, %p30923_p7 }
 0x265   : > { %30933 = shalt.err (!%p30930_p6)
}
 0x266   : > { %s35772_s9 = scalar_lea.sflag [#allocation20], %s31843_s13  ;;  %s35773_s28 = sld [smem:[#allocation86_spill]] }
 0x267   : > { %30092 = dma.hbm_to_vmem [thread:$0]  (%p35746_p4), %s32174_s20, 16, %s1508_s8, %s35772_s9  }
 0x268   : > { %s1542_s3 = scalar_lea.vmem [#allocation24], %s31854_s0  ;;  %s30934_s17 = scalar_lea.hbm %s32193_s10, 16 }
 0x269   : > { %s1549_s14 = sshll.u32 %s1542_s3, 4  ;;  %p30935_p10 = scmp.ne.s32.totalorder %s32193_s10, %s30934_s17  ;;  %s1550_s14 = int_to_ptr.vmem [resolvable:$true] %s1549_s14 }
 0x26a   : > { %s30938_s4 = scalar_lea.hbm %s35771_s19, 32  ;;  %p30939_p3 = scmp.lt.s32.totalorder %s32193_s10, %s35771_s19 }
 0x26b   : > { %p30936_p11 = pnand %p30935_p10, %p35746_p4  ;;  %p30940_p0 = scmp.lt.s32.totalorder %s30938_s4, %s30934_s17 }
 0x26c   : > { %s35774_s21 = smov %s35773_s28  ;;  %s32212_s18 = scalar_lea.hbm %s35773_s28, %s31879_s16 }
 0x26d   : > { %p30937_p2 = pneg %p30936_p11  ;;  %p30941_p5 = por %p30940_p0, %p30939_p3 }
 0x26f   : > { %p30942_p8 = pnand %p30941_p5, %p30937_p2 }
 0x271   : > { %30945 = shalt.err (!%p30942_p8)
}
 0x272   : > { %s30946_s11 = scalar_lea.vmem %s1550_s14, 16  ;;  %s31408_s20 = smov [#allocation24]  }
 0x273   : > { %p30947_p1 = scmp.ne.s32.totalorder %s1550_s14, %s30946_s11  ;;  %s30950_s8 = sshll.u32 %s31408_s20, 4  ;;  %s30951_s8 = int_to_ptr.vmem [resolvable:$false] %s30950_s8 }
 0x274   : > { %s30952_s9 = scalar_lea.vmem %s30951_s8, 32  ;;  %p30953_p13 = scmp.lt.s32.totalorder %s1550_s14, %s30951_s8 }
 0x275   : > { %p30948_p7 = pnand %p30947_p1, %p35746_p4  ;;  %p30954_p9 = scmp.lt.s32.totalorder %s30952_s9, %s30946_s11 }
 0x277   : > { %p30949_p12 = pneg %p30948_p7  ;;  %p30955_p6 = por %p30954_p9, %p30953_p13 }
 0x279   : > { %p30956_p10 = pnand %p30955_p6, %p30949_p12 }
 0x27b   : > { %30959 = shalt.err (!%p30956_p10)
}
 0x27c   : > { %s35775_s28 = scalar_lea.sflag [#allocation23], %s31843_s13  ;;  %s35776_s3 = sld [smem:[#allocation89_spill]] }
 0x27d   : > { %30094 = dma.hbm_to_vmem [thread:$0]  (%p35746_p4), %s32193_s10, 16, %s1550_s14, %s35775_s28  }
 0x27e   : > { %s1592_s4 = scalar_lea.vmem [#allocation27], %s31854_s0  ;;  %s30960_s8 = scalar_lea.hbm %s32212_s18, 16 }
 0x27f   : > { %s1599_s11 = sshll.u32 %s1592_s4, 4  ;;  %p30961_p11 = scmp.ne.s32.totalorder %s32212_s18, %s30960_s8  ;;  %s1600_s11 = int_to_ptr.vmem [resolvable:$true] %s1599_s11 }
 0x280   : > { %s30964_s9 = scalar_lea.hbm %s35774_s21, 32  ;;  %p30965_p0 = scmp.lt.s32.totalorder %s32212_s18, %s35774_s21 }
 0x281   : > { %p30962_p2 = pnand %p30961_p11, %p35746_p4  ;;  %p30966_p5 = scmp.lt.s32.totalorder %s30964_s9, %s30960_s8 }
 0x282   : > { %s35777_s17 = smov %s35776_s3  ;;  %s32231_s20 = scalar_lea.hbm %s35776_s3, %s31879_s16 }
 0x283   : > { %p30963_p3 = pneg %p30962_p2  ;;  %p30967_p8 = por %p30966_p5, %p30965_p0 }
 0x285   : > { %p30968_p1 = pnand %p30967_p8, %p30963_p3 }
 0x287   : > { %30971 = shalt.err (!%p30968_p1)
}
 0x288   : > { %s30972_s19 = scalar_lea.vmem %s1600_s11, 16  ;;  %s31409_s10 = smov [#allocation27]  }
 0x289   : > { %p30973_p7 = scmp.ne.s32.totalorder %s1600_s11, %s30972_s19  ;;  %s30976_s14 = sshll.u32 %s31409_s10, 4  ;;  %s30977_s14 = int_to_ptr.vmem [resolvable:$false] %s30976_s14 }
 0x28a   : > { %s30978_s28 = scalar_lea.vmem %s30977_s14, 32  ;;  %p30979_p9 = scmp.lt.s32.totalorder %s1600_s11, %s30977_s14 }
 0x28b   : > { %p30974_p12 = pnand %p30973_p7, %p35746_p4  ;;  %p30980_p6 = scmp.lt.s32.totalorder %s30978_s28, %s30972_s19 }
 0x28d   : > { %p30975_p13 = pneg %p30974_p12  ;;  %p30981_p10 = por %p30980_p6, %p30979_p9 }
 0x28f   : > { %p30982_p11 = pnand %p30981_p10, %p30975_p13 }
 0x291   : > { %30985 = shalt.err (!%p30982_p11)
}
 0x292   : > { %s35778_s3 = scalar_lea.sflag [#allocation26], %s31843_s13  ;;  %s1634_s4 = scalar_lea.vmem [#allocation30], %s31854_s0 }
 0x293   : > { %30096 = dma.hbm_to_vmem [thread:$0]  (%p35746_p4), %s32212_s18, 16, %s1600_s11, %s35778_s3  }
 0x294   : > { %s1641_s8 = sshll.u32 %s1634_s4, 4  ;;  %s26679_s19 = sshll.u32 %s31854_s0, 5  ;;  %s1642_s8 = int_to_ptr.vmem [resolvable:$true] %s1641_s8 }
 0x295   : > { %s30986_s9 = scalar_lea.hbm %s32231_s20, 16  ;;  %s30990_s10 = scalar_lea.hbm %s35777_s17, 32 }
 0x296   : > { %p30987_p2 = scmp.ne.s32.totalorder %s32231_s20, %s30986_s9  ;;  %p30991_p5 = scmp.lt.s32.totalorder %s32231_s20, %s35777_s17 }
 0x297   : > { %p30992_p8 = scmp.lt.s32.totalorder %s30990_s10, %s30986_s9 }
 0x298   : > { %p30988_p3 = pnand %p30987_p2, %p35746_p4 }
 0x299   : > { %p30993_p1 = por %p30992_p8, %p30991_p5 }
 0x29a   : > { %p30989_p0 = pneg %p30988_p3 }
 0x29c   : > { %p30994_p7 = pnand %p30993_p1, %p30989_p0 }
 0x29e   : > { %30997 = shalt.err (!%p30994_p7)
}
 0x29f   : > { %s30998_s14 = scalar_lea.vmem %s1642_s8, 16  ;;  %s31410_s18 = smov [#allocation30]  }
 0x2a0   : > { %p30999_p12 = scmp.ne.s32.totalorder %s1642_s8, %s30998_s14  ;;  %s31002_s11 = sshll.u32 %s31410_s18, 4  ;;  %s31003_s11 = int_to_ptr.vmem [resolvable:$false] %s31002_s11 }
 0x2a1   : > { %s31004_s28 = scalar_lea.vmem %s31003_s11, 32  ;;  %p31005_p6 = scmp.lt.s32.totalorder %s1642_s8, %s31003_s11 }
 0x2a2   : > { %p31000_p13 = pnand %p30999_p12, %p35746_p4  ;;  %p31006_p10 = scmp.lt.s32.totalorder %s31004_s28, %s30998_s14 }
 0x2a4   : > { %p31001_p9 = pneg %p31000_p13  ;;  %p31007_p11 = por %p31006_p10, %p31005_p6 }
 0x2a6   : > { %p31008_p2 = pnand %p31007_p11, %p31001_p9 }
 0x2a8   : > { %31011 = shalt.err (!%p31008_p2)
}
 0x2a9   : > { %s35779_s3 = scalar_lea.sflag [#allocation29], %s31843_s13  ;;  %s35780_s4 = sld [smem:[#allocation91_spill]] }
 0x2aa   : > { %30098 = dma.hbm_to_vmem [thread:$0]  (%p35746_p4), %s32231_s20, 16, %s1642_s8, %s35779_s3  }
 0x2ab   : > { %s26759_s9 = sshll.u32 %s31334_s1, 9  ;;  %s1669_s10 = scalar_lea.vmem [#allocation33], %s26679_s19 }
 0x2ac   : > { %s1676_s18 = sshll.u32 %s1669_s10, 4  ;;  %s1677_s18 = int_to_ptr.vmem [resolvable:$true] %s1676_s18 }
 0x2af   : > { %s32265_s17 = scalar_lea.hbm %s35780_s4, %s26759_s9  ;;  %s31016_s11 = scalar_lea.hbm %s35780_s4, 1024 }
 0x2b0   : > { %s31012_s14 = scalar_lea.hbm %s32265_s17, 512  ;;  %p31017_p8 = scmp.lt.s32.totalorder %s32265_s17, %s35780_s4 }
 0x2b1   : > { %p31013_p3 = scmp.ne.s32.totalorder %s32265_s17, %s31012_s14  ;;  %p31018_p1 = scmp.lt.s32.totalorder %s31016_s11, %s31012_s14 }
 0x2b3   : > { %p31014_p0 = pnand %p31013_p3, %p35746_p4  ;;  %p31019_p7 = por %p31018_p1, %p31017_p8 }
 0x2b5   : > { %p31015_p5 = pneg %p31014_p0 }
 0x2b7   : > { %p31020_p12 = pnand %p31019_p7, %p31015_p5 }
 0x2b9   : > { %31023 = shalt.err (!%p31020_p12)
}
 0x2ba   : > { %s31024_s20 = scalar_lea.vmem %s1677_s18, 512  ;;  %s31411_s8 = smov [#allocation33]  }
 0x2bb   : > { %p31025_p13 = scmp.ne.s32.totalorder %s1677_s18, %s31024_s20  ;;  %s31028_s19 = sshll.u32 %s31411_s8, 4  ;;  %s31029_s19 = int_to_ptr.vmem [resolvable:$false] %s31028_s19 }
 0x2bc   : > { %s31030_s28 = scalar_lea.vmem %s31029_s19, 1024  ;;  %p31031_p10 = scmp.lt.s32.totalorder %s1677_s18, %s31029_s19 }
 0x2bd   : > { %p31026_p9 = pnand %p31025_p13, %p35746_p4  ;;  %p31032_p11 = scmp.lt.s32.totalorder %s31030_s28, %s31024_s20 }
 0x2bf   : > { %p31027_p6 = pneg %p31026_p9  ;;  %p31033_p2 = por %p31032_p11, %p31031_p10 }
 0x2c1   : > { %p31034_p3 = pnand %p31033_p2, %p31027_p6 }
 0x2c3   : > { %31037 = shalt.err (!%p31034_p3)
}
 0x2c4   : > { %s35781_s3 = scalar_lea.sflag [#allocation32], %s31843_s13  ;;  %s35782_s9 = sld [smem:[#allocation94_spill]] }
 0x2c5   : > { %s35783_s10 = sld [smem:[#allocation96_spill]]  ;;  %s1714_s20 = scalar_lea.vmem [#allocation36], %s31854_s0 }
 0x2c6   : > { %30100 = dma.hbm_to_vmem [thread:$0]  (%p35746_p4), %s32265_s17, 512, %s1677_s18, %s35781_s3, %s35760_s12, %s35760_s12, %s35759_s25  }
 0x2c7   : > { %s1721_s8 = sshll.u32 %s1714_s20, 4  ;;  %s1722_s8 = int_to_ptr.vmem [resolvable:$true] %s1721_s8 }
 0x2ca   : > { %s32286_s11 = scalar_lea.hbm %s35782_s9, %s31879_s16  ;;  %s31042_s4 = scalar_lea.hbm %s35782_s9, 32 }
 0x2cb   : > { %s35784_s14 = smov %s35783_s10  ;;  %s32291_s19 = scalar_lea.hbm %s35783_s10, %s31879_s16 }
 0x2cc   : > { %s31038_s28 = scalar_lea.hbm %s32286_s11, 16  ;;  %p31043_p1 = scmp.lt.s32.totalorder %s32286_s11, %s35782_s9 }
 0x2cd   : > { %p31039_p0 = scmp.ne.s32.totalorder %s32286_s11, %s31038_s28  ;;  %p31044_p7 = scmp.lt.s32.totalorder %s31042_s4, %s31038_s28 }
 0x2cf   : > { %p31040_p5 = pnand %p31039_p0, %p35746_p4  ;;  %p31045_p12 = por %p31044_p7, %p31043_p1 }
 0x2d1   : > { %p31041_p8 = pneg %p31040_p5 }
 0x2d3   : > { %p31046_p13 = pnand %p31045_p12, %p31041_p8 }
 0x2d5   : > { %31049 = shalt.err (!%p31046_p13)
}
 0x2d6   : > { %s31050_s25 = scalar_lea.vmem %s1722_s8, 16  ;;  %s31412_s12 = smov [#allocation36]  }
 0x2d7   : > { %p31051_p9 = scmp.ne.s32.totalorder %s1722_s8, %s31050_s25  ;;  %s31054_s16 = sshll.u32 %s31412_s12, 4  ;;  %s31055_s16 = int_to_ptr.vmem [resolvable:$false] %s31054_s16 }
 0x2d8   : > { %s31056_s17 = scalar_lea.vmem %s31055_s16, 32  ;;  %p31057_p11 = scmp.lt.s32.totalorder %s1722_s8, %s31055_s16 }
 0x2d9   : > { %p31052_p6 = pnand %p31051_p9, %p35746_p4  ;;  %p31058_p2 = scmp.lt.s32.totalorder %s31056_s17, %s31050_s25 }
 0x2db   : > { %p31053_p10 = pneg %p31052_p6  ;;  %p31059_p3 = por %p31058_p2, %p31057_p11 }
 0x2dd   : > { %p31060_p0 = pnand %p31059_p3, %p31053_p10 }
 0x2df   : > { %31063 = shalt.err (!%p31060_p0)
}
 0x2e0   : > { %s35785_s4 = scalar_lea.sflag [#allocation35], %s31843_s13  ;;  %s1748_s18 = scalar_lea.vmem [#allocation39], %s31854_s0 }
 0x2e1   : > { %30102 = dma.hbm_to_vmem [thread:$0]  (%p35746_p4), %s32286_s11, 16, %s1722_s8, %s35785_s4  }
 0x2e2   : > { %s1755_s3 = sshll.u32 %s1748_s18, 4  ;;  %s31064_s10 = scalar_lea.hbm %s32291_s19, 16  ;;  %s1756_s3 = int_to_ptr.vmem [resolvable:$true] %s1755_s3 }
 0x2e3   : > { %p31065_p5 = scmp.ne.s32.totalorder %s32291_s19, %s31064_s10  ;;  %s31068_s20 = scalar_lea.hbm %s35784_s14, 32 }
 0x2e4   : > { %p31069_p7 = scmp.lt.s32.totalorder %s32291_s19, %s35784_s14  ;;  %p31070_p12 = scmp.lt.s32.totalorder %s31068_s20, %s31064_s10 }
 0x2e5   : > { %p31066_p8 = pnand %p31065_p5, %p35746_p4 }
 0x2e6   : > { %p31071_p13 = por %p31070_p12, %p31069_p7 }
 0x2e7   : > { %p31067_p1 = pneg %p31066_p8 }
 0x2e9   : > { %p31072_p9 = pnand %p31071_p13, %p31067_p1 }
 0x2eb   : > { %31075 = shalt.err (!%p31072_p9)
}
 0x2ec   : > { %s31076_s28 = scalar_lea.vmem %s1756_s3, 16  ;;  %s31413_s0 = smov [#allocation39]  }
 0x2ed   : > { %p31077_p6 = scmp.ne.s32.totalorder %s1756_s3, %s31076_s28  ;;  %s31080_s11 = sshll.u32 %s31413_s0, 4  ;;  %s31081_s11 = int_to_ptr.vmem [resolvable:$false] %s31080_s11 }
 0x2ee   : > { %s31082_s8 = scalar_lea.vmem %s31081_s11, 32  ;;  %p31083_p2 = scmp.lt.s32.totalorder %s1756_s3, %s31081_s11 }
 0x2ef   : > { %p31078_p10 = pnand %p31077_p6, %p35746_p4  ;;  %p31084_p3 = scmp.lt.s32.totalorder %s31082_s8, %s31076_s28 }
 0x2f1   : > { %p31079_p11 = pneg %p31078_p10  ;;  %p31085_p0 = por %p31084_p3, %p31083_p2 }
 0x2f3   : > { %p31086_p5 = pnand %p31085_p0, %p31079_p11 }
 0x2f5   : > { %31089 = shalt.err (!%p31086_p5)
}
 0x2f6   : > { %s35786_s25 = scalar_lea.sflag [#allocation38], %s31843_s13 }
 0x2f7   : > { %30104 = dma.hbm_to_vmem [thread:$0]  (%p35746_p4), %s32291_s19, 16, %s1756_s3, %s35786_s25  }
 0x2f8 PF: > { %p35787_p8 = scmp.ne.s32.totalorder %s35740_s30, 0 }
 0x2fa   : > { %1764 = sbr.rel (%p35787_p8) target bundleno = 14058 (0x36ea), region = 176 }
 0x2ff   : > { %s35788_s12 = sld [smem:[#allocation119_spill]]  ;;  %s32325_s16 = sand.u32 1, %s31318_s22  }
 0x300   : > { %35789 = sst [smem:[#allocation126_spill]] %s32325_s16  ;;  %s32328_s17 = sshll.u32 %s32325_s16, 4 }
 0x301   : > { %s1767_s4 = scalar_lea.sflag [#allocation5], %s32325_s16 }
 0x305   : > { %p35790_p1 = scmp.ne.s32.totalorder %s35788_s12, 0 }
 0x307   : > { %31225 = dma.done.wait (%p35790_p1), %s1767_s4, 256  }
 0x308   : > { %31227 = vsyncadd (%p35790_p1), %s1767_s4, 4294967040  ;;  %s32337_s29 = sand.u32 1, %s31712_s6  }
 0x309   : > { %s1776_s30 = scalar_lea.sflag [#allocation8], %s32337_s29 }
 0x30a   : > { %31229 = dma.done.wait (%p35790_p1), %s1776_s30, 256  }
 0x30b   : > { %31231 = vsyncadd (%p35790_p1), %s1776_s30, 4294967040  ;;  %s32346_s19 = sand.u32 1, %s31306_s15   ;;  %p35791_p4 = scmp.ne.s32.totalorder %s35730_s26, 0 }
 0x30d   : > { %31233 = dma.done.wait (%p35791_p4), %s1776_s30, 16  }
 0x30e   : > { %31235 = vsyncadd (%p35791_p4), %s1776_s30, 4294967280  ;;  %s1793_s10 = scalar_lea.sflag [#allocation11], %s32337_s29 }
 0x30f   : > { %31237 = dma.done.wait (%p35791_p4), %s1793_s10, 32  }
 0x310   : > { %31239 = vsyncadd (%p35791_p4), %s1793_s10, 4294967264  ;;  %s1809_s0 = scalar_lea.sflag [#allocation14], %s32337_s29 }
 0x311   : > { %31241 = dma.done.wait (%p35791_p4), %s1809_s0, 32  }
 0x312   : > { %31243 = vsyncadd (%p35791_p4), %s1809_s0, 4294967264  ;;  %s1825_s25 = scalar_lea.sflag [#allocation17], %s32337_s29 }
 0x313   : > { %31245 = dma.done.wait (%p35791_p4), %s1825_s25, 32  }
 0x314   : > { %31247 = vsyncadd (%p35791_p4), %s1825_s25, 4294967264  ;;  %s1841_s30 = scalar_lea.sflag [#allocation20], %s32337_s29 }
 0x315   : > { %31249 = dma.done.wait (%p35791_p4), %s1841_s30, 32  }
 0x316   : > { %31251 = vsyncadd (%p35791_p4), %s1841_s30, 4294967264  ;;  %s1857_s12 = scalar_lea.sflag [#allocation23], %s32337_s29 }
 0x317   : > { %31253 = dma.done.wait (%p35791_p4), %s1857_s12, 32  }
 0x318   : > { %31255 = vsyncadd (%p35791_p4), %s1857_s12, 4294967264  ;;  %s1873_s10 = scalar_lea.sflag [#allocation26], %s32337_s29 }
 0x319   : > { %31257 = dma.done.wait (%p35791_p4), %s1873_s10, 32  }
 0x31a   : > { %31259 = vsyncadd (%p35791_p4), %s1873_s10, 4294967264  ;;  %s1889_s8 = scalar_lea.sflag [#allocation29], %s32337_s29 }
 0x31b   : > { %31261 = dma.done.wait (%p35791_p4), %s1889_s8, 32  }
 0x31c   : > { %31263 = vsyncadd (%p35791_p4), %s1889_s8, 4294967264  ;;  %s1905_s4 = scalar_lea.sflag [#allocation32], %s32337_s29 }
 0x31d   : > { %31265 = dma.done.wait (%p35791_p4), %s1905_s4, 528  }
 0x31e   : > { %31267 = vsyncadd (%p35791_p4), %s1905_s4, 4294966768  ;;  %s26689_s10 = sshll.u32 %s32346_s19, 5  ;;  %s1922_s8 = scalar_lea.sflag [#allocation35], %s32337_s29 }
 0x31f   : > { %s32409_s0 = scalar_lea.vmem [#allocation33], %s26689_s10 }
 0x320   : > { %31269 = dma.done.wait (%p35791_p4), %s1922_s8, 32  }
 0x321   : > { %31271 = vsyncadd (%p35791_p4), %s1922_s8, 4294967264  ;;  %s1938_s4 = scalar_lea.sflag [#allocation38], %s32337_s29 }
 0x322   : > { %31273 = dma.done.wait (%p35791_p4), %s1938_s4, 32  }
 0x323   : > { %31275 = vsyncadd (%p35791_p4), %s1938_s4, 4294967264  ;;  %p35792_p7 = scmp.eq.s32.totalorder %s31712_s6, 0 }
 0x325   : > { %31277 = dma.done.wait (%p35792_p7), [#allocation41], 528   ;;  %p35793_p12 = pmov %p35792_p7 }
 0x326   : > { %s35794_s8 = sld [smem:[#allocation112_spill]]  ;;  %s2200_s18 = sand.u32 1, %s31294_s7  }
 0x327   : > { %31279 = vsyncadd (%p35793_p12), [#allocation41], 4294966768  ;;  %s35795_s30 = sld [smem:[#allocation65_spill]]  ;;  %s26693_s9 = sshll.u32 %s2200_s18, 4 }
 0x328   : > { %s35796_s25 = sld [smem:[#allocation67_spill]] }
 0x329   : > { %s35797_s11 = sld [smem:[#allocation69_spill]] }
 0x32a   : > { %s35798_s12 = sld [smem:[#allocation71_spill]] }
 0x32b   : > { %s35799_s28 = sld [smem:[#allocation75_spill]] }
 0x32c   : > { %s35800_s20 = sld [smem:[#allocation77_spill]]  ;;  %p2212_p13 = scmp.lt.s32.totalorder %s35794_s8, 1 }
 0x32d   : > { %s35801_s3 = sld [smem:[#allocation81_spill]]  ;;  %p26717_p9 = scmp.ne.s32.totalorder %s35794_s8, 0 }
 0x32e   : > { %s35802_s26 = sld [smem:[#allocation83_spill]] }
 0x32f   : > { %s35803_s4 = sld [smem:[#allocation85_spill]] }
 0x330   : > { %s35804_s13 = sld [smem:[#allocation87_spill]] }
 0x331   : > { %s35805_s10 = sld [smem:[#allocation93_spill]] }
 0x332   : > { %s2213_s6 = scalar_select %p2212_p13, %s35794_s8, 1 }
 0x334   : > { %s26760_s14 = sshll.u32 %s2213_s6, 5  ;;  %s26765_s21 = sshll.u32 %s2213_s6, 7 }
 0x335   : > { %s32433_s24 = scalar_lea.vmem %s35795_s30, %s26760_s14  ;;  %s32436_s27 = scalar_lea.vmem %s35796_s25, %s26760_s14 }
 0x336   : > { %s32439_s2 = scalar_lea.vmem %s35797_s11, %s26760_s14  ;;  %s32442_s1 = scalar_lea.vmem %s35798_s12, %s26760_s14 }
 0x337   : > { %s32445_s23 = scalar_lea.vmem %s35799_s28, %s26760_s14  ;;  %s32448_s22 = scalar_lea.vmem %s35800_s20, %s26765_s21 }
 0x338   : > { %s32451_s15 = scalar_lea.vmem %s35801_s3, %s26760_s14  ;;  %s32454_s18 = scalar_lea.vmem %s35802_s26, %s26760_s14 }
 0x339   : > { %s32457_s7 = scalar_lea.vmem %s35803_s4, %s26760_s14  ;;  %s32460_s16 = scalar_lea.vmem %s35804_s13, %s26760_s14 }
 0x33a   : > { %s32463_s30 = scalar_lea.vmem %s35805_s10, %s26765_s21  ;;  %s32466_s25 = scalar_lea.vmem [#allocation43], %s32328_s17 }
 0x33b   : > { %s32468_s11 = scalar_lea.vmem [#allocation44], %s26693_s9  ;;  %s32470_s12 = scalar_lea.vmem [#allocation46], %s26693_s9 }
 0x33c   : > { %2273 = sbr.rel (%p26717_p9) target bundleno = 836 (0x344), region = 280  ;;  %s35806_s3 = scalar_lea.vmem (!%p26717_p9), [#allocation4], %s32328_s17 }
 0x33d   : > { %s35807_s14 = smov (!%p26717_p9), %s35806_s3  ;;  %s35808_s21 = scalar_lea.vmem (!%p26717_p9), [#allocation7], %s32328_s17 }
 0x33e   : > { %s35809_s13 = smov (!%p26717_p9), %s35808_s21 }
 0x341   : > { %v2274_v0 = vld [vmem:[%s35806_s3] sm:$0xff]  ;;  %vm2276_vm0 = vcmask 261120   ;;  %v2275_v1 = vld [vmem:[%s35807_s14 + $0x8] sm:$0xff] }
 0x342   : > { %v2279_v2 = vld [vmem:[%s35808_s21] sm:$0xff]  ;;  %2277 = vst.msk [vmem:[#allocation2] sm:$0xff] %vm2276_vm0, %v2274_v0  ;;  %2278 = vst.msk [vmem:[#allocation2 + $0x8] sm:$0xff] %vm2276_vm0, %v2275_v1  ;;  %v2280_v3 = vld [vmem:[%s35809_s13 + $0x8] sm:$0xff] }
 0x343   : > { %2281 = vst.msk [vmem:[#allocation3] sm:$0xff] %vm2276_vm0, %v2279_v2  ;;  %2282 = vst.msk [vmem:[#allocation3 + $0x8] sm:$0xff] %vm2276_vm0, %v2280_v3 }
 0x344 PF: > { %v2290_v4 = vld [vmem:[%s32433_s24 + $0x18] sm:$0xff]  ;;  %v2289_v5 = vld [vmem:[%s32433_s24 + $0x10] sm:$0xff]  ;;  %v2288_v6 = vld [vmem:[%s32433_s24 + $0x8] sm:$0xff]  ;;  %vm2298_vm1 = vcmask 261120   ;;  %vm31415_vm2 = vmmov 0   ;;  %vm3919_vm3 = vcmask 64512  }
 0x345   : > { %v32484_v7 = vand.u32 4294901760, %v2290_v4  ;;  %v32486_v8 = vand.u32 4294901760, %v2289_v5  ;;  %v32488_v9 = vand.u32 4294901760, %v2288_v6  ;;  %v2287_v10 = vld [vmem:[%s32433_s24] sm:$0xff]  ;;  %v2838_v43 = vld [vmem:[%s32436_s27 + $0x18] sm:$0xff]  ;;  %v2837_v45 = vld [vmem:[%s32436_s27 + $0x10] sm:$0xff] }
 0x346   : > { %v32491_v13 = vand.u32 4294901760, %v2287_v10  ;;  %v32540_v47 = vand.u32 4294901760, %v2838_v43  ;;  %v32546_v49 = vand.u32 4294901760, %v2837_v45  ;;  %v2836_v50 = vld [vmem:[%s32436_s27 + $0x8] sm:$0xff]  ;;  %v2835_v53 = vld [vmem:[%s32436_s27] sm:$0xff]  ;;  %s35819_s27 = scalar_lea.vmem [#allocation10], %s32346_s19 }
 0x347   : > { %27840 = vmatprep.subr.mxu0 %v32484_v7  ;;  %v2420_v16 = vsub.f32 %v2290_v4, %v32484_v7  ;;  %v2427_v18 = vsub.f32 %v2289_v5, %v32486_v8  ;;  %v2434_v20 = vsub.f32 %v2288_v6, %v32488_v9  ;;  %v32561_v55 = vand.u32 4294901760, %v2836_v50  ;;  %s31416_s24 = smov 120   ;;  %s35820_s9 = scalar_lea.vmem [#allocation12], %s32346_s19 }
 0x348   : > { %27841 = vmatpush3.msra.mxu0 %v32484_v7  ;;  %v2441_v21 = vsub.f32 %v2287_v10, %v32491_v13  ;;  %v32557_v54 = vsub.f32 %v2838_v43, %v32540_v47  ;;  %v2974_v57 = vsub.f32 %v2837_v45, %v32546_v49  ;;  %v32571_v58 = vand.u32 4294901760, %v2835_v53  ;;  %s31417_s17 = smov 112   ;;  %s31418_s20 = smov 104  }
 0x349   : > { %v2283_v11 = vld [vmem:[#allocation2] sm:$0xff]  ;;  %v2284_v12 = vld [vmem:[#allocation2 + $0x8] sm:$0xff]  ;;  %27842 = vmatprep.subr.mxu0 %v32486_v8  ;;  %v2421_v22 = vand.u32 4294901760, %v2420_v16  ;;  %v32509_v24 = vand.u32 4294901760, %v2427_v18  ;;  %v32516_v26 = vand.u32 4294901760, %v2434_v20  ;;  %v2981_v61 = vsub.f32 %v2836_v50, %v32561_v55  ;;  %s31419_s28 = smov 16  }
 0x34a   : > { %v2300_v14 = vsel %vm2298_vm1, %v2283_v11, 0  ;;  %v2303_v15 = vsel %vm2298_vm1, %v2284_v12, 0  ;;  %27843 = vmatpush3.msra.mxu0 %v32486_v8  ;;  %v32518_v27 = vand.u32 4294901760, %v2441_v21  ;;  %v2285_v42 = vld [vmem:[#allocation3] sm:$0xff]  ;;  %v2286_v44 = vld [vmem:[#allocation3 + $0x8] sm:$0xff]  ;;  %v32580_v60 = vand.u32 4294901760, %v32557_v54 }
 0x34b   : > { %v32497_v17 = vand.u32 4294901760, %v2300_v14  ;;  %v32500_v19 = vand.u32 4294901760, %v2303_v15  ;;  %27844 = vmatprep.subr.mxu0 %v32488_v9  ;;  %v2422_v28 = vsub.f32 %v2420_v16, %v2421_v22  ;;  %v2429_v30 = vsub.f32 %v2427_v18, %v32509_v24  ;;  %s31420_s10 = smov 8   ;;  %s31421_s8 = smov 24  }
 0x34c   : > { %27845 = vmatpush3.msra.mxu0 %v32488_v9  ;;  %v2436_v32 = vsub.f32 %v2434_v20, %v32516_v26  ;;  %v2443_v33 = vsub.f32 %v2441_v21, %v32518_v27  ;;  %v2847_v46 = vsel %vm2298_vm1, %v2285_v42, 0  ;;  %v2850_v48 = vsel %vm2298_vm1, %v2286_v44, 0  ;;  %s35823_s26 = scalar_lea.vmem [#allocation16], %s32346_s19  ;;  %s35853_s4 = scalar_lea.vmem [#allocation19], %s32346_s19 }
 0x34d   : > { %v32507_v23 = vsub.f32 %v2300_v14, %v32497_v17  ;;  %v32512_v25 = vsub.f32 %v2303_v15, %v32500_v19  ;;  %27859 = vmatprep.mubr.f32.mxu1 %v32497_v17  ;;  %27846 = vmatprep.subr.mxu0 %v32491_v13  ;;  %v2423_v34 = vand.u32 4294901760, %v2422_v28  ;;  %v2430_v36 = vand.u32 4294901760, %v2429_v30  ;;  %s35863_s6 = scalar_lea.vmem [#allocation21], %s32346_s19  ;;  %s35877_s3 = scalar_lea.vmem [#allocation27], %s32346_s19 }
 0x34e   : > { %27847 = vmatpush3.msra.mxu0 %v32491_v13  ;;  %v2437_v40 = vand.u32 4294901760, %v2436_v32  ;;  %v2444_v41 = vand.u32 4294901760, %v2443_v33  ;;  %v32549_v51 = vand.u32 4294901760, %v2847_v46  ;;  %v32552_v52 = vand.u32 4294901760, %v2850_v48  ;;  %s35880_s14 = scalar_lea.vmem [#allocation31], %s32346_s19  ;;  %s35908_s21 = scalar_lea.vmem [#allocation36], %s32346_s19 }
 0x34f   : > { %v2376_v29 = vand.u32 4294901760, %v32507_v23  ;;  %v2386_v31 = vand.u32 4294901760, %v32512_v25  ;;  %27851 = vmatprep.subr.mxu1 %v2423_v34  ;;  %27862 = vmatprep.subr.mxu0 %v2420_v16  ;;  %v32591_v63 = vand.u32 4294901760, %v2974_v57  ;;  %v2988_v1 = vsub.f32 %v2835_v53, %v32571_v58  ;;  %s35911_s13 = sld [smem:[#allocation112_spill]] }
 0x350   : > { %27852 = vmatpush3.msra.mxu1 %v2423_v34  ;;  %35810 = vst [vmem:[#allocation127_spill] sm:$0xff] %v32549_v51  ;;  %35811 = vst [vmem:[#allocation128_spill] sm:$0xff] %v32552_v52  ;;  %v32566_v56 = vsub.f32 %v2847_v46, %v32549_v51  ;;  %v32574_v59 = vsub.f32 %v2850_v48, %v32552_v52  ;;  %v2969_v2 = vsub.f32 %v32557_v54, %v32580_v60  ;;  %vm7600_vm4 = vcmask 130048  }
 0x351   : > { %v2377_v35 = vsub.f32 %v32507_v23, %v2376_v29  ;;  %v2387_v37 = vsub.f32 %v32512_v25, %v2386_v31  ;;  %27853 = vmatprep.subr.mxu1 %v2430_v36  ;;  %v2982_v3 = vand.u32 4294901760, %v2981_v61  ;;  %v2976_v5 = vsub.f32 %v2974_v57, %v32591_v63 }
 0x352   : > { %27854 = vmatpush3.msra.mxu1 %v2430_v36  ;;  %35812 = vst [vmem:[#allocation129_spill] sm:$0xff] %v32566_v56  ;;  %35813 = vst [vmem:[#allocation130_spill] sm:$0xff] %v32574_v59  ;;  %v32589_v62 = vand.u32 4294901760, %v32566_v56  ;;  %v32596_v0 = vand.u32 4294901760, %v32574_v59  ;;  %vm7602_vm5 = vcmask 195584  }
 0x353   : > { %v2378_v38 = vand.u32 4294901760, %v2377_v35  ;;  %v2388_v39 = vand.u32 4294901760, %v2387_v37  ;;  %27855 = vmatprep.subr.mxu1 %v2437_v40  ;;  %v2983_v10 = vsub.f32 %v2981_v61, %v2982_v3  ;;  %v2977_v12 = vand.u32 4294901760, %v2976_v5 }
 0x354   : > { %27856 = vmatpush3.msra.mxu1 %v2437_v40  ;;  %35814 = vst [vmem:[#allocation131_spill] sm:$0xff] %v32589_v62  ;;  %35815 = vst [vmem:[#allocation132_spill] sm:$0xff] %v32596_v0  ;;  %v2924_v4 = vsub.f32 %v32566_v56, %v32589_v62  ;;  %v2934_v6 = vsub.f32 %v32574_v59, %v32596_v0  ;;  %v35587_v40 = vmov 0.0  }
 0x355   : > { %27848 = vmatprep.mubr.f32.mxu0 %v2378_v38  ;;  %27857 = vmatprep.subr.mxu1 %v2444_v41  ;;  %v2984_v15 = vand.u32 4294901760, %v2983_v10 }
 0x356   : > { %27849 = vmatmul.mubr.f32.vlgmr.msra.gmra.mxu0 %v2388_v39  ;;  %27858 = vmatpush3.msra.mxu1 %v2444_v41  ;;  %v32620_v11 = vand.u32 4294901760, %v2924_v4 }
 0x357   : > { %27863 = vmatpush3.msra.mxu0 %v2420_v16  ;;  %27860 = vmatmul.mubr.f32.vlgmr.msra.gmra.mxu1 %v32500_v19  ;;  %v3383_v16 = vld [vmem:[%s32439_s2 + $0x18] sm:$0xff] }
 0x358   : > { %27864 = vmatprep.subr.mxu0 %v2427_v18  ;;  %27873 = vmatprep.subr.mxu1 %v32484_v7  ;;  %35816 = vst [vmem:[#allocation133_spill] sm:$0xff] %v32620_v11 }
 0x359   : > { %27865 = vmatpush3.msra.mxu0 %v2427_v18  ;;  %27870 = vmatprep.mubr.f32.mxu0 %v32507_v23  ;;  %v3382_v18 = vld [vmem:[%s32439_s2 + $0x10] sm:$0xff] }
 0x35a   : > { %27866 = vmatprep.subr.mxu0 %v2434_v20  ;;  %27874 = vmatpush3.msra.mxu1 %v32484_v7 }
 0x35b   : > { %27867 = vmatpush3.msra.mxu0 %v2434_v20  ;;  %27875 = vmatprep.subr.mxu1 %v32486_v8 }
 0x35c   : > { %27868 = vmatprep.subr.mxu0 %v2441_v21  ;;  %27876 = vmatpush3.msra.mxu1 %v32486_v8 }
 0x35d   : > { %27869 = vmatpush3.msra.mxu0 %v2441_v21  ;;  %27877 = vmatprep.subr.mxu1 %v32488_v9  ;;  %v3381_v21 = vld [vmem:[%s32439_s2 + $0x8] sm:$0xff] }
 0x35e   : > { %27871 = vmatmul.mubr.f32.vlgmr.msra.gmra.mxu0 %v32512_v25  ;;  %27884 = vmatprep.subr.mxu0 %v2421_v22  ;;  %v32675_v23 = vand.u32 4294901760, %v3381_v21  ;;  %v3380_v25 = vld [vmem:[%s32439_s2] sm:$0xff]  ;;  %s35818_s2 = scalar_lea.vmem [#allocation9], %s32346_s19 }
 0x35f   : > { %27885 = vmatpush3.msra.mxu0 %v2421_v22  ;;  %27878 = vmatpush3.msra.mxu1 %v32488_v9  ;;  %v3425_v28 = vand.u32 4294901760, %v3380_v25  ;;  %v26718_v41 = vld [vmem:[%s35818_s2] ss:$0 sm:$0xff]  ;;  %s24176_s2 = sadd.s32 1, %s35911_s13 }
 0x360   : > { %27886 = vmatprep.subr.mxu0 %v32509_v24  ;;  %27879 = vmatprep.subr.mxu1 %v32491_v13  ;;  %p26740_p6 = scmp.ge.s32.totalorder %s24176_s2, 2 }
 0x361   : > { %27887 = vmatpush3.msra.mxu0 %v32509_v24  ;;  %27880 = vmatpush3.msra.mxu1 %v32491_v13  ;;  %v3527_v33 = vsub.f32 %v3380_v25, %v3425_v28 }
 0x362   : > { %27888 = vmatprep.subr.mxu0 %v32516_v26  ;;  %27881 = vmatprep.mubr.f32.mxu1 %v2376_v29  ;;  %v3520_v29 = vsub.f32 %v3381_v21, %v32675_v23 }
 0x363   : > { %27889 = vmatpush3.msra.mxu0 %v32516_v26  ;;  %27882 = vmatmul.mubr.f32.vlgmr.msra.gmra.mxu1 %v2386_v31  ;;  %v3528_v36 = vand.u32 4294901760, %v3527_v33 }
 0x364   : > { %27890 = vmatprep.subr.mxu0 %v32518_v27  ;;  %27895 = vmatprep.subr.mxu1 %v32484_v7  ;;  %v3521_v32 = vand.u32 4294901760, %v3520_v29 }
 0x365   : > { %27891 = vmatpush3.msra.mxu0 %v32518_v27  ;;  %27892 = vmatprep.mubr.f32.mxu0 %v32497_v17  ;;  %v3529_v38 = vsub.f32 %v3527_v33, %v3528_v36 }
 0x366   : > { %27896 = vmatpush3.msra.mxu1 %v32484_v7  ;;  %27893 = vmatmul.mubr.f32.vlgmr.msra.gmra.mxu0 %v32500_v19  ;;  %v2989_v7 = vand.u32 4294901760, %v2988_v1  ;;  %v3522_v35 = vsub.f32 %v3520_v29, %v3521_v32 }
 0x367   : > { %27897 = vmatprep.subr.mxu1 %v32486_v8  ;;  %27906 = vmatprep.subr.mxu0 %v32540_v47  ;;  %v3530_v39 = vand.u32 4294901760, %v3529_v38 }
 0x368   : > { %27898 = vmatpush3.msra.mxu1 %v32486_v8  ;;  %27907 = vmatpush3.msra.mxu0 %v32540_v47  ;;  %v2970_v8 = vand.u32 4294901760, %v2969_v2  ;;  %v2990_v14 = vsub.f32 %v2988_v1, %v2989_v7  ;;  %v3523_v37 = vand.u32 4294901760, %v3522_v35 }
 0x369   : > { %27899 = vmatprep.subr.mxu1 %v32488_v9  ;;  %27908 = vmatprep.subr.mxu0 %v32546_v49 }
 0x36a   : > { %27900 = vmatpush3.msra.mxu1 %v32488_v9  ;;  %27909 = vmatpush3.msra.mxu0 %v32546_v49  ;;  %v32624_v9 = vand.u32 4294901760, %v2934_v6 }
 0x36b   : > { %27901 = vmatprep.subr.mxu1 %v32491_v13  ;;  %27910 = vmatprep.subr.mxu0 %v32561_v55 }
 0x36c   : > { %27902 = vmatpush3.msra.mxu1 %v32491_v13  ;;  %27903 = vmatprep.mubr.f32.mxu1 %v32497_v17  ;;  %35817 = vst [vmem:[#allocation134_spill] sm:$0xff] %v32624_v9  ;;  %v2991_v13 = vand.u32 4294901760, %v2990_v14  ;;  %v32665_v17 = vand.u32 4294901760, %v3383_v16 }
 0x36d   : > { %27911 = vmatpush3.msra.mxu0 %v32561_v55  ;;  %27904 = vmatmul.mubr.f32.vlgmr.msra.gmra.mxu1 %v32500_v19  ;;  %v32669_v19 = vand.u32 4294901760, %v3382_v18 }
 0x36e   : > { %27912 = vmatprep.subr.mxu0 %v32571_v58  ;;  %27917 = vmatprep.subr.mxu1 %v2970_v8  ;;  %v3506_v20 = vsub.f32 %v3383_v16, %v32665_v17 }
 0x36f   : > { %27913 = vmatpush3.msra.mxu0 %v32571_v58  ;;  %27918 = vmatpush3.msra.mxu1 %v2970_v8  ;;  %v3513_v24 = vsub.f32 %v3382_v18, %v32669_v19 }
 0x370   : > { %27914 = vmatprep.mubr.f32.mxu0 %v32620_v11  ;;  %27919 = vmatprep.subr.mxu1 %v2977_v12  ;;  %v3507_v22 = vand.u32 4294901760, %v3506_v20 }
 0x371   : > { %27928 = vmatprep.subr.mxu0 %v32557_v54  ;;  %27915 = vmatmul.mubr.f32.vlgmr.msra.gmra.mxu0 %v32624_v9  ;;  %v3514_v27 = vand.u32 4294901760, %v3513_v24 }
 0x372   : > { %27920 = vmatpush3.msra.mxu1 %v2977_v12  ;;  %27929 = vmatpush3.msra.mxu0 %v32557_v54  ;;  %v3508_v26 = vsub.f32 %v3506_v20, %v3507_v22 }
 0x373   : > { %27921 = vmatprep.subr.mxu1 %v2984_v15  ;;  %27930 = vmatprep.subr.mxu0 %v2974_v57  ;;  %v3515_v31 = vsub.f32 %v3513_v24, %v3514_v27 }
 0x374   : > { %27922 = vmatpush3.msra.mxu1 %v2984_v15  ;;  %27931 = vmatpush3.msra.mxu0 %v2974_v57  ;;  %v3509_v30 = vand.u32 4294901760, %v3508_v26 }
 0x375   : > { %27923 = vmatprep.subr.mxu1 %v2991_v13  ;;  %27932 = vmatprep.subr.mxu0 %v2981_v61  ;;  %v3516_v34 = vand.u32 4294901760, %v3515_v31 }
 0x376   : > { %27924 = vmatpush3.msra.mxu1 %v2991_v13  ;;  %27925 = vmatprep.mubr.f32.mxu1 %v32549_v51 }
 0x377   : > { %27933 = vmatpush3.msra.mxu0 %v2981_v61  ;;  %27926 = vmatmul.mubr.f32.vlgmr.msra.gmra.mxu1 %v32552_v52 }
 0x378   : > { %27934 = vmatprep.subr.mxu0 %v2988_v1  ;;  %27939 = vmatprep.subr.mxu1 %v32540_v47 }
 0x379   : > { %27935 = vmatpush3.msra.mxu0 %v2988_v1  ;;  %27936 = vmatprep.mubr.f32.mxu0 %v32566_v56 }
 0x37a   : > { %27940 = vmatpush3.msra.mxu1 %v32540_v47  ;;  %27937 = vmatmul.mubr.f32.vlgmr.msra.gmra.mxu0 %v32574_v59 }
 0x37b   : > { %27941 = vmatprep.subr.mxu1 %v32546_v49  ;;  %27950 = vmatprep.subr.mxu0 %v32580_v60 }
 0x37c   : > { %27942 = vmatpush3.msra.mxu1 %v32546_v49  ;;  %27951 = vmatpush3.msra.mxu0 %v32580_v60 }
 0x37d   : > { %27943 = vmatprep.subr.mxu1 %v32561_v55  ;;  %27952 = vmatprep.subr.mxu0 %v32591_v63 }
 0x37e   : > { %27944 = vmatpush3.msra.mxu1 %v32561_v55  ;;  %27953 = vmatpush3.msra.mxu0 %v32591_v63 }
 0x37f   : > { %27945 = vmatprep.subr.mxu1 %v32571_v58  ;;  %27954 = vmatprep.subr.mxu0 %v2982_v3 }
 0x380   : > { %27946 = vmatpush3.msra.mxu1 %v32571_v58  ;;  %27947 = vmatprep.mubr.f32.mxu1 %v32589_v62 }
 0x381   : > { %27955 = vmatpush3.msra.mxu0 %v2982_v3  ;;  %27948 = vmatmul.mubr.f32.vlgmr.msra.gmra.mxu1 %v32596_v0  ;;  %v26719_v3 = vld [vmem:[%s35819_s27] ss:$0 sm:$0xff]  ;;  %s35912_s27 = scalar_lea.vmem [#allocation37], %s32346_s19 }
 0x382   : > { %27956 = vmatprep.subr.mxu0 %v2989_v7  ;;  %27961 = vmatprep.subr.mxu1 %v32540_v47 }
 0x383   : > { %27957 = vmatpush3.msra.mxu0 %v2989_v7  ;;  %27958 = vmatprep.mubr.f32.mxu0 %v32549_v51 }
 0x384   : > { %27962 = vmatpush3.msra.mxu1 %v32540_v47  ;;  %27959 = vmatmul.mubr.f32.vlgmr.msra.gmra.mxu0 %v32552_v52 }
 0x385   : > { %27963 = vmatprep.subr.mxu1 %v32546_v49  ;;  %27969 = vmatprep.mubr.f32.mxu1 %v32549_v51 }
 0x386   : > { %27964 = vmatpush3.msra.mxu1 %v32546_v49  ;;  %27980 = vmatprep.mubr.f32.mxu0 %v32620_v11 }
 0x387   : > { %27965 = vmatprep.subr.mxu1 %v32561_v55  ;;  %27972 = vmatprep.subr.mxu0 %v32665_v17 }
 0x388   : > { %27966 = vmatpush3.msra.mxu1 %v32561_v55  ;;  %27973 = vmatpush3.msra.mxu0 %v32665_v17 }
 0x389   : > { %27967 = vmatprep.subr.mxu1 %v32571_v58  ;;  %27974 = vmatprep.subr.mxu0 %v32669_v19 }
 0x38a   : > { %27968 = vmatpush3.msra.mxu1 %v32571_v58  ;;  %27975 = vmatpush3.msra.mxu0 %v32669_v19 }
 0x38b   : > { %27970 = vmatmul.mubr.f32.vlgmr.msra.gmra.mxu1 %v32552_v52  ;;  %27976 = vmatprep.subr.mxu0 %v32675_v23 }
 0x38c   : > { %27991 = vmatprep.mubr.f32.mxu1 %v32549_v51  ;;  %27977 = vmatpush3.msra.mxu0 %v32675_v23 }
 0x38d   : > { %27978 = vmatprep.subr.mxu0 %v3425_v28  ;;  %27983 = vmatprep.subr.mxu1 %v3509_v30 }
 0x38e   : > { %27979 = vmatpush3.msra.mxu0 %v3425_v28  ;;  %27984 = vmatpush3.msra.mxu1 %v3509_v30 }
 0x38f   : > { %27994 = vmatprep.subr.mxu0 %v3506_v20  ;;  %27981 = vmatmul.mubr.f32.vlgmr.msra.gmra.mxu0 %v32624_v9 }
 0x390   : > { %27985 = vmatprep.subr.mxu1 %v3516_v34  ;;  %27995 = vmatpush3.msra.mxu0 %v3506_v20 }
 0x391   : > { %27986 = vmatpush3.msra.mxu1 %v3516_v34  ;;  %27996 = vmatprep.subr.mxu0 %v3513_v24 }
 0x392   : > { %27987 = vmatprep.subr.mxu1 %v3523_v37  ;;  %27997 = vmatpush3.msra.mxu0 %v3513_v24 }
 0x393   : > { %27988 = vmatpush3.msra.mxu1 %v3523_v37  ;;  %27998 = vmatprep.subr.mxu0 %v3520_v29 }
 0x394   : > { %27989 = vmatprep.subr.mxu1 %v3530_v39  ;;  %27999 = vmatpush3.msra.mxu0 %v3520_v29 }
 0x395   : > { %27990 = vmatpush3.msra.mxu1 %v3530_v39  ;;  %28000 = vmatprep.subr.mxu0 %v3527_v33 }
 0x396   : > { %28005 = vmatprep.subr.mxu1 %v32665_v17  ;;  %27992 = vmatmul.mubr.f32.vlgmr.msra.gmra.mxu1 %v32552_v52 }
 0x397   : > { %28006 = vmatpush3.msra.mxu1 %v32665_v17  ;;  %28001 = vmatpush3.msra.mxu0 %v3527_v33 }
 0x398   : > { %28007 = vmatprep.subr.mxu1 %v32669_v19  ;;  %28002 = vmatprep.mubr.f32.mxu0 %v32566_v56 }
 0x399   : > { %28008 = vmatpush3.msra.mxu1 %v32669_v19  ;;  %28016 = vmatprep.subr.mxu0 %v3507_v22 }
 0x39a   : > { %28009 = vmatprep.subr.mxu1 %v32675_v23  ;;  %28003 = vmatmul.mubr.f32.vlgmr.msra.gmra.mxu0 %v32574_v59 }
 0x39b   : > { %28010 = vmatpush3.msra.mxu1 %v32675_v23  ;;  %28017 = vmatpush3.msra.mxu0 %v3507_v22 }
 0x39c   : > { %28011 = vmatprep.subr.mxu1 %v3425_v28  ;;  %28013 = vmatprep.mubr.f32.mxu1 %v32589_v62 }
 0x39d   : > { %28012 = vmatpush3.msra.mxu1 %v3425_v28  ;;  %28018 = vmatprep.subr.mxu0 %v3514_v27 }
 0x39e   : > { %28027 = vmatprep.subr.mxu1 %v32665_v17  ;;  %28014 = vmatmul.mubr.f32.vlgmr.msra.gmra.mxu1 %v32596_v0 }
 0x39f   : > { %28019 = vmatpush3.msra.mxu0 %v3514_v27  ;;  %28028 = vmatpush3.msra.mxu1 %v32665_v17 }
 0x3a0   : > { %28020 = vmatprep.subr.mxu0 %v3521_v32  ;;  %28029 = vmatprep.subr.mxu1 %v32669_v19 }
 0x3a1   : > { %28021 = vmatpush3.msra.mxu0 %v3521_v32  ;;  %28030 = vmatpush3.msra.mxu1 %v32669_v19 }
 0x3a2   : > { %28022 = vmatprep.subr.mxu0 %v3528_v36  ;;  %28031 = vmatprep.subr.mxu1 %v32675_v23 }
 0x3a3   : > { %28023 = vmatpush3.msra.mxu0 %v3528_v36  ;;  %28024 = vmatprep.mubr.f32.mxu0 %v32549_v51 }
 0x3a4   : > { %28032 = vmatpush3.msra.mxu1 %v32675_v23  ;;  %28025 = vmatmul.mubr.f32.vlgmr.msra.gmra.mxu0 %v32552_v52 }
 0x3a5   : > { %28033 = vmatprep.subr.mxu1 %v3425_v28  ;;  %28035 = vmatprep.mubr.f32.mxu1 %v32549_v51 }
 0x3a6   : > { %28034 = vmatpush3.msra.mxu1 %v3425_v28  ;;  %28038 = vmatprep.subr.mxu0 %v35587_v40 }
 0x3a7   : > { %28036 = vmatmul.mubr.f32.vlgmr.msra.gmra.mxu1 %v32552_v52  ;;  %28043 = vmatprep.subr.mxu1 %v35587_v40 }
 0x3a8   : > { %28040 = vmatprep.mubr.msk.f32.mxu0 %vm31415_vm2, %v35587_v40  ;;  %28045 = vmatprep.mubr.msk.f32.mxu1 %vm31415_vm2, %v35587_v40 }
 0x416   : > { %v27850_v42 = vpop.f32.mrf.mxu0 }
 0x417   : > { %v2391_v43 = vadd.f32 %v27850_v42, %v26718_v41  ;;  %v27861_v45 = vpop.f32.mrf.mxu1 }
 0x418   : > { %v2380_v44 = vpop.f32.mrf.mxu0 }
 0x419   : > { %v2488_v46 = vadd.f32 %v27861_v45, %v2391_v43  ;;  %v2481_v49 = vpop.f32.mrf.mxu1  ;;  %v2381_v58 = vadd.f32 %v26718_v41, %v2380_v44 }
 0x41b   : > { %v2482_v61 = vadd.f32 %v2481_v49, %v2381_v58  ;;  %v26720_v49 = vld [vmem:[%s35820_s9] ss:$0 sm:$0xff] }
 0x41e   : > { %v27872_v47 = vpop.f32.mrf.mxu0 }
 0x41f   : > { %v2575_v48 = vadd.f32 %v27872_v47, %v2488_v46 }
 0x420   : > { %v2567_v53 = vpop.f32.mrf.mxu0 }
 0x421   : > { %v2568_v4 = vadd.f32 %v2567_v53, %v2482_v61 }
 0x423   : > { %v27883_v50 = vpop.f32.mrf.mxu1 }
 0x424   : > { %v2660_v54 = vadd.f32 %v27883_v50, %v2575_v48 }
 0x425   : > { %v2651_v60 = vpop.f32.mrf.mxu1 }
 0x426   : > { %v27894_v55 = vpop.f32.mrf.mxu0  ;;  %v2652_v7 = vadd.f32 %v2651_v60, %v2568_v4 }
 0x427   : > { %v2749_v57 = vadd.f32 %v27894_v55, %v2660_v54 }
 0x428   : > { %v2742_v2 = vpop.f32.mrf.mxu0 }
 0x429   : > { %v2743_v12 = vadd.f32 %v2742_v2, %v2652_v7 }
 0x42d   : > { %v27905_v63 = vpop.f32.mrf.mxu1 }
 0x42e   : > { %v32713_v1 = vadd.f32 %v27905_v63, %v2749_v57 }
 0x42f   : > { %v2823_v8 = vpop.f32.mrf.mxu1 }
 0x430   : > { %v2824_v13 = vadd.f32 %v2823_v8, %v2743_v12 }
 0x431   : > { %v27916_v5 = vpop.f32.mrf.mxu0 }
 0x432   : > { %v2938_v6 = vadd.f32 %v27916_v5, %v26719_v3  ;;  %v32717_v18 = vmul.f32 0.35355338, %v2824_v13 }
 0x433   : > { %v2927_v10 = vpop.f32.mrf.mxu0 }
 0x434   : > { %v2928_v19 = vadd.f32 %v26719_v3, %v2927_v10  ;;  %v3921_v21 = vsel %vm3919_vm3, %v32717_v18, 0 }
 0x435   : > { %v3992_v26 = vand.u32 4294901760, %v3921_v21 }
 0x437   : > { %v27927_v14 = vpop.f32.mrf.mxu1  ;;  %v3993_v31 = vsub.f32 %v3921_v21, %v3992_v26 }
 0x438   : > { %v3035_v15 = vadd.f32 %v27927_v14, %v2938_v6 }
 0x439   : > { %v3028_v20 = vpop.f32.mrf.mxu1  ;;  %v3994_v37 = vand.u32 4294901760, %v3993_v31 }
 0x43a   : > { %v27938_v16 = vpop.f32.mrf.mxu0  ;;  %v3029_v23 = vadd.f32 %v3028_v20, %v2928_v19 }
 0x43b   : > { %v3122_v17 = vadd.f32 %v27938_v16, %v3035_v15  ;;  %v3995_v42 = vsub.f32 %v3993_v31, %v3994_v37 }
 0x43c   : > { %v3114_v24 = vpop.f32.mrf.mxu0 }
 0x43d   : > { %v3115_v30 = vadd.f32 %v3114_v24, %v3029_v23  ;;  %v3996_v45 = vand.u32 4294901760, %v3995_v42 }
 0x441   : > { %v27949_v22 = vpop.f32.mrf.mxu1 }
 0x442   : > { %v3207_v25 = vadd.f32 %v27949_v22, %v3122_v17 }
 0x443   : > { %v3198_v28 = vpop.f32.mrf.mxu1 }
 0x444   : > { %v27960_v27 = vpop.f32.mrf.mxu0  ;;  %v3199_v32 = vadd.f32 %v3198_v28, %v3115_v30 }
 0x445   : > { %v3296_v29 = vadd.f32 %v27960_v27, %v3207_v25 }
 0x446   : > { %v3289_v33 = vpop.f32.mrf.mxu0 }
 0x447   : > { %v3290_v35 = vadd.f32 %v3289_v33, %v3199_v32 }
 0x44b   : > { %v27971_v34 = vpop.f32.mrf.mxu1 }
 0x44c   : > { %v32721_v36 = vadd.f32 %v27971_v34, %v3296_v29 }
 0x44d   : > { %v3370_v38 = vpop.f32.mrf.mxu1 }
 0x44e   : > { %v32723_v39 = vadd.f32 %v3370_v38, %v3290_v35 }
 0x44f   : > { %v27982_v50 = vpop.f32.mrf.mxu0 }
 0x450   : > { %4834 = vrot.lane.b32.xlu1 %v32723_v39, %s31416_s24  ;;  %v3924_v41 = vsel %vm3919_vm3, %v32723_v39, 0  ;;  %v3477_v53 = vadd.f32 %v27982_v50, %v26720_v49 }
 0x451   : > { %v3957_v43 = vand.u32 4294901760, %v3924_v41  ;;  %v3466_v54 = vpop.f32.mrf.mxu0 }
 0x452   : > { %v3467_v57 = vadd.f32 %v26720_v49, %v3466_v54 }
 0x453   : > { %28039 = vmatpush3.xpose.msra.mxu0 %v3957_v43  ;;  %v4034_v44 = vsub.f32 %v3924_v41, %v3957_v43 }
 0x454   : > { %4832 = vrot.lane.b32.xlu1 %v32717_v18, %s31416_s24  ;;  %28048 = vmatprep.subr.mxu0 %v35587_v40 }
 0x455   : > { %v4035_v46 = vand.u32 4294901760, %v4034_v44 }
 0x456   : > { %28041 = vmatmul.mubr.f32.vlgmr.msra.gmra.mxu0 %v3996_v45  ;;  %v27993_v55 = vpop.f32.mrf.mxu1 }
 0x457   : > { %28049 = vmatpush3.xpose.msra.mxu0 %v4034_v44  ;;  %28050 = vmatprep.mubr.msk.f32.mxu0 %vm31415_vm2, %v35587_v40  ;;  %v4036_v47 = vsub.f32 %v4034_v44, %v4035_v46  ;;  %v3574_v58 = vadd.f32 %v27993_v55, %v3477_v53 }
 0x458   : > { %28058 = vmatprep.subr.mxu0 %v35587_v40  ;;  %v3567_v60 = vpop.f32.mrf.mxu1 }
 0x459   : > { %v4037_v48 = vand.u32 4294901760, %v4036_v47  ;;  %v3568_v63 = vadd.f32 %v3567_v60, %v3467_v57 }
 0x45a   : > { %28051 = vmatmul.mubr.f32.vlgmr.msra.gmra.mxu0 %v3993_v31  ;;  %v28004_v61 = vpop.f32.mrf.mxu0 }
 0x45b   : > { %28044 = vmatpush3.xpose.msra.mxu1 %v4037_v48  ;;  %28059 = vmatpush3.xpose.msra.mxu0 %v4035_v46  ;;  %v3661_v2 = vadd.f32 %v28004_v61, %v3574_v58 }
 0x45c   : > { %28060 = vmatprep.mubr.msk.f32.mxu0 %vm31415_vm2, %v35587_v40  ;;  %28053 = vmatprep.subr.mxu1 %v35587_v40  ;;  %v3653_v3 = vpop.f32.mrf.mxu0 }
 0x45d   : > { %28068 = vmatprep.subr.mxu0 %v35587_v40  ;;  %v3654_v5 = vadd.f32 %v3653_v3, %v3568_v63 }
 0x45e   : > { %28046 = vmatmul.mubr.f32.vlgmr.msra.gmra.mxu1 %v3992_v26  ;;  %28061 = vmatmul.mubr.f32.vlgmr.msra.gmra.mxu0 %v3992_v26  ;;  %v28015_v4 = vpop.f32.mrf.mxu1 }
 0x45f   : > { %28054 = vmatpush3.xpose.msra.mxu1 %v3957_v43  ;;  %28055 = vmatprep.mubr.msk.f32.mxu1 %vm31415_vm2, %v35587_v40  ;;  %v3746_v6 = vadd.f32 %v28015_v4, %v3661_v2 }
 0x460   : > { %28063 = vmatprep.subr.mxu1 %v35587_v40  ;;  %28070 = vmatprep.mubr.msk.f32.mxu0 %vm31415_vm2, %v35587_v40  ;;  %v3737_v7 = vpop.f32.mrf.mxu1 }
 0x461   : > { %v3738_v8 = vadd.f32 %v3737_v7, %v3654_v5 }
 0x462   : > { %28056 = vmatmul.mubr.f32.vlgmr.msra.gmra.mxu1 %v3994_v37 }
 0x463   : > { %28064 = vmatpush3.xpose.msra.mxu1 %v3957_v43  ;;  %28065 = vmatprep.mubr.msk.f32.mxu1 %vm31415_vm2, %v35587_v40 }
 0x464   : > { %28073 = vmatprep.subr.mxu1 %v35587_v40  ;;  %v28026_v10 = vpop.f32.mrf.mxu0 }
 0x465   : > { %v3835_v12 = vadd.f32 %v28026_v10, %v3746_v6 }
 0x466   : > { %28066 = vmatmul.mubr.f32.vlgmr.msra.gmra.mxu1 %v3992_v26  ;;  %v3828_v14 = vpop.f32.mrf.mxu0 }
 0x467   : > { %28075 = vmatprep.mubr.msk.f32.mxu1 %vm31415_vm2, %v35587_v40  ;;  %v3829_v15 = vadd.f32 %v3828_v14, %v3738_v8  ;;  %v28037_v13 = vpop.f32.mrf.mxu1 }
 0x468   : > { %v32751_v16 = vadd.f32 %v28037_v13, %v3835_v12 }
 0x469   : > { %v3909_v17 = vpop.f32.mrf.mxu1 }
 0x46a   : > { %v32753_v19 = vadd.f32 %v3909_v17, %v3829_v15 }
 0x46c   : > { %v4417_v20 = vand.u32 4294901760, %v32753_v19 }
 0x46e   : > { %28069 = vmatpush3.msra.mxu0 %v4417_v20  ;;  %v32757_v21 = vsub.f32 %v32753_v19, %v4417_v20 }
 0x46f   : > { %28078 = vmatprep.subr.mxu0 %v35587_v40 }
 0x470   : > { %v4495_v22 = vand.u32 4294901760, %v32757_v21 }
 0x472   : > { %v4496_v23 = vsub.f32 %v32757_v21, %v4495_v22 }
 0x474   : > { %v4497_v24 = vand.u32 4294901760, %v4496_v23 }
 0x476   : > { %28074 = vmatpush3.msra.mxu1 %v4497_v24 }
 0x477   : > { %28083 = vmatprep.subr.mxu1 %v35587_v40 }
 0x4c2   : > { %v4835_v54 = vpop.permute.xlu1 %4834 }
 0x4c3   : > { %v4838_v55 = vsel %vm3919_vm3, %v4835_v54, 0 }
 0x4c4   : > { %v4871_v57 = vand.u32 4294901760, %v4838_v55 }
 0x4c6   : > { %v4948_v60 = vsub.f32 %v4838_v55, %v4871_v57  ;;  %v4833_v63 = vpop.permute.xlu1 %4832 }
 0x4c7   : > { %v4836_v5 = vsel %vm3919_vm3, %v4833_v63, 0 }
 0x4c8   : > { %v4949_v4 = vand.u32 4294901760, %v4948_v60  ;;  %v4906_v7 = vand.u32 4294901760, %v4836_v5 }
 0x4ca   : > { %v4950_v10 = vsub.f32 %v4948_v60, %v4949_v4  ;;  %v4907_v14 = vsub.f32 %v4836_v5, %v4906_v7 }
 0x4cc   : > { %v4951_v13 = vand.u32 4294901760, %v4950_v10  ;;  %v4908_v17 = vand.u32 4294901760, %v4907_v14 }
 0x516   : > { %v3998_v25 = vpop.f32.mrf.mxu0 }
 0x518   : > { %v28042_v26 = vpop.f32.mrf.mxu0 }
 0x51a   : > { %v4148_v27 = vpop.f32.mrf.mxu0 }
 0x51c   : > { %v28052_v28 = vpop.f32.mrf.mxu0 }
 0x51e   : > { %v4074_v29 = vpop.f32.mrf.mxu1  ;;  %v4296_v30 = vpop.f32.mrf.mxu0 }
 0x51f   : > { %v4075_v31 = vadd.f32 %v4074_v29, %v3998_v25 }
 0x520   : > { %v28047_v32 = vpop.f32.mrf.mxu1  ;;  %v28062_v33 = vpop.f32.mrf.mxu0 }
 0x521   : > { %v4149_v34 = vadd.f32 %v4148_v27, %v4075_v31 }
 0x522   : > { %v4222_v35 = vpop.f32.mrf.mxu1 }
 0x523   : > { %v4223_v37 = vadd.f32 %v4222_v35, %v4149_v34 }
 0x524   : > { %v28057_v38 = vpop.f32.mrf.mxu1 }
 0x525   : > { %v4297_v41 = vadd.f32 %v4296_v30, %v4223_v37 }
 0x526   : > { %v4368_v42 = vpop.f32.mrf.mxu1 }
 0x527   : > { %v4369_v43 = vadd.f32 %v4368_v42, %v4297_v41 }
 0x528   : > { %v28067_v44 = vpop.f32.mrf.mxu1 }
 0x529   : > { %v4372_v45 = vsel %vm3919_vm3, %v4369_v43, -inf }
 0x52a   : > { %4373 = vmax.xlane.f32.xlu0 %v4372_v45 }
 0x5b3   : > { %v4374_v46 = vpop.xlane.xlu0 %4373 }
 0x5b4   : > { %v4375_v47 = vsub.f32 %v4369_v43, %v4374_v46 }
 0x5b6   : > { %v4376_v48 = vmul.f32 1.442695, %v4375_v47 }
 0x5b8   : > { %30328 = vpow2.f32 %v4376_v48 }
 0x5c5   : > { %v30329_v49 = vpop.eup %30328 }
 0x5c6   : > { %v4378_v50 = vsel %vm3919_vm3, %v30329_v49, 0.0 }
 0x5c7   : > { %4379 = vadd.xlane.f32.xlu0 %v4378_v50 }
 0x650   : > { %v4380_v53 = vpop.xlane.xlu0 %4379 }
 0x651   : > { %30330 = vrcp.f32 %v4380_v53 }
 0x65e   : > { %v30331_v58 = vpop.eup %30330 }
 0x65f   : > { %v32768_v61 = vmul.f32 %v30331_v58, %v30329_v49 }
 0x661   : > { %v4384_v2 = vsel %vm3919_vm3, %v32768_v61, 0 }
 0x662   : > { %v4452_v3 = vand.u32 4294901760, %v4384_v2 }
 0x664   : > { %v4453_v6 = vsub.f32 %v4384_v2, %v4452_v3  ;;  %28076 = vmatmul.mubr.f32.vlgmr.msra.gmra.mxu1 %v4452_v3 }
 0x665   : > { %28084 = vmatpush3.msra.mxu1 %v4417_v20  ;;  %28085 = vmatprep.mubr.msk.f32.mxu1 %vm31415_vm2, %v35587_v40 }
 0x666   : > { %28093 = vmatprep.subr.mxu1 %v35587_v40  ;;  %v4454_v8 = vand.u32 4294901760, %v4453_v6 }
 0x668   : > { %28086 = vmatmul.mubr.f32.vlgmr.msra.gmra.mxu1 %v4454_v8  ;;  %v4455_v12 = vsub.f32 %v4453_v6, %v4454_v8 }
 0x669   : > { %28094 = vmatpush3.msra.mxu1 %v4417_v20  ;;  %28095 = vmatprep.mubr.msk.f32.mxu1 %vm31415_vm2, %v35587_v40  ;;  %v4909_v20 = vsub.f32 %v4907_v14, %v4908_v17 }
 0x66a   : > { %28103 = vmatprep.subr.mxu1 %v35587_v40  ;;  %v4456_v15 = vand.u32 4294901760, %v4455_v12 }
 0x66b   : > { %v4910_v23 = vand.u32 4294901760, %v4909_v20 }
 0x66c   : > { %28071 = vmatmul.mubr.f32.vlgmr.msra.gmra.mxu0 %v4456_v15  ;;  %28096 = vmatmul.mubr.f32.vlgmr.msra.gmra.mxu1 %v4452_v3 }
 0x66d   : > { %28079 = vmatpush3.msra.mxu0 %v32757_v21  ;;  %28104 = vmatpush3.xpose.msra.mxu1 %v4951_v13 }
 0x66e   : > { %28080 = vmatprep.mubr.msk.f32.mxu0 %vm31415_vm2, %v35587_v40  ;;  %28088 = vmatprep.subr.mxu0 %v35587_v40 }
 0x66f   : > { %28105 = vmatprep.mubr.msk.f32.mxu1 %vm31415_vm2, %v35587_v40  ;;  %28113 = vmatprep.subr.mxu1 %v35587_v40 }
 0x670   : > { %28081 = vmatmul.mubr.f32.vlgmr.msra.gmra.mxu0 %v4453_v6  ;;  %28106 = vmatmul.mubr.f32.vlgmr.msra.gmra.mxu1 %v4906_v7 }
 0x671   : > { %28089 = vmatpush3.msra.mxu0 %v4495_v22  ;;  %28114 = vmatpush3.xpose.msra.mxu1 %v4871_v57 }
 0x672   : > { %28090 = vmatprep.mubr.msk.f32.mxu0 %vm31415_vm2, %v35587_v40  ;;  %28098 = vmatprep.subr.mxu0 %v35587_v40 }
 0x673   : > { %28115 = vmatprep.mubr.msk.f32.mxu1 %vm31415_vm2, %v35587_v40  ;;  %28123 = vmatprep.subr.mxu1 %v35587_v40 }
 0x674   : > { %28091 = vmatmul.mubr.f32.vlgmr.msra.gmra.mxu0 %v4452_v3  ;;  %28116 = vmatmul.mubr.f32.vlgmr.msra.gmra.mxu1 %v4908_v17 }
 0x675   : > { %28099 = vmatpush3.xpose.msra.mxu0 %v4871_v57  ;;  %28124 = vmatpush3.xpose.msra.mxu1 %v4871_v57 }
 0x676   : > { %28100 = vmatprep.mubr.msk.f32.mxu0 %vm31415_vm2, %v35587_v40  ;;  %28108 = vmatprep.subr.mxu0 %v35587_v40 }
 0x677   : > { %28125 = vmatprep.mubr.msk.f32.mxu1 %vm31415_vm2, %v35587_v40  ;;  %28133 = vmatprep.subr.mxu1 %v35587_v40 }
 0x678   : > { %28101 = vmatmul.mubr.f32.vlgmr.msra.gmra.mxu0 %v4910_v23  ;;  %28126 = vmatmul.mubr.f32.vlgmr.msra.gmra.mxu1 %v4906_v7 }
 0x679   : > { %28109 = vmatpush3.xpose.msra.mxu0 %v4948_v60  ;;  %28110 = vmatprep.mubr.msk.f32.mxu0 %vm31415_vm2, %v35587_v40 }
 0x67a   : > { %28118 = vmatprep.subr.mxu0 %v35587_v40  ;;  %28135 = vmatprep.mubr.msk.f32.mxu1 %vm31415_vm2, %v35587_v40 }
 0x67c   : > { %28111 = vmatmul.mubr.f32.vlgmr.msra.gmra.mxu0 %v4907_v14 }
 0x67d   : > { %28119 = vmatpush3.xpose.msra.mxu0 %v4949_v4  ;;  %28120 = vmatprep.mubr.msk.f32.mxu0 %vm31415_vm2, %v35587_v40 }
 0x67e   : > { %28128 = vmatprep.subr.mxu0 %v35587_v40 }
 0x680   : > { %28121 = vmatmul.mubr.f32.vlgmr.msra.gmra.mxu0 %v4906_v7 }
 0x681   : > { %28130 = vmatprep.mubr.msk.f32.mxu0 %vm31415_vm2, %v35587_v40 }
 0x724   : > { %v4534_v21 = vpop.f32.mrf.mxu1 }
 0x726   : > { %v28077_v22 = vpop.f32.mrf.mxu1 }
 0x728   : > { %v4682_v24 = vpop.f32.mrf.mxu1 }
 0x72a   : > { %v28087_v25 = vpop.f32.mrf.mxu1 }
 0x72c   : > { %v4458_v26 = vpop.f32.mrf.mxu0  ;;  %v4828_v27 = vpop.f32.mrf.mxu1 }
 0x72d   : > { %v4535_v28 = vadd.f32 %v4534_v21, %v4458_v26 }
 0x72e   : > { %v28072_v29 = vpop.f32.mrf.mxu0  ;;  %v28097_v30 = vpop.f32.mrf.mxu1 }
 0x730   : > { %v4608_v31 = vpop.f32.mrf.mxu0  ;;  %v4988_v32 = vpop.f32.mrf.mxu1 }
 0x731   : > { %v4609_v33 = vadd.f32 %v4608_v31, %v4535_v28 }
 0x732   : > { %v28082_v34 = vpop.f32.mrf.mxu0  ;;  %v28107_v35 = vpop.f32.mrf.mxu1 }
 0x733   : > { %v4683_v37 = vadd.f32 %v4682_v24, %v4609_v33 }
 0x734   : > { %v4756_v38 = vpop.f32.mrf.mxu0  ;;  %v5136_v41 = vpop.f32.mrf.mxu1 }
 0x735   : > { %v4757_v42 = vadd.f32 %v4756_v38, %v4683_v37 }
 0x736   : > { %v28092_v43 = vpop.f32.mrf.mxu0  ;;  %v28117_v44 = vpop.f32.mrf.mxu1 }
 0x737   : > { %v32810_v45 = vadd.f32 %v4828_v27, %v4757_v42 }
 0x738   : > { %v4912_v46 = vpop.f32.mrf.mxu0  ;;  %v5282_v47 = vpop.f32.mrf.mxu1 }
 0x739   : > { %v4989_v50 = vadd.f32 %v4988_v32, %v4912_v46 }
 0x73a   : > { %v28102_v48 = vpop.f32.mrf.mxu0  ;;  %v28127_v49 = vpop.f32.mrf.mxu1 }
 0x73c   : > { %v5062_v53 = vpop.f32.mrf.mxu0 }
 0x73d   : > { %v5063_v54 = vadd.f32 %v5062_v53, %v4989_v50 }
 0x73e   : > { %v28112_v55 = vpop.f32.mrf.mxu0 }
 0x73f   : > { %v5137_v57 = vadd.f32 %v5136_v41, %v5063_v54 }
 0x740   : > { %v5210_v58 = vpop.f32.mrf.mxu0 }
 0x741   : > { %v5211_v60 = vadd.f32 %v5210_v58, %v5137_v57 }
 0x742   : > { %v28122_v63 = vpop.f32.mrf.mxu0 }
 0x743   : > { %v5283_v2 = vadd.f32 %v5282_v47, %v5211_v60 }
 0x745   : > { %v5286_v3 = vsel %vm3919_vm3, %v5283_v2, -inf }
 0x746   : > { %5287 = vmax.xlane.f32.xlu0 %v5286_v3 }
 0x75c   : > { %5298 = vrot.lane.b32.xlu0 %v32753_v19, %s31416_s24 }
 0x760   : > { %5753 = vrot.lane.b32.xlu0 %v32723_v39, %s31417_s17 }
 0x764   : > { %5751 = vrot.lane.b32.xlu0 %v32717_v18, %s31417_s17 }
 0x7cf   : > { %v5288_v4 = vpop.xlane.xlu0 %5287 }
 0x7d0   : > { %v5289_v5 = vsub.f32 %v5283_v2, %v5288_v4 }
 0x7d2   : > { %v5290_v6 = vmul.f32 1.442695, %v5289_v5 }
 0x7d3   : > { %v5299_v7 = vpop.permute.xlu0 %5298 }
 0x7d4   : > { %30332 = vpow2.f32 %v5290_v6  ;;  %v5335_v8 = vand.u32 4294901760, %v5299_v7 }
 0x7d6   : > { %v5412_v10 = vsub.f32 %v5299_v7, %v5335_v8  ;;  %28129 = vmatpush3.msra.mxu0 %v5335_v8 }
 0x7d7   : > { %28138 = vmatprep.subr.mxu0 %v35587_v40  ;;  %v5754_v23 = vpop.permute.xlu0 %5753 }
 0x7d8   : > { %v5413_v12 = vand.u32 4294901760, %v5412_v10  ;;  %v5757_v21 = vsel %vm3919_vm3, %v5754_v23, 0 }
 0x7d9   : > { %v5790_v22 = vand.u32 4294901760, %v5757_v21 }
 0x7da   : > { %v5414_v14 = vsub.f32 %v5412_v10, %v5413_v12 }
 0x7db   : > { %v32825_v25 = vsub.f32 %v5757_v21, %v5790_v22  ;;  %v5752_v27 = vpop.permute.xlu0 %5751 }
 0x7dc   : > { %v5415_v15 = vand.u32 4294901760, %v5414_v14  ;;  %v5755_v31 = vsel %vm3919_vm3, %v5752_v27, 0 }
 0x7dd   : > { %v5868_v30 = vand.u32 4294901760, %v32825_v25  ;;  %v5825_v34 = vand.u32 4294901760, %v5755_v31 }
 0x7de   : > { %28134 = vmatpush3.msra.mxu1 %v5415_v15 }
 0x7df   : > { %28143 = vmatprep.subr.mxu1 %v35587_v40  ;;  %v5869_v37 = vsub.f32 %v32825_v25, %v5868_v30  ;;  %v5826_v42 = vsub.f32 %v5755_v31, %v5825_v34 }
 0x7e1   : > { %v30333_v13 = vpop.eup %30332  ;;  %v5870_v44 = vand.u32 4294901760, %v5869_v37  ;;  %v5827_v47 = vand.u32 4294901760, %v5826_v42 }
 0x7e2   : > { %v5292_v17 = vsel %vm3919_vm3, %v30333_v13, 0.0 }
 0x7e3   : > { %5293 = vadd.xlane.f32.xlu1 %v5292_v17  ;;  %v5828_v49 = vsub.f32 %v5826_v42, %v5827_v47 }
 0x7e5   : > { %v5829_v53 = vand.u32 4294901760, %v5828_v49 }
 0x7f4   : > { %6216 = vrot.lane.b32.xlu1 %v32753_v19, %s31417_s17 }
 0x86c   : > { %v5294_v20 = vpop.xlane.xlu1 %5293 }
 0x86d   : > { %30334 = vrcp.f32 %v5294_v20 }
 0x870   : > { %v6217_v32 = vpop.permute.xlu1 %6216 }
 0x871   : > { %v32837_v38 = vand.u32 4294901760, %v6217_v32 }
 0x873   : > { %v32843_v46 = vsub.f32 %v6217_v32, %v32837_v38 }
 0x875   : > { %v6331_v48 = vand.u32 4294901760, %v32843_v46 }
 0x877   : > { %v6332_v50 = vsub.f32 %v32843_v46, %v6331_v48 }
 0x879   : > { %v6333_v54 = vand.u32 4294901760, %v6332_v50 }
 0x87a   : > { %v30335_v24 = vpop.eup %30334 }
 0x87b   : > { %v32827_v26 = vmul.f32 %v30335_v24, %v30333_v13 }
 0x87d   : > { %v5302_v28 = vsel %vm3919_vm3, %v32827_v26, 0 }
 0x87e   : > { %v5370_v29 = vand.u32 4294901760, %v5302_v28 }
 0x880   : > { %v5371_v33 = vsub.f32 %v5302_v28, %v5370_v29  ;;  %28136 = vmatmul.mubr.f32.vlgmr.msra.gmra.mxu1 %v5370_v29 }
 0x881   : > { %28144 = vmatpush3.msra.mxu1 %v5335_v8  ;;  %28145 = vmatprep.mubr.msk.f32.mxu1 %vm31415_vm2, %v35587_v40 }
 0x882   : > { %28153 = vmatprep.subr.mxu1 %v35587_v40  ;;  %v5372_v35 = vand.u32 4294901760, %v5371_v33 }
 0x884   : > { %28146 = vmatmul.mubr.f32.vlgmr.msra.gmra.mxu1 %v5372_v35  ;;  %v5373_v41 = vsub.f32 %v5371_v33, %v5372_v35 }
 0x885   : > { %28154 = vmatpush3.msra.mxu1 %v5335_v8  ;;  %28155 = vmatprep.mubr.msk.f32.mxu1 %vm31415_vm2, %v35587_v40 }
 0x886   : > { %28163 = vmatprep.subr.mxu1 %v35587_v40  ;;  %v5374_v43 = vand.u32 4294901760, %v5373_v41 }
 0x888   : > { %28131 = vmatmul.mubr.f32.vlgmr.msra.gmra.mxu0 %v5374_v43  ;;  %28156 = vmatmul.mubr.f32.vlgmr.msra.gmra.mxu1 %v5370_v29 }
 0x889   : > { %28139 = vmatpush3.msra.mxu0 %v5412_v10  ;;  %28164 = vmatpush3.xpose.msra.mxu1 %v5870_v44 }
 0x88a   : > { %28140 = vmatprep.mubr.msk.f32.mxu0 %vm31415_vm2, %v35587_v40  ;;  %28148 = vmatprep.subr.mxu0 %v35587_v40 }
 0x88b   : > { %28165 = vmatprep.mubr.msk.f32.mxu1 %vm31415_vm2, %v35587_v40  ;;  %28173 = vmatprep.subr.mxu1 %v35587_v40 }
 0x88c   : > { %28141 = vmatmul.mubr.f32.vlgmr.msra.gmra.mxu0 %v5371_v33  ;;  %28166 = vmatmul.mubr.f32.vlgmr.msra.gmra.mxu1 %v5825_v34 }
 0x88d   : > { %28149 = vmatpush3.msra.mxu0 %v5413_v12  ;;  %28174 = vmatpush3.xpose.msra.mxu1 %v5790_v22 }
 0x88e   : > { %28150 = vmatprep.mubr.msk.f32.mxu0 %vm31415_vm2, %v35587_v40  ;;  %28158 = vmatprep.subr.mxu0 %v35587_v40 }
 0x88f   : > { %28175 = vmatprep.mubr.msk.f32.mxu1 %vm31415_vm2, %v35587_v40  ;;  %28183 = vmatprep.subr.mxu1 %v35587_v40 }
 0x890   : > { %28151 = vmatmul.mubr.f32.vlgmr.msra.gmra.mxu0 %v5370_v29  ;;  %28176 = vmatmul.mubr.f32.vlgmr.msra.gmra.mxu1 %v5827_v47 }
 0x891   : > { %28159 = vmatpush3.xpose.msra.mxu0 %v5790_v22  ;;  %28184 = vmatpush3.xpose.msra.mxu1 %v5790_v22 }
 0x892   : > { %28160 = vmatprep.mubr.msk.f32.mxu0 %vm31415_vm2, %v35587_v40  ;;  %28168 = vmatprep.subr.mxu0 %v35587_v40 }
 0x893   : > { %28185 = vmatprep.mubr.msk.f32.mxu1 %vm31415_vm2, %v35587_v40  ;;  %28193 = vmatprep.subr.mxu1 %v35587_v40 }
 0x894   : > { %28161 = vmatmul.mubr.f32.vlgmr.msra.gmra.mxu0 %v5829_v53  ;;  %28186 = vmatmul.mubr.f32.vlgmr.msra.gmra.mxu1 %v5825_v34 }
 0x895   : > { %28169 = vmatpush3.xpose.msra.mxu0 %v32825_v25  ;;  %28194 = vmatpush3.msra.mxu1 %v6333_v54 }
 0x896   : > { %28170 = vmatprep.mubr.msk.f32.mxu0 %vm31415_vm2, %v35587_v40  ;;  %28178 = vmatprep.subr.mxu0 %v35587_v40 }
 0x897   : > { %28195 = vmatprep.mubr.msk.f32.mxu1 %vm31415_vm2, %v35587_v40  ;;  %28203 = vmatprep.subr.mxu1 %v35587_v40 }
 0x898   : > { %28171 = vmatmul.mubr.f32.vlgmr.msra.gmra.mxu0 %v5826_v42 }
 0x899   : > { %28179 = vmatpush3.xpose.msra.mxu0 %v5868_v30  ;;  %28180 = vmatprep.mubr.msk.f32.mxu0 %vm31415_vm2, %v35587_v40 }
 0x89a   : > { %28188 = vmatprep.subr.mxu0 %v35587_v40 }
 0x89c   : > { %28181 = vmatmul.mubr.f32.vlgmr.msra.gmra.mxu0 %v5825_v34 }
 0x89d   : > { %28189 = vmatpush3.msra.mxu0 %v32837_v38  ;;  %28190 = vmatprep.mubr.msk.f32.mxu0 %vm31415_vm2, %v35587_v40 }
 0x89e   : > { %28198 = vmatprep.subr.mxu0 %v35587_v40 }
 0x940   : > { %v5452_v55 = vpop.f32.mrf.mxu1 }
 0x942   : > { %v28137_v57 = vpop.f32.mrf.mxu1 }
 0x944   : > { %v5600_v58 = vpop.f32.mrf.mxu1 }
 0x946   : > { %v28147_v60 = vpop.f32.mrf.mxu1 }
 0x948   : > { %v5376_v63 = vpop.f32.mrf.mxu0  ;;  %v5746_v2 = vpop.f32.mrf.mxu1 }
 0x949   : > { %v5453_v3 = vadd.f32 %v5452_v55, %v5376_v63 }
 0x94a   : > { %v28132_v4 = vpop.f32.mrf.mxu0  ;;  %v28157_v5 = vpop.f32.mrf.mxu1 }
 0x94c   : > { %v5526_v6 = vpop.f32.mrf.mxu0  ;;  %v5907_v7 = vpop.f32.mrf.mxu1 }
 0x94d   : > { %v5527_v8 = vadd.f32 %v5526_v6, %v5453_v3 }
 0x94e   : > { %v28142_v10 = vpop.f32.mrf.mxu0  ;;  %v28167_v12 = vpop.f32.mrf.mxu1 }
 0x94f   : > { %v5601_v14 = vadd.f32 %v5600_v58, %v5527_v8  ;;  %v5750_v58 = vadd.f32 %v32827_v26, %v32768_v61 }
 0x950   : > { %v5674_v15 = vpop.f32.mrf.mxu0  ;;  %v6055_v13 = vpop.f32.mrf.mxu1 }
 0x951   : > { %v5675_v17 = vadd.f32 %v5674_v15, %v5601_v14 }
 0x952   : > { %v28152_v20 = vpop.f32.mrf.mxu0  ;;  %v28177_v23 = vpop.f32.mrf.mxu1 }
 0x953   : > { %v32881_v21 = vadd.f32 %v5746_v2, %v5675_v17 }
 0x954   : > { %v5831_v22 = vpop.f32.mrf.mxu0  ;;  %v6201_v24 = vpop.f32.mrf.mxu1 }
 0x955   : > { %v5908_v28 = vadd.f32 %v5907_v7, %v5831_v22 }
 0x956   : > { %v28162_v25 = vpop.f32.mrf.mxu0  ;;  %v28187_v27 = vpop.f32.mrf.mxu1 }
 0x958   : > { %v5981_v29 = vpop.f32.mrf.mxu0 }
 0x959   : > { %v5982_v30 = vadd.f32 %v5981_v29, %v5908_v28 }
 0x95a   : > { %v28172_v31 = vpop.f32.mrf.mxu0 }
 0x95b   : > { %v6056_v32 = vadd.f32 %v6055_v13, %v5982_v30 }
 0x95c   : > { %v6129_v33 = vpop.f32.mrf.mxu0 }
 0x95d   : > { %v6130_v34 = vadd.f32 %v6129_v33, %v6056_v32 }
 0x95e   : > { %v28182_v35 = vpop.f32.mrf.mxu0 }
 0x95f   : > { %v6202_v37 = vadd.f32 %v6201_v24, %v6130_v34 }
 0x961   : > { %v6205_v41 = vsel %vm3919_vm3, %v6202_v37, -inf }
 0x962   : > { %6206 = vmax.xlane.f32.xlu0 %v6205_v41 }
 0x9eb   : > { %v6207_v42 = vpop.xlane.xlu0 %6206 }
 0x9ec   : > { %v6208_v43 = vsub.f32 %v6202_v37, %v6207_v42 }
 0x9ee   : > { %v6209_v44 = vmul.f32 1.442695, %v6208_v43 }
 0x9f0   : > { %30336 = vpow2.f32 %v6209_v44 }
 0x9fd   : > { %v30337_v47 = vpop.eup %30336 }
 0x9fe   : > { %v6211_v49 = vsel %vm3919_vm3, %v30337_v47, 0.0 }
 0x9ff   : > { %6212 = vadd.xlane.f32.xlu1 %v6211_v49 }
 0xa10   : > { %6671 = vrot.lane.b32.xlu1 %v32723_v39, %s31418_s20 }
 0xa14   : > { %6669 = vrot.lane.b32.xlu1 %v32717_v18, %s31418_s20 }
 0xa88   : > { %v6213_v50 = vpop.xlane.xlu1 %6212 }
 0xa89   : > { %30338 = vrcp.f32 %v6213_v50 }
 0xa8c   : > { %v6672_v53 = vpop.permute.xlu1 %6671 }
 0xa8d   : > { %v6675_v54 = vsel %vm3919_vm3, %v6672_v53, 0 }
 0xa8e   : > { %v6708_v55 = vand.u32 4294901760, %v6675_v54 }
 0xa90   : > { %v6785_v60 = vsub.f32 %v6675_v54, %v6708_v55  ;;  %v6670_v2 = vpop.permute.xlu1 %6669 }
 0xa91   : > { %v6673_v18 = vsel %vm3919_vm3, %v6670_v2, 0 }
 0xa92   : > { %v6786_v5 = vand.u32 4294901760, %v6785_v60  ;;  %v6743_v7 = vand.u32 4294901760, %v6673_v18 }
 0xa94   : > { %v6787_v26 = vsub.f32 %v6785_v60, %v6786_v5  ;;  %v6744_v10 = vsub.f32 %v6673_v18, %v6743_v7 }
 0xa96   : > { %v30339_v57 = vpop.eup %30338  ;;  %v6788_v14 = vand.u32 4294901760, %v6787_v26  ;;  %v6745_v15 = vand.u32 4294901760, %v6744_v10 }
 0xa97   : > { %v6215_v63 = vmul.f32 %v30339_v57, %v30337_v47 }
 0xa99   : > { %v6220_v3 = vsel %vm3919_vm3, %v6215_v63, 0  ;;  %v32893_v4 = vadd.f32 %v6215_v63, %v5750_v58 }
 0xa9a   : > { %v6288_v39 = vand.u32 4294901760, %v6220_v3 }
 0xa9c   : > { %v6289_v6 = vsub.f32 %v6220_v3, %v6288_v39  ;;  %28196 = vmatmul.mubr.f32.vlgmr.msra.gmra.mxu1 %v6288_v39 }
 0xa9d   : > { %28204 = vmatpush3.msra.mxu1 %v32837_v38  ;;  %28205 = vmatprep.mubr.msk.f32.mxu1 %vm31415_vm2, %v35587_v40 }
 0xa9e   : > { %28213 = vmatprep.subr.mxu1 %v35587_v40  ;;  %v6290_v61 = vand.u32 4294901760, %v6289_v6 }
 0xaa0   : > { %28206 = vmatmul.mubr.f32.vlgmr.msra.gmra.mxu1 %v6290_v61  ;;  %v6291_v8 = vsub.f32 %v6289_v6, %v6290_v61 }
 0xaa1   : > { %28214 = vmatpush3.msra.mxu1 %v32837_v38  ;;  %28215 = vmatprep.mubr.msk.f32.mxu1 %vm31415_vm2, %v35587_v40  ;;  %v6746_v38 = vsub.f32 %v6744_v10, %v6745_v15 }
 0xaa2   : > { %28223 = vmatprep.subr.mxu1 %v35587_v40  ;;  %v6292_v12 = vand.u32 4294901760, %v6291_v8 }
 0xaa3   : > { %v6747_v13 = vand.u32 4294901760, %v6746_v38  ;;  %v7609_v38 = vsel %vm3919_vm3, %v32721_v36, 0 }
 0xaa4   : > { %28191 = vmatmul.mubr.f32.vlgmr.msra.gmra.mxu0 %v6292_v12  ;;  %28216 = vmatmul.mubr.f32.vlgmr.msra.gmra.mxu1 %v6288_v39 }
 0xaa5   : > { %28199 = vmatpush3.msra.mxu0 %v32843_v46  ;;  %28224 = vmatpush3.xpose.msra.mxu1 %v6788_v14 }
 0xaa6   : > { %28200 = vmatprep.mubr.msk.f32.mxu0 %vm31415_vm2, %v35587_v40  ;;  %28208 = vmatprep.subr.mxu0 %v35587_v40 }
 0xaa7   : > { %28225 = vmatprep.mubr.msk.f32.mxu1 %vm31415_vm2, %v35587_v40  ;;  %28233 = vmatprep.subr.mxu1 %v35587_v40 }
 0xaa8   : > { %28201 = vmatmul.mubr.f32.vlgmr.msra.gmra.mxu0 %v6289_v6  ;;  %28226 = vmatmul.mubr.f32.vlgmr.msra.gmra.mxu1 %v6743_v7 }
 0xaa9   : > { %28209 = vmatpush3.msra.mxu0 %v6331_v48  ;;  %28234 = vmatpush3.xpose.msra.mxu1 %v6708_v55 }
 0xaaa   : > { %28210 = vmatprep.mubr.msk.f32.mxu0 %vm31415_vm2, %v35587_v40  ;;  %28218 = vmatprep.subr.mxu0 %v35587_v40 }
 0xaab   : > { %28235 = vmatprep.mubr.msk.f32.mxu1 %vm31415_vm2, %v35587_v40  ;;  %28243 = vmatprep.subr.mxu1 %v35587_v40 }
 0xaac   : > { %28211 = vmatmul.mubr.f32.vlgmr.msra.gmra.mxu0 %v6288_v39  ;;  %28236 = vmatmul.mubr.f32.vlgmr.msra.gmra.mxu1 %v6745_v15 }
 0xaad   : > { %28219 = vmatpush3.xpose.msra.mxu0 %v6708_v55  ;;  %28244 = vmatpush3.xpose.msra.mxu1 %v6708_v55 }
 0xaae   : > { %28220 = vmatprep.mubr.msk.f32.mxu0 %vm31415_vm2, %v35587_v40  ;;  %28228 = vmatprep.subr.mxu0 %v35587_v40 }
 0xaaf   : > { %28245 = vmatprep.mubr.msk.f32.mxu1 %vm31415_vm2, %v35587_v40  ;;  %28253 = vmatprep.subr.mxu1 %v35587_v40 }
 0xab0   : > { %28221 = vmatmul.mubr.f32.vlgmr.msra.gmra.mxu0 %v6747_v13  ;;  %28246 = vmatmul.mubr.f32.vlgmr.msra.gmra.mxu1 %v6743_v7  ;;  %v7642_v13 = vand.u32 4294901760, %v7609_v38 }
 0xab1   : > { %28229 = vmatpush3.xpose.msra.mxu0 %v6785_v60  ;;  %28230 = vmatprep.mubr.msk.f32.mxu0 %vm31415_vm2, %v35587_v40 }
 0xab2   : > { %28238 = vmatprep.subr.mxu0 %v35587_v40  ;;  %28255 = vmatprep.mubr.msk.f32.mxu1 %vm31415_vm2, %v35587_v40 }
 0xab4   : > { %28231 = vmatmul.mubr.f32.vlgmr.msra.gmra.mxu0 %v6744_v10 }
 0xab5   : > { %28239 = vmatpush3.xpose.msra.mxu0 %v6786_v5  ;;  %28240 = vmatprep.mubr.msk.f32.mxu0 %vm31415_vm2, %v35587_v40 }
 0xab6   : > { %28248 = vmatprep.subr.mxu0 %v35587_v40 }
 0xab8   : > { %28241 = vmatmul.mubr.f32.vlgmr.msra.gmra.mxu0 %v6743_v7 }
 0xab9   : > { %28250 = vmatprep.mubr.msk.f32.mxu0 %vm31415_vm2, %v35587_v40 }
 0xb5c   : > { %v6370_v46 = vpop.f32.mrf.mxu1 }
 0xb5e   : > { %v28197_v48 = vpop.f32.mrf.mxu1 }
 0xb5f   : > { %v32946_v48 = vmul.f32 0.35355338, %v32713_v1 }
 0xb60   : > { %v6518_v17 = vpop.f32.mrf.mxu1 }
 0xb62   : > { %v28207_v20 = vpop.f32.mrf.mxu1 }
 0xb64   : > { %v6294_v23 = vpop.f32.mrf.mxu0  ;;  %v6664_v22 = vpop.f32.mrf.mxu1 }
 0xb65   : > { %v6371_v24 = vadd.f32 %v6370_v46, %v6294_v23 }
 0xb66   : > { %v28192_v25 = vpop.f32.mrf.mxu0  ;;  %v28217_v27 = vpop.f32.mrf.mxu1 }
 0xb68   : > { %v6444_v28 = vpop.f32.mrf.mxu0  ;;  %v6825_v29 = vpop.f32.mrf.mxu1 }
 0xb69   : > { %v6445_v30 = vadd.f32 %v6444_v28, %v6371_v24  ;;  %v7606_v28 = vsel %vm3919_vm3, %v32946_v48, 0 }
 0xb6a   : > { %v28202_v31 = vpop.f32.mrf.mxu0  ;;  %v28227_v32 = vpop.f32.mrf.mxu1 }
 0xb6b   : > { %v6519_v33 = vadd.f32 %v6518_v17, %v6445_v30  ;;  %v32948_v17 = vsub.f32 %v7609_v38, %v7642_v13  ;;  %v7677_v30 = vand.u32 4294901760, %v7606_v28 }
 0xb6c   : > { %v6592_v34 = vpop.f32.mrf.mxu0  ;;  %v6973_v35 = vpop.f32.mrf.mxu1 }
 0xb6d   : > { %v6593_v37 = vadd.f32 %v6592_v34, %v6519_v33  ;;  %v7720_v27 = vand.u32 4294901760, %v32948_v17  ;;  %v7678_v34 = vsub.f32 %v7606_v28, %v7677_v30 }
 0xb6e   : > { %v28212_v41 = vpop.f32.mrf.mxu0  ;;  %v28237_v42 = vpop.f32.mrf.mxu1 }
 0xb6f   : > { %v32935_v43 = vadd.f32 %v6664_v22, %v6593_v37  ;;  %v7721_v31 = vsub.f32 %v32948_v17, %v7720_v27  ;;  %v7679_v41 = vand.u32 4294901760, %v7678_v34 }
 0xb70   : > { %v6749_v44 = vpop.f32.mrf.mxu0  ;;  %v7119_v47 = vpop.f32.mrf.mxu1 }
 0xb71   : > { %v6826_v53 = vadd.f32 %v6825_v29, %v6749_v44  ;;  %v7680_v44 = vsub.f32 %v7678_v34, %v7679_v41 }
 0xb72   : > { %v28222_v49 = vpop.f32.mrf.mxu0  ;;  %v28247_v50 = vpop.f32.mrf.mxu1 }
 0xb73   : > { %v7681_v49 = vand.u32 4294901760, %v7680_v44 }
 0xb74   : > { %v6899_v54 = vpop.f32.mrf.mxu0 }
 0xb75   : > { %v6900_v55 = vadd.f32 %v6899_v54, %v6826_v53 }
 0xb76   : > { %v28232_v57 = vpop.f32.mrf.mxu0 }
 0xb77   : > { %v6974_v58 = vadd.f32 %v6973_v35, %v6900_v55  ;;  %v7722_v35 = vand.u32 4294901760, %v7721_v31 }
 0xb78   : > { %v7047_v60 = vpop.f32.mrf.mxu0 }
 0xb79   : > { %v7048_v63 = vadd.f32 %v7047_v60, %v6974_v58 }
 0xb7a   : > { %v28242_v2 = vpop.f32.mrf.mxu0 }
 0xb7b   : > { %v7120_v3 = vadd.f32 %v7119_v47, %v7048_v63 }
 0xb7d   : > { %v7123_v39 = vsel %vm3919_vm3, %v7120_v3, -inf }
 0xb7e   : > { %7124 = vmax.xlane.f32.xlu0 %v7123_v39 }
 0xb94   : > { %7134 = vrot.lane.b32.xlu0 %v32753_v19, %s31418_s20 }
 0xc07   : > { %v7125_v5 = vpop.xlane.xlu0 %7124 }
 0xc08   : > { %v7126_v18 = vsub.f32 %v7120_v3, %v7125_v5 }
 0xc0a   : > { %v7127_v6 = vmul.f32 1.442695, %v7126_v18 }
 0xc0b   : > { %v7135_v7 = vpop.permute.xlu0 %7134 }
 0xc0c   : > { %30340 = vpow2.f32 %v7127_v6  ;;  %v7171_v61 = vand.u32 4294901760, %v7135_v7 }
 0xc0e   : > { %v7248_v26 = vsub.f32 %v7135_v7, %v7171_v61  ;;  %28249 = vmatpush3.msra.mxu0 %v7171_v61 }
 0xc0f   : > { %28258 = vmatprep.subr.mxu0 %v35587_v40 }
 0xc10   : > { %v7249_v8 = vand.u32 4294901760, %v7248_v26 }
 0xc12   : > { %v7250_v10 = vsub.f32 %v7248_v26, %v7249_v8 }
 0xc14   : > { %v7251_v12 = vand.u32 4294901760, %v7250_v10 }
 0xc16   : > { %28254 = vmatpush3.msra.mxu1 %v7251_v12 }
 0xc17   : > { %28263 = vmatprep.subr.mxu1 %v35587_v40 }
 0xc19   : > { %v30341_v14 = vpop.eup %30340 }
 0xc1a   : > { %v7129_v15 = vsel %vm3919_vm3, %v30341_v14, 0.0 }
 0xc1b   : > { %7130 = vadd.xlane.f32.xlu1 %v7129_v15 }
 0xca4   : > { %v7131_v19 = vpop.xlane.xlu1 %7130 }
 0xca5   : > { %30342 = vrcp.f32 %v7131_v19 }
 0xcb2   : > { %v30343_v46 = vpop.eup %30342 }
 0xcb3   : > { %v7133_v20 = vmul.f32 %v30343_v46, %v30341_v14 }
 0xcb5   : > { %v7138_v23 = vsel %vm3919_vm3, %v7133_v20, 0  ;;  %v7586_v22 = vadd.f32 %v7133_v20, %v32893_v4  ;;  %v32961_v4 = vand.u32 4294901760, %v32751_v16 }
 0xcb6   : > { %v7206_v24 = vand.u32 4294901760, %v7138_v23 }
 0xcb7   : > { %v7604_v25 = vmul.f32 0.25, %v7586_v22  ;;  %v32969_v37 = vsub.f32 %v32751_v16, %v32961_v4 }
 0xcb8   : > { %v7207_v29 = vsub.f32 %v7138_v23, %v7206_v24  ;;  %28256 = vmatmul.mubr.f32.vlgmr.msra.gmra.mxu1 %v7206_v24 }
 0xcb9   : > { %11833 = vst.msk [vmem:[%s32468_s11] sm:$0xff] %vm3919_vm3, %v7604_v25  ;;  %28264 = vmatpush3.msra.mxu1 %v7171_v61  ;;  %28265 = vmatprep.mubr.msk.f32.mxu1 %vm31415_vm2, %v35587_v40  ;;  %v8180_v42 = vand.u32 4294901760, %v32969_v37 }
 0xcba   : > { %28273 = vmatprep.subr.mxu1 %v35587_v40  ;;  %v7208_v1 = vand.u32 4294901760, %v7207_v29 }
 0xcbb   : > { %v8181_v47 = vsub.f32 %v32969_v37, %v8180_v42 }
 0xcbc   : > { %28266 = vmatmul.mubr.f32.vlgmr.msra.gmra.mxu1 %v7208_v1  ;;  %v7209_v32 = vsub.f32 %v7207_v29, %v7208_v1 }
 0xcbd   : > { %28274 = vmatpush3.msra.mxu1 %v7171_v61  ;;  %28275 = vmatprep.mubr.msk.f32.mxu1 %vm31415_vm2, %v35587_v40  ;;  %v8182_v50 = vand.u32 4294901760, %v8181_v47 }
 0xcbe   : > { %28283 = vmatprep.subr.mxu1 %v35587_v40  ;;  %v7210_v33 = vand.u32 4294901760, %v7209_v32 }
 0xcc0   : > { %28251 = vmatmul.mubr.f32.vlgmr.msra.gmra.mxu0 %v7210_v33  ;;  %28276 = vmatmul.mubr.f32.vlgmr.msra.gmra.mxu1 %v7206_v24 }
 0xcc1   : > { %28259 = vmatpush3.msra.mxu0 %v7248_v26  ;;  %28284 = vmatpush3.xpose.msra.mxu1 %v7722_v35 }
 0xcc2   : > { %28260 = vmatprep.mubr.msk.f32.mxu0 %vm31415_vm2, %v35587_v40  ;;  %28268 = vmatprep.subr.mxu0 %v35587_v40 }
 0xcc3   : > { %28285 = vmatprep.mubr.msk.f32.mxu1 %vm31415_vm2, %v35587_v40  ;;  %28293 = vmatprep.subr.mxu1 %v35587_v40 }
 0xcc4   : > { %28261 = vmatmul.mubr.f32.vlgmr.msra.gmra.mxu0 %v7207_v29  ;;  %28286 = vmatmul.mubr.f32.vlgmr.msra.gmra.mxu1 %v7677_v30 }
 0xcc5   : > { %28269 = vmatpush3.msra.mxu0 %v7249_v8  ;;  %28294 = vmatpush3.xpose.msra.mxu1 %v7642_v13 }
 0xcc6   : > { %28270 = vmatprep.mubr.msk.f32.mxu0 %vm31415_vm2, %v35587_v40  ;;  %28278 = vmatprep.subr.mxu0 %v35587_v40 }
 0xcc7   : > { %28295 = vmatprep.mubr.msk.f32.mxu1 %vm31415_vm2, %v35587_v40  ;;  %28303 = vmatprep.subr.mxu1 %v35587_v40 }
 0xcc8   : > { %28271 = vmatmul.mubr.f32.vlgmr.msra.gmra.mxu0 %v7206_v24  ;;  %28296 = vmatmul.mubr.f32.vlgmr.msra.gmra.mxu1 %v7679_v41 }
 0xcc9   : > { %28279 = vmatpush3.xpose.msra.mxu0 %v7642_v13  ;;  %28304 = vmatpush3.xpose.msra.mxu1 %v7642_v13 }
 0xcca   : > { %28280 = vmatprep.mubr.msk.f32.mxu0 %vm31415_vm2, %v35587_v40  ;;  %28288 = vmatprep.subr.mxu0 %v35587_v40 }
 0xccb   : > { %28305 = vmatprep.mubr.msk.f32.mxu1 %vm31415_vm2, %v35587_v40  ;;  %28313 = vmatprep.subr.mxu1 %v35587_v40 }
 0xccc   : > { %28281 = vmatmul.mubr.f32.vlgmr.msra.gmra.mxu0 %v7681_v49  ;;  %28306 = vmatmul.mubr.f32.vlgmr.msra.gmra.mxu1 %v7677_v30 }
 0xccd   : > { %28289 = vmatpush3.xpose.msra.mxu0 %v32948_v17  ;;  %28314 = vmatpush3.msra.mxu1 %v8182_v50 }
 0xcce   : > { %28290 = vmatprep.mubr.msk.f32.mxu0 %vm31415_vm2, %v35587_v40  ;;  %28298 = vmatprep.subr.mxu0 %v35587_v40 }
 0xccf   : > { %28315 = vmatprep.mubr.msk.f32.mxu1 %vm31415_vm2, %v35587_v40  ;;  %28323 = vmatprep.subr.mxu1 %v35587_v40 }
 0xcd0   : > { %28291 = vmatmul.mubr.f32.vlgmr.msra.gmra.mxu0 %v7678_v34 }
 0xcd1   : > { %28299 = vmatpush3.xpose.msra.mxu0 %v7720_v27  ;;  %28300 = vmatprep.mubr.msk.f32.mxu0 %vm31415_vm2, %v35587_v40 }
 0xcd2   : > { %28308 = vmatprep.subr.mxu0 %v35587_v40 }
 0xcd4   : > { %28301 = vmatmul.mubr.f32.vlgmr.msra.gmra.mxu0 %v7677_v30 }
 0xcd5   : > { %28309 = vmatpush3.msra.mxu0 %v32961_v4  ;;  %28310 = vmatprep.mubr.msk.f32.mxu0 %vm31415_vm2, %v35587_v40 }
 0xcd6   : > { %28318 = vmatprep.subr.mxu0 %v35587_v40 }
 0xd78   : > { %v7288_v53 = vpop.f32.mrf.mxu1 }
 0xd7a   : > { %v28257_v54 = vpop.f32.mrf.mxu1 }
 0xd7c   : > { %v7436_v55 = vpop.f32.mrf.mxu1 }
 0xd7e   : > { %v28267_v57 = vpop.f32.mrf.mxu1 }
 0xd80   : > { %v7212_v58 = vpop.f32.mrf.mxu0  ;;  %v7582_v60 = vpop.f32.mrf.mxu1 }
 0xd81   : > { %v7289_v63 = vadd.f32 %v7288_v53, %v7212_v58 }
 0xd82   : > { %v28252_v2 = vpop.f32.mrf.mxu0  ;;  %v28277_v3 = vpop.f32.mrf.mxu1 }
 0xd84   : > { %v7362_v39 = vpop.f32.mrf.mxu0  ;;  %v7759_v5 = vpop.f32.mrf.mxu1 }
 0xd85   : > { %v7363_v18 = vadd.f32 %v7362_v39, %v7289_v63 }
 0xd86   : > { %v28262_v6 = vpop.f32.mrf.mxu0  ;;  %v28287_v7 = vpop.f32.mrf.mxu1 }
 0xd87   : > { %v7437_v61 = vadd.f32 %v7436_v55, %v7363_v18 }
 0xd88   : > { %v7510_v26 = vpop.f32.mrf.mxu0  ;;  %v7907_v8 = vpop.f32.mrf.mxu1 }
 0xd89   : > { %v7511_v10 = vadd.f32 %v7510_v26, %v7437_v61 }
 0xd8a   : > { %v28272_v12 = vpop.f32.mrf.mxu0  ;;  %v28297_v14 = vpop.f32.mrf.mxu1 }
 0xd8b   : > { %v33007_v15 = vadd.f32 %v7582_v60, %v7511_v10 }
 0xd8c   : > { %v7683_v19 = vpop.f32.mrf.mxu0  ;;  %v8053_v38 = vpop.f32.mrf.mxu1 }
 0xd8d   : > { %v7760_v17 = vadd.f32 %v7759_v5, %v7683_v19 }
 0xd8e   : > { %v28282_v13 = vpop.f32.mrf.mxu0  ;;  %v28307_v46 = vpop.f32.mrf.mxu1 }
 0xd90   : > { %v7833_v20 = vpop.f32.mrf.mxu0 }
 0xd91   : > { %v7834_v23 = vadd.f32 %v7833_v20, %v7760_v17 }
 0xd92   : > { %v28292_v22 = vpop.f32.mrf.mxu0 }
 0xd93   : > { %v7908_v24 = vadd.f32 %v7907_v8, %v7834_v23 }
 0xd94   : > { %v7981_v25 = vpop.f32.mrf.mxu0 }
 0xd95   : > { %v7982_v27 = vadd.f32 %v7981_v25, %v7908_v24 }
 0xd96   : > { %v28302_v28 = vpop.f32.mrf.mxu0 }
 0xd97   : > { %v8054_v29 = vadd.f32 %v8053_v38, %v7982_v27 }
 0xd99   : > { %v8057_v1 = vsel %vm3919_vm3, %v8054_v29, -inf }
 0xd9a   : > { %8058 = vmax.xlane.f32.xlu0 %v8057_v1 }
 0xdb0   : > { %8517 = vrot.lane.b32.xlu0 %v32946_v48, %s31416_s24 }
 0xe23   : > { %v8059_v30 = vpop.xlane.xlu0 %8058 }
 0xe24   : > { %v8060_v31 = vsub.f32 %v8054_v29, %v8059_v30 }
 0xe26   : > { %v8061_v32 = vmul.f32 1.442695, %v8060_v31 }
 0xe27   : > { %v8518_v54 = vpop.permute.xlu0 %8517 }
 0xe28   : > { %30344 = vpow2.f32 %v8061_v32  ;;  %v8521_v58 = vsel %vm3919_vm3, %v8518_v54, 0 }
 0xe29   : > { %v8591_v2 = vand.u32 4294901760, %v8521_v58 }
 0xe2b   : > { %v8592_v18 = vsub.f32 %v8521_v58, %v8591_v2 }
 0xe2d   : > { %v8593_v61 = vand.u32 4294901760, %v8592_v18 }
 0xe35   : > { %v30345_v33 = vpop.eup %30344 }
 0xe36   : > { %v8063_v34 = vsel %vm3919_vm3, %v30345_v33, 0.0 }
 0xe37   : > { %8064 = vadd.xlane.f32.xlu1 %v8063_v34 }
 0xe48   : > { %8519 = vrot.lane.b32.xlu1 %v32721_v36, %s31416_s24 }
 0xec0   : > { %v8065_v35 = vpop.xlane.xlu1 %8064 }
 0xec1   : > { %30346 = vrcp.f32 %v8065_v35 }
 0xec4   : > { %v8520_v41 = vpop.permute.xlu1 %8519 }
 0xec5   : > { %v8523_v44 = vsel %vm3919_vm3, %v8520_v41, 0 }
 0xec6   : > { %v8556_v47 = vand.u32 4294901760, %v8523_v44 }
 0xec8   : > { %v8633_v50 = vsub.f32 %v8523_v44, %v8556_v47 }
 0xeca   : > { %v8634_v60 = vand.u32 4294901760, %v8633_v50 }
 0xecc   : > { %v8635_v39 = vsub.f32 %v8633_v50, %v8634_v60 }
 0xece   : > { %v30347_v49 = vpop.eup %30346  ;;  %v8636_v7 = vand.u32 4294901760, %v8635_v39 }
 0xecf   : > { %v33016_v53 = vmul.f32 %v30347_v49, %v30345_v33 }
 0xed1   : > { %v8069_v55 = vsel %vm3919_vm3, %v33016_v53, 0 }
 0xed2   : > { %v8137_v57 = vand.u32 4294901760, %v8069_v55 }
 0xed4   : > { %v8138_v63 = vsub.f32 %v8069_v55, %v8137_v57  ;;  %28316 = vmatmul.mubr.f32.vlgmr.msra.gmra.mxu1 %v8137_v57 }
 0xed5   : > { %28324 = vmatpush3.msra.mxu1 %v32961_v4  ;;  %28325 = vmatprep.mubr.msk.f32.mxu1 %vm31415_vm2, %v35587_v40 }
 0xed6   : > { %28333 = vmatprep.subr.mxu1 %v35587_v40  ;;  %v8139_v3 = vand.u32 4294901760, %v8138_v63 }
 0xed8   : > { %28326 = vmatmul.mubr.f32.vlgmr.msra.gmra.mxu1 %v8139_v3  ;;  %v8140_v5 = vsub.f32 %v8138_v63, %v8139_v3 }
 0xed9   : > { %28334 = vmatpush3.msra.mxu1 %v32961_v4  ;;  %28335 = vmatprep.mubr.msk.f32.mxu1 %vm31415_vm2, %v35587_v40  ;;  %v8594_v4 = vsub.f32 %v8592_v18, %v8593_v61 }
 0xeda   : > { %28343 = vmatprep.subr.mxu1 %v35587_v40  ;;  %v8141_v6 = vand.u32 4294901760, %v8140_v5 }
 0xedb   : > { %v8595_v26 = vand.u32 4294901760, %v8594_v4 }
 0xedc   : > { %28311 = vmatmul.mubr.f32.vlgmr.msra.gmra.mxu0 %v8141_v6  ;;  %28336 = vmatmul.mubr.f32.vlgmr.msra.gmra.mxu1 %v8137_v57 }
 0xedd   : > { %28319 = vmatpush3.msra.mxu0 %v32969_v37  ;;  %28344 = vmatpush3.xpose.msra.mxu1 %v8636_v7 }
 0xede   : > { %28320 = vmatprep.mubr.msk.f32.mxu0 %vm31415_vm2, %v35587_v40  ;;  %28328 = vmatprep.subr.mxu0 %v35587_v40 }
 0xedf   : > { %28345 = vmatprep.mubr.msk.f32.mxu1 %vm31415_vm2, %v35587_v40  ;;  %28353 = vmatprep.subr.mxu1 %v35587_v40 }
 0xee0   : > { %28321 = vmatmul.mubr.f32.vlgmr.msra.gmra.mxu0 %v8138_v63  ;;  %28346 = vmatmul.mubr.f32.vlgmr.msra.gmra.mxu1 %v8591_v2 }
 0xee1   : > { %28329 = vmatpush3.msra.mxu0 %v8180_v42  ;;  %28354 = vmatpush3.xpose.msra.mxu1 %v8556_v47 }
 0xee2   : > { %28330 = vmatprep.mubr.msk.f32.mxu0 %vm31415_vm2, %v35587_v40  ;;  %28338 = vmatprep.subr.mxu0 %v35587_v40 }
 0xee3   : > { %28355 = vmatprep.mubr.msk.f32.mxu1 %vm31415_vm2, %v35587_v40  ;;  %28363 = vmatprep.subr.mxu1 %v35587_v40 }
 0xee4   : > { %28331 = vmatmul.mubr.f32.vlgmr.msra.gmra.mxu0 %v8137_v57  ;;  %28356 = vmatmul.mubr.f32.vlgmr.msra.gmra.mxu1 %v8593_v61 }
 0xee5   : > { %28339 = vmatpush3.xpose.msra.mxu0 %v8556_v47  ;;  %28364 = vmatpush3.xpose.msra.mxu1 %v8556_v47 }
 0xee6   : > { %28340 = vmatprep.mubr.msk.f32.mxu0 %vm31415_vm2, %v35587_v40  ;;  %28348 = vmatprep.subr.mxu0 %v35587_v40 }
 0xee7   : > { %28365 = vmatprep.mubr.msk.f32.mxu1 %vm31415_vm2, %v35587_v40  ;;  %28373 = vmatprep.subr.mxu1 %v35587_v40 }
 0xee8   : > { %28341 = vmatmul.mubr.f32.vlgmr.msra.gmra.mxu0 %v8595_v26  ;;  %28366 = vmatmul.mubr.f32.vlgmr.msra.gmra.mxu1 %v8591_v2 }
 0xee9   : > { %28349 = vmatpush3.xpose.msra.mxu0 %v8633_v50  ;;  %28350 = vmatprep.mubr.msk.f32.mxu0 %vm31415_vm2, %v35587_v40 }
 0xeea   : > { %28358 = vmatprep.subr.mxu0 %v35587_v40  ;;  %28375 = vmatprep.mubr.msk.f32.mxu1 %vm31415_vm2, %v35587_v40 }
 0xeec   : > { %28351 = vmatmul.mubr.f32.vlgmr.msra.gmra.mxu0 %v8592_v18 }
 0xeed   : > { %28359 = vmatpush3.xpose.msra.mxu0 %v8634_v60  ;;  %28360 = vmatprep.mubr.msk.f32.mxu0 %vm31415_vm2, %v35587_v40 }
 0xeee   : > { %28368 = vmatprep.subr.mxu0 %v35587_v40 }
 0xef0   : > { %28361 = vmatmul.mubr.f32.vlgmr.msra.gmra.mxu0 %v8591_v2 }
 0xef1   : > { %28370 = vmatprep.mubr.msk.f32.mxu0 %vm31415_vm2, %v35587_v40 }
 0xf94   : > { %v8219_v37 = vpop.f32.mrf.mxu1 }
 0xf96   : > { %v28317_v42 = vpop.f32.mrf.mxu1 }
 0xf98   : > { %v8367_v8 = vpop.f32.mrf.mxu1 }
 0xf9a   : > { %v28327_v10 = vpop.f32.mrf.mxu1 }
 0xf9c   : > { %v8143_v12 = vpop.f32.mrf.mxu0  ;;  %v8513_v14 = vpop.f32.mrf.mxu1 }
 0xf9d   : > { %v8220_v19 = vadd.f32 %v8219_v37, %v8143_v12 }
 0xf9e   : > { %v28312_v38 = vpop.f32.mrf.mxu0  ;;  %v28337_v13 = vpop.f32.mrf.mxu1 }
 0xfa0   : > { %v8293_v46 = vpop.f32.mrf.mxu0  ;;  %v8673_v17 = vpop.f32.mrf.mxu1 }
 0xfa1   : > { %v8294_v20 = vadd.f32 %v8293_v46, %v8220_v19 }
 0xfa2   : > { %v28322_v23 = vpop.f32.mrf.mxu0  ;;  %v28347_v22 = vpop.f32.mrf.mxu1 }
 0xfa3   : > { %v8368_v24 = vadd.f32 %v8367_v8, %v8294_v20 }
 0xfa4   : > { %v8441_v25 = vpop.f32.mrf.mxu0  ;;  %v8821_v27 = vpop.f32.mrf.mxu1 }
 0xfa5   : > { %v8442_v28 = vadd.f32 %v8441_v25, %v8368_v24 }
 0xfa6   : > { %v28332_v29 = vpop.f32.mrf.mxu0  ;;  %v28357_v1 = vpop.f32.mrf.mxu1 }
 0xfa7   : > { %v33060_v30 = vadd.f32 %v8513_v14, %v8442_v28 }
 0xfa8   : > { %v8597_v31 = vpop.f32.mrf.mxu0  ;;  %v8967_v32 = vpop.f32.mrf.mxu1 }
 0xfa9   : > { %v8674_v35 = vadd.f32 %v8673_v17, %v8597_v31 }
 0xfaa   : > { %v28342_v33 = vpop.f32.mrf.mxu0  ;;  %v28367_v34 = vpop.f32.mrf.mxu1 }
 0xfac   : > { %v8747_v41 = vpop.f32.mrf.mxu0 }
 0xfad   : > { %v8748_v44 = vadd.f32 %v8747_v41, %v8674_v35 }
 0xfae   : > { %v28352_v47 = vpop.f32.mrf.mxu0 }
 0xfaf   : > { %v8822_v49 = vadd.f32 %v8821_v27, %v8748_v44 }
 0xfb0   : > { %v8895_v50 = vpop.f32.mrf.mxu0 }
 0xfb1   : > { %v8896_v54 = vadd.f32 %v8895_v50, %v8822_v49 }
 0xfb2   : > { %v28362_v55 = vpop.f32.mrf.mxu0 }
 0xfb3   : > { %v8968_v57 = vadd.f32 %v8967_v32, %v8896_v54 }
 0xfb5   : > { %v8971_v58 = vsel %vm3919_vm3, %v8968_v57, -inf }
 0xfb6   : > { %8972 = vmax.xlane.f32.xlu1 %v8971_v58 }
 0xfc7   : > { %8983 = vrot.lane.b32.xlu1 %v32751_v16, %s31416_s24 }
 0xfcb   : > { %9436 = vrot.lane.b32.xlu1 %v32946_v48, %s31417_s17 }
0x103f   : > { %v8973_v60 = vpop.xlane.xlu1 %8972 }
0x1040   : > { %v8974_v63 = vsub.f32 %v8968_v57, %v8973_v60 }
0x1042   : > { %v8975_v2 = vmul.f32 1.442695, %v8974_v63 }
0x1043   : > { %v8984_v3 = vpop.permute.xlu1 %8983 }
0x1044   : > { %30348 = vpow2.f32 %v8975_v2  ;;  %v9020_v39 = vand.u32 4294901760, %v8984_v3 }
0x1046   : > { %v9097_v5 = vsub.f32 %v8984_v3, %v9020_v39  ;;  %28369 = vmatpush3.msra.mxu0 %v9020_v39 }
0x1047   : > { %28378 = vmatprep.subr.mxu0 %v35587_v40  ;;  %v9437_v19 = vpop.permute.xlu1 %9436 }
0x1048   : > { %v9098_v18 = vand.u32 4294901760, %v9097_v5  ;;  %v9440_v46 = vsel %vm3919_vm3, %v9437_v19, 0 }
0x1049   : > { %v9510_v23 = vand.u32 4294901760, %v9440_v46 }
0x104a   : > { %v9099_v6 = vsub.f32 %v9097_v5, %v9098_v18 }
0x104b   : > { %v9511_v27 = vsub.f32 %v9440_v46, %v9510_v23 }
0x104c   : > { %v9100_v7 = vand.u32 4294901760, %v9099_v6 }
0x104d   : > { %v9512_v1 = vand.u32 4294901760, %v9511_v27 }
0x104e   : > { %28374 = vmatpush3.msra.mxu1 %v9100_v7 }
0x104f   : > { %28383 = vmatprep.subr.mxu1 %v35587_v40  ;;  %v9513_v31 = vsub.f32 %v9511_v27, %v9512_v1 }
0x1051   : > { %v30349_v61 = vpop.eup %30348  ;;  %v9514_v32 = vand.u32 4294901760, %v9513_v31 }
0x1052   : > { %v8977_v4 = vsel %vm3919_vm3, %v30349_v61, 0.0 }
0x1053   : > { %8978 = vadd.xlane.f32.xlu0 %v8977_v4 }
0x1069   : > { %9438 = vrot.lane.b32.xlu0 %v32721_v36, %s31417_s17 }
0x10dc   : > { %v8979_v26 = vpop.xlane.xlu0 %8978 }
0x10dd   : > { %30350 = vrcp.f32 %v8979_v26 }
0x10e0   : > { %v9439_v37 = vpop.permute.xlu0 %9438 }
0x10e1   : > { %v9442_v42 = vsel %vm3919_vm3, %v9439_v37, 0 }
0x10e2   : > { %v9475_v8 = vand.u32 4294901760, %v9442_v42 }
0x10e4   : > { %v9552_v12 = vsub.f32 %v9442_v42, %v9475_v8 }
0x10e6   : > { %v9553_v17 = vand.u32 4294901760, %v9552_v12 }
0x10e8   : > { %v9554_v24 = vsub.f32 %v9552_v12, %v9553_v17 }
0x10ea   : > { %v30351_v10 = vpop.eup %30350  ;;  %v9555_v29 = vand.u32 4294901760, %v9554_v24 }
0x10eb   : > { %v33073_v14 = vmul.f32 %v30351_v10, %v30349_v61 }
0x10ed   : > { %v8987_v38 = vsel %vm3919_vm3, %v33073_v14, 0 }
0x10ee   : > { %v9055_v13 = vand.u32 4294901760, %v8987_v38 }
0x10f0   : > { %v9056_v20 = vsub.f32 %v8987_v38, %v9055_v13  ;;  %28376 = vmatmul.mubr.f32.vlgmr.msra.gmra.mxu1 %v9055_v13 }
0x10f1   : > { %28384 = vmatpush3.msra.mxu1 %v9020_v39  ;;  %28385 = vmatprep.mubr.msk.f32.mxu1 %vm31415_vm2, %v35587_v40 }
0x10f2   : > { %28393 = vmatprep.subr.mxu1 %v35587_v40  ;;  %v9057_v22 = vand.u32 4294901760, %v9056_v20 }
0x10f4   : > { %28386 = vmatmul.mubr.f32.vlgmr.msra.gmra.mxu1 %v9057_v22  ;;  %v9058_v25 = vsub.f32 %v9056_v20, %v9057_v22 }
0x10f5   : > { %28394 = vmatpush3.msra.mxu1 %v9020_v39  ;;  %28395 = vmatprep.mubr.msk.f32.mxu1 %vm31415_vm2, %v35587_v40 }
0x10f6   : > { %28403 = vmatprep.subr.mxu1 %v35587_v40  ;;  %v9059_v28 = vand.u32 4294901760, %v9058_v25 }
0x10f8   : > { %28371 = vmatmul.mubr.f32.vlgmr.msra.gmra.mxu0 %v9059_v28  ;;  %28396 = vmatmul.mubr.f32.vlgmr.msra.gmra.mxu1 %v9055_v13 }
0x10f9   : > { %28379 = vmatpush3.msra.mxu0 %v9097_v5  ;;  %28404 = vmatpush3.xpose.msra.mxu1 %v9555_v29 }
0x10fa   : > { %28380 = vmatprep.mubr.msk.f32.mxu0 %vm31415_vm2, %v35587_v40  ;;  %28388 = vmatprep.subr.mxu0 %v35587_v40 }
0x10fb   : > { %28405 = vmatprep.mubr.msk.f32.mxu1 %vm31415_vm2, %v35587_v40  ;;  %28413 = vmatprep.subr.mxu1 %v35587_v40 }
0x10fc   : > { %28381 = vmatmul.mubr.f32.vlgmr.msra.gmra.mxu0 %v9056_v20  ;;  %28406 = vmatmul.mubr.f32.vlgmr.msra.gmra.mxu1 %v9510_v23 }
0x10fd   : > { %28389 = vmatpush3.msra.mxu0 %v9098_v18  ;;  %28414 = vmatpush3.xpose.msra.mxu1 %v9475_v8 }
0x10fe   : > { %28390 = vmatprep.mubr.msk.f32.mxu0 %vm31415_vm2, %v35587_v40  ;;  %28398 = vmatprep.subr.mxu0 %v35587_v40 }
0x10ff   : > { %28415 = vmatprep.mubr.msk.f32.mxu1 %vm31415_vm2, %v35587_v40  ;;  %28423 = vmatprep.subr.mxu1 %v35587_v40 }
0x1100   : > { %28391 = vmatmul.mubr.f32.vlgmr.msra.gmra.mxu0 %v9055_v13  ;;  %28416 = vmatmul.mubr.f32.vlgmr.msra.gmra.mxu1 %v9512_v1 }
0x1101   : > { %28399 = vmatpush3.xpose.msra.mxu0 %v9475_v8  ;;  %28424 = vmatpush3.xpose.msra.mxu1 %v9475_v8 }
0x1102   : > { %28400 = vmatprep.mubr.msk.f32.mxu0 %vm31415_vm2, %v35587_v40  ;;  %28408 = vmatprep.subr.mxu0 %v35587_v40 }
0x1103   : > { %28425 = vmatprep.mubr.msk.f32.mxu1 %vm31415_vm2, %v35587_v40  ;;  %28433 = vmatprep.subr.mxu1 %v35587_v40 }
0x1104   : > { %28401 = vmatmul.mubr.f32.vlgmr.msra.gmra.mxu0 %v9514_v32  ;;  %28426 = vmatmul.mubr.f32.vlgmr.msra.gmra.mxu1 %v9510_v23 }
0x1105   : > { %28409 = vmatpush3.xpose.msra.mxu0 %v9552_v12  ;;  %28410 = vmatprep.mubr.msk.f32.mxu0 %vm31415_vm2, %v35587_v40 }
0x1106   : > { %28418 = vmatprep.subr.mxu0 %v35587_v40  ;;  %28435 = vmatprep.mubr.msk.f32.mxu1 %vm31415_vm2, %v35587_v40 }
0x1108   : > { %28411 = vmatmul.mubr.f32.vlgmr.msra.gmra.mxu0 %v9511_v27 }
0x1109   : > { %28419 = vmatpush3.xpose.msra.mxu0 %v9553_v17  ;;  %28420 = vmatprep.mubr.msk.f32.mxu0 %vm31415_vm2, %v35587_v40 }
0x110a   : > { %28428 = vmatprep.subr.mxu0 %v35587_v40 }
0x110c   : > { %28421 = vmatmul.mubr.f32.vlgmr.msra.gmra.mxu0 %v9510_v23 }
0x110d   : > { %28430 = vmatprep.mubr.msk.f32.mxu0 %vm31415_vm2, %v35587_v40 }
0x11b0   : > { %v9137_v33 = vpop.f32.mrf.mxu1 }
0x11b2   : > { %v28377_v34 = vpop.f32.mrf.mxu1 }
0x11b4   : > { %v9285_v35 = vpop.f32.mrf.mxu1 }
0x11b6   : > { %v28387_v41 = vpop.f32.mrf.mxu1 }
0x11b8   : > { %v9061_v44 = vpop.f32.mrf.mxu0  ;;  %v9431_v47 = vpop.f32.mrf.mxu1 }
0x11b9   : > { %v9138_v49 = vadd.f32 %v9137_v33, %v9061_v44 }
0x11ba   : > { %v28372_v50 = vpop.f32.mrf.mxu0  ;;  %v28397_v54 = vpop.f32.mrf.mxu1 }
0x11bc   : > { %v9211_v55 = vpop.f32.mrf.mxu0  ;;  %v9592_v57 = vpop.f32.mrf.mxu1 }
0x11bd   : > { %v9212_v58 = vadd.f32 %v9211_v55, %v9138_v49 }
0x11be   : > { %v28382_v60 = vpop.f32.mrf.mxu0  ;;  %v28407_v63 = vpop.f32.mrf.mxu1 }
0x11bf   : > { %v9286_v2 = vadd.f32 %v9285_v35, %v9212_v58 }
0x11c0   : > { %v9359_v3 = vpop.f32.mrf.mxu0  ;;  %v9740_v39 = vpop.f32.mrf.mxu1 }
0x11c1   : > { %v9360_v5 = vadd.f32 %v9359_v3, %v9286_v2 }
0x11c2   : > { %v28392_v18 = vpop.f32.mrf.mxu0  ;;  %v28417_v6 = vpop.f32.mrf.mxu1 }
0x11c3   : > { %v33112_v7 = vadd.f32 %v9431_v47, %v9360_v5  ;;  %v9435_v47 = vadd.f32 %v33073_v14, %v33016_v53 }
0x11c4   : > { %v9516_v61 = vpop.f32.mrf.mxu0  ;;  %v9886_v4 = vpop.f32.mrf.mxu1 }
0x11c5   : > { %v9593_v42 = vadd.f32 %v9592_v57, %v9516_v61 }
0x11c6   : > { %v28402_v26 = vpop.f32.mrf.mxu0  ;;  %v28427_v37 = vpop.f32.mrf.mxu1 }
0x11c8   : > { %v9666_v8 = vpop.f32.mrf.mxu0 }
0x11c9   : > { %v9667_v10 = vadd.f32 %v9666_v8, %v9593_v42 }
0x11ca   : > { %v28412_v12 = vpop.f32.mrf.mxu0 }
0x11cb   : > { %v9741_v19 = vadd.f32 %v9740_v39, %v9667_v10 }
0x11cc   : > { %v9814_v38 = vpop.f32.mrf.mxu0 }
0x11cd   : > { %v9815_v13 = vadd.f32 %v9814_v38, %v9741_v19 }
0x11ce   : > { %v28422_v46 = vpop.f32.mrf.mxu0 }
0x11cf   : > { %v9887_v17 = vadd.f32 %v9886_v4, %v9815_v13 }
0x11d1   : > { %v9890_v20 = vsel %vm3919_vm3, %v9887_v17, -inf }
0x11d2   : > { %9891 = vmax.xlane.f32.xlu1 %v9890_v20 }
0x11e3   : > { %9901 = vrot.lane.b32.xlu1 %v32751_v16, %s31417_s17 }
0x11e7   : > { %10354 = vrot.lane.b32.xlu1 %v32946_v48, %s31418_s20 }
0x125b   : > { %v9892_v23 = vpop.xlane.xlu1 %9891 }
0x125c   : > { %v9893_v22 = vsub.f32 %v9887_v17, %v9892_v23 }
0x125e   : > { %v9894_v24 = vmul.f32 1.442695, %v9893_v22 }
0x125f   : > { %v9902_v25 = vpop.permute.xlu1 %9901 }
0x1260   : > { %30352 = vpow2.f32 %v9894_v24  ;;  %v9938_v27 = vand.u32 4294901760, %v9902_v25 }
0x1262   : > { %v10015_v28 = vsub.f32 %v9902_v25, %v9938_v27  ;;  %28429 = vmatpush3.msra.mxu0 %v9938_v27 }
0x1263   : > { %28438 = vmatprep.subr.mxu0 %v35587_v40  ;;  %v10355_v54 = vpop.permute.xlu1 %10354 }
0x1264   : > { %v10016_v29 = vand.u32 4294901760, %v10015_v28 }
0x1266   : > { %v10017_v1 = vsub.f32 %v10015_v28, %v10016_v29 }
0x1268   : > { %v10018_v31 = vand.u32 4294901760, %v10017_v1 }
0x126a   : > { %28434 = vmatpush3.msra.mxu1 %v10018_v31 }
0x126b   : > { %28443 = vmatprep.subr.mxu1 %v35587_v40 }
0x126d   : > { %v30353_v32 = vpop.eup %30352 }
0x126e   : > { %v9896_v33 = vsel %vm3919_vm3, %v30353_v32, 0.0 }
0x126f   : > { %9897 = vadd.xlane.f32.xlu0 %v9896_v33 }
0x1285   : > { %10356 = vrot.lane.b32.xlu0 %v32721_v36, %s31418_s20  ;;  %v10358_v36 = vsel %vm3919_vm3, %v10355_v54, 0 }
0x1286   : > { %v10428_v2 = vand.u32 4294901760, %v10358_v36 }
0x1288   : > { %v10429_v39 = vsub.f32 %v10358_v36, %v10428_v2 }
0x128a   : > { %v10430_v6 = vand.u32 4294901760, %v10429_v39 }
0x128c   : > { %v10431_v61 = vsub.f32 %v10429_v39, %v10430_v6 }
0x128e   : > { %v10432_v4 = vand.u32 4294901760, %v10431_v61 }
0x12f8   : > { %v9898_v48 = vpop.xlane.xlu0 %9897 }
0x12f9   : > { %30354 = vrcp.f32 %v9898_v48 }
0x12fc   : > { %v10357_v34 = vpop.permute.xlu0 %10356 }
0x12fd   : > { %v10360_v35 = vsel %vm3919_vm3, %v10357_v34, 0 }
0x12fe   : > { %v10393_v41 = vand.u32 4294901760, %v10360_v35 }
0x1300   : > { %v10470_v49 = vsub.f32 %v10360_v35, %v10393_v41 }
0x1302   : > { %v10471_v60 = vand.u32 4294901760, %v10470_v49 }
0x1304   : > { %v10472_v14 = vsub.f32 %v10470_v49, %v10471_v60 }
0x1306   : > { %v30355_v44 = vpop.eup %30354  ;;  %v10473_v18 = vand.u32 4294901760, %v10472_v14 }
0x1307   : > { %v9900_v50 = vmul.f32 %v30355_v44, %v30353_v32 }
0x1309   : > { %v9905_v55 = vsel %vm3919_vm3, %v9900_v50, 0  ;;  %v33128_v57 = vadd.f32 %v9900_v50, %v9435_v47 }
0x130a   : > { %v9973_v58 = vand.u32 4294901760, %v9905_v55 }
0x130c   : > { %v9974_v63 = vsub.f32 %v9905_v55, %v9973_v58  ;;  %28436 = vmatmul.mubr.f32.vlgmr.msra.gmra.mxu1 %v9973_v58 }
0x130d   : > { %28444 = vmatpush3.msra.mxu1 %v9938_v27  ;;  %28445 = vmatprep.mubr.msk.f32.mxu1 %vm31415_vm2, %v35587_v40 }
0x130e   : > { %28453 = vmatprep.subr.mxu1 %v35587_v40  ;;  %v9975_v53 = vand.u32 4294901760, %v9974_v63 }
0x1310   : > { %28446 = vmatmul.mubr.f32.vlgmr.msra.gmra.mxu1 %v9975_v53  ;;  %v9976_v3 = vsub.f32 %v9974_v63, %v9975_v53 }
0x1311   : > { %28454 = vmatpush3.msra.mxu1 %v9938_v27  ;;  %28455 = vmatprep.mubr.msk.f32.mxu1 %vm31415_vm2, %v35587_v40 }
0x1312   : > { %28463 = vmatprep.subr.mxu1 %v35587_v40  ;;  %v9977_v5 = vand.u32 4294901760, %v9976_v3 }
0x1314   : > { %28431 = vmatmul.mubr.f32.vlgmr.msra.gmra.mxu0 %v9977_v5  ;;  %28456 = vmatmul.mubr.f32.vlgmr.msra.gmra.mxu1 %v9973_v58 }
0x1315   : > { %28439 = vmatpush3.msra.mxu0 %v10015_v28  ;;  %28464 = vmatpush3.xpose.msra.mxu1 %v10473_v18 }
0x1316   : > { %28440 = vmatprep.mubr.msk.f32.mxu0 %vm31415_vm2, %v35587_v40  ;;  %28448 = vmatprep.subr.mxu0 %v35587_v40 }
0x1317   : > { %28465 = vmatprep.mubr.msk.f32.mxu1 %vm31415_vm2, %v35587_v40  ;;  %28473 = vmatprep.subr.mxu1 %v35587_v40 }
0x1318   : > { %28441 = vmatmul.mubr.f32.vlgmr.msra.gmra.mxu0 %v9974_v63  ;;  %28466 = vmatmul.mubr.f32.vlgmr.msra.gmra.mxu1 %v10428_v2 }
0x1319   : > { %28449 = vmatpush3.msra.mxu0 %v10016_v29  ;;  %28474 = vmatpush3.xpose.msra.mxu1 %v10393_v41 }
0x131a   : > { %28450 = vmatprep.mubr.msk.f32.mxu0 %vm31415_vm2, %v35587_v40  ;;  %28458 = vmatprep.subr.mxu0 %v35587_v40 }
0x131b   : > { %28475 = vmatprep.mubr.msk.f32.mxu1 %vm31415_vm2, %v35587_v40  ;;  %28483 = vmatprep.subr.mxu1 %v35587_v40 }
0x131c   : > { %28451 = vmatmul.mubr.f32.vlgmr.msra.gmra.mxu0 %v9973_v58  ;;  %28476 = vmatmul.mubr.f32.vlgmr.msra.gmra.mxu1 %v10430_v6 }
0x131d   : > { %28459 = vmatpush3.xpose.msra.mxu0 %v10393_v41  ;;  %28484 = vmatpush3.xpose.msra.mxu1 %v10393_v41 }
0x131e   : > { %28460 = vmatprep.mubr.msk.f32.mxu0 %vm31415_vm2, %v35587_v40  ;;  %28468 = vmatprep.subr.mxu0 %v35587_v40 }
0x131f   : > { %28485 = vmatprep.mubr.msk.f32.mxu1 %vm31415_vm2, %v35587_v40  ;;  %28493 = vmatprep.subr.mxu1 %v35587_v40 }
0x1320   : > { %28461 = vmatmul.mubr.f32.vlgmr.msra.gmra.mxu0 %v10432_v4  ;;  %28486 = vmatmul.mubr.f32.vlgmr.msra.gmra.mxu1 %v10428_v2 }
0x1321   : > { %28469 = vmatpush3.xpose.msra.mxu0 %v10470_v49  ;;  %28470 = vmatprep.mubr.msk.f32.mxu0 %vm31415_vm2, %v35587_v40 }
0x1322   : > { %28478 = vmatprep.subr.mxu0 %v35587_v40  ;;  %28495 = vmatprep.mubr.msk.f32.mxu1 %vm31415_vm2, %v35587_v40 }
0x1324   : > { %28471 = vmatmul.mubr.f32.vlgmr.msra.gmra.mxu0 %v10429_v39 }
0x1325   : > { %28479 = vmatpush3.xpose.msra.mxu0 %v10471_v60  ;;  %28480 = vmatprep.mubr.msk.f32.mxu0 %vm31415_vm2, %v35587_v40 }
0x1326   : > { %28488 = vmatprep.subr.mxu0 %v35587_v40 }
0x1328   : > { %28481 = vmatmul.mubr.f32.vlgmr.msra.gmra.mxu0 %v10428_v2 }
0x1329   : > { %28490 = vmatprep.mubr.msk.f32.mxu0 %vm31415_vm2, %v35587_v40 }
0x13cc   : > { %v10055_v26 = vpop.f32.mrf.mxu1 }
0x13ce   : > { %v28437_v37 = vpop.f32.mrf.mxu1 }
0x13d0   : > { %v10203_v42 = vpop.f32.mrf.mxu1 }
0x13d2   : > { %v28447_v8 = vpop.f32.mrf.mxu1 }
0x13d4   : > { %v9979_v10 = vpop.f32.mrf.mxu0  ;;  %v10349_v12 = vpop.f32.mrf.mxu1 }
0x13d5   : > { %v10056_v50 = vadd.f32 %v10055_v26, %v9979_v10 }
0x13d6   : > { %v28432_v19 = vpop.f32.mrf.mxu0  ;;  %v28457_v38 = vpop.f32.mrf.mxu1 }
0x13d8   : > { %v10129_v13 = vpop.f32.mrf.mxu0  ;;  %v10510_v46 = vpop.f32.mrf.mxu1 }
0x13d9   : > { %v10130_v54 = vadd.f32 %v10129_v13, %v10056_v50 }
0x13da   : > { %v28442_v17 = vpop.f32.mrf.mxu0  ;;  %v28467_v20 = vpop.f32.mrf.mxu1 }
0x13db   : > { %v10204_v55 = vadd.f32 %v10203_v42, %v10130_v54 }
0x13dc   : > { %v10277_v23 = vpop.f32.mrf.mxu0  ;;  %v10658_v22 = vpop.f32.mrf.mxu1 }
0x13dd   : > { %v10278_v58 = vadd.f32 %v10277_v23, %v10204_v55 }
0x13de   : > { %v28452_v24 = vpop.f32.mrf.mxu0  ;;  %v28477_v25 = vpop.f32.mrf.mxu1 }
0x13df   : > { %v10350_v36 = vadd.f32 %v10349_v12, %v10278_v58 }
0x13e0   : > { %v10434_v27 = vpop.f32.mrf.mxu0  ;;  %v10804_v28 = vpop.f32.mrf.mxu1 }
0x13e1   : > { %v10511_v31 = vadd.f32 %v10510_v46, %v10434_v27  ;;  %v11291_v27 = vld [vmem:[%s32442_s1 + $0x18] sm:$0xff] }
0x13e2   : > { %v28462_v29 = vpop.f32.mrf.mxu0  ;;  %v28487_v1 = vpop.f32.mrf.mxu1 }
0x13e3   : > { %v11289_v29 = vld [vmem:[%s32442_s1 + $0x8] sm:$0xff]  ;;  %v33216_v1 = vand.u32 4294901760, %v11291_v27 }
0x13e4   : > { %v10584_v32 = vpop.f32.mrf.mxu0 }
0x13e5   : > { %v10585_v33 = vadd.f32 %v10584_v32, %v10511_v31  ;;  %v33220_v32 = vand.u32 4294901760, %v11289_v29 }
0x13e6   : > { %v28472_v48 = vpop.f32.mrf.mxu0 }
0x13e7   : > { %v10659_v34 = vadd.f32 %v10658_v22, %v10585_v33  ;;  %v33223_v33 = vsub.f32 %v11291_v27, %v33216_v1 }
0x13e8   : > { %v10732_v35 = vpop.f32.mrf.mxu0 }
0x13e9   : > { %v10733_v41 = vadd.f32 %v10732_v35, %v10659_v34  ;;  %v33229_v34 = vsub.f32 %v11289_v29, %v33220_v32  ;;  %v33234_v35 = vand.u32 4294901760, %v33223_v33 }
0x13ea   : > { %v28482_v44 = vpop.f32.mrf.mxu0 }
0x13eb   : > { %v10805_v47 = vadd.f32 %v10804_v28, %v10733_v41  ;;  %v11290_v28 = vld [vmem:[%s32442_s1 + $0x10] sm:$0xff]  ;;  %v33240_v44 = vand.u32 4294901760, %v33229_v34 }
0x13ec   : > { %v33218_v31 = vand.u32 4294901760, %v11290_v28 }
0x13ed   : > { %v10808_v49 = vsel %vm3919_vm3, %v10805_v47, -inf  ;;  %v11436_v50 = vsub.f32 %v33229_v34, %v33240_v44 }
0x13ee   : > { %10809 = vmax.xlane.f32.xlu1 %v10808_v49  ;;  %v33226_v48 = vsub.f32 %v11290_v28, %v33218_v31 }
0x13ef   : > { %v11437_v58 = vand.u32 4294901760, %v11436_v50 }
0x13f0   : > { %v33237_v41 = vand.u32 4294901760, %v33226_v48 }
0x13f2   : > { %v11429_v49 = vsub.f32 %v33226_v48, %v33237_v41 }
0x13f4   : > { %v11430_v55 = vand.u32 4294901760, %v11429_v49 }
0x13ff   : > { %10819 = vrot.lane.b32.xlu1 %v32751_v16, %s31418_s20 }
0x1403   : > { %7592 = vrot.lane.b32.xlu1 %v32935_v43, %s31419_s28 }
0x1407   : > { %11273 = vrot.lane.b32.xlu1 %v33112_v7, %s31420_s10 }
0x140b   : > { %7596 = vrot.lane.b32.xlu1 %v33007_v15, %s31421_s8 }
0x140f   : > { %11277 = vrot.lane.b32.xlu1 %v10350_v36, %s31419_s28  ;;  %v11288_v36 = vld [vmem:[%s32442_s1] sm:$0xff]  ;;  %s35821_s1 = scalar_lea.vmem [#allocation13], %s32346_s19 }
0x1477   : > { %v10810_v60 = vpop.xlane.xlu1 %10809 }
0x1478   : > { %v10811_v16 = vsub.f32 %v10805_v47, %v10810_v60  ;;  %v11422_v47 = vsub.f32 %v33223_v33, %v33234_v35 }
0x147a   : > { %v10812_v63 = vmul.f32 1.442695, %v10811_v16  ;;  %v11423_v54 = vand.u32 4294901760, %v11422_v47  ;;  %v33253_v16 = vand.u32 4294901760, %v11288_v36 }
0x147b   : > { %v10820_v2 = vpop.permute.xlu1 %10819 }
0x147c   : > { %30356 = vpow2.f32 %v10812_v63  ;;  %v10856_v53 = vand.u32 4294901760, %v10820_v2 }
0x147e   : > { %v10933_v43 = vsub.f32 %v10820_v2, %v10856_v53  ;;  %28489 = vmatpush3.msra.mxu0 %v10856_v53  ;;  %v11441_v2 = vsub.f32 %v11288_v36, %v33253_v16 }
0x147f   : > { %v7593_v14 = vpop.permute.xlu1 %7592  ;;  %28498 = vmatprep.subr.mxu0 %v35587_v40 }
0x1480   : > { %v10934_v7 = vand.u32 4294901760, %v10933_v43 }
0x1482   : > { %v10935_v3 = vsub.f32 %v10933_v43, %v10934_v7 }
0x1483   : > { %v11274_v39 = vpop.permute.xlu1 %11273 }
0x1484   : > { %v10936_v5 = vand.u32 4294901760, %v10935_v3  ;;  %v33178_v15 = vsel %vm3919_vm3, %v33060_v30, %v11274_v39 }
0x1486   : > { %28494 = vmatpush3.msra.mxu1 %v10936_v5 }
0x1487   : > { %28503 = vmatprep.subr.mxu1 %v35587_v40  ;;  %v7597_v37 = vpop.permute.xlu1 %7596 }
0x1489   : > { %v30357_v18 = vpop.eup %30356 }
0x148a   : > { %v10814_v6 = vsel %vm3919_vm3, %v30357_v18, 0.0 }
0x148b   : > { %10815 = vadd.xlane.f32.xlu0 %v10814_v6 }
0x14a1   : > { %7588 = vrot.lane.b32.xlu0 %v32881_v21, %s31420_s10 }
0x1514   : > { %v10816_v61 = vpop.xlane.xlu0 %10815 }
0x1515   : > { %30358 = vrcp.f32 %v10816_v61 }
0x1518   : > { %v7589_v4 = vpop.permute.xlu0 %7588 }
0x1519   : > { %v7599_v26 = vsel %vm3919_vm3, %v32810_v45, %v7589_v4 }
0x151a   : > { %v7601_v30 = vsel %vm7600_vm4, %v7599_v26, %v7593_v14 }
0x151b   : > { %v7603_v42 = vsel %vm7602_vm5, %v7601_v30, %v7597_v37 }
0x151c   : > { %v11300_v12 = vsel %vm2298_vm1, %v7603_v42, 0 }
0x151d   : > { %v33191_v46 = vand.u32 4294901760, %v11300_v12 }
0x151f   : > { %v33199_v20 = vsub.f32 %v11300_v12, %v33191_v46 }
0x1521   : > { %v11376_v22 = vand.u32 4294901760, %v33199_v20 }
0x1522   : > { %v30359_v8 = vpop.eup %30358 }
0x1523   : > { %v10818_v10 = vmul.f32 %v30359_v8, %v30357_v18  ;;  %v11377_v24 = vsub.f32 %v33199_v20, %v11376_v22 }
0x1525   : > { %v10823_v21 = vsel %vm3919_vm3, %v10818_v10, 0  ;;  %v11271_v19 = vadd.f32 %v10818_v10, %v33128_v57  ;;  %v11378_v25 = vand.u32 4294901760, %v11377_v24 }
0x1526   : > { %v10891_v38 = vand.u32 4294901760, %v10823_v21 }
0x1527   : > { %v11287_v13 = vmul.f32 0.25, %v11271_v19 }
0x1528   : > { %v10892_v45 = vsub.f32 %v10823_v21, %v10891_v38  ;;  %28496 = vmatmul.mubr.f32.vlgmr.msra.gmra.mxu1 %v10891_v38  ;;  %v11278_v21 = vpop.permute.xlu1 %11277 }
0x1529   : > { %26722 = vst.msk [vmem:[%s32468_s11 + $0x8] sm:$0xff] %vm3919_vm3, %v11287_v13  ;;  %28504 = vmatpush3.msra.mxu1 %v10856_v53  ;;  %28505 = vmatprep.mubr.msk.f32.mxu1 %vm31415_vm2, %v35587_v40  ;;  %v11285_v19 = vsel %vm7600_vm4, %v33178_v15, %v11278_v21 }
0x152a   : > { %28513 = vmatprep.subr.mxu1 %v35587_v40  ;;  %v10893_v17 = vand.u32 4294901760, %v10892_v45 }
0x152c   : > { %28506 = vmatmul.mubr.f32.vlgmr.msra.gmra.mxu1 %v10893_v17  ;;  %v10894_v57 = vsub.f32 %v10892_v45, %v10893_v17 }
0x152d   : > { %28514 = vmatpush3.msra.mxu1 %v10856_v53  ;;  %28515 = vmatprep.mubr.msk.f32.mxu1 %vm31415_vm2, %v35587_v40 }
0x152e   : > { %v10895_v23 = vand.u32 4294901760, %v10894_v57  ;;  %28529 = vmatprep.subr.mxu1 %v11423_v54 }
0x1530   : > { %28491 = vmatmul.mubr.f32.vlgmr.msra.gmra.mxu0 %v10895_v23  ;;  %28516 = vmatmul.mubr.f32.vlgmr.msra.gmra.mxu1 %v10891_v38 }
0x1531   : > { %28499 = vmatpush3.msra.mxu0 %v10933_v43  ;;  %28537 = vmatprep.mubr.f32.mxu1 %v33191_v46  ;;  %v33258_v43 = vand.u32 4294901760, %v11441_v2 }
0x1532   : > { %28500 = vmatprep.mubr.msk.f32.mxu0 %vm31415_vm2, %v35587_v40  ;;  %28508 = vmatprep.subr.mxu0 %v35587_v40 }
0x1533   : > { %28530 = vmatpush3.msra.mxu1 %v11423_v54 }
0x1534   : > { %28501 = vmatmul.mubr.f32.vlgmr.msra.gmra.mxu0 %v10892_v45  ;;  %28531 = vmatprep.subr.mxu1 %v11430_v55 }
0x1535   : > { %28509 = vmatpush3.msra.mxu0 %v10934_v7  ;;  %28510 = vmatprep.mubr.msk.f32.mxu0 %vm31415_vm2, %v35587_v40  ;;  %v11443_v7 = vsub.f32 %v11441_v2, %v33258_v43 }
0x1536   : > { %28518 = vmatprep.subr.mxu0 %v33216_v1  ;;  %28532 = vmatpush3.msra.mxu1 %v11430_v55 }
0x1537   : > { %28533 = vmatprep.subr.mxu1 %v11437_v58  ;;  %v11444_v5 = vand.u32 4294901760, %v11443_v7 }
0x1538   : > { %28511 = vmatmul.mubr.f32.vlgmr.msra.gmra.mxu0 %v10891_v38  ;;  %28534 = vmatpush3.msra.mxu1 %v11437_v58 }
0x1539   : > { %28526 = vmatprep.mubr.f32.mxu0 %v11378_v25  ;;  %28519 = vmatpush3.msra.mxu0 %v33216_v1 }
0x153a   : > { %28520 = vmatprep.subr.mxu0 %v33218_v31  ;;  %28535 = vmatprep.subr.mxu1 %v11444_v5 }
0x153b   : > { %28521 = vmatpush3.msra.mxu0 %v33218_v31  ;;  %28536 = vmatpush3.msra.mxu1 %v11444_v5 }
0x153c   : > { %28522 = vmatprep.subr.mxu0 %v33220_v32  ;;  %28551 = vmatprep.subr.mxu1 %v33216_v1 }
0x153d   : > { %28523 = vmatpush3.msra.mxu0 %v33220_v32 }
0x153e   : > { %28524 = vmatprep.subr.mxu0 %v33253_v16 }
0x153f   : > { %28525 = vmatpush3.msra.mxu0 %v33253_v16 }
0x1540   : > { %28540 = vmatprep.subr.mxu0 %v33223_v33 }
0x15e8   : > { %v10973_v60 = vpop.f32.mrf.mxu1 }
0x15ea   : > { %v28497_v63 = vpop.f32.mrf.mxu1 }
0x15eb   : > { %v30424_v63 = vld [vmem:[#allocation2 + $0x8] sm:$0xff] }
0x15ec   : > { %v11121_v53 = vpop.f32.mrf.mxu1 }
0x15ee   : > { %v28507_v14 = vpop.f32.mrf.mxu1 }
0x15f0   : > { %v10897_v3 = vpop.f32.mrf.mxu0  ;;  %v11267_v39 = vpop.f32.mrf.mxu1 }
0x15f1   : > { %v10974_v61 = vadd.f32 %v10973_v60, %v10897_v3 }
0x15f2   : > { %v28492_v18 = vpop.f32.mrf.mxu0  ;;  %v28517_v6 = vpop.f32.mrf.mxu1 }
0x15f4   : > { %v11047_v4 = vpop.f32.mrf.mxu0 }
0x15f5   : > { %v11048_v26 = vadd.f32 %v11047_v4, %v10974_v61 }
0x15f6   : > { %v28502_v30 = vpop.f32.mrf.mxu0 }
0x15f7   : > { %v11122_v37 = vadd.f32 %v11121_v53, %v11048_v26 }
0x15f8   : > { %v11195_v42 = vpop.f32.mrf.mxu0 }
0x15f9   : > { %v11196_v8 = vadd.f32 %v11195_v42, %v11122_v37  ;;  %v11886_v42 = vld [vmem:[%s32445_s23 + $0x18] sm:$0xff] }
0x15fa   : > { %v28512_v10 = vpop.f32.mrf.mxu0 }
0x15fb   : > { %v11268_v12 = vadd.f32 %v11267_v39, %v11196_v8  ;;  %v33308_v8 = vand.u32 4294901760, %v11886_v42  ;;  %v11885_v10 = vld [vmem:[%s32445_s23 + $0x10] sm:$0xff] }
0x15fc   : > { %v33314_v21 = vand.u32 4294901760, %v11885_v10 }
0x15fd   : > { %11281 = vrot.lane.b32.xlu0 %v11268_v12, %s31421_s8  ;;  %v33312_v12 = vsub.f32 %v11886_v42, %v33308_v8 }
0x166f   : > { %v11282_v38 = vpop.permute.xlu0 %11281 }
0x1670   : > { %v11286_v13 = vsel %vm7602_vm5, %v11285_v19, %v11282_v38  ;;  %v11884_v19 = vld [vmem:[%s32445_s23 + $0x8] sm:$0xff]  ;;  %v33320_v38 = vand.u32 4294901760, %v33312_v12 }
0x1671   : > { %v11303_v45 = vsel %vm2298_vm1, %v11286_v13, 0  ;;  %v33323_v13 = vsub.f32 %v11885_v10, %v33314_v21  ;;  %v11901_v10 = vld [vmem:[%s32448_s22 + $0x68] sm:$0xff] }
0x1672   : > { %v11384_v17 = vand.u32 4294901760, %v11303_v45 }
0x1674   : > { %v11385_v57 = vsub.f32 %v11303_v45, %v11384_v17  ;;  %28538 = vmatmul.mubr.f32.vlgmr.msra.gmra.mxu1 %v11384_v17  ;;  %v33325_v45 = vand.u32 4294901760, %v11884_v19 }
0x1675   : > { %28552 = vmatpush3.msra.mxu1 %v33216_v1  ;;  %28559 = vmatprep.mubr.f32.mxu1 %v11376_v22  ;;  %v26721_v22 = vld [vmem:[%s35821_s1] ss:$0 sm:$0xff] }
0x1676   : > { %v11386_v23 = vand.u32 4294901760, %v11385_v57  ;;  %28553 = vmatprep.subr.mxu1 %v33218_v31 }
0x1677   : > { %28554 = vmatpush3.msra.mxu1 %v33218_v31 }
0x1678   : > { %v11387_v24 = vsub.f32 %v11385_v57, %v11386_v23  ;;  %28555 = vmatprep.subr.mxu1 %v33220_v32 }
0x1679   : > { %28556 = vmatpush3.msra.mxu1 %v33220_v32 }
0x167a   : > { %v11388_v15 = vand.u32 4294901760, %v11387_v24  ;;  %28557 = vmatprep.subr.mxu1 %v33253_v16  ;;  %v33336_v24 = vsub.f32 %v11884_v19, %v33325_v45  ;;  %v33421_v19 = vand.u32 4294901760, %v11901_v10 }
0x167b   : > { %28558 = vmatpush3.msra.mxu1 %v33253_v16 }
0x167c   : > { %28560 = vmatmul.mubr.f32.vlgmr.msra.gmra.mxu1 %v11386_v23  ;;  %28573 = vmatprep.subr.mxu1 %v33216_v1  ;;  %v33333_v23 = vand.u32 4294901760, %v33323_v13 }
0x167d   : > { %28527 = vmatmul.mubr.f32.vlgmr.msra.gmra.mxu0 %v11388_v15  ;;  %28574 = vmatpush3.msra.mxu1 %v33216_v1 }
0x167e   : > { %28541 = vmatpush3.msra.mxu0 %v33223_v33  ;;  %28581 = vmatprep.mubr.f32.mxu1 %v33191_v46 }
0x167f   : > { %28542 = vmatprep.subr.mxu0 %v33226_v48  ;;  %28548 = vmatprep.mubr.f32.mxu0 %v33199_v20 }
0x1680   : > { %28575 = vmatprep.subr.mxu1 %v33218_v31  ;;  %28543 = vmatpush3.msra.mxu0 %v33226_v48 }
0x1681   : > { %28576 = vmatpush3.msra.mxu1 %v33218_v31  ;;  %28544 = vmatprep.subr.mxu0 %v33229_v34 }
0x1682   : > { %28577 = vmatprep.subr.mxu1 %v33220_v32  ;;  %28545 = vmatpush3.msra.mxu0 %v33229_v34 }
0x1683   : > { %28578 = vmatpush3.msra.mxu1 %v33220_v32  ;;  %28546 = vmatprep.subr.mxu0 %v11441_v2 }
0x1684   : > { %28579 = vmatprep.subr.mxu1 %v33253_v16  ;;  %28547 = vmatpush3.msra.mxu0 %v11441_v2 }
0x1685   : > { %28580 = vmatpush3.msra.mxu1 %v33253_v16  ;;  %28549 = vmatmul.mubr.f32.vlgmr.msra.gmra.mxu0 %v11385_v57  ;;  %v12034_v57 = vsub.f32 %v33312_v12, %v33320_v38 }
0x1686   : > { %28562 = vmatprep.subr.mxu0 %v33234_v35  ;;  %28582 = vmatmul.mubr.f32.vlgmr.msra.gmra.mxu1 %v11384_v17 }
0x1687   : > { %28563 = vmatpush3.msra.mxu0 %v33234_v35  ;;  %28570 = vmatprep.mubr.f32.mxu0 %v33191_v46 }
0x1688   : > { %28564 = vmatprep.subr.mxu0 %v33237_v41 }
0x1689   : > { %28565 = vmatpush3.msra.mxu0 %v33237_v41 }
0x168a   : > { %28566 = vmatprep.subr.mxu0 %v33240_v44 }
0x168b   : > { %28567 = vmatpush3.msra.mxu0 %v33240_v44 }
0x168c   : > { %28568 = vmatprep.subr.mxu0 %v33258_v43 }
0x168d   : > { %28569 = vmatpush3.msra.mxu0 %v33258_v43  ;;  %v30425_v43 = vld [vmem:[#allocation2] sm:$0xff] }
0x168e   : > { %28571 = vmatmul.mubr.f32.vlgmr.msra.gmra.mxu0 %v11384_v17  ;;  %28584 = vmatprep.subr.mxu0 %v33308_v8  ;;  %v11883_v17 = vld [vmem:[%s32445_s23] sm:$0xff]  ;;  %s35822_s23 = scalar_lea.vmem [#allocation15], %s32346_s19 }
0x168f   : > { %28585 = vmatpush3.msra.mxu0 %v33308_v8  ;;  %v33338_v15 = vand.u32 4294901760, %v11883_v17 }
0x1690   : > { %28586 = vmatprep.subr.mxu0 %v33314_v21 }
0x1691   : > { %28587 = vmatpush3.msra.mxu0 %v33314_v21 }
0x1692   : > { %28588 = vmatprep.subr.mxu0 %v33325_v45 }
0x1693   : > { %28589 = vmatpush3.msra.mxu0 %v33325_v45 }
0x1694   : > { %28590 = vmatprep.subr.mxu0 %v33338_v15 }
0x1695   : > { %28591 = vmatpush3.msra.mxu0 %v33338_v15 }
0x1696   : > { %28606 = vmatprep.subr.mxu0 %v33312_v12 }
0x1734   : > { %v28539_v25 = vpop.f32.mrf.mxu1 }
0x1736   : > { %v11481_v1 = vpop.f32.mrf.mxu1 }
0x173c   : > { %v28561_v32 = vpop.f32.mrf.mxu1 }
0x173d   : > { %v28528_v20 = vpop.f32.mrf.mxu0 }
0x173e   : > { %v11391_v28 = vadd.f32 %v28528_v20, %v26721_v22  ;;  %v11651_v41 = vpop.f32.mrf.mxu1  ;;  %v12035_v20 = vand.u32 4294901760, %v12034_v57 }
0x173f   : > { %v11380_v27 = vpop.f32.mrf.mxu0 }
0x1740   : > { %v11381_v46 = vadd.f32 %v26721_v22, %v11380_v27  ;;  %v11488_v31 = vadd.f32 %v28539_v25, %v11391_v28  ;;  %v12041_v22 = vsub.f32 %v33323_v13, %v33333_v23  ;;  %v33345_v25 = vand.u32 4294901760, %v33336_v24  ;;  %28595 = vmatprep.subr.mxu1 %v12035_v20 }
0x1741   : > { %v33348_v27 = vsub.f32 %v11883_v17, %v33338_v15  ;;  %28596 = vmatpush3.msra.mxu1 %v12035_v20  ;;  %v33432_v17 = vsub.f32 %v11901_v10, %v33421_v19 }
0x1742   : > { %v11482_v34 = vadd.f32 %v11481_v1, %v11381_v46  ;;  %v12042_v28 = vand.u32 4294901760, %v12041_v22  ;;  %v12048_v46 = vsub.f32 %v33336_v24, %v33345_v25 }
0x1743   : > { %v33442_v20 = vand.u32 4294901760, %v33432_v17 }
0x1744   : > { %28597 = vmatprep.subr.mxu1 %v12042_v28  ;;  %v12049_v1 = vand.u32 4294901760, %v12048_v46 }
0x1745   : > { %v28550_v29 = vpop.f32.mrf.mxu0  ;;  %28598 = vmatpush3.msra.mxu1 %v12042_v28  ;;  %v12624_v46 = vsub.f32 %v33432_v17, %v33442_v20 }
0x1746   : > { %v11575_v48 = vadd.f32 %v28550_v29, %v11488_v31  ;;  %v28583_v47 = vpop.f32.mrf.mxu1  ;;  %v33355_v29 = vand.u32 4294901760, %v33348_v27  ;;  %28599 = vmatprep.subr.mxu1 %v12049_v1 }
0x1747   : > { %v11567_v33 = vpop.f32.mrf.mxu0  ;;  %28600 = vmatpush3.msra.mxu1 %v12049_v1 }
0x1748   : > { %v11568_v35 = vadd.f32 %v11567_v33, %v11482_v34  ;;  %v11660_v44 = vadd.f32 %v28561_v32, %v11575_v48  ;;  %v11823_v60 = vpop.f32.mrf.mxu1  ;;  %v12055_v31 = vsub.f32 %v33348_v27, %v33355_v29 }
0x174a   : > { %v11652_v54 = vadd.f32 %v11651_v41, %v11568_v35  ;;  %v12056_v32 = vand.u32 4294901760, %v12055_v31 }
0x174c   : > { %28601 = vmatprep.subr.mxu1 %v12056_v32 }
0x174d   : > { %28602 = vmatpush3.msra.mxu1 %v12056_v32  ;;  %v11897_v32 = vld [vmem:[%s32448_s22 + $0x48] sm:$0xff] }
0x174e   : > { %v28572_v49 = vpop.f32.mrf.mxu0  ;;  %28617 = vmatprep.subr.mxu1 %v33308_v8 }
0x174f   : > { %v11749_v50 = vadd.f32 %v28572_v49, %v11660_v44  ;;  %v26723_v49 = vld [vmem:[%s35822_s23] ss:$0 sm:$0xff] }
0x1750   : > { %v11742_v55 = vpop.f32.mrf.mxu0 }
0x1751   : > { %v11830_v58 = vadd.f32 %v28583_v47, %v11749_v50  ;;  %v11743_v36 = vadd.f32 %v11742_v55, %v11652_v54  ;;  %v26724_v55 = vld [vmem:[%s35823_s26] ss:$0 sm:$0xff] }
0x1753   : > { %v11824_v16 = vadd.f32 %v11823_v60, %v11743_v36  ;;  %v11837_v2 = vadd.f32 %v30424_v63, %v11830_v58 }
0x1755   : > { %v11843_v53 = vsel %vm2298_vm1, %v11837_v2, 0.0  ;;  %v11836_v14 = vadd.f32 %v30425_v43, %v11824_v16 }
0x1756   : > { %11844 = vadd.xlane.f32.xlu0 %v11843_v53 }
0x1757   : > { %v11840_v7 = vsel %vm2298_vm1, %v11836_v14, 0.0 }
0x1758   : > { %11841 = vadd.xlane.f32.xlu1 %v11840_v7 }
0x17df   : > { %v11845_v3 = vpop.xlane.xlu0 %11844 }
0x17e0   : > { %v11848_v39 = vmul.f32 0.03125, %v11845_v3 }
0x17e1   : > { %v11842_v5 = vpop.xlane.xlu1 %11841 }
0x17e2   : > { %v11850_v18 = vsub.f32 %v11837_v2, %v11848_v39  ;;  %v11847_v6 = vmul.f32 0.03125, %v11842_v5 }
0x17e4   : > { %v11849_v61 = vsub.f32 %v11836_v14, %v11847_v6  ;;  %v11852_v4 = vmul.f32 %v11850_v18, %v11850_v18 }
0x17e6   : > { %v11856_v26 = vsel %vm2298_vm1, %v11852_v4, 0.0  ;;  %v11851_v30 = vmul.f32 %v11849_v61, %v11849_v61 }
0x17e7   : > { %11857 = vadd.xlane.f32.xlu1 %v11856_v26  ;;  %v11903_v26 = vld [vmem:[%s32448_s22 + $0x78] sm:$0xff] }
0x17e8   : > { %v11853_v37 = vsel %vm2298_vm1, %v11851_v30, 0.0  ;;  %v33404_v30 = vand.u32 4294901760, %v11903_v26 }
0x17e9   : > { %11854 = vadd.xlane.f32.xlu0 %v11853_v37  ;;  %v11902_v37 = vld [vmem:[%s32448_s22 + $0x70] sm:$0xff] }
0x17ea   : > { %v33408_v42 = vsub.f32 %v11903_v26, %v33404_v30 }
0x1870   : > { %v11858_v33 = vpop.xlane.xlu1 %11857 }
0x1871   : > { %v11860_v48 = vmul.f32 0.03125, %v11858_v33  ;;  %v12625_v33 = vand.u32 4294901760, %v12624_v46 }
0x1872   : > { %v11855_v34 = vpop.xlane.xlu0 %11854 }
0x1873   : > { %v11862_v35 = vadd.f32 1e-05, %v11860_v48  ;;  %v11859_v41 = vmul.f32 0.03125, %v11855_v34 }
0x1875   : > { %30360 = vrsqrt.f32 %v11862_v35  ;;  %v11861_v44 = vadd.f32 1e-05, %v11859_v41  ;;  %v33469_v35 = vand.u32 4294901760, %v11897_v32 }
0x1877   : > { %30362 = vrsqrt.f32 %v11861_v44  ;;  %v11896_v44 = vld [vmem:[%s32448_s22 + $0x40] sm:$0xff] }
0x1882   : > { %v30361_v47 = vpop.eup %30360 }
0x1883   : > { %v11866_v50 = vmul.f32 %v30361_v47, %v11850_v18 }
0x1884   : > { %v30363_v54 = vpop.eup %30362 }
0x1885   : > { %v11865_v58 = vmul.f32 %v30363_v54, %v11849_v61  ;;  %v11874_v36 = vmul.f32 %v26723_v49, %v11866_v50  ;;  %v33481_v50 = vsub.f32 %v11897_v32, %v33469_v35  ;;  %v33483_v54 = vand.u32 4294901760, %v11896_v44 }
0x1887   : > { %v11873_v60 = vmul.f32 %v26723_v49, %v11865_v58  ;;  %v33365_v16 = vadd.f32 %v26724_v55, %v11874_v36  ;;  %v11895_v58 = vld [vmem:[%s32448_s22 + $0x38] sm:$0xff] }
0x1889   : > { %35824 = vst [vmem:[#allocation135_spill] sm:$0xff] %v33365_v16  ;;  %v33367_v63 = vadd.f32 %v26724_v55, %v11873_v60  ;;  %v11915_v2 = vsel %vm2298_vm1, %v33365_v16, 0  ;;  %v33493_v60 = vand.u32 4294901760, %v33481_v50 }
0x188a   : > { %v11996_v53 = vand.u32 4294901760, %v11915_v2 }
0x188b   : > { %35825 = vst [vmem:[#allocation136_spill] sm:$0xff] %v33367_v63  ;;  %v11912_v43 = vsel %vm2298_vm1, %v33367_v63, 0  ;;  %35828 = vst [vmem:[#allocation139_spill] sm:$0xff] %v33493_v60 }
0x188c   : > { %v11986_v14 = vand.u32 4294901760, %v11912_v43  ;;  %v11997_v7 = vsub.f32 %v11915_v2, %v11996_v53  ;;  %v33496_v2 = vsub.f32 %v11896_v44, %v33483_v54 }
0x188e   : > { %28603 = vmatprep.mubr.f32.mxu1 %v11986_v14  ;;  %v11987_v3 = vsub.f32 %v11912_v43, %v11986_v14  ;;  %v11998_v39 = vand.u32 4294901760, %v11997_v7 }
0x188f   : > { %28604 = vmatmul.mubr.f32.vlgmr.msra.gmra.mxu1 %v11996_v53 }
0x1890   : > { %28618 = vmatpush3.msra.mxu1 %v33308_v8  ;;  %v11988_v5 = vand.u32 4294901760, %v11987_v3  ;;  %v11999_v6 = vsub.f32 %v11997_v7, %v11998_v39 }
0x1891   : > { %28619 = vmatprep.subr.mxu1 %v33314_v21 }
0x1892   : > { %28620 = vmatpush3.msra.mxu1 %v33314_v21  ;;  %28625 = vmatprep.mubr.f32.mxu1 %v11988_v5  ;;  %v11989_v18 = vsub.f32 %v11987_v3, %v11988_v5  ;;  %v12000_v4 = vand.u32 4294901760, %v11999_v6  ;;  %v11893_v6 = vld [vmem:[%s32448_s22 + $0x28] sm:$0xff] }
0x1893   : > { %28621 = vmatprep.subr.mxu1 %v33325_v45 }
0x1894   : > { %28622 = vmatpush3.msra.mxu1 %v33325_v45  ;;  %v11990_v61 = vand.u32 4294901760, %v11989_v18 }
0x1895   : > { %28623 = vmatprep.subr.mxu1 %v33338_v15 }
0x1896   : > { %28624 = vmatpush3.msra.mxu1 %v33338_v15  ;;  %28592 = vmatprep.mubr.f32.mxu0 %v11990_v61 }
0x1897   : > { %28626 = vmatmul.mubr.f32.vlgmr.msra.gmra.mxu1 %v11998_v39  ;;  %28639 = vmatprep.subr.mxu1 %v33308_v8  ;;  %v33506_v39 = vand.u32 4294901760, %v33496_v2 }
0x1898   : > { %28593 = vmatmul.mubr.f32.vlgmr.msra.gmra.mxu0 %v12000_v4  ;;  %28640 = vmatpush3.msra.mxu1 %v33308_v8  ;;  %v33410_v8 = vand.u32 4294901760, %v11902_v37 }
0x1899   : > { %28607 = vmatpush3.msra.mxu0 %v33312_v12  ;;  %28647 = vmatprep.mubr.f32.mxu1 %v11986_v14  ;;  %v33416_v12 = vand.u32 4294901760, %v33408_v42  ;;  %35829 = vst [vmem:[#allocation140_spill] sm:$0xff] %v33506_v39  ;;  %v12659_v4 = vsub.f32 %v33496_v2, %v33506_v39 }
0x189a   : > { %28608 = vmatprep.subr.mxu0 %v33323_v13  ;;  %28614 = vmatprep.mubr.f32.mxu0 %v11987_v3  ;;  %v12652_v3 = vsub.f32 %v33481_v50, %v33493_v60 }
0x189b   : > { %28641 = vmatprep.subr.mxu1 %v33314_v21  ;;  %28609 = vmatpush3.msra.mxu0 %v33323_v13  ;;  %v12610_v13 = vsub.f32 %v33408_v42, %v33416_v12 }
0x189c   : > { %28642 = vmatpush3.msra.mxu1 %v33314_v21  ;;  %28610 = vmatprep.subr.mxu0 %v33336_v24  ;;  %v33419_v21 = vsub.f32 %v11902_v37, %v33410_v8  ;;  %v12653_v61 = vand.u32 4294901760, %v12652_v3  ;;  %v33521_v37 = vand.u32 4294901760, %v11893_v6 }
0x189d   : > { %28643 = vmatprep.subr.mxu1 %v33325_v45  ;;  %28611 = vmatpush3.msra.mxu0 %v33336_v24  ;;  %v12611_v24 = vand.u32 4294901760, %v12610_v13  ;;  %v12660_v13 = vand.u32 4294901760, %v12659_v4 }
0x189e   : > { %28644 = vmatpush3.msra.mxu1 %v33325_v45  ;;  %28612 = vmatprep.subr.mxu0 %v33348_v27  ;;  %v33429_v45 = vand.u32 4294901760, %v33419_v21 }
0x189f   : > { %28645 = vmatprep.subr.mxu1 %v33338_v15  ;;  %28613 = vmatpush3.msra.mxu0 %v33348_v27  ;;  %v11898_v27 = vld [vmem:[%s32448_s22 + $0x50] sm:$0xff] }
0x18a0   : > { %28646 = vmatpush3.msra.mxu1 %v33338_v15  ;;  %28615 = vmatmul.mubr.f32.vlgmr.msra.gmra.mxu0 %v11997_v7  ;;  %v12617_v15 = vsub.f32 %v33419_v21, %v33429_v45  ;;  %v33457_v1 = vand.u32 4294901760, %v11898_v27 }
0x18a1   : > { %28628 = vmatprep.subr.mxu0 %v33320_v38  ;;  %28648 = vmatmul.mubr.f32.vlgmr.msra.gmra.mxu1 %v11996_v53 }
0x18a2   : > { %28629 = vmatpush3.msra.mxu0 %v33320_v38  ;;  %28636 = vmatprep.mubr.f32.mxu0 %v11986_v14  ;;  %v11900_v38 = vld [vmem:[%s32448_s22 + $0x60] sm:$0xff]  ;;  %v12618_v28 = vand.u32 4294901760, %v12617_v15  ;;  %v33467_v34 = vsub.f32 %v11898_v27, %v33457_v1  ;;  %v11894_v14 = vld [vmem:[%s32448_s22 + $0x30] sm:$0xff] }
0x18a3   : > { %28630 = vmatprep.subr.mxu0 %v33333_v23  ;;  %v33434_v57 = vand.u32 4294901760, %v11900_v38  ;;  %28685 = vmatprep.subr.mxu1 %v12611_v24  ;;  %v33512_v18 = vand.u32 4294901760, %v11894_v14 }
0x18a4   : > { %28631 = vmatpush3.msra.mxu0 %v33333_v23  ;;  %v11899_v23 = vld [vmem:[%s32448_s22 + $0x58] sm:$0xff]  ;;  %28686 = vmatpush3.msra.mxu1 %v12611_v24  ;;  %v33478_v49 = vand.u32 4294901760, %v33467_v34  ;;  %v33532_v24 = vsub.f32 %v11893_v6, %v33521_v37 }
0x18a5   : > { %28632 = vmatprep.subr.mxu0 %v33345_v25  ;;  %v33445_v22 = vsub.f32 %v11900_v38, %v33434_v57  ;;  %28687 = vmatprep.subr.mxu1 %v12618_v28  ;;  %v33525_v10 = vsub.f32 %v11894_v14, %v33512_v18  ;;  %v11892_v38 = vld [vmem:[%s32448_s22 + $0x20] sm:$0xff] }
0x18a6   : > { %28633 = vmatpush3.msra.mxu0 %v33345_v25  ;;  %v33448_v25 = vand.u32 4294901760, %v11899_v23  ;;  %28688 = vmatpush3.msra.mxu1 %v12618_v28  ;;  %35827 = vst [vmem:[#allocation138_spill] sm:$0xff] %v33478_v49  ;;  %v12645_v36 = vsub.f32 %v33467_v34, %v33478_v49  ;;  %v33534_v15 = vand.u32 4294901760, %v11892_v38  ;;  %v11891_v28 = vld [vmem:[%s32448_s22 + $0x18] sm:$0xff]  ;;  %v33543_v32 = vand.u32 4294901760, %v33532_v24 }
0x18a7   : > { %28634 = vmatprep.subr.mxu0 %v33355_v29  ;;  %28689 = vmatprep.subr.mxu1 %v12625_v33  ;;  %v33538_v27 = vand.u32 4294901760, %v33525_v10 }
0x18a8   : > { %28635 = vmatpush3.msra.mxu0 %v33355_v29  ;;  %v33455_v29 = vand.u32 4294901760, %v33445_v22  ;;  %v33460_v31 = vsub.f32 %v11899_v23, %v33448_v25  ;;  %28690 = vmatpush3.msra.mxu1 %v12625_v33  ;;  %v12646_v7 = vand.u32 4294901760, %v12645_v36  ;;  %35832 = vst [vmem:[#allocation143_spill] sm:$0xff] %v33543_v32  ;;  %v33546_v33 = vsub.f32 %v11892_v38, %v33534_v15 }
0x18a9   : > { %28637 = vmatmul.mubr.f32.vlgmr.msra.gmra.mxu0 %v11996_v53  ;;  %28650 = vmatprep.subr.mxu0 %v33404_v30  ;;  %v33498_v53 = vand.u32 4294901760, %v11895_v58  ;;  %35831 = vst [vmem:[#allocation142_spill] sm:$0xff] %v33538_v27  ;;  %v12673_v44 = vsub.f32 %v33525_v10, %v33538_v27 }
0x18aa   : > { %28651 = vmatpush3.msra.mxu0 %v33404_v30  ;;  %v12631_v48 = vsub.f32 %v33445_v22, %v33455_v29  ;;  %v33473_v41 = vand.u32 4294901760, %v33460_v31 }
0x18ab   : > { %28652 = vmatprep.subr.mxu0 %v33410_v8  ;;  %v33509_v5 = vsub.f32 %v11895_v58, %v33498_v53  ;;  %v33558_v58 = vand.u32 4294901760, %v33546_v33  ;;  %v12674_v14 = vand.u32 4294901760, %v12673_v44 }
0x18ac   : > { %28653 = vmatpush3.msra.mxu0 %v33410_v8  ;;  %35826 = vst [vmem:[#allocation137_spill] sm:$0xff] %v33473_v41  ;;  %v12632_v47 = vand.u32 4294901760, %v12631_v48  ;;  %v12638_v55 = vsub.f32 %v33460_v31, %v33473_v41  ;;  %v33548_v48 = vand.u32 4294901760, %v11891_v28 }
0x18ad   : > { %28654 = vmatprep.subr.mxu0 %v33421_v19  ;;  %v33519_v26 = vand.u32 4294901760, %v33509_v5  ;;  %35833 = vst [vmem:[#allocation144_spill] sm:$0xff] %v33558_v58  ;;  %v12687_v6 = vsub.f32 %v33546_v33, %v33558_v58 }
0x18ae   : > { %28655 = vmatpush3.msra.mxu0 %v33421_v19  ;;  %28691 = vmatprep.subr.mxu1 %v12632_v47  ;;  %v12639_v43 = vand.u32 4294901760, %v12638_v55  ;;  %v12680_v55 = vsub.f32 %v33532_v24, %v33543_v32  ;;  %v33561_v36 = vsub.f32 %v11891_v28, %v33548_v48 }
0x18af   : > { %28656 = vmatprep.subr.mxu0 %v33434_v57  ;;  %28692 = vmatpush3.msra.mxu1 %v12632_v47  ;;  %35830 = vst [vmem:[#allocation141_spill] sm:$0xff] %v33519_v26  ;;  %v12666_v23 = vsub.f32 %v33509_v5, %v33519_v26  ;;  %v11890_v47 = vld [vmem:[%s32448_s22 + $0x10] sm:$0xff] }
0x18b0   : > { %28657 = vmatpush3.msra.mxu0 %v33434_v57  ;;  %28693 = vmatprep.subr.mxu1 %v12639_v43  ;;  %v12681_v3 = vand.u32 4294901760, %v12680_v55 }
0x18b1   : > { %28658 = vmatprep.subr.mxu0 %v33448_v25  ;;  %28694 = vmatpush3.msra.mxu1 %v12639_v43  ;;  %v12667_v46 = vand.u32 4294901760, %v12666_v23  ;;  %v33563_v43 = vand.u32 4294901760, %v11890_v47  ;;  %v12688_v23 = vand.u32 4294901760, %v12687_v6 }
0x18b2   : > { %28659 = vmatpush3.msra.mxu0 %v33448_v25  ;;  %28695 = vmatprep.subr.mxu1 %v12646_v7 }
0x18b3   : > { %28660 = vmatprep.subr.mxu0 %v33457_v1  ;;  %28696 = vmatpush3.msra.mxu1 %v12646_v7  ;;  %v11889_v7 = vld [vmem:[%s32448_s22 + $0x8] sm:$0xff]  ;;  %v33574_v4 = vsub.f32 %v11890_v47, %v33563_v43 }
0x18b4   : > { %28661 = vmatpush3.msra.mxu0 %v33457_v1  ;;  %28697 = vmatprep.subr.mxu1 %v12653_v61  ;;  %v33577_v38 = vand.u32 4294901760, %v11889_v7 }
0x18b5   : > { %28662 = vmatprep.subr.mxu0 %v33469_v35  ;;  %28698 = vmatpush3.msra.mxu1 %v12653_v61  ;;  %v33571_v61 = vand.u32 4294901760, %v33561_v36 }
0x18b6   : > { %28663 = vmatpush3.msra.mxu0 %v33469_v35  ;;  %28699 = vmatprep.subr.mxu1 %v12660_v13  ;;  %v33590_v47 = vsub.f32 %v11889_v7, %v33577_v38 }
0x18b7   : > { %28664 = vmatprep.subr.mxu0 %v33483_v54  ;;  %28700 = vmatpush3.msra.mxu1 %v12660_v13  ;;  %35834 = vst [vmem:[#allocation145_spill] sm:$0xff] %v33571_v61  ;;  %v11888_v13 = vld [vmem:[%s32448_s22] sm:$0xff]  ;;  %v12694_v28 = vsub.f32 %v33561_v36, %v33571_v61  ;;  %s35838_s22 = scalar_lea.vmem [#allocation18], %s32346_s19 }
0x18b8   : > { %28665 = vmatpush3.msra.mxu0 %v33483_v54  ;;  %28701 = vmatprep.subr.mxu1 %v12667_v46  ;;  %v33586_v44 = vand.u32 4294901760, %v11888_v13  ;;  %v33600_v40 = vand.u32 4294901760, %v33590_v47  ;;  %v26725_v62 = vld [vmem:[%s35838_s22] ss:$0 sm:$0xff] }
0x18b9   : > { %28666 = vmatprep.subr.mxu0 %v33498_v53  ;;  %28702 = vmatpush3.msra.mxu1 %v12667_v46  ;;  %v33584_v46 = vand.u32 4294901760, %v33574_v4  ;;  %v12695_v55 = vand.u32 4294901760, %v12694_v28 }
0x18ba   : > { %28667 = vmatpush3.msra.mxu0 %v33498_v53  ;;  %28703 = vmatprep.subr.mxu1 %v12674_v14  ;;  %v33596_v6 = vsub.f32 %v11888_v13, %v33586_v44  ;;  %35836 = vst [vmem:[#allocation147_spill] sm:$0xff] %v33600_v40 }
0x18bb   : > { %28668 = vmatprep.subr.mxu0 %v33512_v18  ;;  %28704 = vmatpush3.msra.mxu1 %v12674_v14  ;;  %35835 = vst [vmem:[#allocation146_spill] sm:$0xff] %v33584_v46  ;;  %v12701_v14 = vsub.f32 %v33574_v4, %v33584_v46 }
0x18bc   : > { %28669 = vmatpush3.msra.mxu0 %v33512_v18  ;;  %28705 = vmatprep.subr.mxu1 %v12681_v3  ;;  %v33604_v0 = vand.u32 4294901760, %v33596_v6 }
0x18bd   : > { %28670 = vmatprep.subr.mxu0 %v33521_v37  ;;  %28706 = vmatpush3.msra.mxu1 %v12681_v3  ;;  %v12702_v7 = vand.u32 4294901760, %v12701_v14  ;;  %v12708_v3 = vsub.f32 %v33590_v47, %v33600_v40 }
0x18be   : > { %28671 = vmatpush3.msra.mxu0 %v33521_v37  ;;  %28707 = vmatprep.subr.mxu1 %v12688_v23  ;;  %35837 = vst [vmem:[#allocation148_spill] sm:$0xff] %v33604_v0  ;;  %v12715_v13 = vsub.f32 %v33596_v6, %v33604_v0 }
0x18bf   : > { %28672 = vmatprep.subr.mxu0 %v33534_v15  ;;  %28708 = vmatpush3.msra.mxu1 %v12688_v23  ;;  %v12709_v28 = vand.u32 4294901760, %v12708_v3 }
0x18c0   : > { %28673 = vmatpush3.msra.mxu0 %v33534_v15  ;;  %28709 = vmatprep.subr.mxu1 %v12695_v55  ;;  %v12716_v23 = vand.u32 4294901760, %v12715_v13 }
0x18c1   : > { %28674 = vmatprep.subr.mxu0 %v33548_v48  ;;  %28710 = vmatpush3.msra.mxu1 %v12695_v55 }
0x18c2   : > { %28675 = vmatpush3.msra.mxu0 %v33548_v48  ;;  %28711 = vmatprep.subr.mxu1 %v12702_v7 }
0x18c3   : > { %28676 = vmatprep.subr.mxu0 %v33563_v43  ;;  %28712 = vmatpush3.msra.mxu1 %v12702_v7 }
0x18c4   : > { %28677 = vmatpush3.msra.mxu0 %v33563_v43  ;;  %28713 = vmatprep.subr.mxu1 %v12709_v28 }
0x18c5   : > { %28678 = vmatprep.subr.mxu0 %v33577_v38  ;;  %28714 = vmatpush3.msra.mxu1 %v12709_v28 }
0x18c6   : > { %28679 = vmatpush3.msra.mxu0 %v33577_v38  ;;  %28715 = vmatprep.subr.mxu1 %v12716_v23 }
0x18c7   : > { %28680 = vmatprep.subr.mxu0 %v33586_v44  ;;  %28716 = vmatpush3.msra.mxu1 %v12716_v23 }
0x18c8   : > { %28681 = vmatpush3.msra.mxu0 %v33586_v44  ;;  %28755 = vmatprep.subr.mxu1 %v33404_v30 }
0x18c9   : > { %28720 = vmatprep.subr.mxu0 %v33408_v42 }
0x194f   : > { %v28605_v52 = vpop.f32.mrf.mxu1 }
0x1951   : > { %v12093_v63 = vpop.f32.mrf.mxu1 }
0x1957   : > { %v28627_v11 = vpop.f32.mrf.mxu1 }
0x1958   : > { %v28594_v14 = vpop.f32.mrf.mxu0 }
0x1959   : > { %v12003_v56 = vadd.f32 %v28594_v14, %v26725_v62  ;;  %v12263_v28 = vpop.f32.mrf.mxu1 }
0x195a   : > { %v11992_v59 = vpop.f32.mrf.mxu0 }
0x195b   : > { %v11993_v55 = vadd.f32 %v26725_v62, %v11992_v59  ;;  %v12100_v16 = vadd.f32 %v28605_v52, %v12003_v56 }
0x195d   : > { %v12094_v13 = vadd.f32 %v12093_v63, %v11993_v55 }
0x1960   : > { %v28616_v9 = vpop.f32.mrf.mxu0 }
0x1961   : > { %v12187_v7 = vadd.f32 %v28616_v9, %v12100_v16  ;;  %v28649_v23 = vpop.f32.mrf.mxu1 }
0x1962   : > { %v12179_v3 = vpop.f32.mrf.mxu0 }
0x1963   : > { %v12180_v0 = vadd.f32 %v12179_v3, %v12094_v13  ;;  %v12272_v40 = vadd.f32 %v28627_v11, %v12187_v7  ;;  %v12435_v26 = vpop.f32.mrf.mxu1 }
0x1965   : > { %v12264_v61 = vadd.f32 %v12263_v28, %v12180_v0 }
0x1969   : > { %v28638_v51 = vpop.f32.mrf.mxu0 }
0x196a   : > { %v12361_v46 = vadd.f32 %v28638_v51, %v12272_v40 }
0x196b   : > { %v12354_v58 = vpop.f32.mrf.mxu0 }
0x196c   : > { %v12442_v32 = vadd.f32 %v28649_v23, %v12361_v46  ;;  %v12355_v27 = vadd.f32 %v12354_v58, %v12264_v61 }
0x196e   : > { %v12448_v14 = vmul.f32 0.70710677, %v12442_v32  ;;  %v12436_v59 = vadd.f32 %v12435_v26, %v12355_v27 }
0x1970   : > { %v12450_v62 = vand.u32 2147483647, %v12448_v14  ;;  %v12447_v39 = vmul.f32 0.70710677, %v12436_v59  ;;  %vm12490_vm6 = vcmp.ge.f32.partialorder %v12448_v14, 0.0 }
0x1972   : > { %v12452_v52 = vmul.f32 0.3275911, %v12450_v62  ;;  %v12449_v56 = vand.u32 2147483647, %v12447_v39  ;;  %v12478_v11 = vsub.f32 0.0, %v12450_v62  ;;  %vm12489_vm7 = vcmp.ge.f32.partialorder %v12447_v39, 0.0 }
0x1974   : > { %v12454_v60 = vadd.f32 1.0, %v12452_v52  ;;  %v12451_v9 = vmul.f32 0.3275911, %v12449_v56  ;;  %v12477_v63 = vsub.f32 0.0, %v12449_v56  ;;  %v12480_v55 = vmul.f32 %v12478_v11, %v12450_v62 }
0x1976   : > { %30364 = vrcp.f32 %v12454_v60  ;;  %v12453_v16 = vadd.f32 1.0, %v12451_v9  ;;  %v12479_v0 = vmul.f32 %v12477_v63, %v12449_v56  ;;  %v12483_v46 = vmul.f32 1.442695, %v12480_v55 }
0x1978   : > { %30366 = vrcp.f32 %v12453_v16  ;;  %v12481_v26 = vmul.f32 1.442695, %v12479_v0 }
0x1979   : > { %30368 = vpow2.f32 %v12483_v46 }
0x197a   : > { %30370 = vpow2.f32 %v12481_v26 }
0x1983   : > { %v30365_v51 = vpop.eup %30364 }
0x1984   : > { %v12460_v40 = vmul.f32 1.0614054, %v30365_v51 }
0x1985   : > { %v30367_v58 = vpop.eup %30366 }
0x1986   : > { %v12462_v61 = vadd.f32 -1.4531521, %v12460_v40  ;;  %v12459_v3 = vmul.f32 1.0614054, %v30367_v58  ;;  %v30369_v55 = vpop.eup %30368 }
0x1987   : > { %v30371_v0 = vpop.eup %30370 }
0x1988   : > { %v12464_v27 = vmul.f32 %v30365_v51, %v12462_v61  ;;  %v12461_v7 = vadd.f32 -1.4531521, %v12459_v3 }
0x198a   : > { %v12466_v13 = vadd.f32 1.4214138, %v12464_v27  ;;  %v12463_v28 = vmul.f32 %v30367_v58, %v12461_v7  ;;  %v12446_v7 = vmul.f32 0.5, %v12442_v32 }
0x198c   : > { %v12468_v60 = vmul.f32 %v30365_v51, %v12466_v13  ;;  %v12465_v23 = vadd.f32 1.4214138, %v12463_v28 }
0x198e   : > { %v12470_v52 = vadd.f32 -0.28449672, %v12468_v60  ;;  %v12467_v9 = vmul.f32 %v30367_v58, %v12465_v23 }
0x1990   : > { %v12472_v16 = vmul.f32 %v30365_v51, %v12470_v52  ;;  %v12469_v62 = vadd.f32 -0.28449672, %v12467_v9  ;;  %v12445_v52 = vmul.f32 0.5, %v12436_v59 }
0x1992   : > { %v12474_v11 = vadd.f32 0.2548296, %v12472_v16  ;;  %v12471_v56 = vmul.f32 %v30367_v58, %v12469_v62 }
0x1994   : > { %v12476_v63 = vmul.f32 %v30365_v51, %v12474_v11  ;;  %v12473_v49 = vadd.f32 0.2548296, %v12471_v56 }
0x1996   : > { %v12486_v40 = vmul.f32 %v30369_v55, %v12476_v63  ;;  %v12475_v41 = vmul.f32 %v30367_v58, %v12473_v49 }
0x1998   : > { %v12488_v61 = vsub.f32 1.0, %v12486_v40  ;;  %v12485_v46 = vmul.f32 %v30371_v0, %v12475_v41  ;;  %v35854_v40 = vld [vmem:[#allocation135_spill] sm:$0xff] }
0x199a   : > { %v12492_v3 = vsub.f32 0.0, %v12488_v61  ;;  %v12487_v27 = vsub.f32 1.0, %v12485_v46 }
0x199c   : > { %v12494_v26 = vsel %vm12490_vm6, %v12488_v61, %v12492_v3  ;;  %v12491_v28 = vsub.f32 0.0, %v12487_v27  ;;  %v30426_v61 = vld [vmem:[#allocation2 + $0x8] sm:$0xff]  ;;  %v35855_v3 = vld [vmem:[#allocation136_spill] sm:$0xff] }
0x199d   : > { %v12496_v13 = vadd.f32 1.0, %v12494_v26 }
0x199e   : > { %v12493_v23 = vsel %vm12489_vm7, %v12487_v27, %v12491_v28 }
0x199f   : > { %v12498_v60 = vmul.f32 %v12496_v13, %v12446_v7  ;;  %v12495_v9 = vadd.f32 1.0, %v12493_v23  ;;  %v30427_v7 = vld [vmem:[#allocation2] sm:$0xff]  ;;  %v13239_v23 = vld [vmem:[%s32451_s15 + $0x10] sm:$0xff] }
0x19a1   : > { %v33615_v51 = vand.u32 4294901760, %v12498_v60  ;;  %v12497_v16 = vmul.f32 %v12495_v9, %v12445_v52  ;;  %v13238_v52 = vld [vmem:[%s32451_s15 + $0x8] sm:$0xff] }
0x19a3   : > { %v33618_v49 = vsub.f32 %v12498_v60, %v33615_v51  ;;  %v33620_v58 = vand.u32 4294901760, %v12497_v16  ;;  %v13240_v60 = vld [vmem:[%s32451_s15 + $0x18] sm:$0xff] }
0x19a4   : > { %v33773_v9 = vand.u32 4294901760, %v13240_v60 }
0x19a5   : > { %v12598_v41 = vand.u32 4294901760, %v33618_v49  ;;  %28717 = vmatprep.mubr.f32.mxu1 %v33620_v58  ;;  %v12587_v32 = vsub.f32 %v12497_v16, %v33620_v58  ;;  %v33777_v16 = vand.u32 4294901760, %v13238_v52 }
0x19a6   : > { %28718 = vmatmul.mubr.f32.vlgmr.msra.gmra.mxu1 %v33615_v51 }
0x19a7   : > { %28756 = vmatpush3.msra.mxu1 %v33404_v30  ;;  %v12588_v39 = vand.u32 4294901760, %v12587_v32  ;;  %v12599_v14 = vsub.f32 %v33618_v49, %v12598_v41 }
0x19a8   : > { %28757 = vmatprep.subr.mxu1 %v33410_v8 }
0x19a9   : > { %28758 = vmatpush3.msra.mxu1 %v33410_v8  ;;  %28787 = vmatprep.mubr.f32.mxu1 %v12588_v39  ;;  %v12589_v59 = vsub.f32 %v12587_v32, %v12588_v39  ;;  %v12600_v11 = vand.u32 4294901760, %v12599_v14 }
0x19aa   : > { %28759 = vmatprep.subr.mxu1 %v33421_v19 }
0x19ab   : > { %28760 = vmatpush3.msra.mxu1 %v33421_v19  ;;  %v12590_v62 = vand.u32 4294901760, %v12589_v59 }
0x19ac   : > { %28761 = vmatprep.subr.mxu1 %v33434_v57 }
0x19ad   : > { %28762 = vmatpush3.msra.mxu1 %v33434_v57  ;;  %28682 = vmatprep.mubr.f32.mxu0 %v12590_v62 }
0x19ae   : > { %28763 = vmatprep.subr.mxu1 %v33448_v25  ;;  %28683 = vmatmul.mubr.f32.vlgmr.msra.gmra.mxu0 %v12600_v11 }
0x19af   : > { %28721 = vmatpush3.msra.mxu0 %v33408_v42  ;;  %28764 = vmatpush3.msra.mxu1 %v33448_v25  ;;  %v35840_v42 = vld [vmem:[#allocation138_spill] sm:$0xff] }
0x19b0   : > { %28722 = vmatprep.subr.mxu0 %v33419_v21  ;;  %28752 = vmatprep.mubr.f32.mxu0 %v12587_v32  ;;  %v13237_v32 = vld [vmem:[%s32451_s15] sm:$0xff]  ;;  %s35862_s15 = scalar_lea.vmem [#allocation24], %s32346_s19 }
0x19b1   : > { %28765 = vmatprep.subr.mxu1 %v33457_v1  ;;  %28723 = vmatpush3.msra.mxu0 %v33419_v21  ;;  %v35843_v21 = vld [vmem:[#allocation141_spill] sm:$0xff] }
0x19b2   : > { %28766 = vmatpush3.msra.mxu1 %v33457_v1  ;;  %28724 = vmatprep.subr.mxu0 %v33432_v17 }
0x19b3   : > { %28767 = vmatprep.subr.mxu1 %v33469_v35  ;;  %28725 = vmatpush3.msra.mxu0 %v33432_v17  ;;  %v35846_v17 = vld [vmem:[#allocation144_spill] sm:$0xff] }
0x19b4   : > { %28768 = vmatpush3.msra.mxu1 %v33469_v35  ;;  %28726 = vmatprep.subr.mxu0 %v33445_v22 }
0x19b5   : > { %28769 = vmatprep.subr.mxu1 %v33483_v54  ;;  %28727 = vmatpush3.msra.mxu0 %v33445_v22  ;;  %v35849_v22 = vld [vmem:[#allocation127_spill] sm:$0xff] }
0x19b6   : > { %28770 = vmatpush3.msra.mxu1 %v33483_v54  ;;  %28728 = vmatprep.subr.mxu0 %v33460_v31 }
0x19b7   : > { %28771 = vmatprep.subr.mxu1 %v33498_v53  ;;  %28729 = vmatpush3.msra.mxu0 %v33460_v31 }
0x19b8   : > { %28772 = vmatpush3.msra.mxu1 %v33498_v53  ;;  %28730 = vmatprep.subr.mxu0 %v33467_v34 }
0x19b9   : > { %28773 = vmatprep.subr.mxu1 %v33512_v18  ;;  %28731 = vmatpush3.msra.mxu0 %v33467_v34  ;;  %v26726_v34 = vld [vmem:[%s35853_s4] ss:$0 sm:$0xff] }
0x19ba   : > { %28774 = vmatpush3.msra.mxu1 %v33512_v18  ;;  %28732 = vmatprep.subr.mxu0 %v33481_v50 }
0x19bb   : > { %28775 = vmatprep.subr.mxu1 %v33521_v37  ;;  %28733 = vmatpush3.msra.mxu0 %v33481_v50 }
0x19bc   : > { %28776 = vmatpush3.msra.mxu1 %v33521_v37  ;;  %28734 = vmatprep.subr.mxu0 %v33496_v2 }
0x19bd   : > { %28777 = vmatprep.subr.mxu1 %v33534_v15  ;;  %28735 = vmatpush3.msra.mxu0 %v33496_v2 }
0x19be   : > { %28778 = vmatpush3.msra.mxu1 %v33534_v15  ;;  %28736 = vmatprep.subr.mxu0 %v33509_v5 }
0x19bf   : > { %28779 = vmatprep.subr.mxu1 %v33548_v48  ;;  %28737 = vmatpush3.msra.mxu0 %v33509_v5 }
0x19c0   : > { %28780 = vmatpush3.msra.mxu1 %v33548_v48  ;;  %28738 = vmatprep.subr.mxu0 %v33525_v10 }
0x19c1   : > { %28781 = vmatprep.subr.mxu1 %v33563_v43  ;;  %28739 = vmatpush3.msra.mxu0 %v33525_v10 }
0x19c2   : > { %28782 = vmatpush3.msra.mxu1 %v33563_v43  ;;  %28740 = vmatprep.subr.mxu0 %v33532_v24 }
0x19c3   : > { %28783 = vmatprep.subr.mxu1 %v33577_v38  ;;  %28741 = vmatpush3.msra.mxu0 %v33532_v24 }
0x19c4   : > { %28784 = vmatpush3.msra.mxu1 %v33577_v38  ;;  %28742 = vmatprep.subr.mxu0 %v33546_v33 }
0x19c5   : > { %28785 = vmatprep.subr.mxu1 %v33586_v44  ;;  %28743 = vmatpush3.msra.mxu0 %v33546_v33 }
0x19c6   : > { %28786 = vmatpush3.msra.mxu1 %v33586_v44  ;;  %28744 = vmatprep.subr.mxu0 %v33561_v36 }
0x19c7   : > { %28788 = vmatmul.mubr.f32.vlgmr.msra.gmra.mxu1 %v12598_v41  ;;  %28825 = vmatprep.subr.mxu1 %v33404_v30  ;;  %v13377_v41 = vsub.f32 %v13238_v52, %v33777_v16 }
0x19c8   : > { %28745 = vmatpush3.msra.mxu0 %v33561_v36  ;;  %28826 = vmatpush3.msra.mxu1 %v33404_v30  ;;  %v35839_v30 = vld [vmem:[#allocation137_spill] sm:$0xff] }
0x19c9   : > { %28857 = vmatprep.mubr.f32.mxu1 %v33620_v58  ;;  %28746 = vmatprep.subr.mxu0 %v33574_v4  ;;  %v13378_v59 = vand.u32 4294901760, %v13377_v41 }
0x19ca   : > { %28827 = vmatprep.subr.mxu1 %v33410_v8  ;;  %28747 = vmatpush3.msra.mxu0 %v33574_v4 }
0x19cb   : > { %28828 = vmatpush3.msra.mxu1 %v33410_v8  ;;  %28748 = vmatprep.subr.mxu0 %v33590_v47  ;;  %v35841_v8 = vld [vmem:[#allocation139_spill] sm:$0xff] }
0x19cc   : > { %28829 = vmatprep.subr.mxu1 %v33421_v19  ;;  %28749 = vmatpush3.msra.mxu0 %v33590_v47 }
0x19cd   : > { %28830 = vmatpush3.msra.mxu1 %v33421_v19  ;;  %28750 = vmatprep.subr.mxu0 %v33596_v6  ;;  %v35844_v19 = vld [vmem:[#allocation142_spill] sm:$0xff] }
0x19ce   : > { %28831 = vmatprep.subr.mxu1 %v33434_v57  ;;  %28751 = vmatpush3.msra.mxu0 %v33596_v6 }
0x19cf   : > { %28832 = vmatpush3.msra.mxu1 %v33434_v57  ;;  %28753 = vmatmul.mubr.f32.vlgmr.msra.gmra.mxu0 %v33618_v49  ;;  %v35847_v57 = vld [vmem:[#allocation145_spill] sm:$0xff]  ;;  %v13363_v49 = vsub.f32 %v13240_v60, %v33773_v9 }
0x19d0   : > { %28790 = vmatprep.subr.mxu0 %v33416_v12  ;;  %28833 = vmatprep.subr.mxu1 %v33448_v25 }
0x19d1   : > { %28791 = vmatpush3.msra.mxu0 %v33416_v12  ;;  %28822 = vmatprep.mubr.f32.mxu0 %v33620_v58  ;;  %v35842_v12 = vld [vmem:[#allocation140_spill] sm:$0xff]  ;;  %v13364_v39 = vand.u32 4294901760, %v13363_v49 }
0x19d2   : > { %28834 = vmatpush3.msra.mxu1 %v33448_v25  ;;  %28792 = vmatprep.subr.mxu0 %v33429_v45  ;;  %v35850_v25 = vld [vmem:[#allocation147_spill] sm:$0xff] }
0x19d3   : > { %28835 = vmatprep.subr.mxu1 %v33457_v1  ;;  %28793 = vmatpush3.msra.mxu0 %v33429_v45  ;;  %v35845_v45 = vld [vmem:[#allocation143_spill] sm:$0xff]  ;;  %v13365_v62 = vsub.f32 %v13363_v49, %v13364_v39 }
0x19d4   : > { %28836 = vmatpush3.msra.mxu1 %v33457_v1  ;;  %28794 = vmatprep.subr.mxu0 %v33442_v20  ;;  %v35852_v1 = vld [vmem:[#allocation133_spill] sm:$0xff] }
0x19d5   : > { %28837 = vmatprep.subr.mxu1 %v33469_v35  ;;  %28795 = vmatpush3.msra.mxu0 %v33442_v20  ;;  %v35848_v20 = vld [vmem:[#allocation146_spill] sm:$0xff] }
0x19d6   : > { %28838 = vmatpush3.msra.mxu1 %v33469_v35  ;;  %28796 = vmatprep.subr.mxu0 %v33455_v29 }
0x19d7   : > { %28839 = vmatprep.subr.mxu1 %v33483_v54  ;;  %28797 = vmatpush3.msra.mxu0 %v33455_v29  ;;  %v35851_v29 = vld [vmem:[#allocation148_spill] sm:$0xff] }
0x19d8   : > { %28840 = vmatpush3.msra.mxu1 %v33483_v54  ;;  %28798 = vmatprep.subr.mxu0 %v35839_v30 }
0x19d9   : > { %28841 = vmatprep.subr.mxu1 %v33498_v53  ;;  %28799 = vmatpush3.msra.mxu0 %v35839_v30  ;;  %v33788_v30 = vand.u32 4294901760, %v13237_v32 }
0x19da   : > { %28842 = vmatpush3.msra.mxu1 %v33498_v53  ;;  %28800 = vmatprep.subr.mxu0 %v35840_v42 }
0x19db   : > { %28843 = vmatprep.subr.mxu1 %v33512_v18  ;;  %28801 = vmatpush3.msra.mxu0 %v35840_v42  ;;  %v13379_v42 = vsub.f32 %v13377_v41, %v13378_v59 }
0x19dc   : > { %28844 = vmatpush3.msra.mxu1 %v33512_v18  ;;  %28802 = vmatprep.subr.mxu0 %v35841_v8 }
0x19dd   : > { %28845 = vmatprep.subr.mxu1 %v33521_v37  ;;  %28803 = vmatpush3.msra.mxu0 %v35841_v8  ;;  %v13366_v8 = vand.u32 4294901760, %v13365_v62 }
0x19de   : > { %28846 = vmatpush3.msra.mxu1 %v33521_v37  ;;  %28804 = vmatprep.subr.mxu0 %v35842_v12 }
0x19df   : > { %28847 = vmatprep.subr.mxu1 %v33534_v15  ;;  %28805 = vmatpush3.msra.mxu0 %v35842_v12 }
0x19e0   : > { %28848 = vmatpush3.msra.mxu1 %v33534_v15  ;;  %28806 = vmatprep.subr.mxu0 %v35843_v21 }
0x19e1   : > { %28849 = vmatprep.subr.mxu1 %v33548_v48  ;;  %28807 = vmatpush3.msra.mxu0 %v35843_v21  ;;  %v13380_v21 = vand.u32 4294901760, %v13379_v42 }
0x19e2   : > { %28850 = vmatpush3.msra.mxu1 %v33548_v48  ;;  %28808 = vmatprep.subr.mxu0 %v35844_v19 }
0x19e3   : > { %28851 = vmatprep.subr.mxu1 %v33563_v43  ;;  %28809 = vmatpush3.msra.mxu0 %v35844_v19  ;;  %v35856_v19 = vld [vmem:[#allocation134_spill] sm:$0xff] }
0x19e4   : > { %28852 = vmatpush3.msra.mxu1 %v33563_v43  ;;  %28810 = vmatprep.subr.mxu0 %v35845_v45 }
0x19e5   : > { %28853 = vmatprep.subr.mxu1 %v33577_v38  ;;  %28811 = vmatpush3.msra.mxu0 %v35845_v45  ;;  %v35857_v45 = vld [vmem:[#allocation129_spill] sm:$0xff] }
0x19e6   : > { %28854 = vmatpush3.msra.mxu1 %v33577_v38  ;;  %28812 = vmatprep.subr.mxu0 %v35846_v17 }
0x19e7   : > { %28855 = vmatprep.subr.mxu1 %v33586_v44  ;;  %28813 = vmatpush3.msra.mxu0 %v35846_v17 }
0x19e8   : > { %28856 = vmatpush3.msra.mxu1 %v33586_v44  ;;  %28814 = vmatprep.subr.mxu0 %v35847_v57 }
0x19e9   : > { %28858 = vmatmul.mubr.f32.vlgmr.msra.gmra.mxu1 %v33615_v51  ;;  %28815 = vmatpush3.msra.mxu0 %v35847_v57 }
0x19ea   : > { %28816 = vmatprep.subr.mxu0 %v35848_v20  ;;  %28879 = vmatprep.mubr.f32.mxu1 %v35849_v22 }
0x19eb   : > { %28817 = vmatpush3.msra.mxu0 %v35848_v20  ;;  %28871 = vmatprep.subr.mxu1 %v13366_v8 }
0x19ec   : > { %28818 = vmatprep.subr.mxu0 %v35850_v25  ;;  %28872 = vmatpush3.msra.mxu1 %v13366_v8 }
0x19ed   : > { %28819 = vmatpush3.msra.mxu0 %v35850_v25 }
0x19ee   : > { %28820 = vmatprep.subr.mxu0 %v35851_v29 }
0x19ef   : > { %28821 = vmatpush3.msra.mxu0 %v35851_v29 }
0x19f0   : > { %28823 = vmatmul.mubr.f32.vlgmr.msra.gmra.mxu0 %v33615_v51  ;;  %v33775_v51 = vand.u32 4294901760, %v13239_v23  ;;  %28860 = vmatprep.subr.mxu0 %v33773_v9 }
0x19f1   : > { %28868 = vmatprep.mubr.f32.mxu0 %v35852_v1  ;;  %28861 = vmatpush3.msra.mxu0 %v33773_v9 }
0x19f2   : > { %v13370_v58 = vsub.f32 %v13239_v23, %v33775_v51  ;;  %28862 = vmatprep.subr.mxu0 %v33775_v51  ;;  %v33886_v23 = vld [vmem:[%s35862_s15] ss:$0 sm:$0xff] }
0x19f3   : > { %28863 = vmatpush3.msra.mxu0 %v33775_v51 }
0x19f4   : > { %v13371_v14 = vand.u32 4294901760, %v13370_v58  ;;  %28864 = vmatprep.subr.mxu0 %v33777_v16 }
0x19f5   : > { %28865 = vmatpush3.msra.mxu0 %v33777_v16 }
0x19f6   : > { %v13372_v11 = vsub.f32 %v13370_v58, %v13371_v14  ;;  %28866 = vmatprep.subr.mxu0 %v33788_v30 }
0x19f7   : > { %28867 = vmatpush3.msra.mxu0 %v33788_v30 }
0x19f8   : > { %v13373_v12 = vand.u32 4294901760, %v13372_v11  ;;  %28882 = vmatprep.subr.mxu0 %v13363_v49  ;;  %28869 = vmatmul.mubr.f32.vlgmr.msra.gmra.mxu0 %v35856_v19 }
0x19f9   : > { %28883 = vmatpush3.msra.mxu0 %v13363_v49  ;;  %28890 = vmatprep.mubr.f32.mxu0 %v35857_v45 }
0x19fa   : > { %28873 = vmatprep.subr.mxu1 %v13373_v12  ;;  %28884 = vmatprep.subr.mxu0 %v13370_v58 }
0x19fb   : > { %28874 = vmatpush3.msra.mxu1 %v13373_v12  ;;  %28885 = vmatpush3.msra.mxu0 %v13370_v58 }
0x19fc   : > { %28875 = vmatprep.subr.mxu1 %v13380_v21  ;;  %28886 = vmatprep.subr.mxu0 %v13377_v41 }
0x19fd   : > { %28876 = vmatpush3.msra.mxu1 %v13380_v21  ;;  %28887 = vmatpush3.msra.mxu0 %v13377_v41 }
0x1a66   : > { %v28719_v35 = vpop.f32.mrf.mxu1 }
0x1a68   : > { %v12753_v5 = vpop.f32.mrf.mxu1 }
0x1a6e   : > { %v28684_v31 = vpop.f32.mrf.mxu0 }
0x1a6f   : > { %v12603_v54 = vadd.f32 %v28684_v31, %v26726_v34 }
0x1a70   : > { %v12592_v50 = vpop.f32.mrf.mxu0 }
0x1a71   : > { %v12593_v53 = vadd.f32 %v26726_v34, %v12592_v50  ;;  %v12760_v18 = vadd.f32 %v28719_v35, %v12603_v54  ;;  %v13384_v54 = vsub.f32 %v13237_v32, %v33788_v30 }
0x1a73   : > { %v12754_v15 = vadd.f32 %v12753_v5, %v12593_v53  ;;  %28888 = vmatprep.subr.mxu0 %v13384_v54  ;;  %v35858_v5 = vld [vmem:[#allocation130_spill] sm:$0xff] }
0x1a74   : > { %28889 = vmatpush3.msra.mxu0 %v13384_v54 }
0x1a75   : > { %28904 = vmatprep.subr.mxu0 %v13364_v39  ;;  %28891 = vmatmul.mubr.f32.vlgmr.msra.gmra.mxu0 %v35858_v5  ;;  %v14323_v5 = vld [vmem:[%s32457_s7] sm:$0xff] }
0x1a76   : > { %28905 = vmatpush3.msra.mxu0 %v13364_v39  ;;  %28912 = vmatprep.mubr.f32.mxu0 %v35849_v22  ;;  %v26727_v39 = vld [vmem:[%s35863_s6] ss:$0 sm:$0xff] }
0x1a77   : > { %28906 = vmatprep.subr.mxu0 %v13371_v14 }
0x1a78   : > { %28907 = vmatpush3.msra.mxu0 %v13371_v14 }
0x1a79   : > { %28908 = vmatprep.subr.mxu0 %v13378_v59 }
0x1a7a   : > { %28909 = vmatpush3.msra.mxu0 %v13378_v59 }
0x1a87   : > { %v28789_v37 = vpop.f32.mrf.mxu1 }
0x1a89   : > { %v12959_v48 = vpop.f32.mrf.mxu1 }
0x1a8f   : > { %v28754_v2 = vpop.f32.mrf.mxu0 }
0x1a90   : > { %v12871_v24 = vadd.f32 %v28754_v2, %v12760_v18  ;;  %v13385_v2 = vand.u32 4294901760, %v13384_v54 }
0x1a91   : > { %v12863_v10 = vpop.f32.mrf.mxu0 }
0x1a92   : > { %v12864_v33 = vadd.f32 %v12863_v10, %v12754_v15  ;;  %v12968_v36 = vadd.f32 %v28789_v37, %v12871_v24  ;;  %v13386_v53 = vsub.f32 %v13384_v54, %v13385_v2  ;;  %v35859_v37 = vld [vmem:[#allocation128_spill] sm:$0xff]  ;;  %v35860_v10 = vld [vmem:[#allocation131_spill] sm:$0xff]  ;;  %28910 = vmatprep.subr.mxu0 %v13385_v2 }
0x1a93   : > { %28911 = vmatpush3.msra.mxu0 %v13385_v2  ;;  %v35861_v24 = vld [vmem:[#allocation132_spill] sm:$0xff] }
0x1a94   : > { %v12960_v44 = vadd.f32 %v12959_v48, %v12864_v33  ;;  %v13387_v18 = vand.u32 4294901760, %v13386_v53  ;;  %28913 = vmatmul.mubr.f32.vlgmr.msra.gmra.mxu0 %v35859_v37  ;;  %v13781_v15 = vld [vmem:[%s32454_s18 + $0x18] sm:$0xff]  ;;  %v13780_v48 = vld [vmem:[%s32454_s18 + $0x10] sm:$0xff] }
0x1a95   : > { %v33824_v33 = vand.u32 4294901760, %v13781_v15 }
0x1a96   : > { %28877 = vmatprep.subr.mxu1 %v13387_v18 }
0x1a97   : > { %28878 = vmatpush3.msra.mxu1 %v13387_v18  ;;  %28926 = vmatprep.subr.mxu0 %v33824_v33 }
0x1a98   : > { %28893 = vmatprep.subr.mxu1 %v33773_v9  ;;  %28880 = vmatmul.mubr.f32.vlgmr.msra.gmra.mxu1 %v35859_v37 }
0x1a99   : > { %28894 = vmatpush3.msra.mxu1 %v33773_v9  ;;  %28901 = vmatprep.mubr.f32.mxu1 %v35860_v10 }
0x1a9a   : > { %28895 = vmatprep.subr.mxu1 %v33775_v51  ;;  %28927 = vmatpush3.msra.mxu0 %v33824_v33 }
0x1a9b   : > { %28896 = vmatpush3.msra.mxu1 %v33775_v51 }
0x1a9c   : > { %28897 = vmatprep.subr.mxu1 %v33777_v16 }
0x1a9d   : > { %28898 = vmatpush3.msra.mxu1 %v33777_v16 }
0x1a9e   : > { %28899 = vmatprep.subr.mxu1 %v33788_v30 }
0x1a9f   : > { %28900 = vmatpush3.msra.mxu1 %v33788_v30 }
0x1aa0   : > { %28915 = vmatprep.subr.mxu1 %v33773_v9  ;;  %28902 = vmatmul.mubr.f32.vlgmr.msra.gmra.mxu1 %v35861_v24  ;;  %v33952_v24 = vand.u32 4294901760, %v14323_v5 }
0x1aa1   : > { %28916 = vmatpush3.msra.mxu1 %v33773_v9  ;;  %28923 = vmatprep.mubr.f32.mxu1 %v35849_v22 }
0x1aa2   : > { %28917 = vmatprep.subr.mxu1 %v33775_v51 }
0x1aa3   : > { %28918 = vmatpush3.msra.mxu1 %v33775_v51 }
0x1aa4   : > { %28919 = vmatprep.subr.mxu1 %v33777_v16 }
0x1aa5   : > { %28920 = vmatpush3.msra.mxu1 %v33777_v16 }
0x1aa6   : > { %28921 = vmatprep.subr.mxu1 %v33788_v30 }
0x1aa7   : > { %28922 = vmatpush3.msra.mxu1 %v33788_v30 }
0x1aa8   : > { %28924 = vmatmul.mubr.f32.vlgmr.msra.gmra.mxu1 %v35859_v37 }
0x1aa9   : > { %v28859_v43 = vpop.f32.mrf.mxu1 }
0x1aab   : > { %v13179_v63 = vpop.f32.mrf.mxu1 }
0x1ab0   : > { %v28824_v4 = vpop.f32.mrf.mxu0 }
0x1ab1   : > { %v13093_v38 = vadd.f32 %v28824_v4, %v12968_v36  ;;  %v33830_v36 = vsub.f32 %v13781_v15, %v33824_v33  ;;  %v13779_v4 = vld [vmem:[%s32454_s18 + $0x8] sm:$0xff] }
0x1ab2   : > { %v13086_v47 = vpop.f32.mrf.mxu0 }
0x1ab3   : > { %v13186_v6 = vadd.f32 %v28859_v43, %v13093_v38  ;;  %v13087_v56 = vadd.f32 %v13086_v47, %v12960_v44  ;;  %v33832_v43 = vand.u32 4294901760, %v13780_v48  ;;  %v33840_v22 = vand.u32 4294901760, %v33830_v36  ;;  %v13778_v47 = vld [vmem:[%s32454_s18] sm:$0xff]  ;;  %s35864_s18 = scalar_lea.vmem [#allocation22], %s32346_s19 }
0x1ab4   : > { %v33845_v44 = vand.u32 4294901760, %v13779_v4  ;;  %v26728_v62 = vld [vmem:[%s35864_s18] ss:$0 sm:$0xff] }
0x1ab5   : > { %v13180_v55 = vadd.f32 %v13179_v63, %v13087_v56  ;;  %v13190_v0 = vadd.f32 %v13186_v6, %v35854_v40  ;;  %v33843_v38 = vsub.f32 %v13780_v48, %v33832_v43  ;;  %28928 = vmatprep.subr.mxu0 %v33832_v43  ;;  %v13912_v6 = vsub.f32 %v33830_v36, %v33840_v22 }
0x1ab6   : > { %28929 = vmatpush3.msra.mxu0 %v33832_v43  ;;  %v33858_v63 = vsub.f32 %v13779_v4, %v33845_v44 }
0x1ab7   : > { %v13192_v46 = vadd.f32 %v30426_v61, %v13190_v0  ;;  %v13189_v27 = vadd.f32 %v13180_v55, %v35855_v3  ;;  %v33855_v56 = vand.u32 4294901760, %v33843_v38  ;;  %v33860_v55 = vand.u32 4294901760, %v13778_v47  ;;  %28930 = vmatprep.subr.mxu0 %v33845_v44 }
0x1ab8   : > { %28931 = vmatpush3.msra.mxu0 %v33845_v44  ;;  %v13913_v40 = vand.u32 4294901760, %v13912_v6  ;;  %v33868_v61 = vand.u32 4294901760, %v33858_v63  ;;  %v28870_v60 = vpop.f32.mrf.mxu0  ;;  %v33974_v6 = vsub.f32 %v14323_v5, %v33952_v24 }
0x1ab9   : > { %v13198_v26 = vsel %vm2298_vm1, %v13192_v46, 0.0  ;;  %v13191_v13 = vadd.f32 %v30427_v7, %v13189_v27  ;;  %v13919_v0 = vsub.f32 %v33843_v38, %v33855_v56  ;;  %28932 = vmatprep.subr.mxu0 %v33860_v55  ;;  %v33889_v52 = vadd.f32 %v28870_v60, %v33886_v23 }
0x1aba   : > { %13199 = vadd.xlane.f32.xlu1 %v13198_v26  ;;  %28933 = vmatpush3.msra.mxu0 %v33860_v55  ;;  %v13926_v27 = vsub.f32 %v33858_v63, %v33868_v61 }
0x1abb   : > { %v13195_v28 = vsel %vm2298_vm1, %v13191_v13, 0.0  ;;  %28937 = vmatprep.subr.mxu1 %v13913_v40  ;;  %v13920_v3 = vand.u32 4294901760, %v13919_v0  ;;  %28948 = vmatprep.subr.mxu0 %v33830_v36  ;;  %v33992_v0 = vand.u32 4294901760, %v33974_v6 }
0x1abc   : > { %13196 = vadd.xlane.f32.xlu0 %v13195_v28  ;;  %28938 = vmatpush3.msra.mxu1 %v13913_v40  ;;  %v13927_v7 = vand.u32 4294901760, %v13926_v27 }
0x1abd   : > { %28939 = vmatprep.subr.mxu1 %v13920_v3 }
0x1abe   : > { %28940 = vmatpush3.msra.mxu1 %v13920_v3 }
0x1abf   : > { %28941 = vmatprep.subr.mxu1 %v13927_v7 }
0x1ac0   : > { %28942 = vmatpush3.msra.mxu1 %v13927_v7 }
0x1b43   : > { %v13200_v17 = vpop.xlane.xlu1 %13199 }
0x1b44   : > { %v13202_v57 = vmul.f32 0.03125, %v13200_v17  ;;  %v14326_v17 = vld [vmem:[%s32457_s7 + $0x18] sm:$0xff] }
0x1b45   : > { %v13197_v20 = vpop.xlane.xlu0 %13196 }
0x1b46   : > { %v33795_v25 = vsub.f32 %v13192_v46, %v13202_v57  ;;  %v13201_v29 = vmul.f32 0.03125, %v13197_v20  ;;  %v33871_v46 = vsub.f32 %v13778_v47, %v33860_v55 }
0x1b48   : > { %v33797_v1 = vsub.f32 %v13191_v13, %v13201_v29  ;;  %v13206_v31 = vmul.f32 %v33795_v25, %v33795_v25  ;;  %v33878_v26 = vand.u32 4294901760, %v33871_v46 }
0x1b4a   : > { %v13210_v34 = vsel %vm2298_vm1, %v13206_v31, 0.0  ;;  %v13205_v35 = vmul.f32 %v33797_v1, %v33797_v1  ;;  %v13933_v13 = vsub.f32 %v33871_v46, %v33878_v26  ;;  %v14325_v31 = vld [vmem:[%s32457_s7 + $0x10] sm:$0xff] }
0x1b4b   : > { %13211 = vadd.xlane.f32.xlu1 %v13210_v34 }
0x1b4c   : > { %v13207_v50 = vsel %vm2298_vm1, %v13205_v35, 0.0  ;;  %v13934_v28 = vand.u32 4294901760, %v13933_v13  ;;  %v14324_v35 = vld [vmem:[%s32457_s7 + $0x8] sm:$0xff]  ;;  %s35876_s7 = scalar_lea.vmem [#allocation25], %s32346_s19 }
0x1b4d   : > { %13208 = vadd.xlane.f32.xlu0 %v13207_v50  ;;  %v33930_v50 = vand.u32 4294901760, %v14325_v31  ;;  %v33943_v18 = vand.u32 4294901760, %v14324_v35 }
0x1b4e   : > { %28943 = vmatprep.subr.mxu1 %v13934_v28 }
0x1b4f   : > { %28944 = vmatpush3.msra.mxu1 %v13934_v28  ;;  %v33950_v10 = vsub.f32 %v14325_v31, %v33930_v50  ;;  %v33964_v4 = vsub.f32 %v14324_v35, %v33943_v18 }
0x1b50   : > { %28959 = vmatprep.subr.mxu1 %v33824_v33 }
0x1b51   : > { %v33971_v47 = vand.u32 4294901760, %v33950_v10 }
0x1bd4   : > { %v13212_v9 = vpop.xlane.xlu1 %13211 }
0x1bd5   : > { %v13214_v51 = vmul.f32 0.03125, %v13212_v9 }
0x1bd6   : > { %v13209_v16 = vpop.xlane.xlu0 %13208 }
0x1bd7   : > { %v13216_v49 = vadd.f32 1e-05, %v13214_v51  ;;  %v13213_v58 = vmul.f32 0.03125, %v13209_v16  ;;  %v35875_v51 = vmov 0.0  }
0x1bd9   : > { %30372 = vrsqrt.f32 %v13216_v49  ;;  %v13215_v41 = vadd.f32 1e-05, %v13213_v58 }
0x1bdb   : > { %30374 = vrsqrt.f32 %v13215_v41 }
0x1be6   : > { %v30373_v32 = vpop.eup %30372 }
0x1be7   : > { %v13220_v14 = vmul.f32 %v30373_v32, %v33795_v25 }
0x1be8   : > { %v30375_v59 = vpop.eup %30374 }
0x1be9   : > { %v13228_v11 = vmul.f32 %v26727_v39, %v13220_v14  ;;  %v13219_v30 = vmul.f32 %v30375_v59, %v33797_v1  ;;  %v33920_v1 = vand.u32 4294901760, %v14326_v17 }
0x1beb   : > { %v33897_v42 = vadd.f32 %v26728_v62, %v13228_v11  ;;  %v13227_v8 = vmul.f32 %v26727_v39, %v13219_v30  ;;  %v33939_v53 = vsub.f32 %v14326_v17, %v33920_v1 }
0x1bed   : > { %35865 = vst [vmem:[#allocation137_spill] sm:$0xff] %v33897_v42  ;;  %v13793_v12 = vsel %vm2298_vm1, %v33897_v42, 0  ;;  %v33901_v21 = vadd.f32 %v26728_v62, %v13227_v8  ;;  %v33959_v48 = vand.u32 4294901760, %v33939_v53  ;;  %v26730_v62 = vld [vmem:[%s35876_s7] ss:$0 sm:$0xff] }
0x1bee   : > { %v33903_v19 = vand.u32 4294901760, %v13793_v12 }
0x1bef   : > { %35866 = vst [vmem:[#allocation138_spill] sm:$0xff] %v33901_v21  ;;  %v13790_v45 = vsel %vm2298_vm1, %v33901_v21, 0  ;;  %v14451_v40 = vsub.f32 %v33939_v53, %v33959_v48 }
0x1bf0   : > { %35867 = vst [vmem:[#allocation139_spill] sm:$0xff] %v33903_v19  ;;  %v33908_v57 = vand.u32 4294901760, %v13790_v45  ;;  %v33911_v20 = vsub.f32 %v13793_v12, %v33903_v19 }
0x1bf2   : > { %35868 = vst [vmem:[#allocation140_spill] sm:$0xff] %v33908_v57  ;;  %35869 = vst [vmem:[#allocation141_spill] sm:$0xff] %v33911_v20  ;;  %28945 = vmatprep.mubr.f32.mxu1 %v33908_v57  ;;  %v33915_v25 = vsub.f32 %v13790_v45, %v33908_v57  ;;  %v33918_v29 = vand.u32 4294901760, %v33911_v20 }
0x1bf3   : > { %28946 = vmatmul.mubr.f32.vlgmr.msra.gmra.mxu1 %v33903_v19 }
0x1bf4   : > { %35870 = vst [vmem:[#allocation142_spill] sm:$0xff] %v33915_v25  ;;  %35871 = vst [vmem:[#allocation143_spill] sm:$0xff] %v33918_v29  ;;  %28960 = vmatpush3.msra.mxu1 %v33824_v33  ;;  %v33926_v34 = vand.u32 4294901760, %v33915_v25  ;;  %v13877_v2 = vsub.f32 %v33911_v20, %v33918_v29 }
0x1bf5   : > { %28961 = vmatprep.subr.mxu1 %v33832_v43 }
0x1bf6   : > { %35872 = vst [vmem:[#allocation144_spill] sm:$0xff] %v33926_v34  ;;  %28962 = vmatpush3.msra.mxu1 %v33832_v43  ;;  %28967 = vmatprep.mubr.f32.mxu1 %v33926_v34  ;;  %v13867_v54 = vsub.f32 %v33915_v25, %v33926_v34  ;;  %v33956_v15 = vand.u32 4294901760, %v13877_v2 }
0x1bf7   : > { %28963 = vmatprep.subr.mxu1 %v33845_v44 }
0x1bf8   : > { %28964 = vmatpush3.msra.mxu1 %v33845_v44  ;;  %v33946_v37 = vand.u32 4294901760, %v13867_v54  ;;  %35874 = vst [vmem:[#allocation146_spill] sm:$0xff] %v33956_v15 }
0x1bf9   : > { %28965 = vmatprep.subr.mxu1 %v33860_v55 }
0x1bfa   : > { %35873 = vst [vmem:[#allocation145_spill] sm:$0xff] %v33946_v37  ;;  %28966 = vmatpush3.msra.mxu1 %v33860_v55  ;;  %28934 = vmatprep.mubr.f32.mxu0 %v33946_v37 }
0x1bfb   : > { %28968 = vmatmul.mubr.f32.vlgmr.msra.gmra.mxu1 %v33918_v29  ;;  %28981 = vmatprep.subr.mxu1 %v33824_v33 }
0x1bfc   : > { %28935 = vmatmul.mubr.f32.vlgmr.msra.gmra.mxu0 %v33956_v15  ;;  %28982 = vmatpush3.msra.mxu1 %v33824_v33  ;;  %v33983_v33 = vand.u32 4294901760, %v33964_v4 }
0x1bfd   : > { %28949 = vmatpush3.msra.mxu0 %v33830_v36  ;;  %28989 = vmatprep.mubr.f32.mxu1 %v33908_v57  ;;  %v14458_v36 = vsub.f32 %v33950_v10, %v33971_v47 }
0x1bfe   : > { %28950 = vmatprep.subr.mxu0 %v33843_v38  ;;  %28956 = vmatprep.mubr.f32.mxu0 %v33915_v25 }
0x1bff   : > { %28983 = vmatprep.subr.mxu1 %v33832_v43  ;;  %28951 = vmatpush3.msra.mxu0 %v33843_v38  ;;  %v14452_v38 = vand.u32 4294901760, %v14451_v40 }
0x1c00   : > { %28984 = vmatpush3.msra.mxu1 %v33832_v43  ;;  %28952 = vmatprep.subr.mxu0 %v33858_v63  ;;  %v14465_v43 = vsub.f32 %v33964_v4, %v33983_v33 }
0x1c01   : > { %28985 = vmatprep.subr.mxu1 %v33845_v44  ;;  %28953 = vmatpush3.msra.mxu0 %v33858_v63  ;;  %v14459_v63 = vand.u32 4294901760, %v14458_v36 }
0x1c02   : > { %28986 = vmatpush3.msra.mxu1 %v33845_v44  ;;  %28954 = vmatprep.subr.mxu0 %v33871_v46  ;;  %v14472_v44 = vsub.f32 %v33974_v6, %v33992_v0 }
0x1c03   : > { %28987 = vmatprep.subr.mxu1 %v33860_v55  ;;  %28955 = vmatpush3.msra.mxu0 %v33871_v46  ;;  %v14466_v46 = vand.u32 4294901760, %v14465_v43 }
0x1c04   : > { %28988 = vmatpush3.msra.mxu1 %v33860_v55  ;;  %28957 = vmatmul.mubr.f32.vlgmr.msra.gmra.mxu0 %v33911_v20  ;;  %v14473_v55 = vand.u32 4294901760, %v14472_v44 }
0x1c05   : > { %28970 = vmatprep.subr.mxu0 %v33840_v22  ;;  %28990 = vmatmul.mubr.f32.vlgmr.msra.gmra.mxu1 %v33903_v19 }
0x1c06   : > { %29003 = vmatprep.subr.mxu1 %v14452_v38  ;;  %28971 = vmatpush3.msra.mxu0 %v33840_v22  ;;  %v13323_v22 = vpop.f32.mrf.mxu0 }
0x1c07   : > { %28978 = vmatprep.mubr.f32.mxu0 %v33908_v57  ;;  %29004 = vmatpush3.msra.mxu1 %v14452_v38  ;;  %v13324_v58 = vadd.f32 %v33886_v23, %v13323_v22 }
0x1c08   : > { %29011 = vmatprep.mubr.f32.mxu1 %v33908_v57  ;;  %28972 = vmatprep.subr.mxu0 %v33855_v56  ;;  %v28892_v3 = vpop.f32.mrf.mxu0 }
0x1c09   : > { %29005 = vmatprep.subr.mxu1 %v14459_v63  ;;  %28973 = vmatpush3.msra.mxu0 %v33855_v56  ;;  %v28881_v56 = vpop.f32.mrf.mxu1 }
0x1c0a   : > { %29006 = vmatpush3.msra.mxu1 %v14459_v63  ;;  %28974 = vmatprep.subr.mxu0 %v33868_v61  ;;  %v13510_v7 = vpop.f32.mrf.mxu0 }
0x1c0b   : > { %29007 = vmatprep.subr.mxu1 %v14466_v46  ;;  %28975 = vmatpush3.msra.mxu0 %v33868_v61  ;;  %v13431_v61 = vadd.f32 %v28881_v56, %v33889_v52  ;;  %v26731_v56 = vld [vmem:[%s35877_s3] ss:$0 sm:$0xff] }
0x1c0c   : > { %29008 = vmatpush3.msra.mxu1 %v14466_v46  ;;  %28976 = vmatprep.subr.mxu0 %v33878_v26  ;;  %v28914_v60 = vpop.f32.mrf.mxu0 }
0x1c0d   : > { %29009 = vmatprep.subr.mxu1 %v14473_v55  ;;  %28977 = vmatpush3.msra.mxu0 %v33878_v26  ;;  %v13518_v27 = vadd.f32 %v28892_v3, %v13431_v61  ;;  %v13424_v26 = vpop.f32.mrf.mxu1 }
0x1c0e   : > { %29010 = vmatpush3.msra.mxu1 %v14473_v55  ;;  %28979 = vmatmul.mubr.f32.vlgmr.msra.gmra.mxu0 %v33903_v19  ;;  %v13425_v41 = vadd.f32 %v13424_v26, %v13324_v58  ;;  %v13685_v14 = vpop.f32.mrf.mxu0 }
0x1c0f   : > { %28992 = vmatprep.subr.mxu0 %v33920_v1  ;;  %29012 = vmatmul.mubr.f32.vlgmr.msra.gmra.mxu1 %v33903_v19  ;;  %v28903_v13 = vpop.f32.mrf.mxu1 }
0x1c10   : > { %29025 = vmatprep.subr.mxu1 %v33920_v1  ;;  %28993 = vmatpush3.msra.mxu0 %v33920_v1  ;;  %v13603_v28 = vadd.f32 %v28903_v13, %v13518_v27  ;;  %v13511_v32 = vadd.f32 %v13510_v7, %v13425_v41 }
0x1c11   : > { %29000 = vmatprep.mubr.f32.mxu0 %v33946_v37  ;;  %29026 = vmatpush3.msra.mxu1 %v33920_v1  ;;  %v13594_v9 = vpop.f32.mrf.mxu1 }
0x1c12   : > { %29033 = vmatprep.mubr.f32.mxu1 %v33926_v34  ;;  %28994 = vmatprep.subr.mxu0 %v33930_v50  ;;  %v13692_v52 = vadd.f32 %v28914_v60, %v13603_v28  ;;  %v13595_v39 = vadd.f32 %v13594_v9, %v13511_v32 }
0x1c13   : > { %29027 = vmatprep.subr.mxu1 %v33930_v50  ;;  %28995 = vmatpush3.msra.mxu0 %v33930_v50  ;;  %v28925_v16 = vpop.f32.mrf.mxu1 }
0x1c14   : > { %29028 = vmatpush3.msra.mxu1 %v33930_v50  ;;  %28996 = vmatprep.subr.mxu0 %v33943_v18  ;;  %v34069_v49 = vadd.f32 %v28925_v16, %v13692_v52  ;;  %v13686_v59 = vadd.f32 %v13685_v14, %v13595_v39 }
0x1c15   : > { %29029 = vmatprep.subr.mxu1 %v33943_v18  ;;  %28997 = vmatpush3.msra.mxu0 %v33943_v18  ;;  %v13766_v11 = vpop.f32.mrf.mxu1 }
0x1c16   : > { %29030 = vmatpush3.msra.mxu1 %v33943_v18  ;;  %28998 = vmatprep.subr.mxu0 %v33952_v24  ;;  %v13767_v12 = vadd.f32 %v13766_v11, %v13686_v59 }
0x1c17   : > { %29031 = vmatprep.subr.mxu1 %v33952_v24  ;;  %28999 = vmatpush3.msra.mxu0 %v33952_v24 }
0x1c18   : > { %29032 = vmatpush3.msra.mxu1 %v33952_v24  ;;  %29001 = vmatmul.mubr.f32.vlgmr.msra.gmra.mxu0 %v33956_v15 }
0x1c19   : > { %29014 = vmatprep.subr.mxu0 %v33939_v53  ;;  %29034 = vmatmul.mubr.f32.vlgmr.msra.gmra.mxu1 %v33918_v29 }
0x1c1a   : > { %29047 = vmatprep.subr.mxu1 %v33920_v1  ;;  %29015 = vmatpush3.msra.mxu0 %v33939_v53 }
0x1c1b   : > { %29022 = vmatprep.mubr.f32.mxu0 %v33915_v25  ;;  %29048 = vmatpush3.msra.mxu1 %v33920_v1  ;;  %v34079_v1 = vmul.f32 0.35355338, %v13767_v12 }
0x1c1c   : > { %29055 = vmatprep.mubr.f32.mxu1 %v33908_v57  ;;  %29016 = vmatprep.subr.mxu0 %v33950_v10 }
0x1c1d   : > { %29049 = vmatprep.subr.mxu1 %v33930_v50  ;;  %29017 = vmatpush3.msra.mxu0 %v33950_v10  ;;  %v14863_v2 = vsel %vm3919_vm3, %v34079_v1, 0 }
0x1c1e   : > { %29050 = vmatpush3.msra.mxu1 %v33930_v50  ;;  %29018 = vmatprep.subr.mxu0 %v33964_v4  ;;  %v14934_v10 = vand.u32 4294901760, %v14863_v2 }
0x1c1f   : > { %29051 = vmatprep.subr.mxu1 %v33943_v18  ;;  %29019 = vmatpush3.msra.mxu0 %v33964_v4 }
0x1c20   : > { %29052 = vmatpush3.msra.mxu1 %v33943_v18  ;;  %29020 = vmatprep.subr.mxu0 %v33974_v6 }
0x1c21   : > { %29053 = vmatprep.subr.mxu1 %v33952_v24  ;;  %29021 = vmatpush3.msra.mxu0 %v33974_v6 }
0x1c22   : > { %29054 = vmatpush3.msra.mxu1 %v33952_v24  ;;  %29023 = vmatmul.mubr.f32.vlgmr.msra.gmra.mxu0 %v33911_v20 }
0x1c23   : > { %29036 = vmatprep.subr.mxu0 %v33959_v48  ;;  %29056 = vmatmul.mubr.f32.vlgmr.msra.gmra.mxu1 %v33903_v19 }
0x1c24   : > { %29037 = vmatpush3.msra.mxu0 %v33959_v48  ;;  %29044 = vmatprep.mubr.f32.mxu0 %v33908_v57 }
0x1c25   : > { %29038 = vmatprep.subr.mxu0 %v33971_v47  ;;  %29063 = vmatprep.subr.mxu1 %v35875_v51 }
0x1c26   : > { %29039 = vmatpush3.msra.mxu0 %v33971_v47  ;;  %29065 = vmatprep.mubr.msk.f32.mxu1 %vm31415_vm2, %v35875_v51  ;;  %v14935_v47 = vsub.f32 %v14863_v2, %v14934_v10 }
0x1c27   : > { %29040 = vmatprep.subr.mxu0 %v33983_v33 }
0x1c28   : > { %29041 = vmatpush3.msra.mxu0 %v33983_v33  ;;  %v14936_v63 = vand.u32 4294901760, %v14935_v47 }
0x1c29   : > { %29042 = vmatprep.subr.mxu0 %v33992_v0 }
0x1c2a   : > { %29043 = vmatpush3.msra.mxu0 %v33992_v0  ;;  %v14937_v22 = vsub.f32 %v14935_v47, %v14936_v63 }
0x1c2b   : > { %29045 = vmatmul.mubr.f32.vlgmr.msra.gmra.mxu0 %v33903_v19  ;;  %29058 = vmatprep.subr.mxu0 %v35875_v51 }
0x1c2c   : > { %29060 = vmatprep.mubr.msk.f32.mxu0 %vm31415_vm2, %v35875_v51  ;;  %v14938_v7 = vand.u32 4294901760, %v14937_v22 }
0x1cb3   : > { %v28947_v45 = vpop.f32.mrf.mxu1 }
0x1cb5   : > { %v13971_v35 = vpop.f32.mrf.mxu1 }
0x1cbb   : > { %v28969_v53 = vpop.f32.mrf.mxu1 }
0x1cbc   : > { %v28936_v30 = vpop.f32.mrf.mxu0 }
0x1cbd   : > { %v13881_v8 = vadd.f32 %v28936_v30, %v26730_v62  ;;  %v14141_v4 = vpop.f32.mrf.mxu1 }
0x1cbe   : > { %v13870_v31 = vpop.f32.mrf.mxu0 }
0x1cbf   : > { %v13978_v17 = vadd.f32 %v28947_v45, %v13881_v8  ;;  %v13871_v54 = vadd.f32 %v26730_v62, %v13870_v31 }
0x1cc1   : > { %v13972_v24 = vadd.f32 %v13971_v35, %v13871_v54 }
0x1cc4   : > { %v28958_v50 = vpop.f32.mrf.mxu0 }
0x1cc5   : > { %v14065_v23 = vadd.f32 %v28958_v50, %v13978_v17  ;;  %v28991_v6 = vpop.f32.mrf.mxu1 }
0x1cc6   : > { %v14057_v18 = vpop.f32.mrf.mxu0 }
0x1cc7   : > { %v14150_v5 = vadd.f32 %v28969_v53, %v14065_v23  ;;  %v14058_v48 = vadd.f32 %v14057_v18, %v13972_v24  ;;  %v14313_v44 = vpop.f32.mrf.mxu1 }
0x1cc9   : > { %v14142_v36 = vadd.f32 %v14141_v4, %v14058_v48 }
0x1cce   : > { %v28980_v40 = vpop.f32.mrf.mxu0 }
0x1ccf   : > { %v14239_v33 = vadd.f32 %v28980_v40, %v14150_v5  ;;  %v29013_v13 = vpop.f32.mrf.mxu1 }
0x1cd0   : > { %v14232_v0 = vpop.f32.mrf.mxu0 }
0x1cd1   : > { %v34083_v38 = vadd.f32 %v28991_v6, %v14239_v33  ;;  %v14233_v43 = vadd.f32 %v14232_v0, %v14142_v36  ;;  %v14510_v58 = vpop.f32.mrf.mxu1 }
0x1cd3   : > { %v34085_v46 = vadd.f32 %v14313_v44, %v14233_v43 }
0x1cd5   : > { %v14866_v55 = vsel %vm3919_vm3, %v34085_v46, 0 }
0x1cd6   : > { %v14899_v61 = vand.u32 4294901760, %v14866_v55 }
0x1cd8   : > { %v29002_v3 = vpop.f32.mrf.mxu0  ;;  %29059 = vmatpush3.xpose.msra.mxu0 %v14899_v61  ;;  %v14976_v27 = vsub.f32 %v14866_v55, %v14899_v61 }
0x1cd9   : > { %v14420_v26 = vadd.f32 %v29002_v3, %v26731_v56  ;;  %29068 = vmatprep.subr.mxu0 %v35875_v51  ;;  %v29035_v14 = vpop.f32.mrf.mxu1 }
0x1cda   : > { %v14977_v28 = vand.u32 4294901760, %v14976_v27  ;;  %v14409_v16 = vpop.f32.mrf.mxu0 }
0x1cdb   : > { %29061 = vmatmul.mubr.f32.vlgmr.msra.gmra.mxu0 %v14938_v7  ;;  %v14517_v60 = vadd.f32 %v29013_v13, %v14420_v26  ;;  %v14410_v41 = vadd.f32 %v26731_v56, %v14409_v16  ;;  %v14680_v8 = vpop.f32.mrf.mxu1 }
0x1cdc   : > { %29069 = vmatpush3.xpose.msra.mxu0 %v14976_v27  ;;  %29070 = vmatprep.mubr.msk.f32.mxu0 %vm31415_vm2, %v35875_v51  ;;  %v14978_v52 = vsub.f32 %v14976_v27, %v14977_v28 }
0x1cdd   : > { %29078 = vmatprep.subr.mxu0 %v35875_v51  ;;  %v14511_v11 = vadd.f32 %v14510_v58, %v14410_v41 }
0x1cde   : > { %v14979_v9 = vand.u32 4294901760, %v14978_v52 }
0x1cdf   : > { %29071 = vmatmul.mubr.f32.vlgmr.msra.gmra.mxu0 %v14935_v47 }
0x1ce0   : > { %29064 = vmatpush3.xpose.msra.mxu1 %v14979_v9  ;;  %29079 = vmatpush3.xpose.msra.mxu0 %v14977_v28 }
0x1ce1   : > { %29080 = vmatprep.mubr.msk.f32.mxu0 %vm31415_vm2, %v35875_v51  ;;  %29073 = vmatprep.subr.mxu1 %v35875_v51 }
0x1ce2   : > { %v29024_v32 = vpop.f32.mrf.mxu0  ;;  %29088 = vmatprep.subr.mxu0 %v35875_v51 }
0x1ce3   : > { %v14604_v39 = vadd.f32 %v29024_v32, %v14517_v60  ;;  %29066 = vmatmul.mubr.f32.vlgmr.msra.gmra.mxu1 %v14934_v10  ;;  %29081 = vmatmul.mubr.f32.vlgmr.msra.gmra.mxu0 %v14934_v10  ;;  %v29057_v12 = vpop.f32.mrf.mxu1 }
0x1ce4   : > { %29074 = vmatpush3.xpose.msra.mxu1 %v14899_v61  ;;  %29075 = vmatprep.mubr.msk.f32.mxu1 %vm31415_vm2, %v35875_v51  ;;  %v14596_v59 = vpop.f32.mrf.mxu0 }
0x1ce5   : > { %v14689_v62 = vadd.f32 %v29035_v14, %v14604_v39  ;;  %29083 = vmatprep.subr.mxu1 %v35875_v51  ;;  %29090 = vmatprep.mubr.msk.f32.mxu0 %vm31415_vm2, %v35875_v51  ;;  %v14597_v30 = vadd.f32 %v14596_v59, %v14511_v11  ;;  %v14852_v23 = vpop.f32.mrf.mxu1 }
0x1ce7   : > { %29076 = vmatmul.mubr.f32.vlgmr.msra.gmra.mxu1 %v14936_v63  ;;  %v14681_v31 = vadd.f32 %v14680_v8, %v14597_v30 }
0x1ce8   : > { %29084 = vmatpush3.xpose.msra.mxu1 %v14899_v61  ;;  %29085 = vmatprep.mubr.msk.f32.mxu1 %vm31415_vm2, %v35875_v51 }
0x1ce9   : > { %29093 = vmatprep.subr.mxu1 %v35875_v51 }
0x1ceb   : > { %v29046_v45 = vpop.f32.mrf.mxu0  ;;  %29086 = vmatmul.mubr.f32.vlgmr.msra.gmra.mxu1 %v14934_v10 }
0x1cec   : > { %v14778_v17 = vadd.f32 %v29046_v45, %v14689_v62  ;;  %29095 = vmatprep.mubr.msk.f32.mxu1 %vm31415_vm2, %v35875_v51 }
0x1ced   : > { %v14771_v35 = vpop.f32.mrf.mxu0 }
0x1cee   : > { %v34109_v50 = vadd.f32 %v29057_v12, %v14778_v17  ;;  %v14772_v54 = vadd.f32 %v14771_v35, %v14681_v31 }
0x1cf0   : > { %v34111_v2 = vadd.f32 %v14852_v23, %v14772_v54 }
0x1cf2   : > { %v15359_v53 = vand.u32 4294901760, %v34111_v2 }
0x1cf4   : > { %29089 = vmatpush3.msra.mxu0 %v15359_v53  ;;  %v34115_v5 = vsub.f32 %v34111_v2, %v15359_v53 }
0x1cf5   : > { %29098 = vmatprep.subr.mxu0 %v35875_v51 }
0x1cf6   : > { %v15437_v18 = vand.u32 4294901760, %v34115_v5 }
0x1cf8   : > { %v15438_v10 = vsub.f32 %v34115_v5, %v15437_v18 }
0x1cfa   : > { %v15439_v24 = vand.u32 4294901760, %v15438_v10 }
0x1cfc   : > { %29094 = vmatpush3.msra.mxu1 %v15439_v24 }
0x1cfd   : > { %29103 = vmatprep.subr.mxu1 %v35875_v51 }
0x1d9b   : > { %v14940_v48 = vpop.f32.mrf.mxu0 }
0x1d9d   : > { %v29062_v4 = vpop.f32.mrf.mxu0 }
0x1d9f   : > { %v15090_v47 = vpop.f32.mrf.mxu0 }
0x1da1   : > { %v29072_v6 = vpop.f32.mrf.mxu0 }
0x1da3   : > { %v15016_v40 = vpop.f32.mrf.mxu1  ;;  %v15238_v33 = vpop.f32.mrf.mxu0 }
0x1da4   : > { %v15017_v36 = vadd.f32 %v15016_v40, %v14940_v48 }
0x1da5   : > { %v29067_v0 = vpop.f32.mrf.mxu1  ;;  %v29082_v43 = vpop.f32.mrf.mxu0 }
0x1da6   : > { %v15091_v63 = vadd.f32 %v15090_v47, %v15017_v36 }
0x1da7   : > { %v15164_v44 = vpop.f32.mrf.mxu1 }
0x1da8   : > { %v15165_v55 = vadd.f32 %v15164_v44, %v15091_v63 }
0x1da9   : > { %v29077_v22 = vpop.f32.mrf.mxu1 }
0x1daa   : > { %v15239_v56 = vadd.f32 %v15238_v33, %v15165_v55 }
0x1dab   : > { %v15310_v61 = vpop.f32.mrf.mxu1 }
0x1dac   : > { %v15311_v3 = vadd.f32 %v15310_v61, %v15239_v56 }
0x1dad   : > { %v29087_v27 = vpop.f32.mrf.mxu1 }
0x1dae   : > { %v15314_v26 = vsel %vm3919_vm3, %v15311_v3, -inf }
0x1daf   : > { %15315 = vmax.xlane.f32.xlu0 %v15314_v26 }
0x1dc5   : > { %15776 = vrot.lane.b32.xlu0 %v34085_v46, %s31416_s24 }
0x1e38   : > { %v15316_v7 = vpop.xlane.xlu0 %15315 }
0x1e39   : > { %v15317_v13 = vsub.f32 %v15311_v3, %v15316_v7 }
0x1e3b   : > { %v15318_v28 = vmul.f32 1.442695, %v15317_v13 }
0x1e3c   : > { %v15777_v16 = vpop.permute.xlu0 %15776 }
0x1e3d   : > { %30376 = vpow2.f32 %v15318_v28  ;;  %v15780_v58 = vsel %vm3919_vm3, %v15777_v16, 0 }
0x1e3e   : > { %v15813_v41 = vand.u32 4294901760, %v15780_v58 }
0x1e40   : > { %v15890_v39 = vsub.f32 %v15780_v58, %v15813_v41 }
0x1e42   : > { %v15891_v30 = vand.u32 4294901760, %v15890_v39 }
0x1e44   : > { %v15892_v31 = vsub.f32 %v15890_v39, %v15891_v30 }
0x1e46   : > { %v15893_v10 = vand.u32 4294901760, %v15892_v31 }
0x1e4a   : > { %v30377_v60 = vpop.eup %30376 }
0x1e4b   : > { %v15320_v52 = vsel %vm3919_vm3, %v30377_v60, 0.0 }
0x1e4c   : > { %15321 = vadd.xlane.f32.xlu1 %v15320_v52 }
0x1e5d   : > { %15774 = vrot.lane.b32.xlu1 %v34079_v1, %s31416_s24 }
0x1ed5   : > { %v15322_v9 = vpop.xlane.xlu1 %15321 }
0x1ed6   : > { %30378 = vrcp.f32 %v15322_v9 }
0x1ed9   : > { %v15775_v59 = vpop.permute.xlu1 %15774 }
0x1eda   : > { %v15778_v8 = vsel %vm3919_vm3, %v15775_v59, 0 }
0x1edb   : > { %v15848_v45 = vand.u32 4294901760, %v15778_v8 }
0x1edd   : > { %v15849_v54 = vsub.f32 %v15778_v8, %v15848_v45 }
0x1edf   : > { %v15850_v24 = vand.u32 4294901760, %v15849_v54 }
0x1ee3   : > { %v30379_v32 = vpop.eup %30378 }
0x1ee4   : > { %v34130_v14 = vmul.f32 %v30379_v32, %v30377_v60 }
0x1ee6   : > { %v15326_v62 = vsel %vm3919_vm3, %v34130_v14, 0 }
0x1ee7   : > { %v15394_v11 = vand.u32 4294901760, %v15326_v62 }
0x1ee9   : > { %v15395_v12 = vsub.f32 %v15326_v62, %v15394_v11  ;;  %29096 = vmatmul.mubr.f32.vlgmr.msra.gmra.mxu1 %v15394_v11 }
0x1eea   : > { %29104 = vmatpush3.msra.mxu1 %v15359_v53  ;;  %29105 = vmatprep.mubr.msk.f32.mxu1 %vm31415_vm2, %v35875_v51 }
0x1eeb   : > { %29113 = vmatprep.subr.mxu1 %v35875_v51  ;;  %v15396_v17 = vand.u32 4294901760, %v15395_v12 }
0x1eed   : > { %29106 = vmatmul.mubr.f32.vlgmr.msra.gmra.mxu1 %v15396_v17  ;;  %v15397_v35 = vsub.f32 %v15395_v12, %v15396_v17 }
0x1eee   : > { %29114 = vmatpush3.msra.mxu1 %v15359_v53  ;;  %29115 = vmatprep.mubr.msk.f32.mxu1 %vm31415_vm2, %v35875_v51  ;;  %v15851_v53 = vsub.f32 %v15849_v54, %v15850_v24 }
0x1eef   : > { %29123 = vmatprep.subr.mxu1 %v35875_v51  ;;  %v15398_v23 = vand.u32 4294901760, %v15397_v35 }
0x1ef0   : > { %v15852_v48 = vand.u32 4294901760, %v15851_v53 }
0x1ef1   : > { %29091 = vmatmul.mubr.f32.vlgmr.msra.gmra.mxu0 %v15398_v23  ;;  %29116 = vmatmul.mubr.f32.vlgmr.msra.gmra.mxu1 %v15394_v11 }
0x1ef2   : > { %29099 = vmatpush3.msra.mxu0 %v34115_v5  ;;  %29124 = vmatpush3.xpose.msra.mxu1 %v15893_v10 }
0x1ef3   : > { %29100 = vmatprep.mubr.msk.f32.mxu0 %vm31415_vm2, %v35875_v51  ;;  %29108 = vmatprep.subr.mxu0 %v35875_v51 }
0x1ef4   : > { %29125 = vmatprep.mubr.msk.f32.mxu1 %vm31415_vm2, %v35875_v51  ;;  %29133 = vmatprep.subr.mxu1 %v35875_v51 }
0x1ef5   : > { %29101 = vmatmul.mubr.f32.vlgmr.msra.gmra.mxu0 %v15395_v12  ;;  %29126 = vmatmul.mubr.f32.vlgmr.msra.gmra.mxu1 %v15848_v45 }
0x1ef6   : > { %29109 = vmatpush3.msra.mxu0 %v15437_v18  ;;  %29134 = vmatpush3.xpose.msra.mxu1 %v15813_v41 }
0x1ef7   : > { %29110 = vmatprep.mubr.msk.f32.mxu0 %vm31415_vm2, %v35875_v51  ;;  %29118 = vmatprep.subr.mxu0 %v35875_v51 }
0x1ef8   : > { %29135 = vmatprep.mubr.msk.f32.mxu1 %vm31415_vm2, %v35875_v51  ;;  %29143 = vmatprep.subr.mxu1 %v35875_v51 }
0x1ef9   : > { %29111 = vmatmul.mubr.f32.vlgmr.msra.gmra.mxu0 %v15394_v11  ;;  %29136 = vmatmul.mubr.f32.vlgmr.msra.gmra.mxu1 %v15850_v24 }
0x1efa   : > { %29119 = vmatpush3.xpose.msra.mxu0 %v15813_v41  ;;  %29144 = vmatpush3.xpose.msra.mxu1 %v15813_v41 }
0x1efb   : > { %29120 = vmatprep.mubr.msk.f32.mxu0 %vm31415_vm2, %v35875_v51  ;;  %29128 = vmatprep.subr.mxu0 %v35875_v51 }
0x1efc   : > { %29145 = vmatprep.mubr.msk.f32.mxu1 %vm31415_vm2, %v35875_v51  ;;  %29153 = vmatprep.subr.mxu1 %v35875_v51 }
0x1efd   : > { %29121 = vmatmul.mubr.f32.vlgmr.msra.gmra.mxu0 %v15852_v48  ;;  %29146 = vmatmul.mubr.f32.vlgmr.msra.gmra.mxu1 %v15848_v45 }
0x1efe   : > { %29129 = vmatpush3.xpose.msra.mxu0 %v15890_v39  ;;  %29130 = vmatprep.mubr.msk.f32.mxu0 %vm31415_vm2, %v35875_v51 }
0x1eff   : > { %29138 = vmatprep.subr.mxu0 %v35875_v51  ;;  %29155 = vmatprep.mubr.msk.f32.mxu1 %vm31415_vm2, %v35875_v51 }
0x1f01   : > { %29131 = vmatmul.mubr.f32.vlgmr.msra.gmra.mxu0 %v15849_v54 }
0x1f02   : > { %29139 = vmatpush3.xpose.msra.mxu0 %v15891_v30  ;;  %29140 = vmatprep.mubr.msk.f32.mxu0 %vm31415_vm2, %v35875_v51 }
0x1f03   : > { %29148 = vmatprep.subr.mxu0 %v35875_v51 }
0x1f05   : > { %29141 = vmatmul.mubr.f32.vlgmr.msra.gmra.mxu0 %v15848_v45 }
0x1f06   : > { %29150 = vmatprep.mubr.msk.f32.mxu0 %vm31415_vm2, %v35875_v51 }
0x1fa9   : > { %v15476_v5 = vpop.f32.mrf.mxu1 }
0x1fab   : > { %v29097_v18 = vpop.f32.mrf.mxu1 }
0x1fad   : > { %v15624_v4 = vpop.f32.mrf.mxu1 }
0x1faf   : > { %v29107_v47 = vpop.f32.mrf.mxu1 }
0x1fb1   : > { %v15400_v6 = vpop.f32.mrf.mxu0  ;;  %v15770_v40 = vpop.f32.mrf.mxu1 }
0x1fb2   : > { %v15477_v33 = vadd.f32 %v15476_v5, %v15400_v6 }
0x1fb3   : > { %v29092_v36 = vpop.f32.mrf.mxu0  ;;  %v29117_v0 = vpop.f32.mrf.mxu1 }
0x1fb5   : > { %v15550_v43 = vpop.f32.mrf.mxu0  ;;  %v15930_v63 = vpop.f32.mrf.mxu1 }
0x1fb6   : > { %v15551_v44 = vadd.f32 %v15550_v43, %v15477_v33 }
0x1fb7   : > { %v29102_v55 = vpop.f32.mrf.mxu0  ;;  %v29127_v22 = vpop.f32.mrf.mxu1 }
0x1fb8   : > { %v15625_v56 = vadd.f32 %v15624_v4, %v15551_v44 }
0x1fb9   : > { %v15698_v61 = vpop.f32.mrf.mxu0  ;;  %v16078_v3 = vpop.f32.mrf.mxu1 }
0x1fba   : > { %v15699_v27 = vadd.f32 %v15698_v61, %v15625_v56 }
0x1fbb   : > { %v29112_v26 = vpop.f32.mrf.mxu0  ;;  %v29137_v7 = vpop.f32.mrf.mxu1 }
0x1fbc   : > { %v34172_v13 = vadd.f32 %v15770_v40, %v15699_v27 }
0x1fbd   : > { %v15854_v28 = vpop.f32.mrf.mxu0  ;;  %v16224_v60 = vpop.f32.mrf.mxu1 }
0x1fbe   : > { %v15931_v16 = vadd.f32 %v15930_v63, %v15854_v28 }
0x1fbf   : > { %v29122_v52 = vpop.f32.mrf.mxu0  ;;  %v29147_v9 = vpop.f32.mrf.mxu1 }
0x1fc1   : > { %v16004_v58 = vpop.f32.mrf.mxu0 }
0x1fc2   : > { %v16005_v41 = vadd.f32 %v16004_v58, %v15931_v16 }
0x1fc3   : > { %v29132_v32 = vpop.f32.mrf.mxu0 }
0x1fc4   : > { %v16079_v39 = vadd.f32 %v16078_v3, %v16005_v41 }
0x1fc5   : > { %v16152_v59 = vpop.f32.mrf.mxu0 }
0x1fc6   : > { %v16153_v62 = vadd.f32 %v16152_v59, %v16079_v39 }
0x1fc7   : > { %v29142_v11 = vpop.f32.mrf.mxu0 }
0x1fc8   : > { %v16225_v30 = vadd.f32 %v16224_v60, %v16153_v62 }
0x1fca   : > { %v16228_v8 = vsel %vm3919_vm3, %v16225_v30, -inf }
0x1fcb   : > { %16229 = vmax.xlane.f32.xlu1 %v16228_v8 }
0x1fdc   : > { %16695 = vrot.lane.b32.xlu1 %v34085_v46, %s31417_s17 }
0x1fe0   : > { %16693 = vrot.lane.b32.xlu1 %v34079_v1, %s31417_s17 }
0x2054   : > { %v16230_v12 = vpop.xlane.xlu1 %16229 }
0x2055   : > { %v16231_v45 = vsub.f32 %v16225_v30, %v16230_v12 }
0x2057   : > { %v16232_v17 = vmul.f32 1.442695, %v16231_v45 }
0x2058   : > { %v16696_v10 = vpop.permute.xlu1 %16695 }
0x2059   : > { %30380 = vpow2.f32 %v16232_v17  ;;  %v16699_v48 = vsel %vm3919_vm3, %v16696_v10, 0 }
0x205a   : > { %v16732_v18 = vand.u32 4294901760, %v16699_v48 }
0x205c   : > { %v16809_v40 = vsub.f32 %v16699_v48, %v16732_v18  ;;  %v16694_v36 = vpop.permute.xlu1 %16693 }
0x205d   : > { %v16697_v44 = vsel %vm3919_vm3, %v16694_v36, 0 }
0x205e   : > { %v16810_v63 = vand.u32 4294901760, %v16809_v40  ;;  %v16767_v22 = vand.u32 4294901760, %v16697_v44 }
0x2060   : > { %v16811_v61 = vsub.f32 %v16809_v40, %v16810_v63  ;;  %v16768_v27 = vsub.f32 %v16697_v44, %v16767_v22 }
0x2062   : > { %v16812_v7 = vand.u32 4294901760, %v16811_v61  ;;  %v16769_v28 = vand.u32 4294901760, %v16768_v27 }
0x2064   : > { %v16770_v60 = vsub.f32 %v16768_v27, %v16769_v28 }
0x2066   : > { %v30381_v31 = vpop.eup %30380  ;;  %v16771_v52 = vand.u32 4294901760, %v16770_v60 }
0x2067   : > { %v16234_v35 = vsel %vm3919_vm3, %v30381_v31, 0.0 }
0x2068   : > { %16235 = vadd.xlane.f32.xlu0 %v16234_v35 }
0x207e   : > { %16240 = vrot.lane.b32.xlu0 %v34111_v2, %s31416_s24 }
0x20f1   : > { %v16236_v54 = vpop.xlane.xlu0 %16235 }
0x20f2   : > { %30382 = vrcp.f32 %v16236_v54 }
0x20f5   : > { %v16241_v23 = vpop.permute.xlu0 %16240 }
0x20f6   : > { %v16277_v24 = vand.u32 4294901760, %v16241_v23 }
0x20f8   : > { %v16354_v53 = vsub.f32 %v16241_v23, %v16277_v24  ;;  %29149 = vmatpush3.msra.mxu0 %v16277_v24 }
0x20f9   : > { %29158 = vmatprep.subr.mxu0 %v35875_v51 }
0x20fa   : > { %v16355_v5 = vand.u32 4294901760, %v16354_v53 }
0x20fc   : > { %v16356_v4 = vsub.f32 %v16354_v53, %v16355_v5 }
0x20fe   : > { %v16357_v47 = vand.u32 4294901760, %v16356_v4 }
0x20ff   : > { %v30383_v6 = vpop.eup %30382 }
0x2100   : > { %v34184_v33 = vmul.f32 %v30383_v6, %v30381_v31  ;;  %29154 = vmatpush3.msra.mxu1 %v16357_v47 }
0x2101   : > { %29163 = vmatprep.subr.mxu1 %v35875_v51 }
0x2102   : > { %v16244_v0 = vsel %vm3919_vm3, %v34184_v33, 0 }
0x2103   : > { %v16312_v43 = vand.u32 4294901760, %v16244_v0 }
0x2105   : > { %v16313_v55 = vsub.f32 %v16244_v0, %v16312_v43  ;;  %29156 = vmatmul.mubr.f32.vlgmr.msra.gmra.mxu1 %v16312_v43 }
0x2106   : > { %29164 = vmatpush3.msra.mxu1 %v16277_v24  ;;  %29165 = vmatprep.mubr.msk.f32.mxu1 %vm31415_vm2, %v35875_v51 }
0x2107   : > { %29173 = vmatprep.subr.mxu1 %v35875_v51  ;;  %v16314_v56 = vand.u32 4294901760, %v16313_v55 }
0x2109   : > { %29166 = vmatmul.mubr.f32.vlgmr.msra.gmra.mxu1 %v16314_v56  ;;  %v16315_v3 = vsub.f32 %v16313_v55, %v16314_v56 }
0x210a   : > { %29174 = vmatpush3.msra.mxu1 %v16277_v24  ;;  %29175 = vmatprep.mubr.msk.f32.mxu1 %vm31415_vm2, %v35875_v51 }
0x210b   : > { %29183 = vmatprep.subr.mxu1 %v35875_v51  ;;  %v16316_v26 = vand.u32 4294901760, %v16315_v3 }
0x210d   : > { %29151 = vmatmul.mubr.f32.vlgmr.msra.gmra.mxu0 %v16316_v26  ;;  %29176 = vmatmul.mubr.f32.vlgmr.msra.gmra.mxu1 %v16312_v43 }
0x210e   : > { %29159 = vmatpush3.msra.mxu0 %v16354_v53  ;;  %29184 = vmatpush3.xpose.msra.mxu1 %v16812_v7 }
0x210f   : > { %29160 = vmatprep.mubr.msk.f32.mxu0 %vm31415_vm2, %v35875_v51  ;;  %29168 = vmatprep.subr.mxu0 %v35875_v51 }
0x2110   : > { %29185 = vmatprep.mubr.msk.f32.mxu1 %vm31415_vm2, %v35875_v51  ;;  %29193 = vmatprep.subr.mxu1 %v35875_v51 }
0x2111   : > { %29161 = vmatmul.mubr.f32.vlgmr.msra.gmra.mxu0 %v16313_v55  ;;  %29186 = vmatmul.mubr.f32.vlgmr.msra.gmra.mxu1 %v16767_v22 }
0x2112   : > { %29169 = vmatpush3.msra.mxu0 %v16355_v5  ;;  %29194 = vmatpush3.xpose.msra.mxu1 %v16732_v18 }
0x2113   : > { %29170 = vmatprep.mubr.msk.f32.mxu0 %vm31415_vm2, %v35875_v51  ;;  %29178 = vmatprep.subr.mxu0 %v35875_v51 }
0x2114   : > { %29195 = vmatprep.mubr.msk.f32.mxu1 %vm31415_vm2, %v35875_v51  ;;  %29203 = vmatprep.subr.mxu1 %v35875_v51 }
0x2115   : > { %29171 = vmatmul.mubr.f32.vlgmr.msra.gmra.mxu0 %v16312_v43  ;;  %29196 = vmatmul.mubr.f32.vlgmr.msra.gmra.mxu1 %v16769_v28 }
0x2116   : > { %29179 = vmatpush3.xpose.msra.mxu0 %v16732_v18  ;;  %29204 = vmatpush3.xpose.msra.mxu1 %v16732_v18 }
0x2117   : > { %29180 = vmatprep.mubr.msk.f32.mxu0 %vm31415_vm2, %v35875_v51  ;;  %29188 = vmatprep.subr.mxu0 %v35875_v51 }
0x2118   : > { %29205 = vmatprep.mubr.msk.f32.mxu1 %vm31415_vm2, %v35875_v51  ;;  %29213 = vmatprep.subr.mxu1 %v35875_v51 }
0x2119   : > { %29181 = vmatmul.mubr.f32.vlgmr.msra.gmra.mxu0 %v16771_v52  ;;  %29206 = vmatmul.mubr.f32.vlgmr.msra.gmra.mxu1 %v16767_v22 }
0x211a   : > { %29189 = vmatpush3.xpose.msra.mxu0 %v16809_v40  ;;  %29190 = vmatprep.mubr.msk.f32.mxu0 %vm31415_vm2, %v35875_v51 }
0x211b   : > { %29198 = vmatprep.subr.mxu0 %v35875_v51  ;;  %29215 = vmatprep.mubr.msk.f32.mxu1 %vm31415_vm2, %v35875_v51 }
0x211d   : > { %29191 = vmatmul.mubr.f32.vlgmr.msra.gmra.mxu0 %v16768_v27 }
0x211e   : > { %29199 = vmatpush3.xpose.msra.mxu0 %v16810_v63  ;;  %29200 = vmatprep.mubr.msk.f32.mxu0 %vm31415_vm2, %v35875_v51 }
0x211f   : > { %29208 = vmatprep.subr.mxu0 %v35875_v51 }
0x2121   : > { %29201 = vmatmul.mubr.f32.vlgmr.msra.gmra.mxu0 %v16767_v22 }
0x2122   : > { %29210 = vmatprep.mubr.msk.f32.mxu0 %vm31415_vm2, %v35875_v51 }
0x21c5   : > { %v16394_v9 = vpop.f32.mrf.mxu1 }
0x21c7   : > { %v29157_v16 = vpop.f32.mrf.mxu1 }
0x21c9   : > { %v16542_v58 = vpop.f32.mrf.mxu1 }
0x21cb   : > { %v29167_v41 = vpop.f32.mrf.mxu1 }
0x21cd   : > { %v16318_v32 = vpop.f32.mrf.mxu0  ;;  %v16688_v39 = vpop.f32.mrf.mxu1 }
0x21ce   : > { %v16395_v59 = vadd.f32 %v16394_v9, %v16318_v32 }
0x21cf   : > { %v29152_v62 = vpop.f32.mrf.mxu0  ;;  %v29177_v11 = vpop.f32.mrf.mxu1 }
0x21d1   : > { %v16468_v30 = vpop.f32.mrf.mxu0  ;;  %v16849_v8 = vpop.f32.mrf.mxu1 }
0x21d2   : > { %v16469_v12 = vadd.f32 %v16468_v30, %v16395_v59  ;;  %v16692_v59 = vadd.f32 %v34184_v33, %v34130_v14 }
0x21d3   : > { %v29162_v45 = vpop.f32.mrf.mxu0  ;;  %v29187_v17 = vpop.f32.mrf.mxu1 }
0x21d4   : > { %v16543_v31 = vadd.f32 %v16542_v58, %v16469_v12 }
0x21d5   : > { %v16616_v35 = vpop.f32.mrf.mxu0  ;;  %v16997_v54 = vpop.f32.mrf.mxu1 }
0x21d6   : > { %v16617_v23 = vadd.f32 %v16616_v35, %v16543_v31 }
0x21d7   : > { %v29172_v10 = vpop.f32.mrf.mxu0  ;;  %v29197_v24 = vpop.f32.mrf.mxu1 }
0x21d8   : > { %v34224_v53 = vadd.f32 %v16688_v39, %v16617_v23 }
0x21d9   : > { %v16773_v48 = vpop.f32.mrf.mxu0  ;;  %v17143_v5 = vpop.f32.mrf.mxu1 }
0x21da   : > { %v16850_v47 = vadd.f32 %v16849_v8, %v16773_v48 }
0x21db   : > { %v29182_v18 = vpop.f32.mrf.mxu0  ;;  %v29207_v4 = vpop.f32.mrf.mxu1 }
0x21dd   : > { %v16923_v6 = vpop.f32.mrf.mxu0 }
0x21de   : > { %v16924_v40 = vadd.f32 %v16923_v6, %v16850_v47 }
0x21df   : > { %v29192_v36 = vpop.f32.mrf.mxu0 }
0x21e0   : > { %v16998_v0 = vadd.f32 %v16997_v54, %v16924_v40 }
0x21e1   : > { %v17071_v43 = vpop.f32.mrf.mxu0 }
0x21e2   : > { %v17072_v63 = vadd.f32 %v17071_v43, %v16998_v0 }
0x21e3   : > { %v29202_v44 = vpop.f32.mrf.mxu0 }
0x21e4   : > { %v17144_v55 = vadd.f32 %v17143_v5, %v17072_v63 }
0x21e6   : > { %v17147_v22 = vsel %vm3919_vm3, %v17144_v55, -inf }
0x21e7   : > { %17148 = vmax.xlane.f32.xlu0 %v17147_v22 }
0x21fd   : > { %17158 = vrot.lane.b32.xlu0 %v34111_v2, %s31417_s17 }
0x2201   : > { %17611 = vrot.lane.b32.xlu0 %v34079_v1, %s31418_s20 }
0x2270   : > { %v17149_v56 = vpop.xlane.xlu0 %17148 }
0x2271   : > { %v17150_v61 = vsub.f32 %v17144_v55, %v17149_v56 }
0x2273   : > { %v17151_v3 = vmul.f32 1.442695, %v17150_v61 }
0x2274   : > { %v17159_v27 = vpop.permute.xlu0 %17158 }
0x2275   : > { %30384 = vpow2.f32 %v17151_v3  ;;  %v17195_v26 = vand.u32 4294901760, %v17159_v27 }
0x2277   : > { %v17272_v7 = vsub.f32 %v17159_v27, %v17195_v26  ;;  %29209 = vmatpush3.msra.mxu0 %v17195_v26 }
0x2278   : > { %29218 = vmatprep.subr.mxu0 %v35875_v51  ;;  %v17612_v30 = vpop.permute.xlu0 %17611 }
0x2279   : > { %v17273_v28 = vand.u32 4294901760, %v17272_v7 }
0x227b   : > { %v17274_v60 = vsub.f32 %v17272_v7, %v17273_v28 }
0x227d   : > { %v17275_v52 = vand.u32 4294901760, %v17274_v60 }
0x227f   : > { %29214 = vmatpush3.msra.mxu1 %v17275_v52 }
0x2280   : > { %29223 = vmatprep.subr.mxu1 %v35875_v51 }
0x2282   : > { %v30385_v9 = vpop.eup %30384 }
0x2283   : > { %v17153_v16 = vsel %vm3919_vm3, %v30385_v9, 0.0 }
0x2284   : > { %17154 = vadd.xlane.f32.xlu1 %v17153_v16 }
0x2295   : > { %17613 = vrot.lane.b32.xlu1 %v34085_v46, %s31418_s20  ;;  %v17615_v46 = vsel %vm3919_vm3, %v17612_v30, 0 }
0x2296   : > { %v17685_v35 = vand.u32 4294901760, %v17615_v46 }
0x2298   : > { %v17686_v23 = vsub.f32 %v17615_v46, %v17685_v35 }
0x229a   : > { %v17687_v48 = vand.u32 4294901760, %v17686_v23 }
0x229c   : > { %v17688_v5 = vsub.f32 %v17686_v23, %v17687_v48 }
0x229e   : > { %v17689_v18 = vand.u32 4294901760, %v17688_v5 }
0x230d   : > { %v17155_v1 = vpop.xlane.xlu1 %17154 }
0x230e   : > { %30386 = vrcp.f32 %v17155_v1 }
0x2311   : > { %v17614_v58 = vpop.permute.xlu1 %17613 }
0x2312   : > { %v17617_v41 = vsel %vm3919_vm3, %v17614_v58, 0 }
0x2313   : > { %v17650_v32 = vand.u32 4294901760, %v17617_v41 }
0x2315   : > { %v17727_v11 = vsub.f32 %v17617_v41, %v17650_v32 }
0x2317   : > { %v17728_v17 = vand.u32 4294901760, %v17727_v11 }
0x2319   : > { %v17729_v33 = vsub.f32 %v17727_v11, %v17728_v17 }
0x231b   : > { %v30387_v39 = vpop.eup %30386  ;;  %v17730_v24 = vand.u32 4294901760, %v17729_v33 }
0x231c   : > { %v17157_v62 = vmul.f32 %v30387_v39, %v30385_v9 }
0x231e   : > { %v34239_v8 = vadd.f32 %v17157_v62, %v16692_v59  ;;  %v17162_v12 = vsel %vm3919_vm3, %v17157_v62, 0 }
0x231f   : > { %v17230_v45 = vand.u32 4294901760, %v17162_v12 }
0x2321   : > { %v17231_v31 = vsub.f32 %v17162_v12, %v17230_v45  ;;  %29216 = vmatmul.mubr.f32.vlgmr.msra.gmra.mxu1 %v17230_v45 }
0x2322   : > { %29224 = vmatpush3.msra.mxu1 %v17195_v26  ;;  %29225 = vmatprep.mubr.msk.f32.mxu1 %vm31415_vm2, %v35875_v51 }
0x2323   : > { %29233 = vmatprep.subr.mxu1 %v35875_v51  ;;  %v17232_v14 = vand.u32 4294901760, %v17231_v31 }
0x2325   : > { %29226 = vmatmul.mubr.f32.vlgmr.msra.gmra.mxu1 %v17232_v14  ;;  %v17233_v54 = vsub.f32 %v17231_v31, %v17232_v14 }
0x2326   : > { %29234 = vmatpush3.msra.mxu1 %v17195_v26  ;;  %29235 = vmatprep.mubr.msk.f32.mxu1 %vm31415_vm2, %v35875_v51 }
0x2327   : > { %29243 = vmatprep.subr.mxu1 %v35875_v51  ;;  %v17234_v10 = vand.u32 4294901760, %v17233_v54 }
0x2329   : > { %29211 = vmatmul.mubr.f32.vlgmr.msra.gmra.mxu0 %v17234_v10  ;;  %29236 = vmatmul.mubr.f32.vlgmr.msra.gmra.mxu1 %v17230_v45 }
0x232a   : > { %29219 = vmatpush3.msra.mxu0 %v17272_v7  ;;  %29244 = vmatpush3.xpose.msra.mxu1 %v17730_v24 }
0x232b   : > { %29220 = vmatprep.mubr.msk.f32.mxu0 %vm31415_vm2, %v35875_v51  ;;  %29228 = vmatprep.subr.mxu0 %v35875_v51 }
0x232c   : > { %29245 = vmatprep.mubr.msk.f32.mxu1 %vm31415_vm2, %v35875_v51  ;;  %29253 = vmatprep.subr.mxu1 %v35875_v51 }
0x232d   : > { %29221 = vmatmul.mubr.f32.vlgmr.msra.gmra.mxu0 %v17231_v31  ;;  %29246 = vmatmul.mubr.f32.vlgmr.msra.gmra.mxu1 %v17685_v35 }
0x232e   : > { %29229 = vmatpush3.msra.mxu0 %v17273_v28  ;;  %29254 = vmatpush3.xpose.msra.mxu1 %v17650_v32 }
0x232f   : > { %29230 = vmatprep.mubr.msk.f32.mxu0 %vm31415_vm2, %v35875_v51  ;;  %29238 = vmatprep.subr.mxu0 %v35875_v51 }
0x2330   : > { %29255 = vmatprep.mubr.msk.f32.mxu1 %vm31415_vm2, %v35875_v51  ;;  %29263 = vmatprep.subr.mxu1 %v35875_v51 }
0x2331   : > { %29231 = vmatmul.mubr.f32.vlgmr.msra.gmra.mxu0 %v17230_v45  ;;  %29256 = vmatmul.mubr.f32.vlgmr.msra.gmra.mxu1 %v17687_v48 }
0x2332   : > { %29239 = vmatpush3.xpose.msra.mxu0 %v17650_v32  ;;  %29264 = vmatpush3.xpose.msra.mxu1 %v17650_v32 }
0x2333   : > { %29240 = vmatprep.mubr.msk.f32.mxu0 %vm31415_vm2, %v35875_v51  ;;  %29248 = vmatprep.subr.mxu0 %v35875_v51 }
0x2334   : > { %29265 = vmatprep.mubr.msk.f32.mxu1 %vm31415_vm2, %v35875_v51  ;;  %29273 = vmatprep.subr.mxu1 %v35875_v51 }
0x2335   : > { %29241 = vmatmul.mubr.f32.vlgmr.msra.gmra.mxu0 %v17689_v18  ;;  %29266 = vmatmul.mubr.f32.vlgmr.msra.gmra.mxu1 %v17685_v35  ;;  %v18549_v18 = vsel %vm3919_vm3, %v34083_v38, 0 }
0x2336   : > { %29249 = vmatpush3.xpose.msra.mxu0 %v17727_v11  ;;  %29250 = vmatprep.mubr.msk.f32.mxu0 %vm31415_vm2, %v35875_v51 }
0x2337   : > { %29258 = vmatprep.subr.mxu0 %v35875_v51  ;;  %29275 = vmatprep.mubr.msk.f32.mxu1 %vm31415_vm2, %v35875_v51 }
0x2339   : > { %29251 = vmatmul.mubr.f32.vlgmr.msra.gmra.mxu0 %v17686_v23  ;;  %v34284_v23 = vmul.f32 0.35355338, %v34069_v49 }
0x233a   : > { %29259 = vmatpush3.xpose.msra.mxu0 %v17728_v17  ;;  %29260 = vmatprep.mubr.msk.f32.mxu0 %vm31415_vm2, %v35875_v51 }
0x233b   : > { %29268 = vmatprep.subr.mxu0 %v35875_v51 }
0x233d   : > { %29261 = vmatmul.mubr.f32.vlgmr.msra.gmra.mxu0 %v17685_v35 }
0x233e   : > { %29270 = vmatprep.mubr.msk.f32.mxu0 %vm31415_vm2, %v35875_v51 }
0x23e1   : > { %v17312_v4 = vpop.f32.mrf.mxu1 }
0x23e3   : > { %v29217_v47 = vpop.f32.mrf.mxu1 }
0x23e4   : > { %v18582_v47 = vand.u32 4294901760, %v18549_v18 }
0x23e5   : > { %v17460_v6 = vpop.f32.mrf.mxu1 }
0x23e7   : > { %v29227_v40 = vpop.f32.mrf.mxu1 }
0x23e8   : > { %v34291_v40 = vsub.f32 %v18549_v18, %v18582_v47 }
0x23e9   : > { %v17236_v36 = vpop.f32.mrf.mxu0  ;;  %v17606_v0 = vpop.f32.mrf.mxu1 }
0x23ea   : > { %v17313_v43 = vadd.f32 %v17312_v4, %v17236_v36 }
0x23eb   : > { %v29212_v63 = vpop.f32.mrf.mxu0  ;;  %v29237_v44 = vpop.f32.mrf.mxu1 }
0x23ec   : > { %v18546_v44 = vsel %vm3919_vm3, %v34284_v23, 0 }
0x23ed   : > { %v17386_v55 = vpop.f32.mrf.mxu0  ;;  %v17767_v22 = vpop.f32.mrf.mxu1 }
0x23ee   : > { %v17387_v56 = vadd.f32 %v17386_v55, %v17313_v43 }
0x23ef   : > { %v29222_v61 = vpop.f32.mrf.mxu0  ;;  %v29247_v3 = vpop.f32.mrf.mxu1 }
0x23f0   : > { %v17461_v27 = vadd.f32 %v17460_v6, %v17387_v56  ;;  %v18617_v61 = vand.u32 4294901760, %v18546_v44  ;;  %v34305_v3 = vand.u32 4294901760, %v34109_v50 }
0x23f1   : > { %v17534_v26 = vpop.f32.mrf.mxu0  ;;  %v17915_v7 = vpop.f32.mrf.mxu1 }
0x23f2   : > { %v17535_v28 = vadd.f32 %v17534_v26, %v17461_v27 }
0x23f3   : > { %v29232_v60 = vpop.f32.mrf.mxu0  ;;  %v29257_v52 = vpop.f32.mrf.mxu1 }
0x23f4   : > { %v34277_v9 = vadd.f32 %v17606_v0, %v17535_v28  ;;  %v34313_v52 = vsub.f32 %v34109_v50, %v34305_v3 }
0x23f5   : > { %v17691_v16 = vpop.f32.mrf.mxu0  ;;  %v18061_v1 = vpop.f32.mrf.mxu1 }
0x23f6   : > { %v17768_v32 = vadd.f32 %v17767_v22, %v17691_v16  ;;  %v18660_v22 = vand.u32 4294901760, %v34291_v40 }
0x23f7   : > { %v29242_v58 = vpop.f32.mrf.mxu0  ;;  %v29267_v41 = vpop.f32.mrf.mxu1 }
0x23f8   : > { %v18661_v27 = vsub.f32 %v34291_v40, %v18660_v22 }
0x23f9   : > { %v17841_v39 = vpop.f32.mrf.mxu0 }
0x23fa   : > { %v17842_v59 = vadd.f32 %v17841_v39, %v17768_v32  ;;  %v18662_v60 = vand.u32 4294901760, %v18661_v27 }
0x23fb   : > { %v29252_v62 = vpop.f32.mrf.mxu0 }
0x23fc   : > { %v17916_v11 = vadd.f32 %v17915_v7, %v17842_v59  ;;  %v18618_v7 = vsub.f32 %v18546_v44, %v18617_v61 }
0x23fd   : > { %v17989_v30 = vpop.f32.mrf.mxu0 }
0x23fe   : > { %v17990_v12 = vadd.f32 %v17989_v30, %v17916_v11  ;;  %v18619_v16 = vand.u32 4294901760, %v18618_v7 }
0x23ff   : > { %v29262_v45 = vpop.f32.mrf.mxu0 }
0x2400   : > { %v18062_v46 = vadd.f32 %v18061_v1, %v17990_v12  ;;  %v19120_v1 = vand.u32 4294901760, %v34313_v52  ;;  %v18620_v58 = vsub.f32 %v18618_v7, %v18619_v16 }
0x2402   : > { %v18065_v17 = vsel %vm3919_vm3, %v18062_v46, -inf  ;;  %v19121_v41 = vsub.f32 %v34313_v52, %v19120_v1  ;;  %v18621_v32 = vand.u32 4294901760, %v18620_v58 }
0x2403   : > { %18066 = vmax.xlane.f32.xlu1 %v18065_v17 }
0x2404   : > { %v19122_v39 = vand.u32 4294901760, %v19121_v41 }
0x248c   : > { %v18067_v31 = vpop.xlane.xlu1 %18066 }
0x248d   : > { %v18068_v35 = vsub.f32 %v18062_v46, %v18067_v31 }
0x248f   : > { %v18069_v14 = vmul.f32 1.442695, %v18068_v35 }
0x2491   : > { %30388 = vpow2.f32 %v18069_v14 }
0x249e   : > { %v30389_v33 = vpop.eup %30388 }
0x249f   : > { %v18071_v54 = vsel %vm3919_vm3, %v30389_v33, 0.0 }
0x24a0   : > { %18072 = vadd.xlane.f32.xlu0 %v18071_v54 }
0x24b6   : > { %18076 = vrot.lane.b32.xlu0 %v34111_v2, %s31418_s20 }
0x24ba   : > { %19457 = vrot.lane.b32.xlu0 %v34284_v23, %s31416_s24 }
0x2529   : > { %v18073_v10 = vpop.xlane.xlu0 %18072 }
0x252a   : > { %30390 = vrcp.f32 %v18073_v10 }
0x252d   : > { %v18077_v24 = vpop.permute.xlu0 %18076 }
0x252e   : > { %v18113_v48 = vand.u32 4294901760, %v18077_v24 }
0x2530   : > { %v18190_v5 = vsub.f32 %v18077_v24, %v18113_v48  ;;  %29269 = vmatpush3.msra.mxu0 %v18113_v48 }
0x2531   : > { %29278 = vmatprep.subr.mxu0 %v35875_v51 }
0x2532   : > { %v18191_v4 = vand.u32 4294901760, %v18190_v5 }
0x2534   : > { %v18192_v2 = vsub.f32 %v18190_v5, %v18191_v4 }
0x2536   : > { %v18193_v49 = vand.u32 4294901760, %v18192_v2 }
0x2537   : > { %v30391_v6 = vpop.eup %30390 }
0x2538   : > { %v18075_v36 = vmul.f32 %v30391_v6, %v30389_v33  ;;  %29274 = vmatpush3.msra.mxu1 %v18193_v49 }
0x2539   : > { %29283 = vmatprep.subr.mxu1 %v35875_v51 }
0x253a   : > { %v18528_v0 = vadd.f32 %v18075_v36, %v34239_v8  ;;  %v18080_v43 = vsel %vm3919_vm3, %v18075_v36, 0 }
0x253b   : > { %v18148_v63 = vand.u32 4294901760, %v18080_v43 }
0x253c   : > { %v18544_v55 = vmul.f32 0.25, %v18528_v0 }
0x253d   : > { %v18149_v56 = vsub.f32 %v18080_v43, %v18148_v63  ;;  %29276 = vmatmul.mubr.f32.vlgmr.msra.gmra.mxu1 %v18148_v63 }
0x253e   : > { %22773 = vst.msk [vmem:[%s32470_s12] sm:$0xff] %vm3919_vm3, %v18544_v55  ;;  %29284 = vmatpush3.msra.mxu1 %v18113_v48  ;;  %29285 = vmatprep.mubr.msk.f32.mxu1 %vm31415_vm2, %v35875_v51 }
0x253f   : > { %29293 = vmatprep.subr.mxu1 %v35875_v51  ;;  %v18150_v8 = vand.u32 4294901760, %v18149_v56 }
0x2541   : > { %29286 = vmatmul.mubr.f32.vlgmr.msra.gmra.mxu1 %v18150_v8  ;;  %v18151_v26 = vsub.f32 %v18149_v56, %v18150_v8 }
0x2542   : > { %29294 = vmatpush3.msra.mxu1 %v18113_v48  ;;  %29295 = vmatprep.mubr.msk.f32.mxu1 %vm31415_vm2, %v35875_v51 }
0x2543   : > { %29303 = vmatprep.subr.mxu1 %v35875_v51  ;;  %v18152_v28 = vand.u32 4294901760, %v18151_v26 }
0x2545   : > { %29271 = vmatmul.mubr.f32.vlgmr.msra.gmra.mxu0 %v18152_v28  ;;  %29296 = vmatmul.mubr.f32.vlgmr.msra.gmra.mxu1 %v18148_v63 }
0x2546   : > { %29279 = vmatpush3.msra.mxu0 %v18190_v5  ;;  %29304 = vmatpush3.xpose.msra.mxu1 %v18662_v60 }
0x2547   : > { %29280 = vmatprep.mubr.msk.f32.mxu0 %vm31415_vm2, %v35875_v51  ;;  %29288 = vmatprep.subr.mxu0 %v35875_v51 }
0x2548   : > { %29305 = vmatprep.mubr.msk.f32.mxu1 %vm31415_vm2, %v35875_v51  ;;  %29313 = vmatprep.subr.mxu1 %v35875_v51 }
0x2549   : > { %29281 = vmatmul.mubr.f32.vlgmr.msra.gmra.mxu0 %v18149_v56  ;;  %29306 = vmatmul.mubr.f32.vlgmr.msra.gmra.mxu1 %v18617_v61 }
0x254a   : > { %29289 = vmatpush3.msra.mxu0 %v18191_v4  ;;  %29314 = vmatpush3.xpose.msra.mxu1 %v18582_v47 }
0x254b   : > { %29290 = vmatprep.mubr.msk.f32.mxu0 %vm31415_vm2, %v35875_v51  ;;  %29298 = vmatprep.subr.mxu0 %v35875_v51 }
0x254c   : > { %29315 = vmatprep.mubr.msk.f32.mxu1 %vm31415_vm2, %v35875_v51  ;;  %29323 = vmatprep.subr.mxu1 %v35875_v51 }
0x254d   : > { %29291 = vmatmul.mubr.f32.vlgmr.msra.gmra.mxu0 %v18148_v63  ;;  %29316 = vmatmul.mubr.f32.vlgmr.msra.gmra.mxu1 %v18619_v16 }
0x254e   : > { %29299 = vmatpush3.xpose.msra.mxu0 %v18582_v47  ;;  %29324 = vmatpush3.xpose.msra.mxu1 %v18582_v47 }
0x254f   : > { %29300 = vmatprep.mubr.msk.f32.mxu0 %vm31415_vm2, %v35875_v51  ;;  %29308 = vmatprep.subr.mxu0 %v35875_v51 }
0x2550   : > { %29325 = vmatprep.mubr.msk.f32.mxu1 %vm31415_vm2, %v35875_v51  ;;  %29333 = vmatprep.subr.mxu1 %v35875_v51 }
0x2551   : > { %29301 = vmatmul.mubr.f32.vlgmr.msra.gmra.mxu0 %v18621_v32  ;;  %29326 = vmatmul.mubr.f32.vlgmr.msra.gmra.mxu1 %v18617_v61 }
0x2552   : > { %29309 = vmatpush3.xpose.msra.mxu0 %v34291_v40  ;;  %29334 = vmatpush3.msra.mxu1 %v19122_v39 }
0x2553   : > { %29310 = vmatprep.mubr.msk.f32.mxu0 %vm31415_vm2, %v35875_v51  ;;  %29318 = vmatprep.subr.mxu0 %v35875_v51 }
0x2554   : > { %29335 = vmatprep.mubr.msk.f32.mxu1 %vm31415_vm2, %v35875_v51  ;;  %29343 = vmatprep.subr.mxu1 %v35875_v51 }
0x2555   : > { %29311 = vmatmul.mubr.f32.vlgmr.msra.gmra.mxu0 %v18618_v7 }
0x2556   : > { %29319 = vmatpush3.xpose.msra.mxu0 %v18660_v22  ;;  %29320 = vmatprep.mubr.msk.f32.mxu0 %vm31415_vm2, %v35875_v51 }
0x2557   : > { %29328 = vmatprep.subr.mxu0 %v35875_v51 }
0x2559   : > { %29321 = vmatmul.mubr.f32.vlgmr.msra.gmra.mxu0 %v18617_v61 }
0x255a   : > { %29329 = vmatpush3.msra.mxu0 %v34305_v3  ;;  %29330 = vmatprep.mubr.msk.f32.mxu0 %vm31415_vm2, %v35875_v51 }
0x255b   : > { %29338 = vmatprep.subr.mxu0 %v35875_v51 }
0x25fd   : > { %v18230_v59 = vpop.f32.mrf.mxu1 }
0x25ff   : > { %v29277_v62 = vpop.f32.mrf.mxu1 }
0x2601   : > { %v18378_v11 = vpop.f32.mrf.mxu1 }
0x2603   : > { %v29287_v30 = vpop.f32.mrf.mxu1 }
0x2604   : > { %v19458_v30 = vpop.permute.xlu0 %19457 }
0x2605   : > { %v18154_v12 = vpop.f32.mrf.mxu0  ;;  %v18524_v45 = vpop.f32.mrf.mxu1 }
0x2606   : > { %v18231_v46 = vadd.f32 %v18230_v59, %v18154_v12 }
0x2607   : > { %v29272_v17 = vpop.f32.mrf.mxu0  ;;  %v29297_v31 = vpop.f32.mrf.mxu1 }
0x2609   : > { %v18304_v35 = vpop.f32.mrf.mxu0  ;;  %v18699_v14 = vpop.f32.mrf.mxu1 }
0x260a   : > { %v18305_v33 = vadd.f32 %v18304_v35, %v18231_v46  ;;  %v19461_v46 = vsel %vm3919_vm3, %v19458_v30, 0 }
0x260b   : > { %v29282_v54 = vpop.f32.mrf.mxu0  ;;  %v29307_v10 = vpop.f32.mrf.mxu1  ;;  %v19531_v35 = vand.u32 4294901760, %v19461_v46 }
0x260c   : > { %v18379_v24 = vadd.f32 %v18378_v11, %v18305_v33 }
0x260d   : > { %v18452_v48 = vpop.f32.mrf.mxu0  ;;  %v18847_v5 = vpop.f32.mrf.mxu1  ;;  %v19532_v10 = vsub.f32 %v19461_v46, %v19531_v35 }
0x260e   : > { %v18453_v18 = vadd.f32 %v18452_v48, %v18379_v24 }
0x260f   : > { %v29292_v4 = vpop.f32.mrf.mxu0  ;;  %v29317_v47 = vpop.f32.mrf.mxu1 }
0x2610   : > { %v34351_v2 = vadd.f32 %v18524_v45, %v18453_v18 }
0x2611   : > { %v18623_v49 = vpop.f32.mrf.mxu0  ;;  %v18993_v6 = vpop.f32.mrf.mxu1 }
0x2612   : > { %v18700_v0 = vadd.f32 %v18699_v14, %v18623_v49 }
0x2613   : > { %v29302_v40 = vpop.f32.mrf.mxu0  ;;  %v29327_v36 = vpop.f32.mrf.mxu1 }
0x2615   : > { %v18773_v43 = vpop.f32.mrf.mxu0 }
0x2616   : > { %v18774_v63 = vadd.f32 %v18773_v43, %v18700_v0 }
0x2617   : > { %v29312_v44 = vpop.f32.mrf.mxu0 }
0x2618   : > { %v18848_v55 = vadd.f32 %v18847_v5, %v18774_v63  ;;  %v19533_v5 = vand.u32 4294901760, %v19532_v10 }
0x2619   : > { %v18921_v22 = vpop.f32.mrf.mxu0 }
0x261a   : > { %v18922_v56 = vadd.f32 %v18921_v22, %v18848_v55 }
0x261b   : > { %v29322_v61 = vpop.f32.mrf.mxu0 }
0x261c   : > { %v18994_v8 = vadd.f32 %v18993_v6, %v18922_v56 }
0x261e   : > { %v18997_v27 = vsel %vm3919_vm3, %v18994_v8, -inf }
0x261f   : > { %18998 = vmax.xlane.f32.xlu1 %v18997_v27 }
0x26a8   : > { %v18999_v26 = vpop.xlane.xlu1 %18998 }
0x26a9   : > { %v19000_v7 = vsub.f32 %v18994_v8, %v18999_v26 }
0x26ab   : > { %v19001_v28 = vmul.f32 1.442695, %v19000_v7 }
0x26ad   : > { %30392 = vpow2.f32 %v19001_v28 }
0x26ba   : > { %v30393_v60 = vpop.eup %30392 }
0x26bb   : > { %v19003_v16 = vsel %vm3919_vm3, %v30393_v60, 0.0 }
0x26bc   : > { %19004 = vadd.xlane.f32.xlu1 %v19003_v16 }
0x26cd   : > { %19459 = vrot.lane.b32.xlu1 %v34083_v38, %s31416_s24 }
0x2745   : > { %v19005_v58 = vpop.xlane.xlu1 %19004 }
0x2746   : > { %30394 = vrcp.f32 %v19005_v58 }
0x2749   : > { %v19460_v41 = vpop.permute.xlu1 %19459 }
0x274a   : > { %v19463_v32 = vsel %vm3919_vm3, %v19460_v41, 0 }
0x274b   : > { %v19496_v39 = vand.u32 4294901760, %v19463_v32 }
0x274d   : > { %v19573_v11 = vsub.f32 %v19463_v32, %v19496_v39 }
0x274f   : > { %v19574_v17 = vand.u32 4294901760, %v19573_v11 }
0x2751   : > { %v19575_v33 = vsub.f32 %v19573_v11, %v19574_v17 }
0x2753   : > { %v30395_v59 = vpop.eup %30394  ;;  %v19576_v48 = vand.u32 4294901760, %v19575_v33 }
0x2754   : > { %v34358_v62 = vmul.f32 %v30395_v59, %v30393_v60 }
0x2756   : > { %v19009_v12 = vsel %vm3919_vm3, %v34358_v62, 0 }
0x2757   : > { %v19077_v45 = vand.u32 4294901760, %v19009_v12 }
0x2759   : > { %v19078_v31 = vsub.f32 %v19009_v12, %v19077_v45  ;;  %29336 = vmatmul.mubr.f32.vlgmr.msra.gmra.mxu1 %v19077_v45 }
0x275a   : > { %29344 = vmatpush3.msra.mxu1 %v34305_v3  ;;  %29345 = vmatprep.mubr.msk.f32.mxu1 %vm31415_vm2, %v35875_v51 }
0x275b   : > { %29353 = vmatprep.subr.mxu1 %v35875_v51  ;;  %v19079_v14 = vand.u32 4294901760, %v19078_v31 }
0x275d   : > { %29346 = vmatmul.mubr.f32.vlgmr.msra.gmra.mxu1 %v19079_v14  ;;  %v19080_v54 = vsub.f32 %v19078_v31, %v19079_v14 }
0x275e   : > { %29354 = vmatpush3.msra.mxu1 %v34305_v3  ;;  %29355 = vmatprep.mubr.msk.f32.mxu1 %vm31415_vm2, %v35875_v51  ;;  %v19534_v3 = vsub.f32 %v19532_v10, %v19533_v5 }
0x275f   : > { %29363 = vmatprep.subr.mxu1 %v35875_v51  ;;  %v19081_v24 = vand.u32 4294901760, %v19080_v54 }
0x2760   : > { %v19535_v18 = vand.u32 4294901760, %v19534_v3 }
0x2761   : > { %29331 = vmatmul.mubr.f32.vlgmr.msra.gmra.mxu0 %v19081_v24  ;;  %29356 = vmatmul.mubr.f32.vlgmr.msra.gmra.mxu1 %v19077_v45 }
0x2762   : > { %29339 = vmatpush3.msra.mxu0 %v34313_v52  ;;  %29364 = vmatpush3.xpose.msra.mxu1 %v19576_v48 }
0x2763   : > { %29340 = vmatprep.mubr.msk.f32.mxu0 %vm31415_vm2, %v35875_v51  ;;  %29348 = vmatprep.subr.mxu0 %v35875_v51 }
0x2764   : > { %29365 = vmatprep.mubr.msk.f32.mxu1 %vm31415_vm2, %v35875_v51  ;;  %29373 = vmatprep.subr.mxu1 %v35875_v51 }
0x2765   : > { %29341 = vmatmul.mubr.f32.vlgmr.msra.gmra.mxu0 %v19078_v31  ;;  %29366 = vmatmul.mubr.f32.vlgmr.msra.gmra.mxu1 %v19531_v35 }
0x2766   : > { %29349 = vmatpush3.msra.mxu0 %v19120_v1  ;;  %29374 = vmatpush3.xpose.msra.mxu1 %v19496_v39 }
0x2767   : > { %29350 = vmatprep.mubr.msk.f32.mxu0 %vm31415_vm2, %v35875_v51  ;;  %29358 = vmatprep.subr.mxu0 %v35875_v51 }
0x2768   : > { %29375 = vmatprep.mubr.msk.f32.mxu1 %vm31415_vm2, %v35875_v51  ;;  %29383 = vmatprep.subr.mxu1 %v35875_v51 }
0x2769   : > { %29351 = vmatmul.mubr.f32.vlgmr.msra.gmra.mxu0 %v19077_v45  ;;  %29376 = vmatmul.mubr.f32.vlgmr.msra.gmra.mxu1 %v19533_v5 }
0x276a   : > { %29359 = vmatpush3.xpose.msra.mxu0 %v19496_v39  ;;  %29384 = vmatpush3.xpose.msra.mxu1 %v19496_v39 }
0x276b   : > { %29360 = vmatprep.mubr.msk.f32.mxu0 %vm31415_vm2, %v35875_v51  ;;  %29368 = vmatprep.subr.mxu0 %v35875_v51 }
0x276c   : > { %29385 = vmatprep.mubr.msk.f32.mxu1 %vm31415_vm2, %v35875_v51  ;;  %29393 = vmatprep.subr.mxu1 %v35875_v51 }
0x276d   : > { %29361 = vmatmul.mubr.f32.vlgmr.msra.gmra.mxu0 %v19535_v18  ;;  %29386 = vmatmul.mubr.f32.vlgmr.msra.gmra.mxu1 %v19531_v35 }
0x276e   : > { %29369 = vmatpush3.xpose.msra.mxu0 %v19573_v11  ;;  %29370 = vmatprep.mubr.msk.f32.mxu0 %vm31415_vm2, %v35875_v51 }
0x276f   : > { %29378 = vmatprep.subr.mxu0 %v35875_v51  ;;  %29395 = vmatprep.mubr.msk.f32.mxu1 %vm31415_vm2, %v35875_v51 }
0x2771   : > { %29371 = vmatmul.mubr.f32.vlgmr.msra.gmra.mxu0 %v19532_v10 }
0x2772   : > { %29379 = vmatpush3.xpose.msra.mxu0 %v19574_v17  ;;  %29380 = vmatprep.mubr.msk.f32.mxu0 %vm31415_vm2, %v35875_v51 }
0x2773   : > { %29388 = vmatprep.subr.mxu0 %v35875_v51 }
0x2775   : > { %29381 = vmatmul.mubr.f32.vlgmr.msra.gmra.mxu0 %v19531_v35 }
0x2776   : > { %29390 = vmatprep.mubr.msk.f32.mxu0 %vm31415_vm2, %v35875_v51 }
0x2819   : > { %v19159_v52 = vpop.f32.mrf.mxu1 }
0x281b   : > { %v29337_v1 = vpop.f32.mrf.mxu1 }
0x281d   : > { %v19307_v4 = vpop.f32.mrf.mxu1 }
0x281f   : > { %v29347_v47 = vpop.f32.mrf.mxu1 }
0x2821   : > { %v19083_v49 = vpop.f32.mrf.mxu0  ;;  %v19453_v6 = vpop.f32.mrf.mxu1 }
0x2822   : > { %v19160_v40 = vadd.f32 %v19159_v52, %v19083_v49 }
0x2823   : > { %v29332_v36 = vpop.f32.mrf.mxu0  ;;  %v29357_v0 = vpop.f32.mrf.mxu1 }
0x2825   : > { %v19233_v43 = vpop.f32.mrf.mxu0  ;;  %v19613_v63 = vpop.f32.mrf.mxu1 }
0x2826   : > { %v19234_v44 = vadd.f32 %v19233_v43, %v19160_v40 }
0x2827   : > { %v29342_v55 = vpop.f32.mrf.mxu0  ;;  %v29367_v22 = vpop.f32.mrf.mxu1 }
0x2828   : > { %v19308_v56 = vadd.f32 %v19307_v4, %v19234_v44 }
0x2829   : > { %v19381_v61 = vpop.f32.mrf.mxu0  ;;  %v19761_v8 = vpop.f32.mrf.mxu1 }
0x282a   : > { %v19382_v27 = vadd.f32 %v19381_v61, %v19308_v56 }
0x282b   : > { %v29352_v26 = vpop.f32.mrf.mxu0  ;;  %v29377_v7 = vpop.f32.mrf.mxu1 }
0x282c   : > { %v34402_v28 = vadd.f32 %v19453_v6, %v19382_v27 }
0x282d   : > { %v19537_v60 = vpop.f32.mrf.mxu0  ;;  %v19907_v16 = vpop.f32.mrf.mxu1 }
0x282e   : > { %v19614_v32 = vadd.f32 %v19613_v63, %v19537_v60 }
0x282f   : > { %v29362_v58 = vpop.f32.mrf.mxu0  ;;  %v29387_v41 = vpop.f32.mrf.mxu1 }
0x2831   : > { %v19687_v39 = vpop.f32.mrf.mxu0 }
0x2832   : > { %v19688_v59 = vadd.f32 %v19687_v39, %v19614_v32 }
0x2833   : > { %v29372_v11 = vpop.f32.mrf.mxu0 }
0x2834   : > { %v19762_v30 = vadd.f32 %v19761_v8, %v19688_v59 }
0x2835   : > { %v19835_v12 = vpop.f32.mrf.mxu0 }
0x2836   : > { %v19836_v45 = vadd.f32 %v19835_v12, %v19762_v30 }
0x2837   : > { %v29382_v46 = vpop.f32.mrf.mxu0 }
0x2838   : > { %v19908_v17 = vadd.f32 %v19907_v16, %v19836_v45 }
0x283a   : > { %v19911_v31 = vsel %vm3919_vm3, %v19908_v17, -inf }
0x283b   : > { %19912 = vmax.xlane.f32.xlu0 %v19911_v31 }
0x2851   : > { %19923 = vrot.lane.b32.xlu0 %v34109_v50, %s31416_s24  ;;  %s35913_s24 = scalar_lea.vmem [#allocation39], %s32346_s19 }
0x2855   : > { %20376 = vrot.lane.b32.xlu0 %v34284_v23, %s31417_s17 }
0x28c4   : > { %v19913_v35 = vpop.xlane.xlu0 %19912 }
0x28c5   : > { %v19914_v14 = vsub.f32 %v19908_v17, %v19913_v35 }
0x28c7   : > { %v19915_v33 = vmul.f32 1.442695, %v19914_v14 }
0x28c8   : > { %v19924_v54 = vpop.permute.xlu0 %19923 }
0x28c9   : > { %30396 = vpow2.f32 %v19915_v33  ;;  %v19960_v10 = vand.u32 4294901760, %v19924_v54 }
0x28cb   : > { %v20037_v24 = vsub.f32 %v19924_v54, %v19960_v10  ;;  %29389 = vmatpush3.msra.mxu0 %v19960_v10 }
0x28cc   : > { %29398 = vmatprep.subr.mxu0 %v35875_v51  ;;  %v20377_v0 = vpop.permute.xlu0 %20376 }
0x28cd   : > { %v20038_v48 = vand.u32 4294901760, %v20037_v24  ;;  %v20380_v44 = vsel %vm3919_vm3, %v20377_v0, 0 }
0x28ce   : > { %v20450_v56 = vand.u32 4294901760, %v20380_v44 }
0x28cf   : > { %v20039_v5 = vsub.f32 %v20037_v24, %v20038_v48 }
0x28d0   : > { %v20451_v26 = vsub.f32 %v20380_v44, %v20450_v56 }
0x28d1   : > { %v20040_v3 = vand.u32 4294901760, %v20039_v5 }
0x28d2   : > { %v20452_v16 = vand.u32 4294901760, %v20451_v26 }
0x28d3   : > { %29394 = vmatpush3.msra.mxu1 %v20040_v3 }
0x28d4   : > { %29403 = vmatprep.subr.mxu1 %v35875_v51  ;;  %v20453_v58 = vsub.f32 %v20451_v26, %v20452_v16 }
0x28d6   : > { %v30397_v18 = vpop.eup %30396  ;;  %v20454_v41 = vand.u32 4294901760, %v20453_v58 }
0x28d7   : > { %v19917_v52 = vsel %vm3919_vm3, %v30397_v18, 0.0 }
0x28d8   : > { %19918 = vadd.xlane.f32.xlu1 %v19917_v52 }
0x28e9   : > { %20378 = vrot.lane.b32.xlu1 %v34083_v38, %s31417_s17 }
0x2961   : > { %v19919_v1 = vpop.xlane.xlu1 %19918 }
0x2962   : > { %30398 = vrcp.f32 %v19919_v1 }
0x2965   : > { %v20379_v4 = vpop.permute.xlu1 %20378 }
0x2966   : > { %v20382_v47 = vsel %vm3919_vm3, %v20379_v4, 0 }
0x2967   : > { %v20415_v49 = vand.u32 4294901760, %v20382_v47 }
0x2969   : > { %v20492_v36 = vsub.f32 %v20382_v47, %v20415_v49 }
0x296b   : > { %v20493_v55 = vand.u32 4294901760, %v20492_v36 }
0x296d   : > { %v20494_v8 = vsub.f32 %v20492_v36, %v20493_v55 }
0x296f   : > { %v30399_v6 = vpop.eup %30398  ;;  %v20495_v60 = vand.u32 4294901760, %v20494_v8 }
0x2970   : > { %v34415_v40 = vmul.f32 %v30399_v6, %v30397_v18 }
0x2972   : > { %v19927_v43 = vsel %vm3919_vm3, %v34415_v40, 0 }
0x2973   : > { %v19995_v63 = vand.u32 4294901760, %v19927_v43 }
0x2975   : > { %v19996_v22 = vsub.f32 %v19927_v43, %v19995_v63  ;;  %29396 = vmatmul.mubr.f32.vlgmr.msra.gmra.mxu1 %v19995_v63 }
0x2976   : > { %29404 = vmatpush3.msra.mxu1 %v19960_v10  ;;  %29405 = vmatprep.mubr.msk.f32.mxu1 %vm31415_vm2, %v35875_v51 }
0x2977   : > { %29413 = vmatprep.subr.mxu1 %v35875_v51  ;;  %v19997_v61 = vand.u32 4294901760, %v19996_v22 }
0x2979   : > { %29406 = vmatmul.mubr.f32.vlgmr.msra.gmra.mxu1 %v19997_v61  ;;  %v19998_v27 = vsub.f32 %v19996_v22, %v19997_v61 }
0x297a   : > { %29414 = vmatpush3.msra.mxu1 %v19960_v10  ;;  %29415 = vmatprep.mubr.msk.f32.mxu1 %vm31415_vm2, %v35875_v51 }
0x297b   : > { %29423 = vmatprep.subr.mxu1 %v35875_v51  ;;  %v19999_v7 = vand.u32 4294901760, %v19998_v27 }
0x297d   : > { %29391 = vmatmul.mubr.f32.vlgmr.msra.gmra.mxu0 %v19999_v7  ;;  %29416 = vmatmul.mubr.f32.vlgmr.msra.gmra.mxu1 %v19995_v63 }
0x297e   : > { %29399 = vmatpush3.msra.mxu0 %v20037_v24  ;;  %29424 = vmatpush3.xpose.msra.mxu1 %v20495_v60 }
0x297f   : > { %29400 = vmatprep.mubr.msk.f32.mxu0 %vm31415_vm2, %v35875_v51  ;;  %29408 = vmatprep.subr.mxu0 %v35875_v51 }
0x2980   : > { %29425 = vmatprep.mubr.msk.f32.mxu1 %vm31415_vm2, %v35875_v51  ;;  %29433 = vmatprep.subr.mxu1 %v35875_v51 }
0x2981   : > { %29401 = vmatmul.mubr.f32.vlgmr.msra.gmra.mxu0 %v19996_v22  ;;  %29426 = vmatmul.mubr.f32.vlgmr.msra.gmra.mxu1 %v20450_v56 }
0x2982   : > { %29409 = vmatpush3.msra.mxu0 %v20038_v48  ;;  %29434 = vmatpush3.xpose.msra.mxu1 %v20415_v49 }
0x2983   : > { %29410 = vmatprep.mubr.msk.f32.mxu0 %vm31415_vm2, %v35875_v51  ;;  %29418 = vmatprep.subr.mxu0 %v35875_v51 }
0x2984   : > { %29435 = vmatprep.mubr.msk.f32.mxu1 %vm31415_vm2, %v35875_v51  ;;  %29443 = vmatprep.subr.mxu1 %v35875_v51 }
0x2985   : > { %29411 = vmatmul.mubr.f32.vlgmr.msra.gmra.mxu0 %v19995_v63  ;;  %29436 = vmatmul.mubr.f32.vlgmr.msra.gmra.mxu1 %v20452_v16 }
0x2986   : > { %29419 = vmatpush3.xpose.msra.mxu0 %v20415_v49  ;;  %29444 = vmatpush3.xpose.msra.mxu1 %v20415_v49 }
0x2987   : > { %29420 = vmatprep.mubr.msk.f32.mxu0 %vm31415_vm2, %v35875_v51  ;;  %29428 = vmatprep.subr.mxu0 %v35875_v51 }
0x2988   : > { %29445 = vmatprep.mubr.msk.f32.mxu1 %vm31415_vm2, %v35875_v51  ;;  %29453 = vmatprep.subr.mxu1 %v35875_v51 }
0x2989   : > { %29421 = vmatmul.mubr.f32.vlgmr.msra.gmra.mxu0 %v20454_v41  ;;  %29446 = vmatmul.mubr.f32.vlgmr.msra.gmra.mxu1 %v20450_v56 }
0x298a   : > { %29429 = vmatpush3.xpose.msra.mxu0 %v20492_v36  ;;  %29430 = vmatprep.mubr.msk.f32.mxu0 %vm31415_vm2, %v35875_v51 }
0x298b   : > { %29438 = vmatprep.subr.mxu0 %v35875_v51  ;;  %29455 = vmatprep.mubr.msk.f32.mxu1 %vm31415_vm2, %v35875_v51 }
0x298d   : > { %29431 = vmatmul.mubr.f32.vlgmr.msra.gmra.mxu0 %v20451_v26 }
0x298e   : > { %29439 = vmatpush3.xpose.msra.mxu0 %v20493_v55  ;;  %29440 = vmatprep.mubr.msk.f32.mxu0 %vm31415_vm2, %v35875_v51 }
0x298f   : > { %29448 = vmatprep.subr.mxu0 %v35875_v51 }
0x2991   : > { %29441 = vmatmul.mubr.f32.vlgmr.msra.gmra.mxu0 %v20450_v56 }
0x2992   : > { %29450 = vmatprep.mubr.msk.f32.mxu0 %vm31415_vm2, %v35875_v51 }
0x2a35   : > { %v20077_v32 = vpop.f32.mrf.mxu1 }
0x2a37   : > { %v29397_v39 = vpop.f32.mrf.mxu1 }
0x2a39   : > { %v20225_v59 = vpop.f32.mrf.mxu1 }
0x2a3b   : > { %v29407_v11 = vpop.f32.mrf.mxu1 }
0x2a3d   : > { %v20001_v30 = vpop.f32.mrf.mxu0  ;;  %v20371_v12 = vpop.f32.mrf.mxu1 }
0x2a3e   : > { %v20078_v45 = vadd.f32 %v20077_v32, %v20001_v30 }
0x2a3f   : > { %v29392_v46 = vpop.f32.mrf.mxu0  ;;  %v29417_v17 = vpop.f32.mrf.mxu1 }
0x2a41   : > { %v20151_v31 = vpop.f32.mrf.mxu0  ;;  %v20532_v35 = vpop.f32.mrf.mxu1 }
0x2a42   : > { %v20152_v14 = vadd.f32 %v20151_v31, %v20078_v45  ;;  %v20375_v45 = vadd.f32 %v34415_v40, %v34358_v62 }
0x2a43   : > { %v29402_v33 = vpop.f32.mrf.mxu0  ;;  %v29427_v54 = vpop.f32.mrf.mxu1 }
0x2a44   : > { %v20226_v10 = vadd.f32 %v20225_v59, %v20152_v14 }
0x2a45   : > { %v20299_v24 = vpop.f32.mrf.mxu0  ;;  %v20680_v48 = vpop.f32.mrf.mxu1 }
0x2a46   : > { %v20300_v5 = vadd.f32 %v20299_v24, %v20226_v10 }
0x2a47   : > { %v29412_v3 = vpop.f32.mrf.mxu0  ;;  %v29437_v18 = vpop.f32.mrf.mxu1 }
0x2a48   : > { %v34454_v52 = vadd.f32 %v20371_v12, %v20300_v5 }
0x2a49   : > { %v20456_v1 = vpop.f32.mrf.mxu0  ;;  %v20826_v4 = vpop.f32.mrf.mxu1 }
0x2a4a   : > { %v20533_v6 = vadd.f32 %v20532_v35, %v20456_v1 }
0x2a4b   : > { %v29422_v47 = vpop.f32.mrf.mxu0  ;;  %v29447_v49 = vpop.f32.mrf.mxu1 }
0x2a4d   : > { %v20606_v36 = vpop.f32.mrf.mxu0 }
0x2a4e   : > { %v20607_v0 = vadd.f32 %v20606_v36, %v20533_v6 }
0x2a4f   : > { %v29432_v43 = vpop.f32.mrf.mxu0 }
0x2a50   : > { %v20681_v63 = vadd.f32 %v20680_v48, %v20607_v0 }
0x2a51   : > { %v20754_v44 = vpop.f32.mrf.mxu0 }
0x2a52   : > { %v20755_v55 = vadd.f32 %v20754_v44, %v20681_v63 }
0x2a53   : > { %v29442_v22 = vpop.f32.mrf.mxu0 }
0x2a54   : > { %v20827_v56 = vadd.f32 %v20826_v4, %v20755_v55 }
0x2a56   : > { %v20830_v61 = vsel %vm3919_vm3, %v20827_v56, -inf }
0x2a57   : > { %20831 = vmax.xlane.f32.xlu1 %v20830_v61 }
0x2a68   : > { %21296 = vrot.lane.b32.xlu1 %v34083_v38, %s31418_s20 }
0x2a6c   : > { %21294 = vrot.lane.b32.xlu1 %v34284_v23, %s31418_s20 }
0x2ae0   : > { %v20832_v8 = vpop.xlane.xlu1 %20831 }
0x2ae1   : > { %v20833_v27 = vsub.f32 %v20827_v56, %v20832_v8 }
0x2ae3   : > { %v20834_v26 = vmul.f32 1.442695, %v20833_v27 }
0x2ae4   : > { %v21297_v41 = vpop.permute.xlu1 %21296 }
0x2ae5   : > { %30400 = vpow2.f32 %v20834_v26  ;;  %v21300_v23 = vsel %vm3919_vm3, %v21297_v41, 0 }
0x2ae6   : > { %v21333_v59 = vand.u32 4294901760, %v21300_v23 }
0x2ae8   : > { %v21410_v46 = vsub.f32 %v21300_v23, %v21333_v59  ;;  %v21295_v31 = vpop.permute.xlu1 %21294 }
0x2ae9   : > { %v21298_v10 = vsel %vm3919_vm3, %v21295_v31, 0 }
0x2aea   : > { %v21411_v54 = vand.u32 4294901760, %v21410_v46  ;;  %v21368_v62 = vand.u32 4294901760, %v21298_v10 }
0x2aec   : > { %v21412_v48 = vsub.f32 %v21410_v46, %v21411_v54  ;;  %v21369_v3 = vsub.f32 %v21298_v10, %v21368_v62 }
0x2aee   : > { %v21413_v1 = vand.u32 4294901760, %v21412_v48  ;;  %v21370_v4 = vand.u32 4294901760, %v21369_v3 }
0x2af0   : > { %v21371_v47 = vsub.f32 %v21369_v3, %v21370_v4 }
0x2af2   : > { %v30401_v7 = vpop.eup %30400  ;;  %v21372_v49 = vand.u32 4294901760, %v21371_v47 }
0x2af3   : > { %v20836_v60 = vsel %vm3919_vm3, %v30401_v7, 0.0 }
0x2af4   : > { %20837 = vadd.xlane.f32.xlu0 %v20836_v60 }
0x2b0a   : > { %20841 = vrot.lane.b32.xlu0 %v34109_v50, %s31417_s17 }
0x2b7d   : > { %v20838_v16 = vpop.xlane.xlu0 %20837 }
0x2b7e   : > { %30402 = vrcp.f32 %v20838_v16 }
0x2b81   : > { %v20842_v58 = vpop.permute.xlu0 %20841 }
0x2b82   : > { %v20878_v32 = vand.u32 4294901760, %v20842_v58 }
0x2b84   : > { %v20955_v38 = vsub.f32 %v20842_v58, %v20878_v32  ;;  %29449 = vmatpush3.msra.mxu0 %v20878_v32 }
0x2b85   : > { %29458 = vmatprep.subr.mxu0 %v35875_v51 }
0x2b86   : > { %v20956_v39 = vand.u32 4294901760, %v20955_v38 }
0x2b88   : > { %v20957_v11 = vsub.f32 %v20955_v38, %v20956_v39 }
0x2b8a   : > { %v20958_v30 = vand.u32 4294901760, %v20957_v11 }
0x2b8b   : > { %v30403_v12 = vpop.eup %30402 }
0x2b8c   : > { %v20840_v17 = vmul.f32 %v30403_v12, %v30401_v7  ;;  %29454 = vmatpush3.msra.mxu1 %v20958_v30 }
0x2b8d   : > { %29463 = vmatprep.subr.mxu1 %v35875_v51 }
0x2b8e   : > { %v34469_v35 = vadd.f32 %v20840_v17, %v20375_v45  ;;  %v20845_v14 = vsel %vm3919_vm3, %v20840_v17, 0 }
0x2b8f   : > { %v20913_v33 = vand.u32 4294901760, %v20845_v14 }
0x2b91   : > { %v20914_v24 = vsub.f32 %v20845_v14, %v20913_v33  ;;  %29456 = vmatmul.mubr.f32.vlgmr.msra.gmra.mxu1 %v20913_v33 }
0x2b92   : > { %29464 = vmatpush3.msra.mxu1 %v20878_v32  ;;  %29465 = vmatprep.mubr.msk.f32.mxu1 %vm31415_vm2, %v35875_v51 }
0x2b93   : > { %29473 = vmatprep.subr.mxu1 %v35875_v51  ;;  %v20915_v40 = vand.u32 4294901760, %v20914_v24 }
0x2b95   : > { %29466 = vmatmul.mubr.f32.vlgmr.msra.gmra.mxu1 %v20915_v40  ;;  %v20916_v5 = vsub.f32 %v20914_v24, %v20915_v40 }
0x2b96   : > { %29474 = vmatpush3.msra.mxu1 %v20878_v32  ;;  %29475 = vmatprep.mubr.msk.f32.mxu1 %vm31415_vm2, %v35875_v51 }
0x2b97   : > { %29483 = vmatprep.subr.mxu1 %v35875_v51  ;;  %v20917_v18 = vand.u32 4294901760, %v20916_v5 }
0x2b99   : > { %29451 = vmatmul.mubr.f32.vlgmr.msra.gmra.mxu0 %v20917_v18  ;;  %29476 = vmatmul.mubr.f32.vlgmr.msra.gmra.mxu1 %v20913_v33 }
0x2b9a   : > { %29459 = vmatpush3.msra.mxu0 %v20955_v38  ;;  %29484 = vmatpush3.xpose.msra.mxu1 %v21413_v1 }
0x2b9b   : > { %29460 = vmatprep.mubr.msk.f32.mxu0 %vm31415_vm2, %v35875_v51  ;;  %29468 = vmatprep.subr.mxu0 %v35875_v51 }
0x2b9c   : > { %29485 = vmatprep.mubr.msk.f32.mxu1 %vm31415_vm2, %v35875_v51  ;;  %29493 = vmatprep.subr.mxu1 %v35875_v51 }
0x2b9d   : > { %29461 = vmatmul.mubr.f32.vlgmr.msra.gmra.mxu0 %v20914_v24  ;;  %29486 = vmatmul.mubr.f32.vlgmr.msra.gmra.mxu1 %v21368_v62 }
0x2b9e   : > { %29469 = vmatpush3.msra.mxu0 %v20956_v39  ;;  %29494 = vmatpush3.xpose.msra.mxu1 %v21333_v59 }
0x2b9f   : > { %29470 = vmatprep.mubr.msk.f32.mxu0 %vm31415_vm2, %v35875_v51  ;;  %29478 = vmatprep.subr.mxu0 %v35875_v51 }
0x2ba0   : > { %29495 = vmatprep.mubr.msk.f32.mxu1 %vm31415_vm2, %v35875_v51  ;;  %29503 = vmatprep.subr.mxu1 %v35875_v51 }
0x2ba1   : > { %29471 = vmatmul.mubr.f32.vlgmr.msra.gmra.mxu0 %v20913_v33  ;;  %29496 = vmatmul.mubr.f32.vlgmr.msra.gmra.mxu1 %v21370_v4 }
0x2ba2   : > { %29479 = vmatpush3.xpose.msra.mxu0 %v21333_v59  ;;  %29504 = vmatpush3.xpose.msra.mxu1 %v21333_v59 }
0x2ba3   : > { %29480 = vmatprep.mubr.msk.f32.mxu0 %vm31415_vm2, %v35875_v51  ;;  %29488 = vmatprep.subr.mxu0 %v35875_v51 }
0x2ba4   : > { %29505 = vmatprep.mubr.msk.f32.mxu1 %vm31415_vm2, %v35875_v51  ;;  %29513 = vmatprep.subr.mxu1 %v35875_v51 }
0x2ba5   : > { %29481 = vmatmul.mubr.f32.vlgmr.msra.gmra.mxu0 %v21372_v49  ;;  %29506 = vmatmul.mubr.f32.vlgmr.msra.gmra.mxu1 %v21368_v62 }
0x2ba6   : > { %29489 = vmatpush3.xpose.msra.mxu0 %v21410_v46  ;;  %29490 = vmatprep.mubr.msk.f32.mxu0 %vm31415_vm2, %v35875_v51 }
0x2ba7   : > { %29498 = vmatprep.subr.mxu0 %v35875_v51  ;;  %29515 = vmatprep.mubr.msk.f32.mxu1 %vm31415_vm2, %v35875_v51 }
0x2ba9   : > { %29491 = vmatmul.mubr.f32.vlgmr.msra.gmra.mxu0 %v21369_v3 }
0x2baa   : > { %29499 = vmatpush3.xpose.msra.mxu0 %v21411_v54  ;;  %29500 = vmatprep.mubr.msk.f32.mxu0 %vm31415_vm2, %v35875_v51 }
0x2bab   : > { %29508 = vmatprep.subr.mxu0 %v35875_v51 }
0x2bad   : > { %29501 = vmatmul.mubr.f32.vlgmr.msra.gmra.mxu0 %v21368_v62 }
0x2bae   : > { %29510 = vmatprep.mubr.msk.f32.mxu0 %vm31415_vm2, %v35875_v51 }
0x2c51   : > { %v20995_v6 = vpop.f32.mrf.mxu1 }
0x2c53   : > { %v29457_v36 = vpop.f32.mrf.mxu1 }
0x2c55   : > { %v21143_v0 = vpop.f32.mrf.mxu1 }
0x2c57   : > { %v29467_v43 = vpop.f32.mrf.mxu1 }
0x2c59   : > { %v20919_v63 = vpop.f32.mrf.mxu0  ;;  %v21289_v44 = vpop.f32.mrf.mxu1 }
0x2c5a   : > { %v20996_v55 = vadd.f32 %v20995_v6, %v20919_v63 }
0x2c5b   : > { %v29452_v22 = vpop.f32.mrf.mxu0  ;;  %v29477_v56 = vpop.f32.mrf.mxu1 }
0x2c5d   : > { %v21069_v61 = vpop.f32.mrf.mxu0  ;;  %v21450_v8 = vpop.f32.mrf.mxu1 }
0x2c5e   : > { %v21070_v27 = vadd.f32 %v21069_v61, %v20996_v55 }
0x2c5f   : > { %v29462_v26 = vpop.f32.mrf.mxu0  ;;  %v29487_v7 = vpop.f32.mrf.mxu1 }
0x2c60   : > { %v21144_v60 = vadd.f32 %v21143_v0, %v21070_v27 }
0x2c61   : > { %v21217_v16 = vpop.f32.mrf.mxu0  ;;  %v21598_v58 = vpop.f32.mrf.mxu1 }
0x2c62   : > { %v21218_v41 = vadd.f32 %v21217_v16, %v21144_v60 }
0x2c63   : > { %v29472_v32 = vpop.f32.mrf.mxu0  ;;  %v29497_v38 = vpop.f32.mrf.mxu1 }
0x2c64   : > { %v21290_v23 = vadd.f32 %v21289_v44, %v21218_v41  ;;  %v22231_v41 = vld [vmem:[%s32460_s16 + $0x18] sm:$0xff]  ;;  %v22230_v32 = vld [vmem:[%s32460_s16 + $0x10] sm:$0xff]  ;;  %v22229_v38 = vld [vmem:[%s32460_s16 + $0x8] sm:$0xff] }
0x2c65   : > { %v21374_v39 = vpop.f32.mrf.mxu0  ;;  %v21744_v59 = vpop.f32.mrf.mxu1 }
0x2c66   : > { %v21451_v12 = vadd.f32 %v21450_v8, %v21374_v39  ;;  %v34556_v39 = vand.u32 4294901760, %v22230_v32 }
0x2c67   : > { %v29482_v11 = vpop.f32.mrf.mxu0  ;;  %v29507_v30 = vpop.f32.mrf.mxu1 }
0x2c68   : > { %v34564_v30 = vsub.f32 %v22230_v32, %v34556_v39 }
0x2c69   : > { %v21524_v45 = vpop.f32.mrf.mxu0 }
0x2c6a   : > { %v21525_v46 = vadd.f32 %v21524_v45, %v21451_v12  ;;  %v34575_v45 = vand.u32 4294901760, %v34564_v30 }
0x2c6b   : > { %v29492_v17 = vpop.f32.mrf.mxu0 }
0x2c6c   : > { %v21599_v31 = vadd.f32 %v21598_v58, %v21525_v46 }
0x2c6d   : > { %v21672_v14 = vpop.f32.mrf.mxu0 }
0x2c6e   : > { %v21673_v33 = vadd.f32 %v21672_v14, %v21599_v31  ;;  %v22369_v31 = vsub.f32 %v34564_v30, %v34575_v45 }
0x2c6f   : > { %v29502_v54 = vpop.f32.mrf.mxu0 }
0x2c70   : > { %v21745_v10 = vadd.f32 %v21744_v59, %v21673_v33  ;;  %v34558_v59 = vand.u32 4294901760, %v22229_v38  ;;  %v22370_v54 = vand.u32 4294901760, %v22369_v31 }
0x2c72   : > { %v21748_v24 = vsel %vm3919_vm3, %v21745_v10, -inf }
0x2c73   : > { %21749 = vmax.xlane.f32.xlu0 %v21748_v24 }
0x2c89   : > { %21759 = vrot.lane.b32.xlu0 %v34109_v50, %s31418_s20 }
0x2c8d   : > { %18534 = vrot.lane.b32.xlu0 %v34277_v9, %s31419_s28 }
0x2c91   : > { %18538 = vrot.lane.b32.xlu0 %v34351_v2, %s31421_s8 }
0x2cfc   : > { %v21750_v62 = vpop.xlane.xlu0 %21749 }
0x2cfd   : > { %v21751_v40 = vsub.f32 %v21745_v10, %v21750_v62 }
0x2cff   : > { %v21752_v48 = vmul.f32 1.442695, %v21751_v40  ;;  %v22228_v40 = vld [vmem:[%s32460_s16] sm:$0xff]  ;;  %s35878_s16 = scalar_lea.vmem [#allocation28], %s32346_s19 }
0x2d00   : > { %v21760_v5 = vpop.permute.xlu0 %21759 }
0x2d01   : > { %30404 = vpow2.f32 %v21752_v48  ;;  %v21796_v3 = vand.u32 4294901760, %v21760_v5 }
0x2d03   : > { %v21873_v18 = vsub.f32 %v21760_v5, %v21796_v3  ;;  %29509 = vmatpush3.msra.mxu0 %v21796_v3  ;;  %v34591_v5 = vand.u32 4294901760, %v22228_v40 }
0x2d04   : > { %29518 = vmatprep.subr.mxu0 %v35875_v51  ;;  %v18535_v6 = vpop.permute.xlu0 %18534 }
0x2d05   : > { %v21874_v1 = vand.u32 4294901760, %v21873_v18 }
0x2d07   : > { %v21875_v4 = vsub.f32 %v21873_v18, %v21874_v1 }
0x2d08   : > { %v18539_v43 = vpop.permute.xlu0 %18538 }
0x2d09   : > { %v21876_v47 = vand.u32 4294901760, %v21875_v4 }
0x2d0b   : > { %29514 = vmatpush3.msra.mxu1 %v21876_v47 }
0x2d0c   : > { %29523 = vmatprep.subr.mxu1 %v35875_v51 }
0x2d0e   : > { %v30405_v50 = vpop.eup %30404 }
0x2d0f   : > { %v21754_v9 = vsel %vm3919_vm3, %v30405_v50, 0.0 }
0x2d10   : > { %21755 = vadd.xlane.f32.xlu1 %v21754_v9 }
0x2d21   : > { %18530 = vrot.lane.b32.xlu1 %v34224_v53, %s31420_s10 }
0x2d25   : > { %22213 = vrot.lane.b32.xlu1 %v34454_v52, %s31420_s10 }
0x2d29   : > { %22217 = vrot.lane.b32.xlu1 %v21290_v23, %s31419_s28  ;;  %v34554_v23 = vand.u32 4294901760, %v22231_v41 }
0x2d2b   : > { %v34561_v11 = vsub.f32 %v22231_v41, %v34554_v23 }
0x2d2d   : > { %v34572_v12 = vand.u32 4294901760, %v34561_v11 }
0x2d2f   : > { %v22362_v17 = vsub.f32 %v34561_v11, %v34572_v12 }
0x2d31   : > { %v22363_v33 = vand.u32 4294901760, %v22362_v17 }
0x2d99   : > { %v21756_v2 = vpop.xlane.xlu1 %21755 }
0x2d9a   : > { %30406 = vrcp.f32 %v21756_v2 }
0x2d9d   : > { %v18531_v49 = vpop.permute.xlu1 %18530 }
0x2d9e   : > { %v18541_v36 = vsel %vm3919_vm3, %v34172_v13, %v18531_v49 }
0x2d9f   : > { %v18542_v0 = vsel %vm7600_vm4, %v18541_v36, %v18535_v6 }
0x2da0   : > { %v18543_v63 = vsel %vm7602_vm5, %v18542_v0, %v18539_v43 }
0x2da1   : > { %v22240_v55 = vsel %vm2298_vm1, %v18543_v63, 0 }
0x2da2   : > { %v34529_v8 = vand.u32 4294901760, %v22240_v55 }
0x2da4   : > { %v34537_v26 = vsub.f32 %v22240_v55, %v34529_v8 }
0x2da6   : > { %v22316_v60 = vand.u32 4294901760, %v34537_v26 }
0x2da7   : > { %v30407_v44 = vpop.eup %30406 }
0x2da8   : > { %v21758_v53 = vmul.f32 %v30407_v44, %v30405_v50  ;;  %v22317_v16 = vsub.f32 %v34537_v26, %v22316_v60 }
0x2daa   : > { %v22211_v52 = vadd.f32 %v21758_v53, %v34469_v35  ;;  %v21763_v22 = vsel %vm3919_vm3, %v21758_v53, 0  ;;  %v22318_v58 = vand.u32 4294901760, %v22317_v16 }
0x2dab   : > { %v21831_v56 = vand.u32 4294901760, %v21763_v22 }
0x2dac   : > { %v22227_v61 = vmul.f32 0.25, %v22211_v52 }
0x2dad   : > { %v21832_v27 = vsub.f32 %v21763_v22, %v21831_v56  ;;  %29516 = vmatmul.mubr.f32.vlgmr.msra.gmra.mxu1 %v21831_v56  ;;  %v22214_v22 = vpop.permute.xlu1 %22213 }
0x2dae   : > { %26733 = vst.msk [vmem:[%s32470_s12 + $0x8] sm:$0xff] %vm3919_vm3, %v22227_v61  ;;  %29524 = vmatpush3.msra.mxu1 %v21796_v3  ;;  %29525 = vmatprep.mubr.msk.f32.mxu1 %vm31415_vm2, %v35875_v51  ;;  %v22224_v61 = vsel %vm3919_vm3, %v34402_v28, %v22214_v22 }
0x2daf   : > { %29533 = vmatprep.subr.mxu1 %v35875_v51  ;;  %v21833_v13 = vand.u32 4294901760, %v21832_v27 }
0x2db1   : > { %29526 = vmatmul.mubr.f32.vlgmr.msra.gmra.mxu1 %v21833_v13  ;;  %v21834_v35 = vsub.f32 %v21832_v27, %v21833_v13 }
0x2db2   : > { %29534 = vmatpush3.msra.mxu1 %v21796_v3  ;;  %29535 = vmatprep.mubr.msk.f32.mxu1 %vm31415_vm2, %v35875_v51 }
0x2db3   : > { %v21835_v7 = vand.u32 4294901760, %v21834_v35  ;;  %29549 = vmatprep.subr.mxu1 %v22363_v33 }
0x2db5   : > { %29511 = vmatmul.mubr.f32.vlgmr.msra.gmra.mxu0 %v21835_v7  ;;  %29536 = vmatmul.mubr.f32.vlgmr.msra.gmra.mxu1 %v21831_v56 }
0x2db6   : > { %29519 = vmatpush3.msra.mxu0 %v21873_v18  ;;  %29557 = vmatprep.mubr.f32.mxu1 %v34529_v8  ;;  %v22381_v18 = vsub.f32 %v22228_v40, %v34591_v5 }
0x2db7   : > { %29520 = vmatprep.mubr.msk.f32.mxu0 %vm31415_vm2, %v35875_v51  ;;  %29528 = vmatprep.subr.mxu0 %v35875_v51 }
0x2db8   : > { %29550 = vmatpush3.msra.mxu1 %v22363_v33  ;;  %v34596_v47 = vand.u32 4294901760, %v22381_v18 }
0x2db9   : > { %29521 = vmatmul.mubr.f32.vlgmr.msra.gmra.mxu0 %v21832_v27  ;;  %29551 = vmatprep.subr.mxu1 %v22370_v54 }
0x2dba   : > { %29529 = vmatpush3.msra.mxu0 %v21874_v1  ;;  %29530 = vmatprep.mubr.msk.f32.mxu0 %vm31415_vm2, %v35875_v51  ;;  %v34567_v51 = vsub.f32 %v22229_v38, %v34558_v59  ;;  %v22383_v2 = vsub.f32 %v22381_v18, %v34596_v47 }
0x2dbb   : > { %29538 = vmatprep.subr.mxu0 %v34554_v23  ;;  %29552 = vmatpush3.msra.mxu1 %v22370_v54 }
0x2dbc   : > { %v34578_v46 = vand.u32 4294901760, %v34567_v51  ;;  %v22384_v36 = vand.u32 4294901760, %v22383_v2 }
0x2dbd   : > { %29531 = vmatmul.mubr.f32.vlgmr.msra.gmra.mxu0 %v21831_v56  ;;  %v22218_v56 = vpop.permute.xlu1 %22217 }
0x2dbe   : > { %29546 = vmatprep.mubr.f32.mxu0 %v22318_v58  ;;  %29539 = vmatpush3.msra.mxu0 %v34554_v23  ;;  %v22376_v14 = vsub.f32 %v34567_v51, %v34578_v46  ;;  %v22225_v27 = vsel %vm7600_vm4, %v22224_v61, %v22218_v56  ;;  %v22824_v56 = vld [vmem:[%s32409_s0 + $0x10] sm:$0xff] }
0x2dbf   : > { %29540 = vmatprep.subr.mxu0 %v34556_v39 }
0x2dc0   : > { %29541 = vmatpush3.msra.mxu0 %v34556_v39  ;;  %v22377_v10 = vand.u32 4294901760, %v22376_v14 }
0x2dc1   : > { %29542 = vmatprep.subr.mxu0 %v34558_v59 }
0x2dc2   : > { %29543 = vmatpush3.msra.mxu0 %v34558_v59  ;;  %29553 = vmatprep.subr.mxu1 %v22377_v10 }
0x2dc3   : > { %29554 = vmatpush3.msra.mxu1 %v22377_v10  ;;  %29544 = vmatprep.subr.mxu0 %v34591_v5 }
0x2dc4   : > { %29545 = vmatpush3.msra.mxu0 %v34591_v5  ;;  %29555 = vmatprep.subr.mxu1 %v22384_v36 }
0x2dc5   : > { %29560 = vmatprep.subr.mxu0 %v34561_v11  ;;  %29556 = vmatpush3.msra.mxu1 %v22384_v36 }
0x2dc6   : > { %29571 = vmatprep.subr.mxu1 %v34554_v23 }
0x2e6d   : > { %v21913_v24 = vpop.f32.mrf.mxu1 }
0x2e6f   : > { %v29517_v62 = vpop.f32.mrf.mxu1 }
0x2e71   : > { %v22061_v48 = vpop.f32.mrf.mxu1 }
0x2e73   : > { %v29527_v3 = vpop.f32.mrf.mxu1 }
0x2e75   : > { %v21837_v1 = vpop.f32.mrf.mxu0  ;;  %v22207_v4 = vpop.f32.mrf.mxu1 }
0x2e76   : > { %v21914_v49 = vadd.f32 %v21913_v24, %v21837_v1 }
0x2e77   : > { %v29512_v50 = vpop.f32.mrf.mxu0  ;;  %v29537_v9 = vpop.f32.mrf.mxu1 }
0x2e79   : > { %v21987_v6 = vpop.f32.mrf.mxu0 }
0x2e7a   : > { %v21988_v0 = vadd.f32 %v21987_v6, %v21914_v49 }
0x2e7b   : > { %v29522_v43 = vpop.f32.mrf.mxu0 }
0x2e7c   : > { %v22062_v63 = vadd.f32 %v22061_v48, %v21988_v0 }
0x2e7d   : > { %v22135_v44 = vpop.f32.mrf.mxu0 }
0x2e7e   : > { %v22136_v53 = vadd.f32 %v22135_v44, %v22062_v63 }
0x2e7f   : > { %v29532_v55 = vpop.f32.mrf.mxu0 }
0x2e80   : > { %v22208_v52 = vadd.f32 %v22207_v4, %v22136_v53 }
0x2e82   : > { %22221 = vrot.lane.b32.xlu0 %v22208_v52, %s31421_s8  ;;  %v22825_v52 = vld [vmem:[%s32409_s0 + $0x18] sm:$0xff] }
0x2e83   : > { %v34647_v22 = vand.u32 4294901760, %v22825_v52 }
0x2e85   : > { %v34651_v61 = vsub.f32 %v22825_v52, %v34647_v22  ;;  %v22841_v52 = vld [vmem:[%s32463_s30 + $0x70] sm:$0xff] }
0x2ef4   : > { %v22222_v13 = vpop.permute.xlu0 %22221 }
0x2ef5   : > { %v22226_v35 = vsel %vm7602_vm5, %v22225_v27, %v22222_v13  ;;  %v34653_v27 = vand.u32 4294901760, %v22824_v56  ;;  %v22823_v13 = vld [vmem:[%s32409_s0 + $0x8] sm:$0xff] }
0x2ef6   : > { %v22243_v7 = vsel %vm2298_vm1, %v22226_v35, 0  ;;  %v34659_v35 = vand.u32 4294901760, %v34651_v61 }
0x2ef7   : > { %v22324_v16 = vand.u32 4294901760, %v22243_v7 }
0x2ef9   : > { %v22325_v58 = vsub.f32 %v22243_v7, %v22324_v16  ;;  %29558 = vmatmul.mubr.f32.vlgmr.msra.gmra.mxu1 %v22324_v16  ;;  %v34662_v7 = vsub.f32 %v22824_v56, %v34653_v27  ;;  %v34749_v56 = vand.u32 4294901760, %v22841_v52 }
0x2efa   : > { %29572 = vmatpush3.msra.mxu1 %v34554_v23  ;;  %29579 = vmatprep.mubr.f32.mxu1 %v22316_v60  ;;  %v26732_v60 = vld [vmem:[%s35878_s16] ss:$0 sm:$0xff] }
0x2efb   : > { %v22326_v41 = vand.u32 4294901760, %v22325_v58  ;;  %29573 = vmatprep.subr.mxu1 %v34556_v39 }
0x2efc   : > { %29574 = vmatpush3.msra.mxu1 %v34556_v39 }
0x2efd   : > { %v22327_v28 = vsub.f32 %v22325_v58, %v22326_v41  ;;  %29575 = vmatprep.subr.mxu1 %v34558_v59 }
0x2efe   : > { %29576 = vmatpush3.msra.mxu1 %v34558_v59 }
0x2eff   : > { %v22328_v32 = vand.u32 4294901760, %v22327_v28  ;;  %29577 = vmatprep.subr.mxu1 %v34591_v5  ;;  %v34672_v28 = vand.u32 4294901760, %v34662_v7 }
0x2f00   : > { %29578 = vmatpush3.msra.mxu1 %v34591_v5 }
0x2f01   : > { %29580 = vmatmul.mubr.f32.vlgmr.msra.gmra.mxu1 %v22326_v41  ;;  %29593 = vmatprep.subr.mxu1 %v34554_v23  ;;  %v22973_v41 = vsub.f32 %v34651_v61, %v34659_v35 }
0x2f02   : > { %29547 = vmatmul.mubr.f32.vlgmr.msra.gmra.mxu0 %v22328_v32  ;;  %29594 = vmatpush3.msra.mxu1 %v34554_v23 }
0x2f03   : > { %29561 = vmatpush3.msra.mxu0 %v34561_v11  ;;  %29601 = vmatprep.mubr.f32.mxu1 %v34529_v8 }
0x2f04   : > { %29562 = vmatprep.subr.mxu0 %v34564_v30  ;;  %29568 = vmatprep.mubr.f32.mxu0 %v34537_v26 }
0x2f05   : > { %29595 = vmatprep.subr.mxu1 %v34556_v39  ;;  %29563 = vmatpush3.msra.mxu0 %v34564_v30 }
0x2f06   : > { %29596 = vmatpush3.msra.mxu1 %v34556_v39  ;;  %29564 = vmatprep.subr.mxu0 %v34567_v51 }
0x2f07   : > { %29597 = vmatprep.subr.mxu1 %v34558_v59  ;;  %29565 = vmatpush3.msra.mxu0 %v34567_v51 }
0x2f08   : > { %29598 = vmatpush3.msra.mxu1 %v34558_v59  ;;  %29566 = vmatprep.subr.mxu0 %v22381_v18 }
0x2f09   : > { %29599 = vmatprep.subr.mxu1 %v34591_v5  ;;  %29567 = vmatpush3.msra.mxu0 %v22381_v18  ;;  %v30428_v18 = vld [vmem:[#allocation3 + $0x8] sm:$0xff] }
0x2f0a   : > { %29600 = vmatpush3.msra.mxu1 %v34591_v5  ;;  %29569 = vmatmul.mubr.f32.vlgmr.msra.gmra.mxu0 %v22325_v58  ;;  %v22822_v58 = vld [vmem:[%s32409_s0] sm:$0xff]  ;;  %s35879_s0 = scalar_lea.vmem [#allocation30], %s32346_s19 }
0x2f0b   : > { %29582 = vmatprep.subr.mxu0 %v34572_v12  ;;  %29602 = vmatmul.mubr.f32.vlgmr.msra.gmra.mxu1 %v22324_v16 }
0x2f0c   : > { %29583 = vmatpush3.msra.mxu0 %v34572_v12  ;;  %29590 = vmatprep.mubr.f32.mxu0 %v34529_v8 }
0x2f0d   : > { %29584 = vmatprep.subr.mxu0 %v34575_v45 }
0x2f0e   : > { %29585 = vmatpush3.msra.mxu0 %v34575_v45 }
0x2f0f   : > { %29586 = vmatprep.subr.mxu0 %v34578_v46 }
0x2f10   : > { %29587 = vmatpush3.msra.mxu0 %v34578_v46 }
0x2f11   : > { %29588 = vmatprep.subr.mxu0 %v34596_v47 }
0x2f12   : > { %29589 = vmatpush3.msra.mxu0 %v34596_v47  ;;  %v30429_v47 = vld [vmem:[#allocation3] sm:$0xff] }
0x2f13   : > { %29591 = vmatmul.mubr.f32.vlgmr.msra.gmra.mxu0 %v22324_v16  ;;  %29604 = vmatprep.subr.mxu0 %v34647_v22  ;;  %v34664_v16 = vand.u32 4294901760, %v22823_v13 }
0x2f14   : > { %29605 = vmatpush3.msra.mxu0 %v34647_v22 }
0x2f15   : > { %29606 = vmatprep.subr.mxu0 %v34653_v27  ;;  %v34675_v32 = vsub.f32 %v22823_v13, %v34664_v16  ;;  %v34758_v13 = vsub.f32 %v22841_v52, %v34749_v56 }
0x2f16   : > { %29607 = vmatpush3.msra.mxu0 %v34653_v27 }
0x2f17   : > { %29608 = vmatprep.subr.mxu0 %v34664_v16 }
0x2f18   : > { %29609 = vmatpush3.msra.mxu0 %v34664_v16 }
0x2fb9   : > { %v29559_v38 = vpop.f32.mrf.mxu1 }
0x2fbb   : > { %v22421_v11 = vpop.f32.mrf.mxu1 }
0x2fc1   : > { %v29581_v51 = vpop.f32.mrf.mxu1 }
0x2fc2   : > { %v29548_v26 = vpop.f32.mrf.mxu0 }
0x2fc3   : > { %v22331_v39 = vadd.f32 %v29548_v26, %v26732_v60  ;;  %v22591_v31 = vpop.f32.mrf.mxu1  ;;  %v34677_v26 = vand.u32 4294901760, %v22822_v58 }
0x2fc4   : > { %v22320_v23 = vpop.f32.mrf.mxu0 }
0x2fc5   : > { %v22321_v8 = vadd.f32 %v26732_v60, %v22320_v23  ;;  %v22428_v30 = vadd.f32 %v29559_v38, %v22331_v39  ;;  %v22974_v60 = vand.u32 4294901760, %v22973_v41  ;;  %v22980_v38 = vsub.f32 %v34662_v7, %v34672_v28  ;;  %29610 = vmatprep.subr.mxu0 %v34677_v26 }
0x2fc6   : > { %v34684_v23 = vand.u32 4294901760, %v34675_v32  ;;  %v34687_v39 = vsub.f32 %v22822_v58, %v34677_v26  ;;  %29611 = vmatpush3.msra.mxu0 %v34677_v26  ;;  %v34768_v58 = vand.u32 4294901760, %v34758_v13 }
0x2fc7   : > { %v22422_v17 = vadd.f32 %v22421_v11, %v22321_v8  ;;  %29615 = vmatprep.subr.mxu1 %v22974_v60  ;;  %v22981_v8 = vand.u32 4294901760, %v22980_v38  ;;  %29626 = vmatprep.subr.mxu0 %v34651_v61 }
0x2fc8   : > { %v34694_v11 = vand.u32 4294901760, %v34687_v39  ;;  %29616 = vmatpush3.msra.mxu1 %v22974_v60  ;;  %v23556_v60 = vsub.f32 %v34758_v13, %v34768_v58 }
0x2fc9   : > { %29617 = vmatprep.subr.mxu1 %v22981_v8 }
0x2fca   : > { %v29570_v59 = vpop.f32.mrf.mxu0  ;;  %29618 = vmatpush3.msra.mxu1 %v22981_v8  ;;  %v22837_v8 = vld [vmem:[%s32463_s30 + $0x50] sm:$0xff] }
0x2fcb   : > { %v22515_v45 = vadd.f32 %v29570_v59, %v22428_v30  ;;  %v29603_v33 = vpop.f32.mrf.mxu1  ;;  %v22987_v59 = vsub.f32 %v34675_v32, %v34684_v23 }
0x2fcc   : > { %v22507_v12 = vpop.f32.mrf.mxu0 }
0x2fcd   : > { %v22508_v46 = vadd.f32 %v22507_v12, %v22422_v17  ;;  %v22600_v14 = vadd.f32 %v29581_v51, %v22515_v45  ;;  %v22763_v5 = vpop.f32.mrf.mxu1  ;;  %v22988_v30 = vand.u32 4294901760, %v22987_v59  ;;  %v22994_v51 = vsub.f32 %v34687_v39, %v34694_v11 }
0x2fce   : > { %v23557_v59 = vand.u32 4294901760, %v23556_v60 }
0x2fcf   : > { %v22592_v24 = vadd.f32 %v22591_v31, %v22508_v46  ;;  %29619 = vmatprep.subr.mxu1 %v22988_v30  ;;  %v22995_v12 = vand.u32 4294901760, %v22994_v51  ;;  %v34796_v51 = vand.u32 4294901760, %v22837_v8 }
0x2fd0   : > { %29620 = vmatpush3.msra.mxu1 %v22988_v30 }
0x2fd1   : > { %29621 = vmatprep.subr.mxu1 %v22995_v12 }
0x2fd2   : > { %29622 = vmatpush3.msra.mxu1 %v22995_v12 }
0x2fd3   : > { %v29592_v54 = vpop.f32.mrf.mxu0  ;;  %29637 = vmatprep.subr.mxu1 %v34647_v22 }
0x2fd4   : > { %v22689_v10 = vadd.f32 %v29592_v54, %v22600_v14 }
0x2fd5   : > { %v22682_v62 = vpop.f32.mrf.mxu0 }
0x2fd6   : > { %v22770_v40 = vadd.f32 %v29603_v33, %v22689_v10  ;;  %v22683_v48 = vadd.f32 %v22682_v62, %v22592_v24  ;;  %v26734_v10 = vld [vmem:[%s35879_s0] ss:$0 sm:$0xff] }
0x2fd8   : > { %v22764_v3 = vadd.f32 %v22763_v5, %v22683_v48  ;;  %v22777_v1 = vadd.f32 %v30428_v18, %v22770_v40  ;;  %v26735_v40 = vld [vmem:[%s35880_s14] ss:$0 sm:$0xff] }
0x2fda   : > { %v22783_v4 = vsel %vm2298_vm1, %v22777_v1, 0.0  ;;  %v22776_v50 = vadd.f32 %v30429_v47, %v22764_v3 }
0x2fdb   : > { %22784 = vadd.xlane.f32.xlu0 %v22783_v4 }
0x2fdc   : > { %v22780_v9 = vsel %vm2298_vm1, %v22776_v50, 0.0 }
0x2fdd   : > { %22781 = vadd.xlane.f32.xlu1 %v22780_v9 }
0x3064   : > { %v22785_v2 = vpop.xlane.xlu0 %22784 }
0x3065   : > { %v22787_v49 = vmul.f32 0.03125, %v22785_v2 }
0x3066   : > { %v22782_v6 = vpop.xlane.xlu1 %22781 }
0x3067   : > { %v22789_v36 = vsub.f32 %v22777_v1, %v22787_v49  ;;  %v22786_v0 = vmul.f32 0.03125, %v22782_v6 }
0x3069   : > { %v22788_v43 = vsub.f32 %v22776_v50, %v22786_v0  ;;  %v22791_v63 = vmul.f32 %v22789_v36, %v22789_v36 }
0x306b   : > { %v22795_v44 = vsel %vm2298_vm1, %v22791_v63, 0.0  ;;  %v22790_v53 = vmul.f32 %v22788_v43, %v22788_v43 }
0x306c   : > { %22796 = vadd.xlane.f32.xlu1 %v22795_v44 }
0x306d   : > { %v22792_v55 = vsel %vm2298_vm1, %v22790_v53, 0.0  ;;  %v22842_v53 = vld [vmem:[%s32463_s30 + $0x78] sm:$0xff] }
0x306e   : > { %22793 = vadd.xlane.f32.xlu0 %v22792_v55  ;;  %v34743_v55 = vand.u32 4294901760, %v22842_v53 }
0x30f5   : > { %v22797_v45 = vpop.xlane.xlu1 %22796 }
0x30f6   : > { %v22799_v17 = vmul.f32 0.03125, %v22797_v45  ;;  %v22836_v45 = vld [vmem:[%s32463_s30 + $0x48] sm:$0xff] }
0x30f7   : > { %v22794_v46 = vpop.xlane.xlu0 %22793 }
0x30f8   : > { %v22801_v31 = vadd.f32 1e-05, %v22799_v17  ;;  %v22798_v14 = vmul.f32 0.03125, %v22794_v46 }
0x30fa   : > { %30408 = vrsqrt.f32 %v22801_v31  ;;  %v22800_v33 = vadd.f32 1e-05, %v22798_v14  ;;  %v34806_v31 = vsub.f32 %v22837_v8, %v34796_v51  ;;  %v34808_v14 = vand.u32 4294901760, %v22836_v45 }
0x30fc   : > { %30410 = vrsqrt.f32 %v22800_v33 }
0x3107   : > { %v30409_v54 = vpop.eup %30408 }
0x3108   : > { %v22805_v24 = vmul.f32 %v30409_v54, %v22789_v36  ;;  %v22835_v54 = vld [vmem:[%s32463_s30 + $0x40] sm:$0xff] }
0x3109   : > { %v30411_v62 = vpop.eup %30410 }
0x310a   : > { %v22804_v48 = vmul.f32 %v30411_v62, %v22788_v43  ;;  %v22813_v5 = vmul.f32 %v26734_v10, %v22805_v24  ;;  %v34817_v24 = vand.u32 4294901760, %v34806_v31  ;;  %v34820_v62 = vsub.f32 %v22836_v45, %v34808_v14 }
0x310c   : > { %v22812_v3 = vmul.f32 %v26734_v10, %v22804_v48  ;;  %v34704_v18 = vadd.f32 %v26735_v40, %v22813_v5  ;;  %35884 = vst [vmem:[#allocation133_spill] sm:$0xff] %v34817_v24  ;;  %v22834_v5 = vld [vmem:[%s32463_s30 + $0x38] sm:$0xff] }
0x310e   : > { %35881 = vst [vmem:[#allocation127_spill] sm:$0xff] %v34704_v18  ;;  %v34706_v1 = vadd.f32 %v26735_v40, %v22812_v3  ;;  %v22854_v4 = vsel %vm2298_vm1, %v34704_v18, 0  ;;  %v34822_v40 = vand.u32 4294901760, %v22835_v54  ;;  %v23584_v3 = vsub.f32 %v34806_v31, %v34817_v24 }
0x310f   : > { %v22935_v47 = vand.u32 4294901760, %v22854_v4 }
0x3110   : > { %35882 = vst [vmem:[#allocation147_spill] sm:$0xff] %v34706_v1  ;;  %v22851_v50 = vsel %vm2298_vm1, %v34706_v1, 0 }
0x3111   : > { %v22925_v9 = vand.u32 4294901760, %v22851_v50  ;;  %v22936_v2 = vsub.f32 %v22854_v4, %v22935_v47  ;;  %v34832_v4 = vand.u32 4294901760, %v34820_v62 }
0x3113   : > { %29623 = vmatprep.mubr.f32.mxu1 %v22925_v9  ;;  %v22926_v49 = vsub.f32 %v22851_v50, %v22925_v9  ;;  %v22937_v6 = vand.u32 4294901760, %v22936_v2  ;;  %35885 = vst [vmem:[#allocation135_spill] sm:$0xff] %v34832_v4  ;;  %v34837_v50 = vand.u32 4294901760, %v22834_v5 }
0x3114   : > { %29624 = vmatmul.mubr.f32.vlgmr.msra.gmra.mxu1 %v22935_v47 }
0x3115   : > { %29638 = vmatpush3.msra.mxu1 %v34647_v22  ;;  %v22927_v36 = vand.u32 4294901760, %v22926_v49  ;;  %v22938_v43 = vsub.f32 %v22936_v2, %v22937_v6 }
0x3116   : > { %29639 = vmatprep.subr.mxu1 %v34653_v27 }
0x3117   : > { %29640 = vmatpush3.msra.mxu1 %v34653_v27  ;;  %29645 = vmatprep.mubr.f32.mxu1 %v22927_v36  ;;  %v22928_v0 = vsub.f32 %v22926_v49, %v22927_v36  ;;  %v22939_v44 = vand.u32 4294901760, %v22938_v43 }
0x3118   : > { %29641 = vmatprep.subr.mxu1 %v34664_v16 }
0x3119   : > { %29642 = vmatpush3.msra.mxu1 %v34664_v16  ;;  %v22929_v63 = vand.u32 4294901760, %v22928_v0  ;;  %v34848_v0 = vsub.f32 %v22834_v5, %v34837_v50 }
0x311a   : > { %29643 = vmatprep.subr.mxu1 %v34677_v26 }
0x311b   : > { %29644 = vmatpush3.msra.mxu1 %v34677_v26  ;;  %29612 = vmatprep.mubr.f32.mxu0 %v22929_v63  ;;  %v22832_v63 = vld [vmem:[%s32463_s30 + $0x28] sm:$0xff]  ;;  %v34858_v52 = vand.u32 4294901760, %v34848_v0 }
0x311c   : > { %29646 = vmatmul.mubr.f32.vlgmr.msra.gmra.mxu1 %v22937_v6  ;;  %29659 = vmatprep.subr.mxu1 %v34647_v22  ;;  %v23591_v6 = vsub.f32 %v34820_v62, %v34832_v4 }
0x311d   : > { %29613 = vmatmul.mubr.f32.vlgmr.msra.gmra.mxu0 %v22939_v44  ;;  %29660 = vmatpush3.msra.mxu1 %v34647_v22  ;;  %v34747_v22 = vsub.f32 %v22842_v53, %v34743_v55  ;;  %35887 = vst [vmem:[#allocation134_spill] sm:$0xff] %v34858_v52 }
0x311e   : > { %29627 = vmatpush3.msra.mxu0 %v34651_v61  ;;  %29667 = vmatprep.mubr.f32.mxu1 %v22925_v9  ;;  %v22840_v61 = vld [vmem:[%s32463_s30 + $0x68] sm:$0xff]  ;;  %v23592_v44 = vand.u32 4294901760, %v23591_v6 }
0x311f   : > { %29628 = vmatprep.subr.mxu0 %v34662_v7  ;;  %29634 = vmatprep.mubr.f32.mxu0 %v22926_v49  ;;  %v23585_v49 = vand.u32 4294901760, %v23584_v3  ;;  %v22828_v6 = vld [vmem:[%s32463_s30 + $0x8] sm:$0xff] }
0x3120   : > { %29661 = vmatprep.subr.mxu1 %v34653_v27  ;;  %29629 = vmatpush3.msra.mxu0 %v34662_v7  ;;  %v22839_v7 = vld [vmem:[%s32463_s30 + $0x60] sm:$0xff] }
0x3121   : > { %29662 = vmatpush3.msra.mxu1 %v34653_v27  ;;  %29630 = vmatprep.subr.mxu0 %v34675_v32  ;;  %v34755_v27 = vand.u32 4294901760, %v34747_v22 }
0x3122   : > { %29663 = vmatprep.subr.mxu1 %v34664_v16  ;;  %29631 = vmatpush3.msra.mxu0 %v34675_v32  ;;  %v22838_v32 = vld [vmem:[%s32463_s30 + $0x58] sm:$0xff] }
0x3123   : > { %29664 = vmatpush3.msra.mxu1 %v34664_v16  ;;  %29632 = vmatprep.subr.mxu0 %v34687_v39  ;;  %v23549_v16 = vsub.f32 %v34747_v22, %v34755_v27 }
0x3124   : > { %29665 = vmatprep.subr.mxu1 %v34677_v26  ;;  %29633 = vmatpush3.msra.mxu0 %v34687_v39  ;;  %v34787_v39 = vand.u32 4294901760, %v22838_v32 }
0x3125   : > { %29666 = vmatpush3.msra.mxu1 %v34677_v26  ;;  %29635 = vmatmul.mubr.f32.vlgmr.msra.gmra.mxu0 %v22936_v2  ;;  %v23550_v26 = vand.u32 4294901760, %v23549_v16  ;;  %v22833_v2 = vld [vmem:[%s32463_s30 + $0x30] sm:$0xff]  ;;  %v22831_v16 = vld [vmem:[%s32463_s30 + $0x20] sm:$0xff] }
0x3126   : > { %29648 = vmatprep.subr.mxu0 %v34659_v35  ;;  %29668 = vmatmul.mubr.f32.vlgmr.msra.gmra.mxu1 %v22935_v47  ;;  %v34799_v12 = vsub.f32 %v22838_v32, %v34787_v39  ;;  %v34851_v43 = vand.u32 4294901760, %v22833_v2  ;;  %v34873_v8 = vand.u32 4294901760, %v22831_v16 }
0x3127   : > { %29649 = vmatpush3.msra.mxu0 %v34659_v35  ;;  %29656 = vmatprep.mubr.f32.mxu0 %v22925_v9  ;;  %v34760_v35 = vand.u32 4294901760, %v22840_v61 }
0x3128   : > { %29650 = vmatprep.subr.mxu0 %v34672_v28  ;;  %29705 = vmatprep.subr.mxu1 %v23550_v26  ;;  %v34812_v33 = vand.u32 4294901760, %v34799_v12 }
0x3129   : > { %29651 = vmatpush3.msra.mxu0 %v34672_v28  ;;  %v34771_v41 = vsub.f32 %v22840_v61, %v34760_v35  ;;  %v34773_v28 = vand.u32 4294901760, %v22839_v7  ;;  %29706 = vmatpush3.msra.mxu1 %v23550_v26  ;;  %v34860_v61 = vand.u32 4294901760, %v22832_v63  ;;  %v23605_v26 = vsub.f32 %v34848_v0, %v34858_v52 }
0x312a   : > { %29652 = vmatprep.subr.mxu0 %v34684_v23  ;;  %29707 = vmatprep.subr.mxu1 %v23557_v59  ;;  %35883 = vst [vmem:[#allocation148_spill] sm:$0xff] %v34812_v33  ;;  %v23577_v48 = vsub.f32 %v34799_v12, %v34812_v33 }
0x312b   : > { %29653 = vmatpush3.msra.mxu0 %v34684_v23  ;;  %v34781_v38 = vand.u32 4294901760, %v34771_v41  ;;  %v34784_v23 = vsub.f32 %v22839_v7, %v34773_v28  ;;  %29708 = vmatpush3.msra.mxu1 %v23557_v59  ;;  %v34864_v7 = vsub.f32 %v22833_v2, %v34851_v43  ;;  %v34871_v60 = vsub.f32 %v22832_v63, %v34860_v61 }
0x312c   : > { %29654 = vmatprep.subr.mxu0 %v34694_v11  ;;  %v23578_v9 = vand.u32 4294901760, %v23577_v48  ;;  %v23606_v45 = vand.u32 4294901760, %v23605_v26  ;;  %v22829_v48 = vld [vmem:[%s32463_s30 + $0x10] sm:$0xff]  ;;  %v22827_v26 = vld [vmem:[%s32463_s30] sm:$0xff] }
0x312d   : > { %29655 = vmatpush3.msra.mxu0 %v34694_v11  ;;  %v23563_v11 = vsub.f32 %v34771_v41, %v34781_v38  ;;  %v34794_v30 = vand.u32 4294901760, %v34784_v23  ;;  %v34877_v59 = vand.u32 4294901760, %v34864_v7  ;;  %v34902_v2 = vand.u32 4294901760, %v22829_v48 }
0x312e   : > { %29657 = vmatmul.mubr.f32.vlgmr.msra.gmra.mxu0 %v22935_v47  ;;  %29670 = vmatprep.subr.mxu0 %v34743_v55  ;;  %v34835_v47 = vsub.f32 %v22835_v54, %v34822_v40 }
0x312f   : > { %29671 = vmatpush3.msra.mxu0 %v34743_v55  ;;  %v23564_v17 = vand.u32 4294901760, %v23563_v11  ;;  %v23570_v46 = vsub.f32 %v34784_v23, %v34794_v30  ;;  %35888 = vst [vmem:[#allocation129_spill] sm:$0xff] %v34877_v59  ;;  %v22830_v11 = vld [vmem:[%s32463_s30 + $0x18] sm:$0xff]  ;;  %s35895_s30 = scalar_lea.vmem [#allocation34], %s32346_s19 }
0x3130   : > { %29672 = vmatprep.subr.mxu0 %v34749_v56  ;;  %v34845_v36 = vand.u32 4294901760, %v34835_v47  ;;  %v34887_v54 = vand.u32 4294901760, %v22830_v11  ;;  %v26736_v25 = vld [vmem:[%s35895_s30] ss:$0 sm:$0xff] }
0x3131   : > { %29673 = vmatpush3.msra.mxu0 %v34749_v56  ;;  %29709 = vmatprep.subr.mxu1 %v23564_v17  ;;  %v23571_v10 = vand.u32 4294901760, %v23570_v46  ;;  %v34885_v46 = vsub.f32 %v22831_v16, %v34873_v8  ;;  %v34913_v16 = vsub.f32 %v22829_v48, %v34902_v2 }
0x3132   : > { %29674 = vmatprep.subr.mxu0 %v34760_v35  ;;  %29710 = vmatpush3.msra.mxu1 %v23564_v17  ;;  %35886 = vst [vmem:[#allocation136_spill] sm:$0xff] %v34845_v36  ;;  %v23598_v53 = vsub.f32 %v34835_v47, %v34845_v36  ;;  %v34882_v17 = vand.u32 4294901760, %v34871_v60 }
0x3133   : > { %29675 = vmatpush3.msra.mxu0 %v34760_v35  ;;  %29711 = vmatprep.subr.mxu1 %v23571_v10  ;;  %v34897_v3 = vand.u32 4294901760, %v34885_v46 }
0x3134   : > { %29676 = vmatprep.subr.mxu0 %v34773_v28  ;;  %29712 = vmatpush3.msra.mxu1 %v23571_v10  ;;  %v23599_v32 = vand.u32 4294901760, %v23598_v53  ;;  %35889 = vst [vmem:[#allocation130_spill] sm:$0xff] %v34882_v17  ;;  %v23612_v10 = vsub.f32 %v34864_v7, %v34877_v59  ;;  %v23619_v5 = vsub.f32 %v34871_v60, %v34882_v17 }
0x3135   : > { %29677 = vmatpush3.msra.mxu0 %v34773_v28  ;;  %29713 = vmatprep.subr.mxu1 %v23578_v9  ;;  %35890 = vst [vmem:[#allocation128_spill] sm:$0xff] %v34897_v3 }
0x3136   : > { %29678 = vmatprep.subr.mxu0 %v34787_v39  ;;  %29714 = vmatpush3.msra.mxu1 %v23578_v9  ;;  %v34900_v9 = vsub.f32 %v22830_v11, %v34887_v54  ;;  %v23620_v63 = vand.u32 4294901760, %v23619_v5  ;;  %v34925_v5 = vand.u32 4294901760, %v22827_v26 }
0x3137   : > { %29679 = vmatpush3.msra.mxu0 %v34787_v39  ;;  %29715 = vmatprep.subr.mxu1 %v23585_v49 }
0x3138   : > { %29680 = vmatprep.subr.mxu0 %v34796_v51  ;;  %29716 = vmatpush3.msra.mxu1 %v23585_v49  ;;  %v23613_v49 = vand.u32 4294901760, %v23612_v10  ;;  %v34910_v53 = vand.u32 4294901760, %v34900_v9  ;;  %v34923_v10 = vand.u32 4294901760, %v34913_v16 }
0x3139   : > { %29681 = vmatpush3.msra.mxu0 %v34796_v51  ;;  %29717 = vmatprep.subr.mxu1 %v23592_v44 }
0x313a   : > { %29682 = vmatprep.subr.mxu0 %v34808_v14  ;;  %29718 = vmatpush3.msra.mxu1 %v23592_v44  ;;  %v23626_v44 = vsub.f32 %v34885_v46, %v34897_v3  ;;  %35891 = vst [vmem:[#allocation131_spill] sm:$0xff] %v34910_v53  ;;  %35892 = vst [vmem:[#allocation132_spill] sm:$0xff] %v34923_v10 }
0x313b   : > { %29683 = vmatpush3.msra.mxu0 %v34808_v14  ;;  %29719 = vmatprep.subr.mxu1 %v23599_v32 }
0x313c   : > { %29684 = vmatprep.subr.mxu0 %v34822_v40  ;;  %29720 = vmatpush3.msra.mxu1 %v23599_v32  ;;  %v34916_v32 = vand.u32 4294901760, %v22828_v6  ;;  %v23627_v11 = vand.u32 4294901760, %v23626_v44  ;;  %v34935_v44 = vsub.f32 %v22827_v26, %v34925_v5 }
0x313d   : > { %29685 = vmatpush3.msra.mxu0 %v34822_v40  ;;  %29721 = vmatprep.subr.mxu1 %v23606_v45 }
0x313e   : > { %29686 = vmatprep.subr.mxu0 %v34837_v50  ;;  %29722 = vmatpush3.msra.mxu1 %v23606_v45  ;;  %v23633_v45 = vsub.f32 %v34900_v9, %v34910_v53  ;;  %v34929_v48 = vsub.f32 %v22828_v6, %v34916_v32  ;;  %v34943_v20 = vand.u32 4294901760, %v34935_v44 }
0x313f   : > { %29687 = vmatpush3.msra.mxu0 %v34837_v50  ;;  %29723 = vmatprep.subr.mxu1 %v23613_v49 }
0x3140   : > { %29688 = vmatprep.subr.mxu0 %v34851_v43  ;;  %29724 = vmatpush3.msra.mxu1 %v23613_v49  ;;  %v23634_v29 = vand.u32 4294901760, %v23633_v45  ;;  %v23640_v49 = vsub.f32 %v34913_v16, %v34923_v10  ;;  %v34939_v34 = vand.u32 4294901760, %v34929_v48  ;;  %35894 = vst [vmem:[#allocation150_spill] sm:$0xff] %v34943_v20  ;;  %v23654_v26 = vsub.f32 %v34935_v44, %v34943_v20 }
0x3141   : > { %29689 = vmatpush3.msra.mxu0 %v34851_v43  ;;  %29725 = vmatprep.subr.mxu1 %v23620_v63 }
0x3142   : > { %29690 = vmatprep.subr.mxu0 %v34860_v61  ;;  %29726 = vmatpush3.msra.mxu1 %v23620_v63  ;;  %35893 = vst [vmem:[#allocation149_spill] sm:$0xff] %v34939_v34  ;;  %v23641_v6 = vand.u32 4294901760, %v23640_v49  ;;  %v23647_v63 = vsub.f32 %v34929_v48, %v34939_v34 }
0x3143   : > { %29691 = vmatpush3.msra.mxu0 %v34860_v61  ;;  %29727 = vmatprep.subr.mxu1 %v23627_v11 }
0x3144   : > { %29692 = vmatprep.subr.mxu0 %v34873_v8  ;;  %29728 = vmatpush3.msra.mxu1 %v23627_v11  ;;  %v23648_v45 = vand.u32 4294901760, %v23647_v63  ;;  %v23655_v11 = vand.u32 4294901760, %v23654_v26 }
0x3145   : > { %29693 = vmatpush3.msra.mxu0 %v34873_v8  ;;  %29729 = vmatprep.subr.mxu1 %v23634_v29 }
0x3146   : > { %29694 = vmatprep.subr.mxu0 %v34887_v54  ;;  %29730 = vmatpush3.msra.mxu1 %v23634_v29 }
0x3147   : > { %29695 = vmatpush3.msra.mxu0 %v34887_v54  ;;  %29731 = vmatprep.subr.mxu1 %v23641_v6 }
0x3148   : > { %29696 = vmatprep.subr.mxu0 %v34902_v2  ;;  %29732 = vmatpush3.msra.mxu1 %v23641_v6 }
0x3149   : > { %29697 = vmatpush3.msra.mxu0 %v34902_v2  ;;  %29733 = vmatprep.subr.mxu1 %v23648_v45 }
0x314a   : > { %29698 = vmatprep.subr.mxu0 %v34916_v32  ;;  %29734 = vmatpush3.msra.mxu1 %v23648_v45 }
0x314b   : > { %29699 = vmatpush3.msra.mxu0 %v34916_v32  ;;  %29735 = vmatprep.subr.mxu1 %v23655_v11 }
0x314c   : > { %29700 = vmatprep.subr.mxu0 %v34925_v5  ;;  %29736 = vmatpush3.msra.mxu1 %v23655_v11 }
0x314d   : > { %29701 = vmatpush3.msra.mxu0 %v34925_v5  ;;  %29775 = vmatprep.subr.mxu1 %v34743_v55 }
0x314e   : > { %29740 = vmatprep.subr.mxu0 %v34747_v22 }
0x31d4   : > { %v29625_v19 = vpop.f32.mrf.mxu1 }
0x31d6   : > { %v23032_v42 = vpop.f32.mrf.mxu1 }
0x31dc   : > { %v29647_v1 = vpop.f32.mrf.mxu1 }
0x31dd   : > { %v29614_v49 = vpop.f32.mrf.mxu0 }
0x31de   : > { %v22942_v15 = vadd.f32 %v29614_v49, %v26736_v25  ;;  %v23202_v45 = vpop.f32.mrf.mxu1 }
0x31df   : > { %v22931_v57 = vpop.f32.mrf.mxu0 }
0x31e0   : > { %v22932_v29 = vadd.f32 %v26736_v25, %v22931_v57  ;;  %v23039_v21 = vadd.f32 %v29625_v19, %v22942_v15 }
0x31e2   : > { %v23033_v26 = vadd.f32 %v23032_v42, %v22932_v29 }
0x31e5   : > { %v29636_v37 = vpop.f32.mrf.mxu0 }
0x31e6   : > { %v23126_v6 = vadd.f32 %v29636_v37, %v23039_v21  ;;  %v29669_v11 = vpop.f32.mrf.mxu1 }
0x31e7   : > { %v23118_v63 = vpop.f32.mrf.mxu0 }
0x31e8   : > { %v23119_v18 = vadd.f32 %v23118_v63, %v23033_v26  ;;  %v23211_v20 = vadd.f32 %v29647_v1, %v23126_v6  ;;  %v23374_v52 = vpop.f32.mrf.mxu1 }
0x31ea   : > { %v23203_v53 = vadd.f32 %v23202_v45, %v23119_v18 }
0x31ee   : > { %v29658_v34 = vpop.f32.mrf.mxu0 }
0x31ef   : > { %v23300_v10 = vadd.f32 %v29658_v34, %v23211_v20 }
0x31f0   : > { %v23293_v3 = vpop.f32.mrf.mxu0 }
0x31f1   : > { %v23381_v17 = vadd.f32 %v29669_v11, %v23300_v10  ;;  %v23294_v59 = vadd.f32 %v23293_v3, %v23203_v53 }
0x31f3   : > { %v23387_v49 = vmul.f32 0.70710677, %v23381_v17  ;;  %v23375_v57 = vadd.f32 %v23374_v52, %v23294_v59 }
0x31f5   : > { %v23389_v25 = vand.u32 2147483647, %v23387_v49  ;;  %v23386_v36 = vmul.f32 0.70710677, %v23375_v57  ;;  %vm23429_vm8 = vcmp.ge.f32.partialorder %v23387_v49, 0.0 }
0x31f7   : > { %v23391_v19 = vmul.f32 0.3275911, %v23389_v25  ;;  %v23388_v15 = vand.u32 2147483647, %v23386_v36  ;;  %v23417_v37 = vsub.f32 0.0, %v23389_v25  ;;  %vm23428_vm9 = vcmp.ge.f32.partialorder %v23386_v36, 0.0 }
0x31f9   : > { %v23393_v4 = vadd.f32 1.0, %v23391_v19  ;;  %v23390_v21 = vmul.f32 0.3275911, %v23388_v15  ;;  %v23416_v1 = vsub.f32 0.0, %v23388_v15  ;;  %v23419_v29 = vmul.f32 %v23417_v37, %v23389_v25 }
0x31fb   : > { %30412 = vrcp.f32 %v23393_v4  ;;  %v23392_v42 = vadd.f32 1.0, %v23390_v21  ;;  %v23418_v34 = vmul.f32 %v23416_v1, %v23388_v15  ;;  %v23422_v10 = vmul.f32 1.442695, %v23419_v29 }
0x31fd   : > { %30414 = vrcp.f32 %v23392_v42  ;;  %v23420_v52 = vmul.f32 1.442695, %v23418_v34 }
0x31fe   : > { %30416 = vpow2.f32 %v23422_v10 }
0x31ff   : > { %30418 = vpow2.f32 %v23420_v52 }
0x3208   : > { %v30413_v20 = vpop.eup %30412 }
0x3209   : > { %v23399_v18 = vmul.f32 1.0614054, %v30413_v20 }
0x320a   : > { %v30415_v3 = vpop.eup %30414 }
0x320b   : > { %v23401_v53 = vadd.f32 -1.4531521, %v23399_v18  ;;  %v23398_v63 = vmul.f32 1.0614054, %v30415_v3  ;;  %v30417_v29 = vpop.eup %30416 }
0x320c   : > { %v30419_v34 = vpop.eup %30418 }
0x320d   : > { %v23403_v59 = vmul.f32 %v30413_v20, %v23401_v53  ;;  %v23400_v6 = vadd.f32 -1.4531521, %v23398_v63 }
0x320f   : > { %v23405_v26 = vadd.f32 1.4214138, %v23403_v59  ;;  %v23402_v45 = vmul.f32 %v30415_v3, %v23400_v6  ;;  %v23385_v6 = vmul.f32 0.5, %v23381_v17 }
0x3211   : > { %v23407_v4 = vmul.f32 %v30413_v20, %v23405_v26  ;;  %v23404_v11 = vadd.f32 1.4214138, %v23402_v45 }
0x3213   : > { %v23409_v19 = vadd.f32 -0.28449672, %v23407_v4  ;;  %v23406_v21 = vmul.f32 %v30415_v3, %v23404_v11 }
0x3215   : > { %v23411_v42 = vmul.f32 %v30413_v20, %v23409_v19  ;;  %v23408_v25 = vadd.f32 -0.28449672, %v23406_v21  ;;  %v23384_v19 = vmul.f32 0.5, %v23375_v57 }
0x3217   : > { %v23413_v37 = vadd.f32 0.2548296, %v23411_v42  ;;  %v23410_v15 = vmul.f32 %v30415_v3, %v23408_v25 }
0x3219   : > { %v23415_v1 = vmul.f32 %v30413_v20, %v23413_v37  ;;  %v23412_v24 = vadd.f32 0.2548296, %v23410_v15 }
0x321b   : > { %v23425_v18 = vmul.f32 %v30417_v29, %v23415_v1  ;;  %v23414_v33 = vmul.f32 %v30415_v3, %v23412_v24  ;;  %v35909_v1 = vld [vmem:[#allocation127_spill] sm:$0xff] }
0x321d   : > { %v23427_v53 = vsub.f32 1.0, %v23425_v18  ;;  %v23424_v10 = vmul.f32 %v30419_v34, %v23414_v33  ;;  %v30430_v18 = vld [vmem:[#allocation3 + $0x8] sm:$0xff] }
0x321f   : > { %v23431_v63 = vsub.f32 0.0, %v23427_v53  ;;  %v23426_v59 = vsub.f32 1.0, %v23424_v10 }
0x3221   : > { %v23433_v52 = vsel %vm23429_vm8, %v23427_v53, %v23431_v63  ;;  %v23430_v45 = vsub.f32 0.0, %v23426_v59  ;;  %v35910_v53 = vld [vmem:[#allocation147_spill] sm:$0xff] }
0x3222   : > { %v23435_v26 = vadd.f32 1.0, %v23433_v52 }
0x3223   : > { %v23432_v11 = vsel %vm23428_vm9, %v23426_v59, %v23430_v45  ;;  %v30431_v59 = vld [vmem:[#allocation3] sm:$0xff] }
0x3224   : > { %v23437_v4 = vmul.f32 %v23435_v26, %v23385_v6  ;;  %v23434_v21 = vadd.f32 1.0, %v23432_v11 }
0x3226   : > { %v34954_v20 = vand.u32 4294901760, %v23437_v4  ;;  %v23436_v42 = vmul.f32 %v23434_v21, %v23384_v19 }
0x3228   : > { %v34957_v24 = vsub.f32 %v23437_v4, %v34954_v20  ;;  %v34959_v3 = vand.u32 4294901760, %v23436_v42 }
0x322a   : > { %v23537_v33 = vand.u32 4294901760, %v34957_v24  ;;  %29737 = vmatprep.mubr.f32.mxu1 %v34959_v3  ;;  %v23526_v17 = vsub.f32 %v23436_v42, %v34959_v3 }
0x322b   : > { %29738 = vmatmul.mubr.f32.vlgmr.msra.gmra.mxu1 %v34954_v20 }
0x322c   : > { %29776 = vmatpush3.msra.mxu1 %v34743_v55  ;;  %v23527_v36 = vand.u32 4294901760, %v23526_v17  ;;  %v23538_v49 = vsub.f32 %v34957_v24, %v23537_v33 }
0x322d   : > { %29777 = vmatprep.subr.mxu1 %v34749_v56 }
0x322e   : > { %29778 = vmatpush3.msra.mxu1 %v34749_v56  ;;  %29807 = vmatprep.mubr.f32.mxu1 %v23527_v36  ;;  %v23528_v57 = vsub.f32 %v23526_v17, %v23527_v36  ;;  %v23539_v37 = vand.u32 4294901760, %v23538_v49 }
0x322f   : > { %29779 = vmatprep.subr.mxu1 %v34760_v35 }
0x3230   : > { %29780 = vmatpush3.msra.mxu1 %v34760_v35  ;;  %v23529_v25 = vand.u32 4294901760, %v23528_v57 }
0x3231   : > { %29781 = vmatprep.subr.mxu1 %v34773_v28 }
0x3232   : > { %29782 = vmatpush3.msra.mxu1 %v34773_v28  ;;  %29702 = vmatprep.mubr.f32.mxu0 %v23529_v25 }
0x3233   : > { %29783 = vmatprep.subr.mxu1 %v34787_v39  ;;  %29703 = vmatmul.mubr.f32.vlgmr.msra.gmra.mxu0 %v23539_v37 }
0x3234   : > { %29741 = vmatpush3.msra.mxu0 %v34747_v22  ;;  %29784 = vmatpush3.msra.mxu1 %v34787_v39  ;;  %v35897_v22 = vld [vmem:[#allocation133_spill] sm:$0xff] }
0x3235   : > { %29742 = vmatprep.subr.mxu0 %v34758_v13  ;;  %29772 = vmatprep.mubr.f32.mxu0 %v23526_v17 }
0x3236   : > { %29785 = vmatprep.subr.mxu1 %v34796_v51  ;;  %29743 = vmatpush3.msra.mxu0 %v34758_v13  ;;  %v35900_v13 = vld [vmem:[#allocation134_spill] sm:$0xff] }
0x3237   : > { %29786 = vmatpush3.msra.mxu1 %v34796_v51  ;;  %29744 = vmatprep.subr.mxu0 %v34771_v41 }
0x3238   : > { %29787 = vmatprep.subr.mxu1 %v34808_v14  ;;  %29745 = vmatpush3.msra.mxu0 %v34771_v41  ;;  %v35903_v41 = vld [vmem:[#allocation128_spill] sm:$0xff] }
0x3239   : > { %29788 = vmatpush3.msra.mxu1 %v34808_v14  ;;  %29746 = vmatprep.subr.mxu0 %v34784_v23 }
0x323a   : > { %29789 = vmatprep.subr.mxu1 %v34822_v40  ;;  %29747 = vmatpush3.msra.mxu0 %v34784_v23  ;;  %v35906_v23 = vld [vmem:[#allocation149_spill] sm:$0xff] }
0x323b   : > { %29790 = vmatpush3.msra.mxu1 %v34822_v40  ;;  %29748 = vmatprep.subr.mxu0 %v34799_v12 }
0x323c   : > { %29791 = vmatprep.subr.mxu1 %v34837_v50  ;;  %29749 = vmatpush3.msra.mxu0 %v34799_v12 }
0x323d   : > { %29792 = vmatpush3.msra.mxu1 %v34837_v50  ;;  %29750 = vmatprep.subr.mxu0 %v34806_v31 }
0x323e   : > { %29793 = vmatprep.subr.mxu1 %v34851_v43  ;;  %29751 = vmatpush3.msra.mxu0 %v34806_v31 }
0x323f   : > { %29794 = vmatpush3.msra.mxu1 %v34851_v43  ;;  %29752 = vmatprep.subr.mxu0 %v34820_v62 }
0x3240   : > { %29795 = vmatprep.subr.mxu1 %v34860_v61  ;;  %29753 = vmatpush3.msra.mxu0 %v34820_v62 }
0x3241   : > { %29796 = vmatpush3.msra.mxu1 %v34860_v61  ;;  %29754 = vmatprep.subr.mxu0 %v34835_v47 }
0x3242   : > { %29797 = vmatprep.subr.mxu1 %v34873_v8  ;;  %29755 = vmatpush3.msra.mxu0 %v34835_v47 }
0x3243   : > { %29798 = vmatpush3.msra.mxu1 %v34873_v8  ;;  %29756 = vmatprep.subr.mxu0 %v34848_v0 }
0x3244   : > { %29799 = vmatprep.subr.mxu1 %v34887_v54  ;;  %29757 = vmatpush3.msra.mxu0 %v34848_v0 }
0x3245   : > { %29800 = vmatpush3.msra.mxu1 %v34887_v54  ;;  %29758 = vmatprep.subr.mxu0 %v34864_v7 }
0x3246   : > { %29801 = vmatprep.subr.mxu1 %v34902_v2  ;;  %29759 = vmatpush3.msra.mxu0 %v34864_v7 }
0x3247   : > { %29802 = vmatpush3.msra.mxu1 %v34902_v2  ;;  %29760 = vmatprep.subr.mxu0 %v34871_v60 }
0x3248   : > { %29803 = vmatprep.subr.mxu1 %v34916_v32  ;;  %29761 = vmatpush3.msra.mxu0 %v34871_v60 }
0x3249   : > { %29804 = vmatpush3.msra.mxu1 %v34916_v32  ;;  %29762 = vmatprep.subr.mxu0 %v34885_v46 }
0x324a   : > { %29805 = vmatprep.subr.mxu1 %v34925_v5  ;;  %29763 = vmatpush3.msra.mxu0 %v34885_v46 }
0x324b   : > { %29806 = vmatpush3.msra.mxu1 %v34925_v5  ;;  %29764 = vmatprep.subr.mxu0 %v34900_v9 }
0x324c   : > { %29808 = vmatmul.mubr.f32.vlgmr.msra.gmra.mxu1 %v23537_v33  ;;  %29845 = vmatprep.subr.mxu1 %v34743_v55 }
0x324d   : > { %29765 = vmatpush3.msra.mxu0 %v34900_v9  ;;  %29846 = vmatpush3.msra.mxu1 %v34743_v55  ;;  %v35896_v55 = vld [vmem:[#allocation148_spill] sm:$0xff] }
0x324e   : > { %29877 = vmatprep.mubr.f32.mxu1 %v34959_v3  ;;  %29766 = vmatprep.subr.mxu0 %v34913_v16 }
0x324f   : > { %29847 = vmatprep.subr.mxu1 %v34749_v56  ;;  %29767 = vmatpush3.msra.mxu0 %v34913_v16 }
0x3250   : > { %29848 = vmatpush3.msra.mxu1 %v34749_v56  ;;  %29768 = vmatprep.subr.mxu0 %v34929_v48  ;;  %v35898_v56 = vld [vmem:[#allocation135_spill] sm:$0xff] }
0x3251   : > { %29849 = vmatprep.subr.mxu1 %v34760_v35  ;;  %29769 = vmatpush3.msra.mxu0 %v34929_v48 }
0x3252   : > { %29850 = vmatpush3.msra.mxu1 %v34760_v35  ;;  %29770 = vmatprep.subr.mxu0 %v34935_v44  ;;  %v35901_v35 = vld [vmem:[#allocation129_spill] sm:$0xff] }
0x3253   : > { %29851 = vmatprep.subr.mxu1 %v34773_v28  ;;  %29771 = vmatpush3.msra.mxu0 %v34935_v44 }
0x3254   : > { %29852 = vmatpush3.msra.mxu1 %v34773_v28  ;;  %29773 = vmatmul.mubr.f32.vlgmr.msra.gmra.mxu0 %v34957_v24  ;;  %v35904_v28 = vld [vmem:[#allocation131_spill] sm:$0xff] }
0x3255   : > { %29810 = vmatprep.subr.mxu0 %v34755_v27  ;;  %29853 = vmatprep.subr.mxu1 %v34787_v39 }
0x3256   : > { %29811 = vmatpush3.msra.mxu0 %v34755_v27  ;;  %29842 = vmatprep.mubr.f32.mxu0 %v34959_v3  ;;  %v35899_v27 = vld [vmem:[#allocation136_spill] sm:$0xff] }
0x3257   : > { %29854 = vmatpush3.msra.mxu1 %v34787_v39  ;;  %29812 = vmatprep.subr.mxu0 %v34768_v58  ;;  %v35907_v39 = vld [vmem:[#allocation150_spill] sm:$0xff] }
0x3258   : > { %29855 = vmatprep.subr.mxu1 %v34796_v51  ;;  %29813 = vmatpush3.msra.mxu0 %v34768_v58  ;;  %v35902_v58 = vld [vmem:[#allocation130_spill] sm:$0xff] }
0x3259   : > { %29856 = vmatpush3.msra.mxu1 %v34796_v51  ;;  %29814 = vmatprep.subr.mxu0 %v34781_v38  ;;  %v26737_v51 = vld [vmem:[%s35908_s21] ss:$0 sm:$0xff] }
0x325a   : > { %29857 = vmatprep.subr.mxu1 %v34808_v14  ;;  %29815 = vmatpush3.msra.mxu0 %v34781_v38  ;;  %v35905_v38 = vld [vmem:[#allocation132_spill] sm:$0xff] }
0x325b   : > { %29858 = vmatpush3.msra.mxu1 %v34808_v14  ;;  %29816 = vmatprep.subr.mxu0 %v34794_v30 }
0x325c   : > { %29859 = vmatprep.subr.mxu1 %v34822_v40  ;;  %29817 = vmatpush3.msra.mxu0 %v34794_v30 }
0x325d   : > { %29860 = vmatpush3.msra.mxu1 %v34822_v40  ;;  %29818 = vmatprep.subr.mxu0 %v35896_v55 }
0x325e   : > { %29861 = vmatprep.subr.mxu1 %v34837_v50  ;;  %29819 = vmatpush3.msra.mxu0 %v35896_v55  ;;  %v26738_v55 = vld [vmem:[%s35912_s27] ss:$0 sm:$0xff] }
0x325f   : > { %29862 = vmatpush3.msra.mxu1 %v34837_v50  ;;  %29820 = vmatprep.subr.mxu0 %v35897_v22 }
0x3260   : > { %29863 = vmatprep.subr.mxu1 %v34851_v43  ;;  %29821 = vmatpush3.msra.mxu0 %v35897_v22 }
0x3261   : > { %29864 = vmatpush3.msra.mxu1 %v34851_v43  ;;  %29822 = vmatprep.subr.mxu0 %v35898_v56 }
0x3262   : > { %29865 = vmatprep.subr.mxu1 %v34860_v61  ;;  %29823 = vmatpush3.msra.mxu0 %v35898_v56 }
0x3263   : > { %29866 = vmatpush3.msra.mxu1 %v34860_v61  ;;  %29824 = vmatprep.subr.mxu0 %v35899_v27 }
0x3264   : > { %29867 = vmatprep.subr.mxu1 %v34873_v8  ;;  %29825 = vmatpush3.msra.mxu0 %v35899_v27  ;;  %v26739_v27 = vld [vmem:[%s35913_s24] ss:$0 sm:$0xff] }
0x3265   : > { %29868 = vmatpush3.msra.mxu1 %v34873_v8  ;;  %29826 = vmatprep.subr.mxu0 %v35900_v13 }
0x3266   : > { %29869 = vmatprep.subr.mxu1 %v34887_v54  ;;  %29827 = vmatpush3.msra.mxu0 %v35900_v13 }
0x3267   : > { %29870 = vmatpush3.msra.mxu1 %v34887_v54  ;;  %29828 = vmatprep.subr.mxu0 %v35901_v35 }
0x3268   : > { %29871 = vmatprep.subr.mxu1 %v34902_v2  ;;  %29829 = vmatpush3.msra.mxu0 %v35901_v35 }
0x3269   : > { %29872 = vmatpush3.msra.mxu1 %v34902_v2  ;;  %29830 = vmatprep.subr.mxu0 %v35902_v58 }
0x326a   : > { %29873 = vmatprep.subr.mxu1 %v34916_v32  ;;  %29831 = vmatpush3.msra.mxu0 %v35902_v58 }
0x326b   : > { %29874 = vmatpush3.msra.mxu1 %v34916_v32  ;;  %29832 = vmatprep.subr.mxu0 %v35903_v41 }
0x326c   : > { %29875 = vmatprep.subr.mxu1 %v34925_v5  ;;  %29833 = vmatpush3.msra.mxu0 %v35903_v41 }
0x326d   : > { %29876 = vmatpush3.msra.mxu1 %v34925_v5  ;;  %29834 = vmatprep.subr.mxu0 %v35904_v28 }
0x326e   : > { %29878 = vmatmul.mubr.f32.vlgmr.msra.gmra.mxu1 %v34954_v20  ;;  %29835 = vmatpush3.msra.mxu0 %v35904_v28 }
0x326f   : > { %29836 = vmatprep.subr.mxu0 %v35905_v38 }
0x3270   : > { %29837 = vmatpush3.msra.mxu0 %v35905_v38 }
0x3271   : > { %29838 = vmatprep.subr.mxu0 %v35906_v23 }
0x3272   : > { %29839 = vmatpush3.msra.mxu0 %v35906_v23 }
0x3273   : > { %29840 = vmatprep.subr.mxu0 %v35907_v39 }
0x3274   : > { %29841 = vmatpush3.msra.mxu0 %v35907_v39 }
0x3275   : > { %29843 = vmatmul.mubr.f32.vlgmr.msra.gmra.mxu0 %v34954_v20 }
0x32eb   : > { %v29739_v12 = vpop.f32.mrf.mxu1 }
0x32ed   : > { %v23692_v47 = vpop.f32.mrf.mxu1 }
0x32f3   : > { %v29704_v30 = vpop.f32.mrf.mxu0 }
0x32f4   : > { %v23542_v14 = vadd.f32 %v29704_v30, %v26737_v51 }
0x32f5   : > { %v23531_v31 = vpop.f32.mrf.mxu0 }
0x32f6   : > { %v23532_v40 = vadd.f32 %v26737_v51, %v23531_v31  ;;  %v23699_v50 = vadd.f32 %v29739_v12, %v23542_v14 }
0x32f8   : > { %v23693_v7 = vadd.f32 %v23692_v47, %v23532_v40 }
0x330c   : > { %v29809_v0 = vpop.f32.mrf.mxu1 }
0x330e   : > { %v23898_v8 = vpop.f32.mrf.mxu1 }
0x3314   : > { %v29774_v62 = vpop.f32.mrf.mxu0 }
0x3315   : > { %v23810_v61 = vadd.f32 %v29774_v62, %v23699_v50 }
0x3316   : > { %v23802_v43 = vpop.f32.mrf.mxu0 }
0x3317   : > { %v23803_v60 = vadd.f32 %v23802_v43, %v23693_v7  ;;  %v23907_v46 = vadd.f32 %v29809_v0, %v23810_v61 }
0x3319   : > { %v23899_v16 = vadd.f32 %v23898_v8, %v23803_v60 }
0x332e   : > { %v29879_v54 = vpop.f32.mrf.mxu1 }
0x3330   : > { %v24118_v44 = vpop.f32.mrf.mxu1 }
0x3335   : > { %v29844_v9 = vpop.f32.mrf.mxu0 }
0x3336   : > { %v24032_v2 = vadd.f32 %v29844_v9, %v23907_v46 }
0x3337   : > { %v24025_v32 = vpop.f32.mrf.mxu0 }
0x3338   : > { %v24125_v5 = vadd.f32 %v29879_v54, %v24032_v2  ;;  %v24026_v48 = vadd.f32 %v24025_v32, %v23899_v16 }
0x333a   : > { %v24119_v15 = vadd.f32 %v24118_v44, %v24026_v48  ;;  %v24129_v29 = vadd.f32 %v24125_v5, %v35909_v1 }
0x333c   : > { %v24131_v34 = vadd.f32 %v30430_v18, %v24129_v29  ;;  %v24128_v10 = vadd.f32 %v24119_v15, %v35910_v53 }
0x333e   : > { %v24137_v63 = vsel %vm2298_vm1, %v24131_v34, 0.0  ;;  %v24130_v52 = vadd.f32 %v30431_v59, %v24128_v10 }
0x333f   : > { %24138 = vadd.xlane.f32.xlu1 %v24137_v63 }
0x3340   : > { %v24134_v6 = vsel %vm2298_vm1, %v24130_v52, 0.0 }
0x3341   : > { %24135 = vadd.xlane.f32.xlu0 %v24134_v6 }
0x33c8   : > { %v24139_v26 = vpop.xlane.xlu1 %24138 }
0x33c9   : > { %v24141_v45 = vmul.f32 0.03125, %v24139_v26 }
0x33ca   : > { %v24136_v4 = vpop.xlane.xlu0 %24135 }
0x33cb   : > { %v24143_v11 = vsub.f32 %v24131_v34, %v24141_v45  ;;  %v24140_v19 = vmul.f32 0.03125, %v24136_v4 }
0x33cd   : > { %v24142_v21 = vsub.f32 %v24130_v52, %v24140_v19  ;;  %v24145_v20 = vmul.f32 %v24143_v11, %v24143_v11 }
0x33cf   : > { %v24149_v42 = vsel %vm2298_vm1, %v24145_v20, 0.0  ;;  %v24144_v24 = vmul.f32 %v24142_v21, %v24142_v21 }
0x33d0   : > { %24150 = vadd.xlane.f32.xlu1 %v24149_v42 }
0x33d1   : > { %v24146_v3 = vsel %vm2298_vm1, %v24144_v24, 0.0 }
0x33d2   : > { %24147 = vadd.xlane.f32.xlu0 %v24146_v3 }
0x3459   : > { %v24151_v33 = vpop.xlane.xlu1 %24150 }
0x345a   : > { %v24153_v17 = vmul.f32 0.03125, %v24151_v33 }
0x345b   : > { %v24148_v36 = vpop.xlane.xlu0 %24147 }
0x345c   : > { %v24155_v49 = vadd.f32 1e-05, %v24153_v17  ;;  %v24152_v57 = vmul.f32 0.03125, %v24148_v36 }
0x345e   : > { %30420 = vrsqrt.f32 %v24155_v49  ;;  %v24154_v25 = vadd.f32 1e-05, %v24152_v57 }
0x3460   : > { %30422 = vrsqrt.f32 %v24154_v25 }
0x346b   : > { %v30421_v37 = vpop.eup %30420 }
0x346c   : > { %v24159_v22 = vmul.f32 %v30421_v37, %v24143_v11 }
0x346d   : > { %v30423_v56 = vpop.eup %30422 }
0x346e   : > { %v24167_v13 = vmul.f32 %v26738_v55, %v24159_v22  ;;  %v24158_v35 = vmul.f32 %v30423_v56, %v24142_v21  ;;  %24180 = sbr.rel (%p26740_p6) target bundleno = 13430 (0x3476), region = 284 }
0x3470   : > { %v35114_v58 = vadd.f32 %v26739_v27, %v24167_v13  ;;  %v24166_v41 = vmul.f32 %v26738_v55, %v24158_v35 }
0x3472   : > { %v35116_v28 = vadd.f32 %v26739_v27, %v24166_v41 }
0x3473   : > { %v35914_v38 = vld [vmem:[#allocation138_spill] sm:$0xff]  ;;  %v35915_v23 = vld [vmem:[#allocation137_spill] sm:$0xff]  ;;  %24184 = vst.msk [vmem:[#allocation3 + $0x8] sm:$0xff] %vm2298_vm1, %v35114_v58 }
0x3474   : > { %24181 = vst.msk [vmem:[#allocation2] sm:$0xff] %vm2298_vm1, %v35914_v38  ;;  %24182 = vst.msk [vmem:[#allocation2 + $0x8] sm:$0xff] %vm2298_vm1, %v35915_v23 }
0x3475   : > { %24183 = vst.msk [vmem:[#allocation3] sm:$0xff] %vm2298_vm1, %v35116_v28 }
0x3476 PF: > { %s35916_s19 = sld [smem:[#allocation112_spill]] }
0x347c   : > { %p26741_p10 = scmp.ne.s32.totalorder %s35916_s19, 1 }
0x347d   : > { %s35917_s9 = sld [smem:[#allocation97_spill]] (!%p26741_p10) }
0x347e   : > { %24188 = sbr.rel (%p26741_p10) target bundleno = 13980 (0x369c), region = 288  ;;  %s35926_s17 = sld [smem:[#allocation100_spill]] (!%p26741_p10) }
0x347f   : > { %s35927_s20 = sld [smem:[#allocation99_spill]] (!%p26741_p10) }
0x3483   : > { %v24196_v39 = vld [vmem:[#allocation40 + $0x18] sm:$0xff]  ;;  %v24195_v30 = vld [vmem:[#allocation40 + $0x10] sm:$0xff]  ;;  %v24194_v51 = vld [vmem:[#allocation40 + $0x8] sm:$0xff]  ;;  %v24198_v12 = vsel %vm2298_vm1, %v35116_v28, 0  ;;  %v24201_v31 = vsel %vm2298_vm1, %v35114_v58, 0 }
0x3484   : > { %v35131_v14 = vand.u32 4294901760, %v24196_v39  ;;  %v35133_v62 = vand.u32 4294901760, %v24195_v30  ;;  %v35135_v40 = vand.u32 4294901760, %v24194_v51  ;;  %v24193_v47 = vld [vmem:[#allocation40] sm:$0xff]  ;;  %v35137_v50 = vand.u32 4294901760, %v24198_v12  ;;  %v24192_v26 = vld [vmem:[%s35917_s9 + $0x18] sm:$0xff] }
0x3485   : > { %v35139_v0 = vand.u32 4294901760, %v24193_v47  ;;  %v35141_v43 = vand.u32 4294901760, %v24201_v31  ;;  %v24191_v45 = vld [vmem:[%s35917_s9 + $0x10] sm:$0xff]  ;;  %v35180_v4 = vand.u32 4294901760, %v24192_v26  ;;  %v24190_v11 = vld [vmem:[%s35917_s9 + $0x8] sm:$0xff]  ;;  %v24189_v21 = vld [vmem:[%s35917_s9] sm:$0xff] }
0x3486   : > { %29880 = vmatprep.subr.mxu0 %v35131_v14  ;;  %v24318_v61 = vsub.f32 %v24196_v39, %v35131_v14  ;;  %v35146_v7 = vsub.f32 %v24198_v12, %v35137_v50  ;;  %v24325_v60 = vsub.f32 %v24195_v30, %v35133_v62  ;;  %v24332_v8 = vsub.f32 %v24194_v51, %v35135_v40  ;;  %v35918_v41 = vld [vmem:[#allocation145_spill] sm:$0xff]  ;;  %v35919_v38 = vld [vmem:[#allocation146_spill] sm:$0xff]  ;;  %v35920_v39 = vld [vmem:[#allocation140_spill] sm:$0xff] }
0x3487   : > { %29881 = vmatpush3.msra.mxu0 %v35131_v14  ;;  %v35152_v46 = vsub.f32 %v24201_v31, %v35141_v43  ;;  %v24339_v54 = vsub.f32 %v24193_v47, %v35139_v0  ;;  %29899 = vmatprep.mubr.f32.mxu1 %v35137_v50  ;;  %v35187_v19 = vand.u32 4294901760, %v24191_v45  ;;  %v35192_v20 = vand.u32 4294901760, %v24190_v11  ;;  %v35921_v30 = vld [vmem:[#allocation139_spill] sm:$0xff]  ;;  %v35922_v51 = vld [vmem:[#allocation142_spill] sm:$0xff]  ;;  %v35923_v12 = vld [vmem:[#allocation141_spill] sm:$0xff] }
0x3488   : > { %29882 = vmatprep.subr.mxu0 %v35133_v62  ;;  %v24319_v9 = vand.u32 4294901760, %v24318_v61  ;;  %v24274_v2 = vand.u32 4294901760, %v35146_v7  ;;  %v24326_v16 = vand.u32 4294901760, %v24325_v60  ;;  %v35158_v32 = vand.u32 4294901760, %v24332_v8  ;;  %v35924_v31 = vld [vmem:[#allocation144_spill] sm:$0xff]  ;;  %v25289_v47 = vld [vmem:[%s35926_s17 + $0x8] sm:$0xff] }
0x3489   : > { %29883 = vmatpush3.msra.mxu0 %v35133_v62  ;;  %v24284_v5 = vand.u32 4294901760, %v35152_v46  ;;  %v35162_v48 = vand.u32 4294901760, %v24339_v54  ;;  %v24846_v42 = vsub.f32 %v24192_v26, %v35180_v4  ;;  %v35197_v24 = vand.u32 4294901760, %v24189_v21 }
0x348a   : > { %29884 = vmatprep.subr.mxu0 %v35135_v40  ;;  %v24320_v44 = vsub.f32 %v24318_v61, %v24319_v9  ;;  %v24275_v15 = vsub.f32 %v35146_v7, %v24274_v2  ;;  %v24327_v1 = vsub.f32 %v24325_v60, %v24326_v16  ;;  %v24334_v29 = vsub.f32 %v24332_v8, %v35158_v32 }
0x348b   : > { %29885 = vmatpush3.msra.mxu0 %v35135_v40  ;;  %v24285_v18 = vsub.f32 %v35152_v46, %v24284_v5  ;;  %v24341_v63 = vsub.f32 %v24339_v54, %v35162_v48  ;;  %v24853_v3 = vsub.f32 %v24191_v45, %v35187_v19  ;;  %v35205_v33 = vand.u32 4294901760, %v24846_v42 }
0x348c   : > { %29886 = vmatprep.subr.mxu0 %v35139_v0  ;;  %v24321_v34 = vand.u32 4294901760, %v24320_v44  ;;  %v24276_v53 = vand.u32 4294901760, %v24275_v15  ;;  %v24328_v10 = vand.u32 4294901760, %v24327_v1  ;;  %v24335_v52 = vand.u32 4294901760, %v24334_v29 }
0x348d   : > { %29887 = vmatpush3.msra.mxu0 %v35139_v0  ;;  %v24286_v59 = vand.u32 4294901760, %v24285_v18  ;;  %v24342_v6 = vand.u32 4294901760, %v24341_v63  ;;  %v24860_v17 = vsub.f32 %v24190_v11, %v35192_v20  ;;  %v24854_v36 = vand.u32 4294901760, %v24853_v3 }
0x348e   : > { %29891 = vmatprep.subr.mxu1 %v24321_v34  ;;  %29888 = vmatprep.mubr.f32.mxu0 %v24276_v53  ;;  %v24867_v49 = vsub.f32 %v24189_v21, %v35197_v24  ;;  %v24848_v57 = vsub.f32 %v24846_v42, %v35205_v33 }
0x348f   : > { %29892 = vmatpush3.msra.mxu1 %v24321_v34  ;;  %29902 = vmatprep.subr.mxu0 %v24318_v61  ;;  %v24861_v25 = vand.u32 4294901760, %v24860_v17  ;;  %v24855_v37 = vsub.f32 %v24853_v3, %v24854_v36 }
0x3490   : > { %29893 = vmatprep.subr.mxu1 %v24328_v10  ;;  %29889 = vmatmul.mubr.f32.vlgmr.msra.gmra.mxu0 %v24286_v59  ;;  %v24868_v55 = vand.u32 4294901760, %v24867_v49  ;;  %v24849_v22 = vand.u32 4294901760, %v24848_v57 }
0x3491   : > { %29894 = vmatpush3.msra.mxu1 %v24328_v10  ;;  %29903 = vmatpush3.msra.mxu0 %v24318_v61  ;;  %v24862_v56 = vsub.f32 %v24860_v17, %v24861_v25  ;;  %v24856_v27 = vand.u32 4294901760, %v24855_v37  ;;  %v25288_v61 = vld [vmem:[%s35926_s17] sm:$0xff] }
0x3492   : > { %29895 = vmatprep.subr.mxu1 %v24335_v52  ;;  %29904 = vmatprep.subr.mxu0 %v24325_v60  ;;  %v24869_v13 = vsub.f32 %v24867_v49, %v24868_v55 }
0x3493   : > { %29896 = vmatpush3.msra.mxu1 %v24335_v52  ;;  %29905 = vmatpush3.msra.mxu0 %v24325_v60  ;;  %v24863_v35 = vand.u32 4294901760, %v24862_v56 }
0x3494   : > { %29897 = vmatprep.subr.mxu1 %v24342_v6  ;;  %29906 = vmatprep.subr.mxu0 %v24332_v8  ;;  %v24870_v23 = vand.u32 4294901760, %v24869_v13 }
0x3495   : > { %29898 = vmatpush3.msra.mxu1 %v24342_v6  ;;  %29907 = vmatpush3.msra.mxu0 %v24332_v8 }
0x3496   : > { %29900 = vmatmul.mubr.f32.vlgmr.msra.gmra.mxu1 %v35141_v43  ;;  %29908 = vmatprep.subr.mxu0 %v24339_v54 }
0x3497   : > { %29913 = vmatprep.subr.mxu1 %v35131_v14  ;;  %29909 = vmatpush3.msra.mxu0 %v24339_v54 }
0x3498   : > { %29910 = vmatprep.mubr.f32.mxu0 %v35146_v7  ;;  %29914 = vmatpush3.msra.mxu1 %v35131_v14  ;;  %v35274_v7 = vand.u32 4294901760, %v25288_v61 }
0x3499   : > { %29911 = vmatmul.mubr.f32.vlgmr.msra.gmra.mxu0 %v35152_v46  ;;  %29915 = vmatprep.subr.mxu1 %v35133_v62 }
0x349a   : > { %29924 = vmatprep.subr.mxu0 %v24319_v9  ;;  %29916 = vmatpush3.msra.mxu1 %v35133_v62  ;;  %v35287_v54 = vsub.f32 %v25288_v61, %v35274_v7 }
0x349b   : > { %29925 = vmatpush3.msra.mxu0 %v24319_v9  ;;  %29917 = vmatprep.subr.mxu1 %v35135_v40 }
0x349c   : > { %29926 = vmatprep.subr.mxu0 %v24326_v16  ;;  %29918 = vmatpush3.msra.mxu1 %v35135_v40 }
0x349d   : > { %29927 = vmatpush3.msra.mxu0 %v24326_v16  ;;  %29919 = vmatprep.subr.mxu1 %v35139_v0 }
0x349e   : > { %29928 = vmatprep.subr.mxu0 %v35158_v32  ;;  %29920 = vmatpush3.msra.mxu1 %v35139_v0 }
0x349f   : > { %29921 = vmatprep.mubr.f32.mxu1 %v24274_v2  ;;  %29929 = vmatpush3.msra.mxu0 %v35158_v32  ;;  %v35301_v32 = vand.u32 4294901760, %v35287_v54 }
0x34a0   : > { %29922 = vmatmul.mubr.f32.vlgmr.msra.gmra.mxu1 %v24284_v5  ;;  %29930 = vmatprep.subr.mxu0 %v35162_v48 }
0x34a1   : > { %29935 = vmatprep.subr.mxu1 %v35131_v14  ;;  %29931 = vmatpush3.msra.mxu0 %v35162_v48  ;;  %v25443_v29 = vsub.f32 %v35287_v54, %v35301_v32 }
0x34a2   : > { %29932 = vmatprep.mubr.f32.mxu0 %v35137_v50  ;;  %29936 = vmatpush3.msra.mxu1 %v35131_v14  ;;  %v35925_v14 = vld [vmem:[#allocation143_spill] sm:$0xff] }
0x34a3   : > { %29933 = vmatmul.mubr.f32.vlgmr.msra.gmra.mxu0 %v35141_v43  ;;  %29937 = vmatprep.subr.mxu1 %v35133_v62  ;;  %v25444_v34 = vand.u32 4294901760, %v25443_v29 }
0x34a4   : > { %29946 = vmatprep.subr.mxu0 %v35180_v4  ;;  %29938 = vmatpush3.msra.mxu1 %v35133_v62  ;;  %v25291_v62 = vld [vmem:[%s35926_s17 + $0x18] sm:$0xff] }
0x34a5   : > { %29947 = vmatpush3.msra.mxu0 %v35180_v4  ;;  %29939 = vmatprep.subr.mxu1 %v35135_v40 }
0x34a6   : > { %29948 = vmatprep.subr.mxu0 %v35187_v19  ;;  %29940 = vmatpush3.msra.mxu1 %v35135_v40  ;;  %v25290_v40 = vld [vmem:[%s35926_s17 + $0x10] sm:$0xff] }
0x34a7   : > { %29949 = vmatpush3.msra.mxu0 %v35187_v19  ;;  %29941 = vmatprep.subr.mxu1 %v35139_v0 }
0x34a8   : > { %29950 = vmatprep.subr.mxu0 %v35192_v20  ;;  %29942 = vmatpush3.msra.mxu1 %v35139_v0  ;;  %v35269_v0 = vand.u32 4294901760, %v25290_v40 }
0x34a9   : > { %29943 = vmatprep.mubr.f32.mxu1 %v35137_v50  ;;  %29951 = vmatpush3.msra.mxu0 %v35192_v20  ;;  %v35267_v50 = vand.u32 4294901760, %v25291_v62 }
0x34aa   : > { %29944 = vmatmul.mubr.f32.vlgmr.msra.gmra.mxu1 %v35141_v43  ;;  %29952 = vmatprep.subr.mxu0 %v35197_v24  ;;  %v35271_v43 = vand.u32 4294901760, %v25289_v47  ;;  %v35280_v8 = vsub.f32 %v25290_v40, %v35269_v0 }
0x34ab   : > { %29957 = vmatprep.subr.mxu1 %v24849_v22  ;;  %29953 = vmatpush3.msra.mxu0 %v35197_v24  ;;  %v35277_v60 = vsub.f32 %v25291_v62, %v35267_v50 }
0x34ac   : > { %29954 = vmatprep.mubr.f32.mxu0 %v35918_v41  ;;  %29958 = vmatpush3.msra.mxu1 %v24849_v22  ;;  %v35283_v46 = vsub.f32 %v25289_v47, %v35271_v43  ;;  %v35294_v2 = vand.u32 4294901760, %v35280_v8 }
0x34ad   : > { %29955 = vmatmul.mubr.f32.vlgmr.msra.gmra.mxu0 %v35919_v38  ;;  %29959 = vmatprep.subr.mxu1 %v24856_v27  ;;  %v35291_v9 = vand.u32 4294901760, %v35277_v60 }
0x34ae   : > { %29968 = vmatprep.subr.mxu0 %v24846_v42  ;;  %29960 = vmatpush3.msra.mxu1 %v24856_v27  ;;  %v35297_v16 = vand.u32 4294901760, %v35283_v46  ;;  %v25429_v48 = vsub.f32 %v35280_v8, %v35294_v2 }
0x34af   : > { %29969 = vmatpush3.msra.mxu0 %v24846_v42  ;;  %29961 = vmatprep.subr.mxu1 %v24863_v35  ;;  %v25422_v5 = vsub.f32 %v35277_v60, %v35291_v9 }
0x34b0   : > { %29970 = vmatprep.subr.mxu0 %v24853_v3  ;;  %29962 = vmatpush3.msra.mxu1 %v24863_v35  ;;  %v25436_v44 = vsub.f32 %v35283_v46, %v35297_v16  ;;  %v25430_v1 = vand.u32 4294901760, %v25429_v48 }
0x34b1   : > { %29971 = vmatpush3.msra.mxu0 %v24853_v3  ;;  %29963 = vmatprep.subr.mxu1 %v24870_v23  ;;  %v25423_v15 = vand.u32 4294901760, %v25422_v5  ;;  %v26742_v5 = vld [vmem:[%s35927_s20] ss:$0 sm:$0xff] }
0x34b2   : > { %29972 = vmatprep.subr.mxu0 %v24860_v17  ;;  %29964 = vmatpush3.msra.mxu1 %v24870_v23  ;;  %v25437_v18 = vand.u32 4294901760, %v25436_v44 }
0x34b3   : > { %29965 = vmatprep.mubr.f32.mxu1 %v35920_v39  ;;  %29973 = vmatpush3.msra.mxu0 %v24860_v17 }
0x34b4   : > { %29966 = vmatmul.mubr.f32.vlgmr.msra.gmra.mxu1 %v35921_v30  ;;  %29974 = vmatprep.subr.mxu0 %v24867_v49 }
0x34b5   : > { %29979 = vmatprep.subr.mxu1 %v35180_v4  ;;  %29975 = vmatpush3.msra.mxu0 %v24867_v49 }
0x34b6   : > { %29976 = vmatprep.mubr.f32.mxu0 %v35922_v51  ;;  %29980 = vmatpush3.msra.mxu1 %v35180_v4 }
0x34b7   : > { %29977 = vmatmul.mubr.f32.vlgmr.msra.gmra.mxu0 %v35923_v12  ;;  %29981 = vmatprep.subr.mxu1 %v35187_v19 }
0x34b8   : > { %29990 = vmatprep.subr.mxu0 %v35205_v33  ;;  %29982 = vmatpush3.msra.mxu1 %v35187_v19 }
0x34b9   : > { %29991 = vmatpush3.msra.mxu0 %v35205_v33  ;;  %29983 = vmatprep.subr.mxu1 %v35192_v20 }
0x34ba   : > { %29992 = vmatprep.subr.mxu0 %v24854_v36  ;;  %29984 = vmatpush3.msra.mxu1 %v35192_v20 }
0x34bb   : > { %29993 = vmatpush3.msra.mxu0 %v24854_v36  ;;  %29985 = vmatprep.subr.mxu1 %v35197_v24 }
0x34bc   : > { %29994 = vmatprep.subr.mxu0 %v24861_v25  ;;  %29986 = vmatpush3.msra.mxu1 %v35197_v24 }
0x34bd   : > { %29987 = vmatprep.mubr.f32.mxu1 %v35924_v31  ;;  %29995 = vmatpush3.msra.mxu0 %v24861_v25 }
0x34be   : > { %29988 = vmatmul.mubr.f32.vlgmr.msra.gmra.mxu1 %v35925_v14  ;;  %29996 = vmatprep.subr.mxu0 %v24868_v55 }
0x34bf   : > { %30001 = vmatprep.subr.mxu1 %v35180_v4  ;;  %29997 = vmatpush3.msra.mxu0 %v24868_v55 }
0x34c0   : > { %29998 = vmatprep.mubr.f32.mxu0 %v35920_v39  ;;  %30002 = vmatpush3.msra.mxu1 %v35180_v4 }
0x34c1   : > { %29999 = vmatmul.mubr.f32.vlgmr.msra.gmra.mxu0 %v35921_v30  ;;  %30003 = vmatprep.subr.mxu1 %v35187_v19 }
0x34c2   : > { %30004 = vmatpush3.msra.mxu1 %v35187_v19  ;;  %30009 = vmatprep.mubr.f32.mxu1 %v35920_v39 }
0x34c3   : > { %30005 = vmatprep.subr.mxu1 %v35192_v20  ;;  %30012 = vmatprep.subr.mxu0 %v35267_v50 }
0x34c4   : > { %30006 = vmatpush3.msra.mxu1 %v35192_v20  ;;  %30013 = vmatpush3.msra.mxu0 %v35267_v50 }
0x34c5   : > { %30007 = vmatprep.subr.mxu1 %v35197_v24  ;;  %30014 = vmatprep.subr.mxu0 %v35269_v0 }
0x34c6   : > { %30008 = vmatpush3.msra.mxu1 %v35197_v24  ;;  %30015 = vmatpush3.msra.mxu0 %v35269_v0 }
0x34c7   : > { %30010 = vmatmul.mubr.f32.vlgmr.msra.gmra.mxu1 %v35921_v30  ;;  %30016 = vmatprep.subr.mxu0 %v35271_v43 }
0x34c8   : > { %30017 = vmatpush3.msra.mxu0 %v35271_v43  ;;  %30023 = vmatprep.subr.mxu1 %v25423_v15 }
0x34c9   : > { %30018 = vmatprep.subr.mxu0 %v35274_v7  ;;  %30024 = vmatpush3.msra.mxu1 %v25423_v15 }
0x34ca   : > { %30019 = vmatpush3.msra.mxu0 %v35274_v7  ;;  %30025 = vmatprep.subr.mxu1 %v25430_v1 }
0x34cb   : > { %30034 = vmatprep.subr.mxu0 %v35277_v60  ;;  %30026 = vmatpush3.msra.mxu1 %v25430_v1 }
0x34cc   : > { %30027 = vmatprep.subr.mxu1 %v25437_v18 }
0x34cd   : > { %30028 = vmatpush3.msra.mxu1 %v25437_v18 }
0x34ce   : > { %30029 = vmatprep.subr.mxu1 %v25444_v34 }
0x34cf   : > { %30030 = vmatpush3.msra.mxu1 %v25444_v34 }
0x34d0   : > { %30045 = vmatprep.subr.mxu1 %v35267_v50 }
0x3550   : > { %v29890_v53 = vpop.f32.mrf.mxu0 }
0x3552   : > { %v24278_v10 = vpop.f32.mrf.mxu0 }
0x3556   : > { %v29901_v63 = vpop.f32.mrf.mxu1 }
0x3557   : > { %v24386_v6 = vadd.f32 %v29901_v63, %v29890_v53 }
0x3558   : > { %v24379_v59 = vpop.f32.mrf.mxu1 }
0x3559   : > { %v29912_v52 = vpop.f32.mrf.mxu0  ;;  %v24380_v45 = vadd.f32 %v24379_v59, %v24278_v10 }
0x355a   : > { %v24473_v11 = vadd.f32 %v29912_v52, %v24386_v6 }
0x355b   : > { %v24465_v4 = vpop.f32.mrf.mxu0 }
0x355c   : > { %v24466_v20 = vadd.f32 %v24465_v4, %v24380_v45 }
0x3560   : > { %v29923_v26 = vpop.f32.mrf.mxu1 }
0x3561   : > { %v24558_v42 = vadd.f32 %v29923_v26, %v24473_v11 }
0x3562   : > { %v24549_v19 = vpop.f32.mrf.mxu1 }
0x3563   : > { %v29934_v21 = vpop.f32.mrf.mxu0  ;;  %v24550_v3 = vadd.f32 %v24549_v19, %v24466_v20 }
0x3564   : > { %v24647_v17 = vadd.f32 %v29934_v21, %v24558_v42  ;;  %v35928_v21 = vld [vmem:[#allocation137_spill] sm:$0xff] }
0x3565   : > { %v24640_v33 = vpop.f32.mrf.mxu0 }
0x3566   : > { %v24641_v57 = vadd.f32 %v24640_v33, %v24550_v3 }
0x356a   : > { %v29945_v24 = vpop.f32.mrf.mxu1 }
0x356b   : > { %v24728_v25 = vadd.f32 %v29945_v24, %v24647_v17  ;;  %v35929_v24 = vld [vmem:[#allocation138_spill] sm:$0xff] }
0x356c   : > { %v24721_v36 = vpop.f32.mrf.mxu1 }
0x356d   : > { %v29956_v49 = vpop.f32.mrf.mxu0  ;;  %v24722_v55 = vadd.f32 %v24721_v36, %v24641_v57 }
0x356e   : > { %v24817_v56 = vadd.f32 %v29956_v49, %v24728_v25 }
0x356f   : > { %v24806_v22 = vpop.f32.mrf.mxu0 }
0x3570   : > { %v24807_v35 = vadd.f32 %v24806_v22, %v24722_v55 }
0x3574   : > { %v29967_v37 = vpop.f32.mrf.mxu1 }
0x3575   : > { %v24914_v41 = vadd.f32 %v29967_v37, %v24817_v56 }
0x3576   : > { %v24907_v27 = vpop.f32.mrf.mxu1 }
0x3577   : > { %v29978_v13 = vpop.f32.mrf.mxu0  ;;  %v24908_v38 = vadd.f32 %v24907_v27, %v24807_v35 }
0x3578   : > { %v25001_v30 = vadd.f32 %v29978_v13, %v24914_v41 }
0x3579   : > { %v24993_v39 = vpop.f32.mrf.mxu0 }
0x357a   : > { %v24994_v31 = vadd.f32 %v24993_v39, %v24908_v38 }
0x357e   : > { %v29989_v23 = vpop.f32.mrf.mxu1 }
0x357f   : > { %v25086_v14 = vadd.f32 %v29989_v23, %v25001_v30 }
0x3580   : > { %v25077_v51 = vpop.f32.mrf.mxu1 }
0x3581   : > { %v30000_v12 = vpop.f32.mrf.mxu0  ;;  %v25078_v62 = vadd.f32 %v25077_v51, %v24994_v31 }
0x3582   : > { %v25175_v47 = vadd.f32 %v30000_v12, %v25086_v14 }
0x3583   : > { %v25168_v40 = vpop.f32.mrf.mxu0 }
0x3584   : > { %v25169_v48 = vadd.f32 %v25168_v40, %v25078_v62 }
0x3587   : > { %v30011_v61 = vpop.f32.mrf.mxu1 }
0x3588   : > { %v25256_v44 = vadd.f32 %v30011_v61, %v25175_v47 }
0x3589   : > { %v25249_v15 = vpop.f32.mrf.mxu1 }
0x358a   : > { %v25267_v1 = vadd.f32 %v26742_v5, %v25256_v44  ;;  %v25250_v29 = vadd.f32 %v25249_v15, %v25169_v48 }
0x358c   : > { %v25269_v18 = vsub.f32 0.0, %v25267_v1  ;;  %v25266_v34 = vadd.f32 %v26742_v5, %v25250_v29 }
0x358e   : > { %v25272_v53 = vmul.f32 1.442695, %v25269_v18  ;;  %v25268_v10 = vsub.f32 0.0, %v25266_v34 }
0x3590   : > { %30432 = vpow2.f32 %v25272_v53  ;;  %v25270_v63 = vmul.f32 1.442695, %v25268_v10 }
0x3592   : > { %30434 = vpow2.f32 %v25270_v63 }
0x359d   : > { %v30433_v59 = vpop.eup %30432 }
0x359e   : > { %v25275_v52 = vadd.f32 1.0, %v30433_v59 }
0x359f   : > { %v30435_v6 = vpop.eup %30434 }
0x35a0   : > { %30436 = vrcp.f32 %v25275_v52  ;;  %v25274_v26 = vadd.f32 1.0, %v30435_v6 }
0x35a2   : > { %30438 = vrcp.f32 %v25274_v26 }
0x35ad   : > { %v30437_v45 = vpop.eup %30436 }
0x35ae   : > { %v25283_v4 = vsub.f32 1.0, %v30437_v45  ;;  %v25281_v20 = vmul.f32 %v30437_v45, %v35928_v21 }
0x35af   : > { %v30439_v11 = vpop.eup %30438 }
0x35b0   : > { %v25282_v19 = vsub.f32 1.0, %v30439_v11  ;;  %v25285_v42 = vmul.f32 %v25283_v4, %v35114_v58  ;;  %v25280_v3 = vmul.f32 %v30439_v11, %v35929_v24 }
0x35b2   : > { %v25284_v33 = vmul.f32 %v25282_v19, %v35116_v28  ;;  %v25287_v17 = vadd.f32 %v25285_v42, %v25281_v20 }
0x35b4   : > { %v25286_v36 = vadd.f32 %v25284_v33, %v25280_v3  ;;  %v25303_v49 = vsel %vm2298_vm1, %v25287_v17, 0 }
0x35b5   : > { %v25384_v57 = vand.u32 4294901760, %v25303_v49 }
0x35b6   : > { %v25300_v25 = vsel %vm2298_vm1, %v25286_v36, 0 }
0x35b7   : > { %v25374_v37 = vand.u32 4294901760, %v25300_v25  ;;  %v25385_v55 = vsub.f32 %v25303_v49, %v25384_v57 }
0x35b9   : > { %30031 = vmatprep.mubr.f32.mxu1 %v25374_v37  ;;  %v25375_v22 = vsub.f32 %v25300_v25, %v25374_v37  ;;  %v25386_v56 = vand.u32 4294901760, %v25385_v55 }
0x35ba   : > { %30032 = vmatmul.mubr.f32.vlgmr.msra.gmra.mxu1 %v25384_v57 }
0x35bb   : > { %30046 = vmatpush3.msra.mxu1 %v35267_v50  ;;  %v25376_v58 = vand.u32 4294901760, %v25375_v22  ;;  %v25387_v27 = vsub.f32 %v25385_v55, %v25386_v56 }
0x35bc   : > { %30047 = vmatprep.subr.mxu1 %v35269_v0 }
0x35bd   : > { %30048 = vmatpush3.msra.mxu1 %v35269_v0  ;;  %30053 = vmatprep.mubr.f32.mxu1 %v25376_v58  ;;  %v25377_v28 = vsub.f32 %v25375_v22, %v25376_v58  ;;  %v25388_v35 = vand.u32 4294901760, %v25387_v27 }
0x35be   : > { %30049 = vmatprep.subr.mxu1 %v35271_v43 }
0x35bf   : > { %30050 = vmatpush3.msra.mxu1 %v35271_v43  ;;  %v25378_v13 = vand.u32 4294901760, %v25377_v28 }
0x35c0   : > { %30051 = vmatprep.subr.mxu1 %v35274_v7 }
0x35c1   : > { %30052 = vmatpush3.msra.mxu1 %v35274_v7  ;;  %30020 = vmatprep.mubr.f32.mxu0 %v25378_v13 }
0x35c2   : > { %30054 = vmatmul.mubr.f32.vlgmr.msra.gmra.mxu1 %v25386_v56  ;;  %30067 = vmatprep.subr.mxu1 %v35267_v50 }
0x35c3   : > { %30021 = vmatmul.mubr.f32.vlgmr.msra.gmra.mxu0 %v25388_v35  ;;  %30068 = vmatpush3.msra.mxu1 %v35267_v50 }
0x35c4   : > { %30035 = vmatpush3.msra.mxu0 %v35277_v60  ;;  %30075 = vmatprep.mubr.f32.mxu1 %v25374_v37 }
0x35c5   : > { %30036 = vmatprep.subr.mxu0 %v35280_v8  ;;  %30042 = vmatprep.mubr.f32.mxu0 %v25375_v22 }
0x35c6   : > { %30069 = vmatprep.subr.mxu1 %v35269_v0  ;;  %30037 = vmatpush3.msra.mxu0 %v35280_v8 }
0x35c7   : > { %30070 = vmatpush3.msra.mxu1 %v35269_v0  ;;  %30038 = vmatprep.subr.mxu0 %v35283_v46  ;;  %v26743_v0 = vld [vmem:[#allocation42] ss:$0 sm:$0xff] }
0x35c8   : > { %30071 = vmatprep.subr.mxu1 %v35271_v43  ;;  %30039 = vmatpush3.msra.mxu0 %v35283_v46 }
0x35c9   : > { %30072 = vmatpush3.msra.mxu1 %v35271_v43  ;;  %30040 = vmatprep.subr.mxu0 %v35287_v54 }
0x35ca   : > { %30073 = vmatprep.subr.mxu1 %v35274_v7  ;;  %30041 = vmatpush3.msra.mxu0 %v35287_v54 }
0x35cb   : > { %30074 = vmatpush3.msra.mxu1 %v35274_v7  ;;  %30043 = vmatmul.mubr.f32.vlgmr.msra.gmra.mxu0 %v25385_v55 }
0x35cc   : > { %30056 = vmatprep.subr.mxu0 %v35291_v9  ;;  %30076 = vmatmul.mubr.f32.vlgmr.msra.gmra.mxu1 %v25384_v57 }
0x35cd   : > { %30057 = vmatpush3.msra.mxu0 %v35291_v9  ;;  %30064 = vmatprep.mubr.f32.mxu0 %v25374_v37 }
0x35ce   : > { %30058 = vmatprep.subr.mxu0 %v35294_v2 }
0x35cf   : > { %30059 = vmatpush3.msra.mxu0 %v35294_v2 }
0x35d0   : > { %30060 = vmatprep.subr.mxu0 %v35297_v16 }
0x35d1   : > { %30061 = vmatpush3.msra.mxu0 %v35297_v16 }
0x35d2   : > { %30062 = vmatprep.subr.mxu0 %v35301_v32 }
0x35d3   : > { %30063 = vmatpush3.msra.mxu0 %v35301_v32 }
0x35d4   : > { %30065 = vmatmul.mubr.f32.vlgmr.msra.gmra.mxu0 %v25384_v57 }
0x367a   : > { %v30033_v43 = vpop.f32.mrf.mxu1 }
0x367c   : > { %v25481_v54 = vpop.f32.mrf.mxu1 }
0x3682   : > { %v30055_v2 = vpop.f32.mrf.mxu1 }
0x3683   : > { %v30022_v50 = vpop.f32.mrf.mxu0 }
0x3684   : > { %v25391_v60 = vadd.f32 %v30022_v50, %v26743_v0  ;;  %v25651_v39 = vpop.f32.mrf.mxu1 }
0x3685   : > { %v25380_v7 = vpop.f32.mrf.mxu0 }
0x3686   : > { %v25381_v8 = vadd.f32 %v26743_v0, %v25380_v7  ;;  %v25488_v9 = vadd.f32 %v30033_v43, %v25391_v60 }
0x3688   : > { %v25482_v16 = vadd.f32 %v25481_v54, %v25381_v8 }
0x368b   : > { %v30044_v46 = vpop.f32.mrf.mxu0 }
0x368c   : > { %v25575_v38 = vadd.f32 %v30044_v46, %v25488_v9  ;;  %v30077_v32 = vpop.f32.mrf.mxu1 }
0x368d   : > { %v25567_v41 = vpop.f32.mrf.mxu0 }
0x368e   : > { %v25568_v23 = vadd.f32 %v25567_v41, %v25482_v16  ;;  %v25660_v30 = vadd.f32 %v30055_v2, %v25575_v38  ;;  %v25823_v47 = vpop.f32.mrf.mxu1 }
0x3690   : > { %v25652_v31 = vadd.f32 %v25651_v39, %v25568_v23 }
0x3694   : > { %v30066_v51 = vpop.f32.mrf.mxu0 }
0x3695   : > { %v25749_v12 = vadd.f32 %v30066_v51, %v25660_v30 }
0x3696   : > { %v25742_v14 = vpop.f32.mrf.mxu0 }
0x3697   : > { %v25830_v62 = vadd.f32 %v30077_v32, %v25749_v12  ;;  %v25743_v40 = vadd.f32 %v25742_v14, %v25652_v31 }
0x3699   : > { %25834 = vst.msk [vmem:[%s32466_s25 + $0x8] sm:$0xff] %vm2298_vm1, %v25830_v62  ;;  %v25824_v61 = vadd.f32 %v25823_v47, %v25743_v40 }
0x369b   : > { %25833 = vst.msk [vmem:[%s32466_s25] sm:$0xff] %vm2298_vm1, %v25824_v61 }
0x369c PF: > { %s35930_s28 = sld [smem:[#allocation113_spill]]  ;;  %s25877_s18 = sshll.u32 %s32468_s11, 4  ;;  %s35362_s18 = int_to_ptr.vmem [resolvable:$true] %s25877_s18 }
0x369d   : > { %s35931_s8 = sld [smem:[#allocation112_spill]]  ;;  %s25841_s0 = scalar_lea.sflag [#allocation45], %s32337_s29 }
0x369e   : > { %s35932_s1 = sld [smem:[#allocation103_spill]]  ;;  %s31090_s14 = scalar_lea.vmem %s35362_s18, 256 }
0x369f   : > { %s35934_s23 = sld [smem:[#allocation104_spill]]  ;;  %p31091_p11 = scmp.ne.s32.totalorder %s35362_s18, %s31090_s14 }
0x36a0   : > { %p35936_p2 = scmp.ne.s32.totalorder %s35737_s5, 0  ;;  %s31422_s30 = smov [#allocation44]  }
0x36a1   : > { %s31094_s21 = sshll.u32 %s31422_s30, 4  ;;  %s31095_s21 = int_to_ptr.vmem [resolvable:$false] %s31094_s21 }
0x36a2   : > { %s26749_s26 = sshll.u32 %s35930_s28, 1  ;;  %p31092_p3 = pnand %p31091_p11, %p35936_p2 }
0x36a3   : > { %s26750_s22 = sshll.u32 %s35931_s8, 2  ;;  %s31096_s11 = scalar_lea.vmem %s31095_s21, 512 }
0x36a4   : > { %s35933_s4 = smov %s35932_s1  ;;  %s25874_s15 = sadd.s32 %s26750_s22, %s26749_s26 }
0x36a5   : > { %s35935_s6 = smov %s35934_s23  ;;  %s26751_s7 = sshll.u32 %s25874_s15, 7 }
0x36a6   : > { %s35365_s3 = scalar_lea.hbm %s35932_s1, %s26751_s7  ;;  %s35368_s16 = scalar_lea.hbm %s35934_s23, %s26751_s7 }
0x36a7   : > { %p31093_p0 = pneg %p31092_p3  ;;  %p31097_p5 = scmp.lt.s32.totalorder %s35362_s18, %s31095_s21 }
0x36a8   : > { %p31098_p8 = scmp.lt.s32.totalorder %s31096_s11, %s31090_s14 }
0x36aa   : > { %p31099_p1 = por %p31098_p8, %p31097_p5 }
0x36ac   : > { %p31100_p4 = pnand %p31099_p1, %p31093_p0 }
0x36ae   : > { %31103 = shalt.err (!%p31100_p4)
}
0x36af   : > { %s31104_s13 = scalar_lea.hbm %s35365_s3, 256  ;;  %s31108_s2 = scalar_lea.hbm %s35933_s4, 1024 }
0x36b0   : > { %p31105_p7 = scmp.ne.s32.totalorder %s35365_s3, %s31104_s13  ;;  %p31109_p9 = scmp.lt.s32.totalorder %s35365_s3, %s35933_s4 }
0x36b1   : > { %p31110_p6 = scmp.lt.s32.totalorder %s31108_s2, %s31104_s13 }
0x36b2   : > { %p31106_p12 = pnand %p31105_p7, %p35936_p2 }
0x36b3   : > { %p31111_p10 = por %p31110_p6, %p31109_p9 }
0x36b4   : > { %p31107_p13 = pneg %p31106_p12 }
0x36b6   : > { %p31112_p11 = pnand %p31111_p10, %p31107_p13 }
0x36b8   : > { %31115 = shalt.err (!%p31112_p11)
}
0x36b9   : > { %s31423_s27 = smov 128   ;;  %s35937_s24 = sld [smem:[#allocation102_spill]] }
0x36ba   : > { %s35938_s19 = sld [smem:[#allocation126_spill]]  ;;  %s26771_s8 = sshll.u32 %s35930_s28, 8 }
0x36bb   : > { %s35939_s20 = sld [smem:[#allocation122_spill]]  ;;  %s25859_s23 = sshll.u32 %s32466_s25, 4  ;;  %s35397_s23 = int_to_ptr.vmem [resolvable:$true] %s25859_s23 }
0x36bc   : > { %30133 = dma.vmem_to_hbm [thread:$0]  (%p35936_p2), %s35362_s18, 256, %s35365_s3, %s25841_s0, %s31423_s27, %s31423_s27, %s31420_s10  }
0x36bd   : > { %s25895_s26 = sshll.u32 %s32470_s12, 4  ;;  %s31116_s15 = scalar_lea.vmem %s35397_s23, 256  ;;  %s25896_s26 = int_to_ptr.vmem [resolvable:$true] %s25895_s26 }
0x36be   : > { %p31117_p3 = scmp.ne.s32.totalorder %s35397_s23, %s31116_s15  ;;  %s31424_s7 = smov [#allocation43]  }
0x36bf   : > { %s35394_s1 = scalar_lea.hbm %s35937_s24, %s26771_s8  ;;  %s31120_s14 = sshll.u32 %s31424_s7, 4  ;;  %s31121_s14 = int_to_ptr.vmem [resolvable:$false] %s31120_s14 }
0x36c0   : > { %s25836_s22 = scalar_lea.sflag [#allocation6], %s35938_s19  ;;  %s31122_s18 = scalar_lea.vmem %s31121_s14, 512 }
0x36c1   : > { %p35940_p0 = scmp.ne.s32.totalorder %s35939_s20, 0  ;;  %p31123_p1 = scmp.lt.s32.totalorder %s35397_s23, %s31121_s14 }
0x36c2   : > { %p31124_p4 = scmp.lt.s32.totalorder %s31122_s18, %s31116_s15 }
0x36c3   : > { %p31118_p5 = pnand %p31117_p3, %p35940_p0 }
0x36c4   : > { %p31125_p7 = por %p31124_p4, %p31123_p1 }
0x36c5   : > { %p31119_p8 = pneg %p31118_p5 }
0x36c7   : > { %p31126_p12 = pnand %p31125_p7, %p31119_p8 }
0x36c9   : > { %31129 = shalt.err (!%p31126_p12)
}
0x36ca   : > { %s31130_s25 = scalar_lea.hbm %s35394_s1, 256  ;;  %s31134_s28 = scalar_lea.hbm %s35937_s24, 512 }
0x36cb   : > { %p31131_p13 = scmp.ne.s32.totalorder %s35394_s1, %s31130_s25  ;;  %p31135_p10 = scmp.lt.s32.totalorder %s35394_s1, %s35937_s24 }
0x36cc   : > { %p31136_p11 = scmp.lt.s32.totalorder %s31134_s28, %s31130_s25 }
0x36cd   : > { %p31132_p9 = pnand %p31131_p13, %p35940_p0 }
0x36ce   : > { %p31137_p3 = por %p31136_p11, %p31135_p10 }
0x36cf   : > { %p31133_p6 = pneg %p31132_p9 }
0x36d1   : > { %p31138_p5 = pnand %p31137_p3, %p31133_p6 }
0x36d3   : > { %31141 = shalt.err (!%p31138_p5)
}
0x36d4   : > { %30132 = dma.vmem_to_hbm [thread:$0]  (%p35940_p0), %s35397_s23, 256, %s35394_s1, %s25836_s22, %s31423_s27, %s31423_s27, %s31420_s10  }
0x36d5   : > { %s31142_s3 = scalar_lea.vmem %s25896_s26, 256  ;;  %s31425_s30 = smov [#allocation46]  }
0x36d6   : > { %p31143_p8 = scmp.ne.s32.totalorder %s25896_s26, %s31142_s3  ;;  %s31146_s21 = sshll.u32 %s31425_s30, 4  ;;  %s31147_s21 = int_to_ptr.vmem [resolvable:$false] %s31146_s21 }
0x36d7   : > { %s31148_s11 = scalar_lea.vmem %s31147_s21, 512  ;;  %p31149_p7 = scmp.lt.s32.totalorder %s25896_s26, %s31147_s21 }
0x36d8   : > { %p31144_p1 = pnand %p31143_p8, %p35936_p2  ;;  %p31150_p12 = scmp.lt.s32.totalorder %s31148_s11, %s31142_s3 }
0x36da   : > { %p31145_p4 = pneg %p31144_p1  ;;  %p31151_p13 = por %p31150_p12, %p31149_p7 }
0x36dc   : > { %p31152_p9 = pnand %p31151_p13, %p31145_p4 }
0x36de   : > { %31155 = shalt.err (!%p31152_p9)
}
0x36df   : > { %s31156_s12 = scalar_lea.hbm %s35368_s16, 256  ;;  %s31160_s13 = scalar_lea.hbm %s35935_s6, 1024 }
0x36e0   : > { %p31157_p0 = scmp.ne.s32.totalorder %s35368_s16, %s31156_s12  ;;  %p31161_p11 = scmp.lt.s32.totalorder %s35368_s16, %s35935_s6 }
0x36e1   : > { %p31162_p3 = scmp.lt.s32.totalorder %s31160_s13, %s31156_s12 }
0x36e2   : > { %p31158_p6 = pnand %p31157_p0, %p35936_p2 }
0x36e3   : > { %p31163_p5 = por %p31162_p3, %p31161_p11 }
0x36e4   : > { %p31159_p10 = pneg %p31158_p6 }
0x36e6   : > { %p31164_p8 = pnand %p31163_p5, %p31159_p10 }
0x36e8   : > { %31167 = shalt.err (!%p31164_p8)
}
0x36e9   : > { %30134 = dma.vmem_to_hbm [thread:$0]  (%p35936_p2), %s25896_s26, 256, %s35368_s16, %s25841_s0, %s31423_s27, %s31423_s27, %s31420_s10  }
0x36ea PF: > { %s35941_s2 = sld [smem:[#allocation116_spill]] }
0x36eb   : > { %s35942_s19 = sld [smem:[#allocation109_spill]] }
0x36ec   : > { %s35943_s20 = sld [smem:[#allocation123_spill]] }
0x36f0   : > { %p30159_p1 = scmp.ge.s32.totalorder %s35941_s2, 2 }
0x36f1   : > { %s25910_s8 = sand.u32 1, %s35942_s19  }
0x36f2   : > { %p35944_p4 = scmp.ne.s32.totalorder %s35943_s20, 0  ;;  %s25911_s1 = scalar_lea.sflag [#allocation6], %s25910_s8 }
0x36f4   : > { %p30146_p7 = pnand %p30159_p1, %p35944_p4 }
0x36f6   : > { %p30147_p12 = pneg %p30146_p7 }
0x36f8   : > { %31281 = dma.done.wait (%p30147_p12), %s25911_s1, 256  }
0x36f9   : > { %31283 = vsyncadd (%p30147_p12), %s25911_s1, 4294967040  ;;  %s35945_s5 = sadd.s32 4294967294, %s35941_s2   ;;  %s35946_s23 = sld [smem:[#allocation125_spill]] }
0x36fa   : > { %s25919_s22 = sand.u32 1, %s35945_s5  }
0x36fb   : > { %s25920_s29 = scalar_lea.sflag [#allocation45], %s25919_s22 }
0x36ff   : > { %p35947_p13 = scmp.ne.s32.totalorder %s35946_s23, 0 }
0x3701   : > { %p30149_p9 = pnand %p30159_p1, %p35947_p13 }
0x3703   : > { %p30150_p0 = pneg %p30149_p9 }
0x3705   : > { %31285 = dma.done.wait (%p30150_p0), %s25920_s29, 512  }
0x3706   : > { %31287 = vsyncadd (%p30150_p0), %s25920_s29, 4294966784  ;;  %s137_s3 = sadd.s32 1, %s35941_s2   ;;  %s35949_s0 = sld [smem:[#allocation105_spill]] }
0x3707   : > { %p35448_p2 = scmp.ge.s32.totalorder %s137_s3, 6   ;;  %s35950_s7 = sld [smem:[#allocation106_spill]] }
0x3708   : > { %s35951_s16 = sld [smem:[#allocation124_spill]] }
0x3709   : > { %s35952_s11 = sld [smem:[#allocation107_spill]] }
0x370a   : > { %s35953_s15 = sld [smem:[#allocation108_spill]] }
0x370b   : > { %s35954_s27 = sld [smem:[#allocation120_spill]] }
0x370c   : > { %s35955_s18 = sld [smem:[#allocation110_spill]] }
0x370d   : > { %s35956_s22 = sld [smem:[#allocation111_spill]] }
0x370e   : > { %s35957_s23 = sld [smem:[#allocation121_spill]]  ;;  %s35963_s10 = smov %s35951_s16 }
0x370f   : > { %s35958_s26 = sld [smem:[#allocation114_spill]]  ;;  %136 = sbr.rel (!%p35448_p2) target bundleno = 122 (0x7a), region = 613 }
0x3710   : > { %s35959_s28 = sld [smem:[#allocation115_spill]] }
0x3711   : > { %s35960_s1 = sld [smem:[#allocation117_spill]]  ;;  %s35964_s16 = smov %s35954_s27 }
0x3712   : > { %s35961_s2 = sld [smem:[#allocation118_spill]] }
0x3714   :  { %25934 = vsyncpa [#allocation5], 1 }
0x3715   :  { %25936 = vsyncpa [#allocation5 + $0x1], 1 }
0x3716   :  { %25937 = vsyncpa [#allocation8], 1 }
0x3717   :  { %25939 = vsyncpa [#allocation8 + $0x1], 1 }
0x3718   :  { %25940 = vsyncpa [#allocation11], 1 }
0x3719   :  { %25942 = vsyncpa [#allocation11 + $0x1], 1 }
0x371a   :  { %25943 = vsyncpa [#allocation14], 1 }
0x371b   :  { %25945 = vsyncpa [#allocation14 + $0x1], 1 }
0x371c   :  { %25946 = vsyncpa [#allocation17], 1 }
0x371d   :  { %25948 = vsyncpa [#allocation17 + $0x1], 1 }
0x371e   :  { %25949 = vsyncpa [#allocation20], 1 }
0x371f   :  { %25951 = vsyncpa [#allocation20 + $0x1], 1 }
0x3720   :  { %25952 = vsyncpa [#allocation23], 1 }
0x3721   :  { %25954 = vsyncpa [#allocation23 + $0x1], 1 }
0x3722   :  { %25955 = vsyncpa [#allocation26], 1 }
0x3723   :  { %25957 = vsyncpa [#allocation26 + $0x1], 1 }
0x3724   :  { %25958 = vsyncpa [#allocation29], 1 }
0x3725   :  { %25960 = vsyncpa [#allocation29 + $0x1], 1 }
0x3726   :  { %25961 = vsyncpa [#allocation32], 1 }
0x3727   :  { %25963 = vsyncpa [#allocation32 + $0x1], 1 }
0x3728   :  { %25964 = vsyncpa [#allocation35], 1 }
0x3729   :  { %25966 = vsyncpa [#allocation35 + $0x1], 1 }
0x372a   :  { %25967 = vsyncpa [#allocation38], 1 }
0x372b   :  { %25969 = vsyncpa [#allocation38 + $0x1], 1 }
0x372c   :  { %25970 = vsyncpa [#allocation41], 1 }
0x372d   :  { %25971 = vsyncpa [#allocation6], 1 }
0x372e   :  { %25973 = vsyncpa [#allocation6 + $0x1], 1 }
0x372f   :  { %25974 = vsyncpa [#allocation45], 1 }
0x3730   :  { %25976 = vsyncpa [#allocation45 + $0x1], 1 }

</bundles_post_ra>
